<compile_context>
chip_gen: v7x
topology: tpu7x:2x2x1
jax: 0.10.0
libtpu: 0.0.40
codegen_flags: <defaults>
</compile_context>

<pallas_src>
import jax
import jax.numpy as jnp
from jax.experimental import pallas as pl
from jax.experimental.pallas import tpu as pltpu


# ---------------------------------------------------------------------------
# Helpers
# ---------------------------------------------------------------------------
def _round_up(x, m):
    return (x + m - 1) // m * m


def _vmem_limit_bytes():
    # v7x has only 64 MiB VMEM per TensorCore; leave headroom for double-buffering.
    try:
        cap = pltpu.get_tpu_info().vmem_capacity_bytes
    except Exception:
        cap = 64 * 1024 * 1024
    return int(min(cap * 3 // 4, 64 * 1024 * 1024))


_VMEM_LIMIT = _vmem_limit_bytes()


def _choose_tk(K):
    """Pick a K tile that is a multiple of 128, <= 1024, with minimal zero-padding."""
    kp128 = _round_up(K, 128)
    if kp128 <= 1024:
        return kp128
    best, best_pad = 512, _round_up(K, 512) - K
    for cand in range(1024, 127, -128):
        pad = _round_up(K, cand) - K
        if pad < best_pad or (pad == best_pad and cand > best):
            best, best_pad = cand, pad
    return best


# ---------------------------------------------------------------------------
# Fused tiled matmul + BN(+residual)(+ReLU) epilogue  (the only compute-heavy kernel)
# ---------------------------------------------------------------------------
def fused_matmul(a, b, scale, bias, residual=None, relu=False):
    """out = [relu]((a @ b) * scale + bias [+ residual])

    a: (M, K) activations (cast to bf16), b: (K, N) weights (cast to bf16),
    scale/bias: (N,) folded eval-mode BN (or 1/bias for plain linear),
    residual: optional (M, N) f32 added in the epilogue.
    Tiled over (M, N, K); f32 accumulation in VMEM scratch; output f32.
    """
    M, K = a.shape
    K2, N = b.shape
    assert K == K2

    tm = min(256, _round_up(M, 8))
    tn = min(256, _round_up(N, 128))
    tk = _choose_tk(K)

    Mp, Np, Kp = _round_up(M, tm), _round_up(N, tn), _round_up(K, tk)
    gm, gn, gk = Mp // tm, Np // tn, Kp // tk

    a_p = jnp.pad(a.astype(jnp.bfloat16), ((0, Mp - M), (0, Kp - K)))
    b_p = jnp.pad(b.astype(jnp.bfloat16), ((0, Kp - K), (0, Np - N)))
    s_p = jnp.pad(scale.astype(jnp.float32), (0, Np - N)).reshape(1, Np)
    c_p = jnp.pad(bias.astype(jnp.float32), (0, Np - N)).reshape(1, Np)

    has_res = residual is not None
    if has_res:
        r_p = jnp.pad(residual.astype(jnp.float32), ((0, Mp - M), (0, Np - N)))

    def body(a_ref, b_ref, s_ref, c_ref, r_ref, o_ref, acc_ref):
        k = pl.program_id(2)

        @pl.when(k == 0)
        def _init():
            acc_ref[...] = jnp.zeros_like(acc_ref)

        acc_ref[...] += jnp.dot(a_ref[...], b_ref[...],
                                preferred_element_type=jnp.float32)

        @pl.when(k == gk - 1)
        def _epilogue():
            y = acc_ref[...] * s_ref[...] + c_ref[...]
            if r_ref is not None:
                y = y + r_ref[...]
            if relu:
                y = jnp.maximum(y, 0.0)
            o_ref[...] = y.astype(o_ref.dtype)

    if has_res:
        def kernel(a_ref, b_ref, s_ref, c_ref, r_ref, o_ref, acc_ref):
            body(a_ref, b_ref, s_ref, c_ref, r_ref, o_ref, acc_ref)
    else:
        def kernel(a_ref, b_ref, s_ref, c_ref, o_ref, acc_ref):
            body(a_ref, b_ref, s_ref, c_ref, None, o_ref, acc_ref)

    in_specs = [
        pl.BlockSpec((tm, tk), lambda i, j, k: (i, k)),
        pl.BlockSpec((tk, tn), lambda i, j, k: (k, j)),
        pl.BlockSpec((1, tn), lambda i, j, k: (0, j)),
        pl.BlockSpec((1, tn), lambda i, j, k: (0, j)),
    ]
    inputs = [a_p, b_p, s_p, c_p]
    if has_res:
        in_specs.append(pl.BlockSpec((tm, tn), lambda i, j, k: (i, j)))
        inputs.append(r_p)

    bytes_accessed = (a_p.size * 2 + b_p.size * 2 + Mp * Np * 4
                      + (Mp * Np * 4 if has_res else 0) + 2 * Np * 4)

    out = pl.pallas_call(
        kernel,
        grid=(gm, gn, gk),
        out_shape=jax.ShapeDtypeStruct((Mp, Np), jnp.float32),
        in_specs=in_specs,
        out_specs=pl.BlockSpec((tm, tn), lambda i, j, k: (i, j)),
        scratch_shapes=[pltpu.VMEM((tm, tn), jnp.float32)],
        compiler_params=pltpu.CompilerParams(
            dimension_semantics=("parallel", "parallel", "arbitrary"),
            vmem_limit_bytes=_VMEM_LIMIT),
        cost_estimate=pl.CostEstimate(
            flops=2 * Mp * Np * Kp, transcendentals=0,
            bytes_accessed=bytes_accessed),
    )(*inputs)
    return out[:M, :N]


# ---------------------------------------------------------------------------
# Pooling kernels
# ---------------------------------------------------------------------------
def pallas_max_over_axis0(x):
    """x: (P, R, L) -> (R, L), max over the leading (patch) axis. L should be lane-dense."""
    P, R, L = x.shape
    tr = min(512, _round_up(R, 8))
    Rp = _round_up(R, tr)
    if Rp != R:
        x = jnp.pad(x, ((0, 0), (0, Rp - R), (0, 0)))

    def kernel(x_ref, o_ref):
        o_ref[...] = jnp.max(x_ref[...], axis=0)

    out = pl.pallas_call(
        kernel,
        grid=(Rp // tr,),
        out_shape=jax.ShapeDtypeStruct((Rp, L), jnp.float32),
        in_specs=[pl.BlockSpec((P, tr, L), lambda i: (0, i, 0))],
        out_specs=pl.BlockSpec((tr, L), lambda i: (i, 0)),
        compiler_params=pltpu.CompilerParams(
            dimension_semantics=("parallel",),
            vmem_limit_bytes=_VMEM_LIMIT),
    )(x)
    return out[:R]


def pallas_mean_over_axis1(x):
    """x: (N, S, C) -> (N, C), mean over spatial axis S (AdaptiveAvgPool2d((1,1)))."""
    N, S, C = x.shape
    inv = 1.0 / float(S)

    def kernel(x_ref, o_ref):
        o_ref[...] = jnp.sum(x_ref[...], axis=1) * inv

    return pl.pallas_call(
        kernel,
        grid=(1,),
        out_shape=jax.ShapeDtypeStruct((N, C), jnp.float32),
        in_specs=[pl.BlockSpec((N, S, C), lambda i: (0, 0, 0))],
        out_specs=pl.BlockSpec((N, C), lambda i: (0, 0)),
        compiler_params=pltpu.CompilerParams(vmem_limit_bytes=_VMEM_LIMIT),
    )(x)


# ---------------------------------------------------------------------------
# JAX glue: conv (im2col) + fused BN epilogue, maxpool patch extraction
# ---------------------------------------------------------------------------
def conv2d_bn(x, w, stride, padding, scale, bias, relu, residual=None):
    """Conv + eval-mode BN (+residual)(+ReLU) via one fused Pallas matmul.
    x: NHWC f32, w: (KH, KW, Cin, Cout)."""
    N, H, W, C = x.shape
    KH, KW, Cin, Cout = w.shape
    assert C == Cin

    if KH == 1 and KW == 1 and padding == 0:
        # 1x1 downsample conv: plain strided-slice matmul, no patch extraction.
        xs = x[:, ::stride, ::stride, :]
        OH, OW = xs.shape[1], xs.shape[2]
        a = xs.reshape(N * OH * OW, Cin)
    else:
        # TODO(synk): fold the (KH, KW) window loop into the matmul grid (shifted-window
        # index_map) so the KH*KW-inflated im2col tensor never round-trips HBM.
        x_pad = jnp.pad(x, ((0, 0), (padding, padding), (padding, padding), (0, 0)))
        OH = (H + 2 * padding - KH) // stride + 1
        OW = (W + 2 * padding - KW) // stride + 1
        patches = []
        for di in range(KH):
            for dj in range(KW):
                patches.append(
                    x_pad[:, di:di + stride * OH:stride,
                          dj:dj + stride * OW:stride, :])
        p = jnp.stack(patches, axis=3)                   # (N, OH, OW, KH*KW, C)
        a = p.reshape(N * OH * OW, KH * KW * C)          # (M, K)

    bmat = w.reshape(KH * KW * Cin, Cout)                # (K, Cout)
    r2 = residual.reshape(N * OH * OW, Cout) if residual is not None else None
    out = fused_matmul(a, bmat, scale, bias, residual=r2, relu=relu)
    return out.reshape(N, OH, OW, Cout)


def maxpool_3x3_s2(x):
    """MaxPool2d(kernel=3, stride=2, padding=1) on NHWC."""
    N, H, W, C = x.shape
    x_pad = jnp.pad(x, ((0, 0), (1, 1), (1, 1), (0, 0)),
                    constant_values=-jnp.inf)
    OH = (H + 2 - 3) // 2 + 1
    OW = (W + 2 - 3) // 2 + 1
    patches = [x_pad[:, di:di + 2 * OH:2, dj:dj + 2 * OW:2, :]
               for di in range(3) for dj in range(3)]
    p = jnp.stack(patches, axis=0)                       # (9, N, OH, OW, C)
    total = N * OH * OW * C
    if total % 128 == 0:
        p2 = p.reshape(9, total // 128, 128)             # lane-dense for unmasked stores
        out = pallas_max_over_axis0(p2)
    else:
        p2 = p.reshape(9, N * OH * OW, C)
        out = pallas_max_over_axis0(p2)
    return out.reshape(N, OH, OW, C)


# ---------------------------------------------------------------------------
# Parameter initialization (synthetic, deterministic)
# ---------------------------------------------------------------------------
def init_params(key, feature_dim=128, num_input_channels=1):
    keys = iter(jax.random.split(key, 256))

    def conv_w(cout, cin, kh, kw):
        fan_in = cin * kh * kw
        return (jax.random.normal(next(keys), (kh, kw, cin, cout), jnp.float32)
                * (2.0 / fan_in) ** 0.5)

    def bn_p(c):
        k1, k2, k3, k4 = jax.random.split(next(keys), 4)
        gamma = 1.0 + 0.1 * jax.random.normal(k1, (c,), jnp.float32)
        beta = 0.1 * jax.random.normal(k2, (c,), jnp.float32)
        mean = 0.1 * jax.random.normal(k3, (c,), jnp.float32)
        var = 1.0 + 0.1 * jnp.abs(jax.random.normal(k4, (c,), jnp.float32))
        eps = 1e-5
        scale = gamma / jnp.sqrt(var + eps)
        bias = beta - mean * scale
        return (scale, bias)

    params = {
        "conv1_w": conv_w(64, num_input_channels, 7, 7),
        "bn1": bn_p(64),
    }

    stage_channels = [64, 128, 256, 512]
    in_ch = 64
    for si, out_ch in enumerate(stage_channels):
        blocks = []
        for b in range(2):
            stride = 2 if (si > 0 and b == 0) else 1
            bp = {
                "conv1_w": conv_w(out_ch, in_ch, 3, 3),
                "bn1": bn_p(out_ch),
                "conv2_w": conv_w(out_ch, out_ch, 3, 3),
                "bn2": bn_p(out_ch),
                "stride": stride,
            }
            if stride != 1 or in_ch != out_ch:
                bp["ds_w"] = conv_w(out_ch, in_ch, 1, 1)
                bp["bn_ds"] = bn_p(out_ch)
            blocks.append(bp)
            in_ch = out_ch
        params[f"layer{si + 1}"] = blocks

    params["fc_w"] = (jax.random.normal(next(keys), (512, feature_dim), jnp.float32)
                      * (1.0 / 512) ** 0.5)
    params["fc_b"] = 0.01 * jax.random.normal(next(keys), (feature_dim,), jnp.float32)
    return params


# ---------------------------------------------------------------------------
# Forward pass (ResNet18 feature extractor)
# ---------------------------------------------------------------------------
def basic_block(x, bp):
    stride = bp["stride"]
    if "ds_w" in bp:
        identity = conv2d_bn(x, bp["ds_w"], stride, 0, *bp["bn_ds"], relu=False)
    else:
        identity = x
    out = conv2d_bn(x, bp["conv1_w"], stride, 1, *bp["bn1"], relu=True)
    out = conv2d_bn(out, bp["conv2_w"], 1, 1, *bp["bn2"], relu=True,
                    residual=identity)
    return out


def resnet_feature_extractor(x_nchw, params):
    # Input is NCHW (PyTorch convention); transpose to NHWC for TPU compute.
    x = jnp.transpose(x_nchw.astype(jnp.float32), (0, 2, 3, 1))
    x = conv2d_bn(x, params["conv1_w"], 2, 3, *params["bn1"], relu=True)   # 7x7/s2/p3 + BN + ReLU
    x = maxpool_3x3_s2(x)
    for si in range(4):
        for bp in params[f"layer{si + 1}"]:
            x = basic_block(x, bp)
    N, H, W, C = x.shape
    pooled = pallas_mean_over_axis1(x.reshape(N, H * W, C))                # AdaptiveAvgPool2d((1,1))
    ones = jnp.ones((params["fc_w"].shape[1],), jnp.float32)
    feats = fused_matmul(pooled, params["fc_w"], ones, params["fc_b"],     # nn.Linear(512, feature_dim)
                         relu=False)
    return feats


# ---------------------------------------------------------------------------
if __name__ == "__main__":
    key = jax.random.PRNGKey(0)
    k_param, k_input = jax.random.split(key)

    feature_dim = 128
    num_input_channels = 1
    params = init_params(k_param, feature_dim=feature_dim,
                         num_input_channels=num_input_channels)

    # Small input consistent with the module (NCHW, 1 channel).
    x = jax.random.normal(k_input, (2, num_input_channels, 32, 32), jnp.float32)

    # Single jit over the whole forward (strides stay static Python ints via closure;
    # XLA overlaps the remaining glue ops with the Pallas kernels).
    fwd = jax.jit(lambda xin: resnet_feature_extractor(xin, params))
    feats = jax.block_until_ready(fwd(x))

    assert feats.shape == (2, feature_dim), feats.shape
    assert bool(jnp.all(jnp.isfinite(feats)))
    print("KERNEL_OK")
</pallas_src>

<mosaic_0001>
module attributes {stable_mosaic.version = 11 : i64} {
  func.func @kernel(%arg0: i32, %arg1: i32, %arg2: i32, %arg3: memref<256x128xbf16, #tpu.memory_space<vmem>>, %arg4: memref<128x128xbf16, #tpu.memory_space<vmem>>, %arg5: memref<1x128xf32, #tpu.memory_space<vmem>>, %arg6: memref<1x128xf32, #tpu.memory_space<vmem>>, %arg7: memref<256x128xf32, #tpu.memory_space<vmem>>, %arg8: memref<256x128xf32, #tpu.memory_space<vmem>>) attributes {dimension_semantics = [#tpu.dimension_semantics<parallel>, #tpu.dimension_semantics<parallel>, #tpu.dimension_semantics<arbitrary>], iteration_bounds = array<i64: 2, 1, 1>, scalar_prefetch = 0 : i64, scratch_operands = 1 : i64, tpu.core_type = #tpu.core_type<tc>, window_params = [{transform_indices = @transform_0, window_bounds = array<i64: 256, 128>}, {transform_indices = @transform_1, window_bounds = array<i64: 128, 128>}, {transform_indices = @transform_2, window_bounds = array<i64: 1, 128>}, {transform_indices = @transform_3, window_bounds = array<i64: 1, 128>}, {transform_indices = @transform_4, window_bounds = array<i64: 256, 128>}]} {
    %c0_i32 = arith.constant 0 : i32
    %0 = arith.cmpi eq, %arg2, %c0_i32 : i32
    %1 = arith.extui %0 : i1 to i32
    %c0_i32_0 = arith.constant 0 : i32
    %2 = arith.cmpi ne, %1, %c0_i32_0 : i32
    scf.if %2 {
      %cst_10 = arith.constant 0.000000e+00 : f32
      %12 = vector.broadcast %cst_10 : f32 to vector<256x128xf32>
      %c0_11 = arith.constant 0 : index
      %c0_12 = arith.constant 0 : index
      %13 = vector.load %arg8[%c0_11, %c0_12] : memref<256x128xf32, #tpu.memory_space<vmem>>, vector<256x128xf32>
      tpu.vector_store %arg8[%c0_11, %c0_12], %12 {strides = array<i32>} : memref<256x128xf32, #tpu.memory_space<vmem>>, vector<256x128xf32>,
    } else {
    }
    %c0 = arith.constant 0 : index
    %c0_1 = arith.constant 0 : index
    %3 = vector.load %arg8[%c0, %c0_1] : memref<256x128xf32, #tpu.memory_space<vmem>>, vector<256x128xf32>
    %c0_2 = arith.constant 0 : index
    %c0_3 = arith.constant 0 : index
    %4 = vector.load %arg3[%c0_2, %c0_3] : memref<256x128xbf16, #tpu.memory_space<vmem>>, vector<256x128xbf16>
    %c0_4 = arith.constant 0 : index
    %c0_5 = arith.constant 0 : index
    %5 = vector.load %arg4[%c0_4, %c0_5] : memref<128x128xbf16, #tpu.memory_space<vmem>>, vector<128x128xbf16>
    %cst = arith.constant dense<0.000000e+00> : vector<256x128xf32>
    %6 = tpu.matmul %4, %5, %cst {dimension_numbers = #tpu.dot_dimension_numbers<[1], [0], [0], [1], [0, 0, 1, 1], [], []>} : vector<256x128xbf16>, vector<128x128xbf16>, vector<256x128xf32> -> vector<256x128xf32>
    %7 = arith.addf %3, %6 : vector<256x128xf32>
    %c0_6 = arith.constant 0 : index
    %c0_7 = arith.constant 0 : index
    %8 = vector.load %arg8[%c0_6, %c0_7] : memref<256x128xf32, #tpu.memory_space<vmem>>, vector<256x128xf32>
    tpu.vector_store %arg8[%c0_6, %c0_7], %7 {strides = array<i32>} : memref<256x128xf32, #tpu.memory_space<vmem>>, vector<256x128xf32>,
    %c0_i32_8 = arith.constant 0 : i32
    %9 = arith.cmpi eq, %arg2, %c0_i32_8 : i32
    %10 = arith.extui %9 : i1 to i32
    %c0_i32_9 = arith.constant 0 : i32
    %11 = arith.cmpi ne, %10, %c0_i32_9 : i32
    scf.if %11 {
      %c0_10 = arith.constant 0 : index
      %c0_11 = arith.constant 0 : index
      %12 = vector.load %arg8[%c0_10, %c0_11] : memref<256x128xf32, #tpu.memory_space<vmem>>, vector<256x128xf32>
      %c0_12 = arith.constant 0 : index
      %c0_13 = arith.constant 0 : index
      %13 = vector.load %arg5[%c0_12, %c0_13] : memref<1x128xf32, #tpu.memory_space<vmem>>, vector<1x128xf32>
      %14 = vector.broadcast %13 : vector<1x128xf32> to vector<256x128xf32>
      %15 = arith.mulf %12, %14 : vector<256x128xf32>
      %c0_14 = arith.constant 0 : index
      %c0_15 = arith.constant 0 : index
      %16 = vector.load %arg6[%c0_14, %c0_15] : memref<1x128xf32, #tpu.memory_space<vmem>>, vector<1x128xf32>
      %17 = vector.broadcast %16 : vector<1x128xf32> to vector<256x128xf32>
      %18 = arith.addf %15, %17 : vector<256x128xf32>
      %cst_16 = arith.constant 0.000000e+00 : f32
      %19 = vector.broadcast %cst_16 : f32 to vector<256x128xf32>
      %20 = arith.maximumf %18, %19 : vector<256x128xf32>
      %c0_17 = arith.constant 0 : index
      %c0_18 = arith.constant 0 : index
      %21 = vector.load %arg7[%c0_17, %c0_18] : memref<256x128xf32, #tpu.memory_space<vmem>>, vector<256x128xf32>
      tpu.vector_store %arg7[%c0_17, %c0_18], %20 {strides = array<i32>} : memref<256x128xf32, #tpu.memory_space<vmem>>, vector<256x128xf32>,
    } else {
    }
    return
  }
  func.func @transform_0(%arg0: i32, %arg1: i32, %arg2: i32) -> (i32, i32) {
    %c0_i32 = arith.constant 0 : i32
    return %arg0, %arg2 : i32, i32
  }
  func.func @transform_1(%arg0: i32, %arg1: i32, %arg2: i32) -> (i32, i32) {
    %c0_i32 = arith.constant 0 : i32
    return %arg2, %arg1 : i32, i32
  }
  func.func @transform_2(%arg0: i32, %arg1: i32, %arg2: i32) -> (i32, i32) {
    %c0_i32 = arith.constant 0 : i32
    %c0_i32_0 = arith.constant 0 : i32
    return %c0_i32, %arg1 : i32, i32
  }
  func.func @transform_3(%arg0: i32, %arg1: i32, %arg2: i32) -> (i32, i32) {
    %c0_i32 = arith.constant 0 : i32
    %c0_i32_0 = arith.constant 0 : i32
    return %c0_i32, %arg1 : i32, i32
  }
  func.func @transform_4(%arg0: i32, %arg1: i32, %arg2: i32) -> (i32, i32) {
    %c0_i32 = arith.constant 0 : i32
    return %arg0, %arg1 : i32, i32
  }
}

module attributes {stable_mosaic.version = 11 : i64} {
  func.func @kernel(%arg0: i32, %arg1: memref<9x64x128xf32, #tpu.memory_space<vmem>>, %arg2: memref<64x128xf32, #tpu.memory_space<vmem>>) attributes {dimension_semantics = [#tpu.dimension_semantics<parallel>], iteration_bounds = array<i64: 1>, scalar_prefetch = 0 : i64, scratch_operands = 0 : i64, tpu.core_type = #tpu.core_type<tc>, window_params = [{transform_indices = @transform_0, window_bounds = array<i64: 9, 64, 128>}, {transform_indices = @transform_1, window_bounds = array<i64: 64, 128>}]} {
    %c0 = arith.constant 0 : index
    %c0_0 = arith.constant 0 : index
    %c0_1 = arith.constant 0 : index
    %0 = vector.load %arg1[%c0, %c0_0, %c0_1] : memref<9x64x128xf32, #tpu.memory_space<vmem>>, vector<9x64x128xf32>
    %cst = arith.constant dense<0xFF800000> : vector<64x128xf32>
    %1 = vector.multi_reduction <maximumf>, %0, %cst [0] : vector<9x64x128xf32> to vector<64x128xf32>
    %c0_2 = arith.constant 0 : index
    %c0_3 = arith.constant 0 : index
    %2 = vector.load %arg2[%c0_2, %c0_3] : memref<64x128xf32, #tpu.memory_space<vmem>>, vector<64x128xf32>
    tpu.vector_store %arg2[%c0_2, %c0_3], %1 {strides = array<i32>} : memref<64x128xf32, #tpu.memory_space<vmem>>, vector<64x128xf32>,
    return
  }
  func.func @transform_0(%arg0: i32) -> (i32, i32, i32) {
    %c0_i32 = arith.constant 0 : i32
    %c0_i32_0 = arith.constant 0 : i32
    %c0_i32_1 = arith.constant 0 : i32
    return %c0_i32, %arg0, %c0_i32_0 : i32, i32, i32
  }
  func.func @transform_1(%arg0: i32) -> (i32, i32) {
    %c0_i32 = arith.constant 0 : i32
    %c0_i32_0 = arith.constant 0 : i32
    return %arg0, %c0_i32 : i32, i32
  }
}

module attributes {stable_mosaic.version = 11 : i64} {
  func.func @kernel(%arg0: i32, %arg1: i32, %arg2: i32, %arg3: memref<128x640xbf16, #tpu.memory_space<vmem>>, %arg4: memref<640x128xbf16, #tpu.memory_space<vmem>>, %arg5: memref<1x128xf32, #tpu.memory_space<vmem>>, %arg6: memref<1x128xf32, #tpu.memory_space<vmem>>, %arg7: memref<128x128xf32, #tpu.memory_space<vmem>>, %arg8: memref<128x128xf32, #tpu.memory_space<vmem>>) attributes {dimension_semantics = [#tpu.dimension_semantics<parallel>, #tpu.dimension_semantics<parallel>, #tpu.dimension_semantics<arbitrary>], iteration_bounds = array<i64: 1, 1, 1>, scalar_prefetch = 0 : i64, scratch_operands = 1 : i64, tpu.core_type = #tpu.core_type<tc>, window_params = [{transform_indices = @transform_0, window_bounds = array<i64: 128, 640>}, {transform_indices = @transform_1, window_bounds = array<i64: 640, 128>}, {transform_indices = @transform_2, window_bounds = array<i64: 1, 128>}, {transform_indices = @transform_3, window_bounds = array<i64: 1, 128>}, {transform_indices = @transform_4, window_bounds = array<i64: 128, 128>}]} {
    %c0_i32 = arith.constant 0 : i32
    %0 = arith.cmpi eq, %arg2, %c0_i32 : i32
    %1 = arith.extui %0 : i1 to i32
    %c0_i32_0 = arith.constant 0 : i32
    %2 = arith.cmpi ne, %1, %c0_i32_0 : i32
    scf.if %2 {
      %cst_10 = arith.constant 0.000000e+00 : f32
      %12 = vector.broadcast %cst_10 : f32 to vector<128x128xf32>
      %c0_11 = arith.constant 0 : index
      %c0_12 = arith.constant 0 : index
      %13 = vector.load %arg8[%c0_11, %c0_12] : memref<128x128xf32, #tpu.memory_space<vmem>>, vector<128x128xf32>
      tpu.vector_store %arg8[%c0_11, %c0_12], %12 {strides = array<i32>} : memref<128x128xf32, #tpu.memory_space<vmem>>, vector<128x128xf32>,
    } else {
    }
    %c0 = arith.constant 0 : index
    %c0_1 = arith.constant 0 : index
    %3 = vector.load %arg8[%c0, %c0_1] : memref<128x128xf32, #tpu.memory_space<vmem>>, vector<128x128xf32>
    %c0_2 = arith.constant 0 : index
    %c0_3 = arith.constant 0 : index
    %4 = vector.load %arg3[%c0_2, %c0_3] : memref<128x640xbf16, #tpu.memory_space<vmem>>, vector<128x640xbf16>
    %c0_4 = arith.constant 0 : index
    %c0_5 = arith.constant 0 : index
    %5 = vector.load %arg4[%c0_4, %c0_5] : memref<640x128xbf16, #tpu.memory_space<vmem>>, vector<640x128xbf16>
    %cst = arith.constant dense<0.000000e+00> : vector<128x128xf32>
    %6 = tpu.matmul %4, %5, %cst {dimension_numbers = #tpu.dot_dimension_numbers<[1], [0], [0], [1], [0, 0, 1, 1], [], []>} : vector<128x640xbf16>, vector<640x128xbf16>, vector<128x128xf32> -> vector<128x128xf32>
    %7 = arith.addf %3, %6 : vector<128x128xf32>
    %c0_6 = arith.constant 0 : index
    %c0_7 = arith.constant 0 : index
    %8 = vector.load %arg8[%c0_6, %c0_7] : memref<128x128xf32, #tpu.memory_space<vmem>>, vector<128x128xf32>
    tpu.vector_store %arg8[%c0_6, %c0_7], %7 {strides = array<i32>} : memref<128x128xf32, #tpu.memory_space<vmem>>, vector<128x128xf32>,
    %c0_i32_8 = arith.constant 0 : i32
    %9 = arith.cmpi eq, %arg2, %c0_i32_8 : i32
    %10 = arith.extui %9 : i1 to i32
    %c0_i32_9 = arith.constant 0 : i32
    %11 = arith.cmpi ne, %10, %c0_i32_9 : i32
    scf.if %11 {
      %c0_10 = arith.constant 0 : index
      %c0_11 = arith.constant 0 : index
      %12 = vector.load %arg8[%c0_10, %c0_11] : memref<128x128xf32, #tpu.memory_space<vmem>>, vector<128x128xf32>
      %c0_12 = arith.constant 0 : index
      %c0_13 = arith.constant 0 : index
      %13 = vector.load %arg5[%c0_12, %c0_13] : memref<1x128xf32, #tpu.memory_space<vmem>>, vector<1x128xf32>
      %14 = vector.broadcast %13 : vector<1x128xf32> to vector<128x128xf32>
      %15 = arith.mulf %12, %14 : vector<128x128xf32>
      %c0_14 = arith.constant 0 : index
      %c0_15 = arith.constant 0 : index
      %16 = vector.load %arg6[%c0_14, %c0_15] : memref<1x128xf32, #tpu.memory_space<vmem>>, vector<1x128xf32>
      %17 = vector.broadcast %16 : vector<1x128xf32> to vector<128x128xf32>
      %18 = arith.addf %15, %17 : vector<128x128xf32>
      %cst_16 = arith.constant 0.000000e+00 : f32
      %19 = vector.broadcast %cst_16 : f32 to vector<128x128xf32>
      %20 = arith.maximumf %18, %19 : vector<128x128xf32>
      %c0_17 = arith.constant 0 : index
      %c0_18 = arith.constant 0 : index
      %21 = vector.load %arg7[%c0_17, %c0_18] : memref<128x128xf32, #tpu.memory_space<vmem>>, vector<128x128xf32>
      tpu.vector_store %arg7[%c0_17, %c0_18], %20 {strides = array<i32>} : memref<128x128xf32, #tpu.memory_space<vmem>>, vector<128x128xf32>,
    } else {
    }
    return
  }
  func.func @transform_0(%arg0: i32, %arg1: i32, %arg2: i32) -> (i32, i32) {
    %c0_i32 = arith.constant 0 : i32
    return %arg0, %arg2 : i32, i32
  }
  func.func @transform_1(%arg0: i32, %arg1: i32, %arg2: i32) -> (i32, i32) {
    %c0_i32 = arith.constant 0 : i32
    return %arg2, %arg1 : i32, i32
  }
  func.func @transform_2(%arg0: i32, %arg1: i32, %arg2: i32) -> (i32, i32) {
    %c0_i32 = arith.constant 0 : i32
    %c0_i32_0 = arith.constant 0 : i32
    return %c0_i32, %arg1 : i32, i32
  }
  func.func @transform_3(%arg0: i32, %arg1: i32, %arg2: i32) -> (i32, i32) {
    %c0_i32 = arith.constant 0 : i32
    %c0_i32_0 = arith.constant 0 : i32
    return %c0_i32, %arg1 : i32, i32
  }
  func.func @transform_4(%arg0: i32, %arg1: i32, %arg2: i32) -> (i32, i32) {
    %c0_i32 = arith.constant 0 : i32
    return %arg0, %arg1 : i32, i32
  }
}

module attributes {stable_mosaic.version = 11 : i64} {
  func.func @kernel(%arg0: i32, %arg1: i32, %arg2: i32, %arg3: memref<128x640xbf16, #tpu.memory_space<vmem>>, %arg4: memref<640x128xbf16, #tpu.memory_space<vmem>>, %arg5: memref<1x128xf32, #tpu.memory_space<vmem>>, %arg6: memref<1x128xf32, #tpu.memory_space<vmem>>, %arg7: memref<128x128xf32, #tpu.memory_space<vmem>>, %arg8: memref<128x128xf32, #tpu.memory_space<vmem>>, %arg9: memref<128x128xf32, #tpu.memory_space<vmem>>) attributes {dimension_semantics = [#tpu.dimension_semantics<parallel>, #tpu.dimension_semantics<parallel>, #tpu.dimension_semantics<arbitrary>], iteration_bounds = array<i64: 1, 1, 1>, scalar_prefetch = 0 : i64, scratch_operands = 1 : i64, tpu.core_type = #tpu.core_type<tc>, window_params = [{transform_indices = @transform_0, window_bounds = array<i64: 128, 640>}, {transform_indices = @transform_1, window_bounds = array<i64: 640, 128>}, {transform_indices = @transform_2, window_bounds = array<i64: 1, 128>}, {transform_indices = @transform_3, window_bounds = array<i64: 1, 128>}, {transform_indices = @transform_4, window_bounds = array<i64: 128, 128>}, {transform_indices = @transform_5, window_bounds = array<i64: 128, 128>}]} {
    %c0_i32 = arith.constant 0 : i32
    %0 = arith.cmpi eq, %arg2, %c0_i32 : i32
    %1 = arith.extui %0 : i1 to i32
    %c0_i32_0 = arith.constant 0 : i32
    %2 = arith.cmpi ne, %1, %c0_i32_0 : i32
    scf.if %2 {
      %cst_10 = arith.constant 0.000000e+00 : f32
      %12 = vector.broadcast %cst_10 : f32 to vector<128x128xf32>
      %c0_11 = arith.constant 0 : index
      %c0_12 = arith.constant 0 : index
      %13 = vector.load %arg9[%c0_11, %c0_12] : memref<128x128xf32, #tpu.memory_space<vmem>>, vector<128x128xf32>
      tpu.vector_store %arg9[%c0_11, %c0_12], %12 {strides = array<i32>} : memref<128x128xf32, #tpu.memory_space<vmem>>, vector<128x128xf32>,
    } else {
    }
    %c0 = arith.constant 0 : index
    %c0_1 = arith.constant 0 : index
    %3 = vector.load %arg9[%c0, %c0_1] : memref<128x128xf32, #tpu.memory_space<vmem>>, vector<128x128xf32>
    %c0_2 = arith.constant 0 : index
    %c0_3 = arith.constant 0 : index
    %4 = vector.load %arg3[%c0_2, %c0_3] : memref<128x640xbf16, #tpu.memory_space<vmem>>, vector<128x640xbf16>
    %c0_4 = arith.constant 0 : index
    %c0_5 = arith.constant 0 : index
    %5 = vector.load %arg4[%c0_4, %c0_5] : memref<640x128xbf16, #tpu.memory_space<vmem>>, vector<640x128xbf16>
    %cst = arith.constant dense<0.000000e+00> : vector<128x128xf32>
    %6 = tpu.matmul %4, %5, %cst {dimension_numbers = #tpu.dot_dimension_numbers<[1], [0], [0], [1], [0, 0, 1, 1], [], []>} : vector<128x640xbf16>, vector<640x128xbf16>, vector<128x128xf32> -> vector<128x128xf32>
    %7 = arith.addf %3, %6 : vector<128x128xf32>
    %c0_6 = arith.constant 0 : index
    %c0_7 = arith.constant 0 : index
    %8 = vector.load %arg9[%c0_6, %c0_7] : memref<128x128xf32, #tpu.memory_space<vmem>>, vector<128x128xf32>
    tpu.vector_store %arg9[%c0_6, %c0_7], %7 {strides = array<i32>} : memref<128x128xf32, #tpu.memory_space<vmem>>, vector<128x128xf32>,
    %c0_i32_8 = arith.constant 0 : i32
    %9 = arith.cmpi eq, %arg2, %c0_i32_8 : i32
    %10 = arith.extui %9 : i1 to i32
    %c0_i32_9 = arith.constant 0 : i32
    %11 = arith.cmpi ne, %10, %c0_i32_9 : i32
    scf.if %11 {
      %c0_10 = arith.constant 0 : index
      %c0_11 = arith.constant 0 : index
      %12 = vector.load %arg9[%c0_10, %c0_11] : memref<128x128xf32, #tpu.memory_space<vmem>>, vector<128x128xf32>
      %c0_12 = arith.constant 0 : index
      %c0_13 = arith.constant 0 : index
      %13 = vector.load %arg5[%c0_12, %c0_13] : memref<1x128xf32, #tpu.memory_space<vmem>>, vector<1x128xf32>
      %14 = vector.broadcast %13 : vector<1x128xf32> to vector<128x128xf32>
      %15 = arith.mulf %12, %14 : vector<128x128xf32>
      %c0_14 = arith.constant 0 : index
      %c0_15 = arith.constant 0 : index
      %16 = vector.load %arg6[%c0_14, %c0_15] : memref<1x128xf32, #tpu.memory_space<vmem>>, vector<1x128xf32>
      %17 = vector.broadcast %16 : vector<1x128xf32> to vector<128x128xf32>
      %18 = arith.addf %15, %17 : vector<128x128xf32>
      %c0_16 = arith.constant 0 : index
      %c0_17 = arith.constant 0 : index
      %19 = vector.load %arg7[%c0_16, %c0_17] : memref<128x128xf32, #tpu.memory_space<vmem>>, vector<128x128xf32>
      %20 = arith.addf %18, %19 : vector<128x128xf32>
      %cst_18 = arith.constant 0.000000e+00 : f32
      %21 = vector.broadcast %cst_18 : f32 to vector<128x128xf32>
      %22 = arith.maximumf %20, %21 : vector<128x128xf32>
      %c0_19 = arith.constant 0 : index
      %c0_20 = arith.constant 0 : index
      %23 = vector.load %arg8[%c0_19, %c0_20] : memref<128x128xf32, #tpu.memory_space<vmem>>, vector<128x128xf32>
      tpu.vector_store %arg8[%c0_19, %c0_20], %22 {strides = array<i32>} : memref<128x128xf32, #tpu.memory_space<vmem>>, vector<128x128xf32>,
    } else {
    }
    return
  }
  func.func @transform_0(%arg0: i32, %arg1: i32, %arg2: i32) -> (i32, i32) {
    %c0_i32 = arith.constant 0 : i32
    return %arg0, %arg2 : i32, i32
  }
  func.func @transform_1(%arg0: i32, %arg1: i32, %arg2: i32) -> (i32, i32) {
    %c0_i32 = arith.constant 0 : i32
    return %arg2, %arg1 : i32, i32
  }
  func.func @transform_2(%arg0: i32, %arg1: i32, %arg2: i32) -> (i32, i32) {
    %c0_i32 = arith.constant 0 : i32
    %c0_i32_0 = arith.constant 0 : i32
    return %c0_i32, %arg1 : i32, i32
  }
  func.func @transform_3(%arg0: i32, %arg1: i32, %arg2: i32) -> (i32, i32) {
    %c0_i32 = arith.constant 0 : i32
    %c0_i32_0 = arith.constant 0 : i32
    return %c0_i32, %arg1 : i32, i32
  }
  func.func @transform_4(%arg0: i32, %arg1: i32, %arg2: i32) -> (i32, i32) {
    %c0_i32 = arith.constant 0 : i32
    return %arg0, %arg1 : i32, i32
  }
  func.func @transform_5(%arg0: i32, %arg1: i32, %arg2: i32) -> (i32, i32) {
    %c0_i32 = arith.constant 0 : i32
    return %arg0, %arg1 : i32, i32
  }
}

module attributes {stable_mosaic.version = 11 : i64} {
  func.func @kernel(%arg0: i32, %arg1: i32, %arg2: i32, %arg3: memref<32x640xbf16, #tpu.memory_space<vmem>>, %arg4: memref<640x128xbf16, #tpu.memory_space<vmem>>, %arg5: memref<1x128xf32, #tpu.memory_space<vmem>>, %arg6: memref<1x128xf32, #tpu.memory_space<vmem>>, %arg7: memref<32x128xf32, #tpu.memory_space<vmem>>, %arg8: memref<32x128xf32, #tpu.memory_space<vmem>>) attributes {dimension_semantics = [#tpu.dimension_semantics<parallel>, #tpu.dimension_semantics<parallel>, #tpu.dimension_semantics<arbitrary>], iteration_bounds = array<i64: 1, 1, 1>, scalar_prefetch = 0 : i64, scratch_operands = 1 : i64, tpu.core_type = #tpu.core_type<tc>, window_params = [{transform_indices = @transform_0, window_bounds = array<i64: 32, 640>}, {transform_indices = @transform_1, window_bounds = array<i64: 640, 128>}, {transform_indices = @transform_2, window_bounds = array<i64: 1, 128>}, {transform_indices = @transform_3, window_bounds = array<i64: 1, 128>}, {transform_indices = @transform_4, window_bounds = array<i64: 32, 128>}]} {
    %c0_i32 = arith.constant 0 : i32
    %0 = arith.cmpi eq, %arg2, %c0_i32 : i32
    %1 = arith.extui %0 : i1 to i32
    %c0_i32_0 = arith.constant 0 : i32
    %2 = arith.cmpi ne, %1, %c0_i32_0 : i32
    scf.if %2 {
      %cst_10 = arith.constant 0.000000e+00 : f32
      %12 = vector.broadcast %cst_10 : f32 to vector<32x128xf32>
      %c0_11 = arith.constant 0 : index
      %c0_12 = arith.constant 0 : index
      %13 = vector.load %arg8[%c0_11, %c0_12] : memref<32x128xf32, #tpu.memory_space<vmem>>, vector<32x128xf32>
      tpu.vector_store %arg8[%c0_11, %c0_12], %12 {strides = array<i32>} : memref<32x128xf32, #tpu.memory_space<vmem>>, vector<32x128xf32>,
    } else {
    }
    %c0 = arith.constant 0 : index
    %c0_1 = arith.constant 0 : index
    %3 = vector.load %arg8[%c0, %c0_1] : memref<32x128xf32, #tpu.memory_space<vmem>>, vector<32x128xf32>
    %c0_2 = arith.constant 0 : index
    %c0_3 = arith.constant 0 : index
    %4 = vector.load %arg3[%c0_2, %c0_3] : memref<32x640xbf16, #tpu.memory_space<vmem>>, vector<32x640xbf16>
    %c0_4 = arith.constant 0 : index
    %c0_5 = arith.constant 0 : index
    %5 = vector.load %arg4[%c0_4, %c0_5] : memref<640x128xbf16, #tpu.memory_space<vmem>>, vector<640x128xbf16>
    %cst = arith.constant dense<0.000000e+00> : vector<32x128xf32>
    %6 = tpu.matmul %4, %5, %cst {dimension_numbers = #tpu.dot_dimension_numbers<[1], [0], [0], [1], [0, 0, 1, 1], [], []>} : vector<32x640xbf16>, vector<640x128xbf16>, vector<32x128xf32> -> vector<32x128xf32>
    %7 = arith.addf %3, %6 : vector<32x128xf32>
    %c0_6 = arith.constant 0 : index
    %c0_7 = arith.constant 0 : index
    %8 = vector.load %arg8[%c0_6, %c0_7] : memref<32x128xf32, #tpu.memory_space<vmem>>, vector<32x128xf32>
    tpu.vector_store %arg8[%c0_6, %c0_7], %7 {strides = array<i32>} : memref<32x128xf32, #tpu.memory_space<vmem>>, vector<32x128xf32>,
    %c0_i32_8 = arith.constant 0 : i32
    %9 = arith.cmpi eq, %arg2, %c0_i32_8 : i32
    %10 = arith.extui %9 : i1 to i32
    %c0_i32_9 = arith.constant 0 : i32
    %11 = arith.cmpi ne, %10, %c0_i32_9 : i32
    scf.if %11 {
      %c0_10 = arith.constant 0 : index
      %c0_11 = arith.constant 0 : index
      %12 = vector.load %arg8[%c0_10, %c0_11] : memref<32x128xf32, #tpu.memory_space<vmem>>, vector<32x128xf32>
      %c0_12 = arith.constant 0 : index
      %c0_13 = arith.constant 0 : index
      %13 = vector.load %arg5[%c0_12, %c0_13] : memref<1x128xf32, #tpu.memory_space<vmem>>, vector<1x128xf32>
      %14 = vector.broadcast %13 : vector<1x128xf32> to vector<32x128xf32>
      %15 = arith.mulf %12, %14 : vector<32x128xf32>
      %c0_14 = arith.constant 0 : index
      %c0_15 = arith.constant 0 : index
      %16 = vector.load %arg6[%c0_14, %c0_15] : memref<1x128xf32, #tpu.memory_space<vmem>>, vector<1x128xf32>
      %17 = vector.broadcast %16 : vector<1x128xf32> to vector<32x128xf32>
      %18 = arith.addf %15, %17 : vector<32x128xf32>
      %cst_16 = arith.constant 0.000000e+00 : f32
      %19 = vector.broadcast %cst_16 : f32 to vector<32x128xf32>
      %20 = arith.maximumf %18, %19 : vector<32x128xf32>
      %c0_17 = arith.constant 0 : index
      %c0_18 = arith.constant 0 : index
      %21 = vector.load %arg7[%c0_17, %c0_18] : memref<32x128xf32, #tpu.memory_space<vmem>>, vector<32x128xf32>
      tpu.vector_store %arg7[%c0_17, %c0_18], %20 {strides = array<i32>} : memref<32x128xf32, #tpu.memory_space<vmem>>, vector<32x128xf32>,
    } else {
    }
    return
  }
  func.func @transform_0(%arg0: i32, %arg1: i32, %arg2: i32) -> (i32, i32) {
    %c0_i32 = arith.constant 0 : i32
    return %arg0, %arg2 : i32, i32
  }
  func.func @transform_1(%arg0: i32, %arg1: i32, %arg2: i32) -> (i32, i32) {
    %c0_i32 = arith.constant 0 : i32
    return %arg2, %arg1 : i32, i32
  }
  func.func @transform_2(%arg0: i32, %arg1: i32, %arg2: i32) -> (i32, i32) {
    %c0_i32 = arith.constant 0 : i32
    %c0_i32_0 = arith.constant 0 : i32
    return %c0_i32, %arg1 : i32, i32
  }
  func.func @transform_3(%arg0: i32, %arg1: i32, %arg2: i32) -> (i32, i32) {
    %c0_i32 = arith.constant 0 : i32
    %c0_i32_0 = arith.constant 0 : i32
    return %c0_i32, %arg1 : i32, i32
  }
  func.func @transform_4(%arg0: i32, %arg1: i32, %arg2: i32) -> (i32, i32) {
    %c0_i32 = arith.constant 0 : i32
    return %arg0, %arg1 : i32, i32
  }
}

module attributes {stable_mosaic.version = 11 : i64} {
  func.func @kernel(%arg0: i32, %arg1: i32, %arg2: i32, %arg3: memref<32x384xbf16, #tpu.memory_space<vmem>>, %arg4: memref<384x128xbf16, #tpu.memory_space<vmem>>, %arg5: memref<1x128xf32, #tpu.memory_space<vmem>>, %arg6: memref<1x128xf32, #tpu.memory_space<vmem>>, %arg7: memref<32x128xf32, #tpu.memory_space<vmem>>, %arg8: memref<32x128xf32, #tpu.memory_space<vmem>>, %arg9: memref<32x128xf32, #tpu.memory_space<vmem>>) attributes {dimension_semantics = [#tpu.dimension_semantics<parallel>, #tpu.dimension_semantics<parallel>, #tpu.dimension_semantics<arbitrary>], iteration_bounds = array<i64: 1, 1, 3>, scalar_prefetch = 0 : i64, scratch_operands = 1 : i64, tpu.core_type = #tpu.core_type<tc>, window_params = [{transform_indices = @transform_0, window_bounds = array<i64: 32, 384>}, {transform_indices = @transform_1, window_bounds = array<i64: 384, 128>}, {transform_indices = @transform_2, window_bounds = array<i64: 1, 128>}, {transform_indices = @transform_3, window_bounds = array<i64: 1, 128>}, {transform_indices = @transform_4, window_bounds = array<i64: 32, 128>}, {transform_indices = @transform_5, window_bounds = array<i64: 32, 128>}]} {
    %c0_i32 = arith.constant 0 : i32
    %0 = arith.cmpi eq, %arg2, %c0_i32 : i32
    %1 = arith.extui %0 : i1 to i32
    %c0_i32_0 = arith.constant 0 : i32
    %2 = arith.cmpi ne, %1, %c0_i32_0 : i32
    scf.if %2 {
      %cst_9 = arith.constant 0.000000e+00 : f32
      %12 = vector.broadcast %cst_9 : f32 to vector<32x128xf32>
      %c0_10 = arith.constant 0 : index
      %c0_11 = arith.constant 0 : index
      %13 = vector.load %arg9[%c0_10, %c0_11] : memref<32x128xf32, #tpu.memory_space<vmem>>, vector<32x128xf32>
      tpu.vector_store %arg9[%c0_10, %c0_11], %12 {strides = array<i32>} : memref<32x128xf32, #tpu.memory_space<vmem>>, vector<32x128xf32>,
    } else {
    }
    %c0 = arith.constant 0 : index
    %c0_1 = arith.constant 0 : index
    %3 = vector.load %arg9[%c0, %c0_1] : memref<32x128xf32, #tpu.memory_space<vmem>>, vector<32x128xf32>
    %c0_2 = arith.constant 0 : index
    %c0_3 = arith.constant 0 : index
    %4 = vector.load %arg3[%c0_2, %c0_3] : memref<32x384xbf16, #tpu.memory_space<vmem>>, vector<32x384xbf16>
    %c0_4 = arith.constant 0 : index
    %c0_5 = arith.constant 0 : index
    %5 = vector.load %arg4[%c0_4, %c0_5] : memref<384x128xbf16, #tpu.memory_space<vmem>>, vector<384x128xbf16>
    %cst = arith.constant dense<0.000000e+00> : vector<32x128xf32>
    %6 = tpu.matmul %4, %5, %cst {dimension_numbers = #tpu.dot_dimension_numbers<[1], [0], [0], [1], [0, 0, 1, 1], [], []>} : vector<32x384xbf16>, vector<384x128xbf16>, vector<32x128xf32> -> vector<32x128xf32>
    %7 = arith.addf %3, %6 : vector<32x128xf32>
    %c0_6 = arith.constant 0 : index
    %c0_7 = arith.constant 0 : index
    %8 = vector.load %arg9[%c0_6, %c0_7] : memref<32x128xf32, #tpu.memory_space<vmem>>, vector<32x128xf32>
    tpu.vector_store %arg9[%c0_6, %c0_7], %7 {strides = array<i32>} : memref<32x128xf32, #tpu.memory_space<vmem>>, vector<32x128xf32>,
    %c2_i32 = arith.constant 2 : i32
    %9 = arith.cmpi eq, %arg2, %c2_i32 : i32
    %10 = arith.extui %9 : i1 to i32
    %c0_i32_8 = arith.constant 0 : i32
    %11 = arith.cmpi ne, %10, %c0_i32_8 : i32
    scf.if %11 {
      %c0_9 = arith.constant 0 : index
      %c0_10 = arith.constant 0 : index
      %12 = vector.load %arg9[%c0_9, %c0_10] : memref<32x128xf32, #tpu.memory_space<vmem>>, vector<32x128xf32>
      %c0_11 = arith.constant 0 : index
      %c0_12 = arith.constant 0 : index
      %13 = vector.load %arg5[%c0_11, %c0_12] : memref<1x128xf32, #tpu.memory_space<vmem>>, vector<1x128xf32>
      %14 = vector.broadcast %13 : vector<1x128xf32> to vector<32x128xf32>
      %15 = arith.mulf %12, %14 : vector<32x128xf32>
      %c0_13 = arith.constant 0 : index
      %c0_14 = arith.constant 0 : index
      %16 = vector.load %arg6[%c0_13, %c0_14] : memref<1x128xf32, #tpu.memory_space<vmem>>, vector<1x128xf32>
      %17 = vector.broadcast %16 : vector<1x128xf32> to vector<32x128xf32>
      %18 = arith.addf %15, %17 : vector<32x128xf32>
      %c0_15 = arith.constant 0 : index
      %c0_16 = arith.constant 0 : index
      %19 = vector.load %arg7[%c0_15, %c0_16] : memref<32x128xf32, #tpu.memory_space<vmem>>, vector<32x128xf32>
      %20 = arith.addf %18, %19 : vector<32x128xf32>
      %cst_17 = arith.constant 0.000000e+00 : f32
      %21 = vector.broadcast %cst_17 : f32 to vector<32x128xf32>
      %22 = arith.maximumf %20, %21 : vector<32x128xf32>
      %c0_18 = arith.constant 0 : index
      %c0_19 = arith.constant 0 : index
      %23 = vector.load %arg8[%c0_18, %c0_19] : memref<32x128xf32, #tpu.memory_space<vmem>>, vector<32x128xf32>
      tpu.vector_store %arg8[%c0_18, %c0_19], %22 {strides = array<i32>} : memref<32x128xf32, #tpu.memory_space<vmem>>, vector<32x128xf32>,
    } else {
    }
    return
  }
  func.func @transform_0(%arg0: i32, %arg1: i32, %arg2: i32) -> (i32, i32) {
    %c0_i32 = arith.constant 0 : i32
    return %arg0, %arg2 : i32, i32
  }
  func.func @transform_1(%arg0: i32, %arg1: i32, %arg2: i32) -> (i32, i32) {
    %c0_i32 = arith.constant 0 : i32
    return %arg2, %arg1 : i32, i32
  }
  func.func @transform_2(%arg0: i32, %arg1: i32, %arg2: i32) -> (i32, i32) {
    %c0_i32 = arith.constant 0 : i32
    %c0_i32_0 = arith.constant 0 : i32
    return %c0_i32, %arg1 : i32, i32
  }
  func.func @transform_3(%arg0: i32, %arg1: i32, %arg2: i32) -> (i32, i32) {
    %c0_i32 = arith.constant 0 : i32
    %c0_i32_0 = arith.constant 0 : i32
    return %c0_i32, %arg1 : i32, i32
  }
  func.func @transform_4(%arg0: i32, %arg1: i32, %arg2: i32) -> (i32, i32) {
    %c0_i32 = arith.constant 0 : i32
    return %arg0, %arg1 : i32, i32
  }
  func.func @transform_5(%arg0: i32, %arg1: i32, %arg2: i32) -> (i32, i32) {
    %c0_i32 = arith.constant 0 : i32
    return %arg0, %arg1 : i32, i32
  }
}

module attributes {stable_mosaic.version = 11 : i64} {
  func.func @kernel(%arg0: i32, %arg1: i32, %arg2: i32, %arg3: memref<32x384xbf16, #tpu.memory_space<vmem>>, %arg4: memref<384x128xbf16, #tpu.memory_space<vmem>>, %arg5: memref<1x128xf32, #tpu.memory_space<vmem>>, %arg6: memref<1x128xf32, #tpu.memory_space<vmem>>, %arg7: memref<32x128xf32, #tpu.memory_space<vmem>>, %arg8: memref<32x128xf32, #tpu.memory_space<vmem>>) attributes {dimension_semantics = [#tpu.dimension_semantics<parallel>, #tpu.dimension_semantics<parallel>, #tpu.dimension_semantics<arbitrary>], iteration_bounds = array<i64: 1, 1, 3>, scalar_prefetch = 0 : i64, scratch_operands = 1 : i64, tpu.core_type = #tpu.core_type<tc>, window_params = [{transform_indices = @transform_0, window_bounds = array<i64: 32, 384>}, {transform_indices = @transform_1, window_bounds = array<i64: 384, 128>}, {transform_indices = @transform_2, window_bounds = array<i64: 1, 128>}, {transform_indices = @transform_3, window_bounds = array<i64: 1, 128>}, {transform_indices = @transform_4, window_bounds = array<i64: 32, 128>}]} {
    %c0_i32 = arith.constant 0 : i32
    %0 = arith.cmpi eq, %arg2, %c0_i32 : i32
    %1 = arith.extui %0 : i1 to i32
    %c0_i32_0 = arith.constant 0 : i32
    %2 = arith.cmpi ne, %1, %c0_i32_0 : i32
    scf.if %2 {
      %cst_9 = arith.constant 0.000000e+00 : f32
      %12 = vector.broadcast %cst_9 : f32 to vector<32x128xf32>
      %c0_10 = arith.constant 0 : index
      %c0_11 = arith.constant 0 : index
      %13 = vector.load %arg8[%c0_10, %c0_11] : memref<32x128xf32, #tpu.memory_space<vmem>>, vector<32x128xf32>
      tpu.vector_store %arg8[%c0_10, %c0_11], %12 {strides = array<i32>} : memref<32x128xf32, #tpu.memory_space<vmem>>, vector<32x128xf32>,
    } else {
    }
    %c0 = arith.constant 0 : index
    %c0_1 = arith.constant 0 : index
    %3 = vector.load %arg8[%c0, %c0_1] : memref<32x128xf32, #tpu.memory_space<vmem>>, vector<32x128xf32>
    %c0_2 = arith.constant 0 : index
    %c0_3 = arith.constant 0 : index
    %4 = vector.load %arg3[%c0_2, %c0_3] : memref<32x384xbf16, #tpu.memory_space<vmem>>, vector<32x384xbf16>
    %c0_4 = arith.constant 0 : index
    %c0_5 = arith.constant 0 : index
    %5 = vector.load %arg4[%c0_4, %c0_5] : memref<384x128xbf16, #tpu.memory_space<vmem>>, vector<384x128xbf16>
    %cst = arith.constant dense<0.000000e+00> : vector<32x128xf32>
    %6 = tpu.matmul %4, %5, %cst {dimension_numbers = #tpu.dot_dimension_numbers<[1], [0], [0], [1], [0, 0, 1, 1], [], []>} : vector<32x384xbf16>, vector<384x128xbf16>, vector<32x128xf32> -> vector<32x128xf32>
    %7 = arith.addf %3, %6 : vector<32x128xf32>
    %c0_6 = arith.constant 0 : index
    %c0_7 = arith.constant 0 : index
    %8 = vector.load %arg8[%c0_6, %c0_7] : memref<32x128xf32, #tpu.memory_space<vmem>>, vector<32x128xf32>
    tpu.vector_store %arg8[%c0_6, %c0_7], %7 {strides = array<i32>} : memref<32x128xf32, #tpu.memory_space<vmem>>, vector<32x128xf32>,
    %c2_i32 = arith.constant 2 : i32
    %9 = arith.cmpi eq, %arg2, %c2_i32 : i32
    %10 = arith.extui %9 : i1 to i32
    %c0_i32_8 = arith.constant 0 : i32
    %11 = arith.cmpi ne, %10, %c0_i32_8 : i32
    scf.if %11 {
      %c0_9 = arith.constant 0 : index
      %c0_10 = arith.constant 0 : index
      %12 = vector.load %arg8[%c0_9, %c0_10] : memref<32x128xf32, #tpu.memory_space<vmem>>, vector<32x128xf32>
      %c0_11 = arith.constant 0 : index
      %c0_12 = arith.constant 0 : index
      %13 = vector.load %arg5[%c0_11, %c0_12] : memref<1x128xf32, #tpu.memory_space<vmem>>, vector<1x128xf32>
      %14 = vector.broadcast %13 : vector<1x128xf32> to vector<32x128xf32>
      %15 = arith.mulf %12, %14 : vector<32x128xf32>
      %c0_13 = arith.constant 0 : index
      %c0_14 = arith.constant 0 : index
      %16 = vector.load %arg6[%c0_13, %c0_14] : memref<1x128xf32, #tpu.memory_space<vmem>>, vector<1x128xf32>
      %17 = vector.broadcast %16 : vector<1x128xf32> to vector<32x128xf32>
      %18 = arith.addf %15, %17 : vector<32x128xf32>
      %cst_15 = arith.constant 0.000000e+00 : f32
      %19 = vector.broadcast %cst_15 : f32 to vector<32x128xf32>
      %20 = arith.maximumf %18, %19 : vector<32x128xf32>
      %c0_16 = arith.constant 0 : index
      %c0_17 = arith.constant 0 : index
      %21 = vector.load %arg7[%c0_16, %c0_17] : memref<32x128xf32, #tpu.memory_space<vmem>>, vector<32x128xf32>
      tpu.vector_store %arg7[%c0_16, %c0_17], %20 {strides = array<i32>} : memref<32x128xf32, #tpu.memory_space<vmem>>, vector<32x128xf32>,
    } else {
    }
    return
  }
  func.func @transform_0(%arg0: i32, %arg1: i32, %arg2: i32) -> (i32, i32) {
    %c0_i32 = arith.constant 0 : i32
    return %arg0, %arg2 : i32, i32
  }
  func.func @transform_1(%arg0: i32, %arg1: i32, %arg2: i32) -> (i32, i32) {
    %c0_i32 = arith.constant 0 : i32
    return %arg2, %arg1 : i32, i32
  }
  func.func @transform_2(%arg0: i32, %arg1: i32, %arg2: i32) -> (i32, i32) {
    %c0_i32 = arith.constant 0 : i32
    %c0_i32_0 = arith.constant 0 : i32
    return %c0_i32, %arg1 : i32, i32
  }
  func.func @transform_3(%arg0: i32, %arg1: i32, %arg2: i32) -> (i32, i32) {
    %c0_i32 = arith.constant 0 : i32
    %c0_i32_0 = arith.constant 0 : i32
    return %c0_i32, %arg1 : i32, i32
  }
  func.func @transform_4(%arg0: i32, %arg1: i32, %arg2: i32) -> (i32, i32) {
    %c0_i32 = arith.constant 0 : i32
    return %arg0, %arg1 : i32, i32
  }
}

module attributes {stable_mosaic.version = 11 : i64} {
  func.func @kernel(%arg0: i32, %arg1: i32, %arg2: i32, %arg3: memref<32x128xbf16, #tpu.memory_space<vmem>>, %arg4: memref<128x128xbf16, #tpu.memory_space<vmem>>, %arg5: memref<1x128xf32, #tpu.memory_space<vmem>>, %arg6: memref<1x128xf32, #tpu.memory_space<vmem>>, %arg7: memref<32x128xf32, #tpu.memory_space<vmem>>, %arg8: memref<32x128xf32, #tpu.memory_space<vmem>>) attributes {dimension_semantics = [#tpu.dimension_semantics<parallel>, #tpu.dimension_semantics<parallel>, #tpu.dimension_semantics<arbitrary>], iteration_bounds = array<i64: 1, 1, 1>, scalar_prefetch = 0 : i64, scratch_operands = 1 : i64, tpu.core_type = #tpu.core_type<tc>, window_params = [{transform_indices = @transform_0, window_bounds = array<i64: 32, 128>}, {transform_indices = @transform_1, window_bounds = array<i64: 128, 128>}, {transform_indices = @transform_2, window_bounds = array<i64: 1, 128>}, {transform_indices = @transform_3, window_bounds = array<i64: 1, 128>}, {transform_indices = @transform_4, window_bounds = array<i64: 32, 128>}]} {
    %c0_i32 = arith.constant 0 : i32
    %0 = arith.cmpi eq, %arg2, %c0_i32 : i32
    %1 = arith.extui %0 : i1 to i32
    %c0_i32_0 = arith.constant 0 : i32
    %2 = arith.cmpi ne, %1, %c0_i32_0 : i32
    scf.if %2 {
      %cst_10 = arith.constant 0.000000e+00 : f32
      %12 = vector.broadcast %cst_10 : f32 to vector<32x128xf32>
      %c0_11 = arith.constant 0 : index
      %c0_12 = arith.constant 0 : index
      %13 = vector.load %arg8[%c0_11, %c0_12] : memref<32x128xf32, #tpu.memory_space<vmem>>, vector<32x128xf32>
      tpu.vector_store %arg8[%c0_11, %c0_12], %12 {strides = array<i32>} : memref<32x128xf32, #tpu.memory_space<vmem>>, vector<32x128xf32>,
    } else {
    }
    %c0 = arith.constant 0 : index
    %c0_1 = arith.constant 0 : index
    %3 = vector.load %arg8[%c0, %c0_1] : memref<32x128xf32, #tpu.memory_space<vmem>>, vector<32x128xf32>
    %c0_2 = arith.constant 0 : index
    %c0_3 = arith.constant 0 : index
    %4 = vector.load %arg3[%c0_2, %c0_3] : memref<32x128xbf16, #tpu.memory_space<vmem>>, vector<32x128xbf16>
    %c0_4 = arith.constant 0 : index
    %c0_5 = arith.constant 0 : index
    %5 = vector.load %arg4[%c0_4, %c0_5] : memref<128x128xbf16, #tpu.memory_space<vmem>>, vector<128x128xbf16>
    %cst = arith.constant dense<0.000000e+00> : vector<32x128xf32>
    %6 = tpu.matmul %4, %5, %cst {dimension_numbers = #tpu.dot_dimension_numbers<[1], [0], [0], [1], [0, 0, 1, 1], [], []>} : vector<32x128xbf16>, vector<128x128xbf16>, vector<32x128xf32> -> vector<32x128xf32>
    %7 = arith.addf %3, %6 : vector<32x128xf32>
    %c0_6 = arith.constant 0 : index
    %c0_7 = arith.constant 0 : index
    %8 = vector.load %arg8[%c0_6, %c0_7] : memref<32x128xf32, #tpu.memory_space<vmem>>, vector<32x128xf32>
    tpu.vector_store %arg8[%c0_6, %c0_7], %7 {strides = array<i32>} : memref<32x128xf32, #tpu.memory_space<vmem>>, vector<32x128xf32>,
    %c0_i32_8 = arith.constant 0 : i32
    %9 = arith.cmpi eq, %arg2, %c0_i32_8 : i32
    %10 = arith.extui %9 : i1 to i32
    %c0_i32_9 = arith.constant 0 : i32
    %11 = arith.cmpi ne, %10, %c0_i32_9 : i32
    scf.if %11 {
      %c0_10 = arith.constant 0 : index
      %c0_11 = arith.constant 0 : index
      %12 = vector.load %arg8[%c0_10, %c0_11] : memref<32x128xf32, #tpu.memory_space<vmem>>, vector<32x128xf32>
      %c0_12 = arith.constant 0 : index
      %c0_13 = arith.constant 0 : index
      %13 = vector.load %arg5[%c0_12, %c0_13] : memref<1x128xf32, #tpu.memory_space<vmem>>, vector<1x128xf32>
      %14 = vector.broadcast %13 : vector<1x128xf32> to vector<32x128xf32>
      %15 = arith.mulf %12, %14 : vector<32x128xf32>
      %c0_14 = arith.constant 0 : index
      %c0_15 = arith.constant 0 : index
      %16 = vector.load %arg6[%c0_14, %c0_15] : memref<1x128xf32, #tpu.memory_space<vmem>>, vector<1x128xf32>
      %17 = vector.broadcast %16 : vector<1x128xf32> to vector<32x128xf32>
      %18 = arith.addf %15, %17 : vector<32x128xf32>
      %c0_16 = arith.constant 0 : index
      %c0_17 = arith.constant 0 : index
      %19 = vector.load %arg7[%c0_16, %c0_17] : memref<32x128xf32, #tpu.memory_space<vmem>>, vector<32x128xf32>
      tpu.vector_store %arg7[%c0_16, %c0_17], %18 {strides = array<i32>} : memref<32x128xf32, #tpu.memory_space<vmem>>, vector<32x128xf32>,
    } else {
    }
    return
  }
  func.func @transform_0(%arg0: i32, %arg1: i32, %arg2: i32) -> (i32, i32) {
    %c0_i32 = arith.constant 0 : i32
    return %arg0, %arg2 : i32, i32
  }
  func.func @transform_1(%arg0: i32, %arg1: i32, %arg2: i32) -> (i32, i32) {
    %c0_i32 = arith.constant 0 : i32
    return %arg2, %arg1 : i32, i32
  }
  func.func @transform_2(%arg0: i32, %arg1: i32, %arg2: i32) -> (i32, i32) {
    %c0_i32 = arith.constant 0 : i32
    %c0_i32_0 = arith.constant 0 : i32
    return %c0_i32, %arg1 : i32, i32
  }
  func.func @transform_3(%arg0: i32, %arg1: i32, %arg2: i32) -> (i32, i32) {
    %c0_i32 = arith.constant 0 : i32
    %c0_i32_0 = arith.constant 0 : i32
    return %c0_i32, %arg1 : i32, i32
  }
  func.func @transform_4(%arg0: i32, %arg1: i32, %arg2: i32) -> (i32, i32) {
    %c0_i32 = arith.constant 0 : i32
    return %arg0, %arg1 : i32, i32
  }
}

module attributes {stable_mosaic.version = 11 : i64} {
  func.func @kernel(%arg0: i32, %arg1: i32, %arg2: i32, %arg3: memref<8x384xbf16, #tpu.memory_space<vmem>>, %arg4: memref<384x256xbf16, #tpu.memory_space<vmem>>, %arg5: memref<1x256xf32, #tpu.memory_space<vmem>>, %arg6: memref<1x256xf32, #tpu.memory_space<vmem>>, %arg7: memref<8x256xf32, #tpu.memory_space<vmem>>, %arg8: memref<8x256xf32, #tpu.memory_space<vmem>>) attributes {dimension_semantics = [#tpu.dimension_semantics<parallel>, #tpu.dimension_semantics<parallel>, #tpu.dimension_semantics<arbitrary>], iteration_bounds = array<i64: 1, 1, 3>, scalar_prefetch = 0 : i64, scratch_operands = 1 : i64, tpu.core_type = #tpu.core_type<tc>, window_params = [{transform_indices = @transform_0, window_bounds = array<i64: 8, 384>}, {transform_indices = @transform_1, window_bounds = array<i64: 384, 256>}, {transform_indices = @transform_2, window_bounds = array<i64: 1, 256>}, {transform_indices = @transform_3, window_bounds = array<i64: 1, 256>}, {transform_indices = @transform_4, window_bounds = array<i64: 8, 256>}]} {
    %c0_i32 = arith.constant 0 : i32
    %0 = arith.cmpi eq, %arg2, %c0_i32 : i32
    %1 = arith.extui %0 : i1 to i32
    %c0_i32_0 = arith.constant 0 : i32
    %2 = arith.cmpi ne, %1, %c0_i32_0 : i32
    scf.if %2 {
      %cst_9 = arith.constant 0.000000e+00 : f32
      %12 = vector.broadcast %cst_9 : f32 to vector<8x256xf32>
      %c0_10 = arith.constant 0 : index
      %c0_11 = arith.constant 0 : index
      %13 = vector.load %arg8[%c0_10, %c0_11] : memref<8x256xf32, #tpu.memory_space<vmem>>, vector<8x256xf32>
      tpu.vector_store %arg8[%c0_10, %c0_11], %12 {strides = array<i32>} : memref<8x256xf32, #tpu.memory_space<vmem>>, vector<8x256xf32>,
    } else {
    }
    %c0 = arith.constant 0 : index
    %c0_1 = arith.constant 0 : index
    %3 = vector.load %arg8[%c0, %c0_1] : memref<8x256xf32, #tpu.memory_space<vmem>>, vector<8x256xf32>
    %c0_2 = arith.constant 0 : index
    %c0_3 = arith.constant 0 : index
    %4 = vector.load %arg3[%c0_2, %c0_3] : memref<8x384xbf16, #tpu.memory_space<vmem>>, vector<8x384xbf16>
    %c0_4 = arith.constant 0 : index
    %c0_5 = arith.constant 0 : index
    %5 = vector.load %arg4[%c0_4, %c0_5] : memref<384x256xbf16, #tpu.memory_space<vmem>>, vector<384x256xbf16>
    %cst = arith.constant dense<0.000000e+00> : vector<8x256xf32>
    %6 = tpu.matmul %4, %5, %cst {dimension_numbers = #tpu.dot_dimension_numbers<[1], [0], [0], [1], [0, 0, 1, 1], [], []>} : vector<8x384xbf16>, vector<384x256xbf16>, vector<8x256xf32> -> vector<8x256xf32>
    %7 = arith.addf %3, %6 : vector<8x256xf32>
    %c0_6 = arith.constant 0 : index
    %c0_7 = arith.constant 0 : index
    %8 = vector.load %arg8[%c0_6, %c0_7] : memref<8x256xf32, #tpu.memory_space<vmem>>, vector<8x256xf32>
    tpu.vector_store %arg8[%c0_6, %c0_7], %7 {strides = array<i32>} : memref<8x256xf32, #tpu.memory_space<vmem>>, vector<8x256xf32>,
    %c2_i32 = arith.constant 2 : i32
    %9 = arith.cmpi eq, %arg2, %c2_i32 : i32
    %10 = arith.extui %9 : i1 to i32
    %c0_i32_8 = arith.constant 0 : i32
    %11 = arith.cmpi ne, %10, %c0_i32_8 : i32
    scf.if %11 {
      %c0_9 = arith.constant 0 : index
      %c0_10 = arith.constant 0 : index
      %12 = vector.load %arg8[%c0_9, %c0_10] : memref<8x256xf32, #tpu.memory_space<vmem>>, vector<8x256xf32>
      %c0_11 = arith.constant 0 : index
      %c0_12 = arith.constant 0 : index
      %13 = vector.load %arg5[%c0_11, %c0_12] : memref<1x256xf32, #tpu.memory_space<vmem>>, vector<1x256xf32>
      %14 = vector.broadcast %13 : vector<1x256xf32> to vector<8x256xf32>
      %15 = arith.mulf %12, %14 : vector<8x256xf32>
      %c0_13 = arith.constant 0 : index
      %c0_14 = arith.constant 0 : index
      %16 = vector.load %arg6[%c0_13, %c0_14] : memref<1x256xf32, #tpu.memory_space<vmem>>, vector<1x256xf32>
      %17 = vector.broadcast %16 : vector<1x256xf32> to vector<8x256xf32>
      %18 = arith.addf %15, %17 : vector<8x256xf32>
      %cst_15 = arith.constant 0.000000e+00 : f32
      %19 = vector.broadcast %cst_15 : f32 to vector<8x256xf32>
      %20 = arith.maximumf %18, %19 : vector<8x256xf32>
      %c0_16 = arith.constant 0 : index
      %c0_17 = arith.constant 0 : index
      %21 = vector.load %arg7[%c0_16, %c0_17] : memref<8x256xf32, #tpu.memory_space<vmem>>, vector<8x256xf32>
      tpu.vector_store %arg7[%c0_16, %c0_17], %20 {strides = array<i32>} : memref<8x256xf32, #tpu.memory_space<vmem>>, vector<8x256xf32>,
    } else {
    }
    return
  }
  func.func @transform_0(%arg0: i32, %arg1: i32, %arg2: i32) -> (i32, i32) {
    %c0_i32 = arith.constant 0 : i32
    return %arg0, %arg2 : i32, i32
  }
  func.func @transform_1(%arg0: i32, %arg1: i32, %arg2: i32) -> (i32, i32) {
    %c0_i32 = arith.constant 0 : i32
    return %arg2, %arg1 : i32, i32
  }
  func.func @transform_2(%arg0: i32, %arg1: i32, %arg2: i32) -> (i32, i32) {
    %c0_i32 = arith.constant 0 : i32
    %c0_i32_0 = arith.constant 0 : i32
    return %c0_i32, %arg1 : i32, i32
  }
  func.func @transform_3(%arg0: i32, %arg1: i32, %arg2: i32) -> (i32, i32) {
    %c0_i32 = arith.constant 0 : i32
    %c0_i32_0 = arith.constant 0 : i32
    return %c0_i32, %arg1 : i32, i32
  }
  func.func @transform_4(%arg0: i32, %arg1: i32, %arg2: i32) -> (i32, i32) {
    %c0_i32 = arith.constant 0 : i32
    return %arg0, %arg1 : i32, i32
  }
}

module attributes {stable_mosaic.version = 11 : i64} {
  func.func @kernel(%arg0: i32, %arg1: i32, %arg2: i32, %arg3: memref<8x768xbf16, #tpu.memory_space<vmem>>, %arg4: memref<768x256xbf16, #tpu.memory_space<vmem>>, %arg5: memref<1x256xf32, #tpu.memory_space<vmem>>, %arg6: memref<1x256xf32, #tpu.memory_space<vmem>>, %arg7: memref<8x256xf32, #tpu.memory_space<vmem>>, %arg8: memref<8x256xf32, #tpu.memory_space<vmem>>) attributes {dimension_semantics = [#tpu.dimension_semantics<parallel>, #tpu.dimension_semantics<parallel>, #tpu.dimension_semantics<arbitrary>], iteration_bounds = array<i64: 1, 1, 3>, scalar_prefetch = 0 : i64, scratch_operands = 1 : i64, tpu.core_type = #tpu.core_type<tc>, window_params = [{transform_indices = @transform_0, window_bounds = array<i64: 8, 768>}, {transform_indices = @transform_1, window_bounds = array<i64: 768, 256>}, {transform_indices = @transform_2, window_bounds = array<i64: 1, 256>}, {transform_indices = @transform_3, window_bounds = array<i64: 1, 256>}, {transform_indices = @transform_4, window_bounds = array<i64: 8, 256>}]} {
    %c0_i32 = arith.constant 0 : i32
    %0 = arith.cmpi eq, %arg2, %c0_i32 : i32
    %1 = arith.extui %0 : i1 to i32
    %c0_i32_0 = arith.constant 0 : i32
    %2 = arith.cmpi ne, %1, %c0_i32_0 : i32
    scf.if %2 {
      %cst_9 = arith.constant 0.000000e+00 : f32
      %12 = vector.broadcast %cst_9 : f32 to vector<8x256xf32>
      %c0_10 = arith.constant 0 : index
      %c0_11 = arith.constant 0 : index
      %13 = vector.load %arg8[%c0_10, %c0_11] : memref<8x256xf32, #tpu.memory_space<vmem>>, vector<8x256xf32>
      tpu.vector_store %arg8[%c0_10, %c0_11], %12 {strides = array<i32>} : memref<8x256xf32, #tpu.memory_space<vmem>>, vector<8x256xf32>,
    } else {
    }
    %c0 = arith.constant 0 : index
    %c0_1 = arith.constant 0 : index
    %3 = vector.load %arg8[%c0, %c0_1] : memref<8x256xf32, #tpu.memory_space<vmem>>, vector<8x256xf32>
    %c0_2 = arith.constant 0 : index
    %c0_3 = arith.constant 0 : index
    %4 = vector.load %arg3[%c0_2, %c0_3] : memref<8x768xbf16, #tpu.memory_space<vmem>>, vector<8x768xbf16>
    %c0_4 = arith.constant 0 : index
    %c0_5 = arith.constant 0 : index
    %5 = vector.load %arg4[%c0_4, %c0_5] : memref<768x256xbf16, #tpu.memory_space<vmem>>, vector<768x256xbf16>
    %cst = arith.constant dense<0.000000e+00> : vector<8x256xf32>
    %6 = tpu.matmul %4, %5, %cst {dimension_numbers = #tpu.dot_dimension_numbers<[1], [0], [0], [1], [0, 0, 1, 1], [], []>} : vector<8x768xbf16>, vector<768x256xbf16>, vector<8x256xf32> -> vector<8x256xf32>
    %7 = arith.addf %3, %6 : vector<8x256xf32>
    %c0_6 = arith.constant 0 : index
    %c0_7 = arith.constant 0 : index
    %8 = vector.load %arg8[%c0_6, %c0_7] : memref<8x256xf32, #tpu.memory_space<vmem>>, vector<8x256xf32>
    tpu.vector_store %arg8[%c0_6, %c0_7], %7 {strides = array<i32>} : memref<8x256xf32, #tpu.memory_space<vmem>>, vector<8x256xf32>,
    %c2_i32 = arith.constant 2 : i32
    %9 = arith.cmpi eq, %arg2, %c2_i32 : i32
    %10 = arith.extui %9 : i1 to i32
    %c0_i32_8 = arith.constant 0 : i32
    %11 = arith.cmpi ne, %10, %c0_i32_8 : i32
    scf.if %11 {
      %c0_9 = arith.constant 0 : index
      %c0_10 = arith.constant 0 : index
      %12 = vector.load %arg8[%c0_9, %c0_10] : memref<8x256xf32, #tpu.memory_space<vmem>>, vector<8x256xf32>
      %c0_11 = arith.constant 0 : index
      %c0_12 = arith.constant 0 : index
      %13 = vector.load %arg5[%c0_11, %c0_12] : memref<1x256xf32, #tpu.memory_space<vmem>>, vector<1x256xf32>
      %14 = vector.broadcast %13 : vector<1x256xf32> to vector<8x256xf32>
      %15 = arith.mulf %12, %14 : vector<8x256xf32>
      %c0_13 = arith.constant 0 : index
      %c0_14 = arith.constant 0 : index
      %16 = vector.load %arg6[%c0_13, %c0_14] : memref<1x256xf32, #tpu.memory_space<vmem>>, vector<1x256xf32>
      %17 = vector.broadcast %16 : vector<1x256xf32> to vector<8x256xf32>
      %18 = arith.addf %15, %17 : vector<8x256xf32>
      %cst_15 = arith.constant 0.000000e+00 : f32
      %19 = vector.broadcast %cst_15 : f32 to vector<8x256xf32>
      %20 = arith.maximumf %18, %19 : vector<8x256xf32>
      %c0_16 = arith.constant 0 : index
      %c0_17 = arith.constant 0 : index
      %21 = vector.load %arg7[%c0_16, %c0_17] : memref<8x256xf32, #tpu.memory_space<vmem>>, vector<8x256xf32>
      tpu.vector_store %arg7[%c0_16, %c0_17], %20 {strides = array<i32>} : memref<8x256xf32, #tpu.memory_space<vmem>>, vector<8x256xf32>,
    } else {
    }
    return
  }
  func.func @transform_0(%arg0: i32, %arg1: i32, %arg2: i32) -> (i32, i32) {
    %c0_i32 = arith.constant 0 : i32
    return %arg0, %arg2 : i32, i32
  }
  func.func @transform_1(%arg0: i32, %arg1: i32, %arg2: i32) -> (i32, i32) {
    %c0_i32 = arith.constant 0 : i32
    return %arg2, %arg1 : i32, i32
  }
  func.func @transform_2(%arg0: i32, %arg1: i32, %arg2: i32) -> (i32, i32) {
    %c0_i32 = arith.constant 0 : i32
    %c0_i32_0 = arith.constant 0 : i32
    return %c0_i32, %arg1 : i32, i32
  }
  func.func @transform_3(%arg0: i32, %arg1: i32, %arg2: i32) -> (i32, i32) {
    %c0_i32 = arith.constant 0 : i32
    %c0_i32_0 = arith.constant 0 : i32
    return %c0_i32, %arg1 : i32, i32
  }
  func.func @transform_4(%arg0: i32, %arg1: i32, %arg2: i32) -> (i32, i32) {
    %c0_i32 = arith.constant 0 : i32
    return %arg0, %arg1 : i32, i32
  }
}

module attributes {stable_mosaic.version = 11 : i64} {
  func.func @kernel(%arg0: i32, %arg1: i32, %arg2: i32, %arg3: memref<8x768xbf16, #tpu.memory_space<vmem>>, %arg4: memref<768x256xbf16, #tpu.memory_space<vmem>>, %arg5: memref<1x256xf32, #tpu.memory_space<vmem>>, %arg6: memref<1x256xf32, #tpu.memory_space<vmem>>, %arg7: memref<8x256xf32, #tpu.memory_space<vmem>>, %arg8: memref<8x256xf32, #tpu.memory_space<vmem>>, %arg9: memref<8x256xf32, #tpu.memory_space<vmem>>) attributes {dimension_semantics = [#tpu.dimension_semantics<parallel>, #tpu.dimension_semantics<parallel>, #tpu.dimension_semantics<arbitrary>], iteration_bounds = array<i64: 1, 1, 3>, scalar_prefetch = 0 : i64, scratch_operands = 1 : i64, tpu.core_type = #tpu.core_type<tc>, window_params = [{transform_indices = @transform_0, window_bounds = array<i64: 8, 768>}, {transform_indices = @transform_1, window_bounds = array<i64: 768, 256>}, {transform_indices = @transform_2, window_bounds = array<i64: 1, 256>}, {transform_indices = @transform_3, window_bounds = array<i64: 1, 256>}, {transform_indices = @transform_4, window_bounds = array<i64: 8, 256>}, {transform_indices = @transform_5, window_bounds = array<i64: 8, 256>}]} {
    %c0_i32 = arith.constant 0 : i32
    %0 = arith.cmpi eq, %arg2, %c0_i32 : i32
    %1 = arith.extui %0 : i1 to i32
    %c0_i32_0 = arith.constant 0 : i32
    %2 = arith.cmpi ne, %1, %c0_i32_0 : i32
    scf.if %2 {
      %cst_9 = arith.constant 0.000000e+00 : f32
      %12 = vector.broadcast %cst_9 : f32 to vector<8x256xf32>
      %c0_10 = arith.constant 0 : index
      %c0_11 = arith.constant 0 : index
      %13 = vector.load %arg9[%c0_10, %c0_11] : memref<8x256xf32, #tpu.memory_space<vmem>>, vector<8x256xf32>
      tpu.vector_store %arg9[%c0_10, %c0_11], %12 {strides = array<i32>} : memref<8x256xf32, #tpu.memory_space<vmem>>, vector<8x256xf32>,
    } else {
    }
    %c0 = arith.constant 0 : index
    %c0_1 = arith.constant 0 : index
    %3 = vector.load %arg9[%c0, %c0_1] : memref<8x256xf32, #tpu.memory_space<vmem>>, vector<8x256xf32>
    %c0_2 = arith.constant 0 : index
    %c0_3 = arith.constant 0 : index
    %4 = vector.load %arg3[%c0_2, %c0_3] : memref<8x768xbf16, #tpu.memory_space<vmem>>, vector<8x768xbf16>
    %c0_4 = arith.constant 0 : index
    %c0_5 = arith.constant 0 : index
    %5 = vector.load %arg4[%c0_4, %c0_5] : memref<768x256xbf16, #tpu.memory_space<vmem>>, vector<768x256xbf16>
    %cst = arith.constant dense<0.000000e+00> : vector<8x256xf32>
    %6 = tpu.matmul %4, %5, %cst {dimension_numbers = #tpu.dot_dimension_numbers<[1], [0], [0], [1], [0, 0, 1, 1], [], []>} : vector<8x768xbf16>, vector<768x256xbf16>, vector<8x256xf32> -> vector<8x256xf32>
    %7 = arith.addf %3, %6 : vector<8x256xf32>
    %c0_6 = arith.constant 0 : index
    %c0_7 = arith.constant 0 : index
    %8 = vector.load %arg9[%c0_6, %c0_7] : memref<8x256xf32, #tpu.memory_space<vmem>>, vector<8x256xf32>
    tpu.vector_store %arg9[%c0_6, %c0_7], %7 {strides = array<i32>} : memref<8x256xf32, #tpu.memory_space<vmem>>, vector<8x256xf32>,
    %c2_i32 = arith.constant 2 : i32
    %9 = arith.cmpi eq, %arg2, %c2_i32 : i32
    %10 = arith.extui %9 : i1 to i32
    %c0_i32_8 = arith.constant 0 : i32
    %11 = arith.cmpi ne, %10, %c0_i32_8 : i32
    scf.if %11 {
      %c0_9 = arith.constant 0 : index
      %c0_10 = arith.constant 0 : index
      %12 = vector.load %arg9[%c0_9, %c0_10] : memref<8x256xf32, #tpu.memory_space<vmem>>, vector<8x256xf32>
      %c0_11 = arith.constant 0 : index
      %c0_12 = arith.constant 0 : index
      %13 = vector.load %arg5[%c0_11, %c0_12] : memref<1x256xf32, #tpu.memory_space<vmem>>, vector<1x256xf32>
      %14 = vector.broadcast %13 : vector<1x256xf32> to vector<8x256xf32>
      %15 = arith.mulf %12, %14 : vector<8x256xf32>
      %c0_13 = arith.constant 0 : index
      %c0_14 = arith.constant 0 : index
      %16 = vector.load %arg6[%c0_13, %c0_14] : memref<1x256xf32, #tpu.memory_space<vmem>>, vector<1x256xf32>
      %17 = vector.broadcast %16 : vector<1x256xf32> to vector<8x256xf32>
      %18 = arith.addf %15, %17 : vector<8x256xf32>
      %c0_15 = arith.constant 0 : index
      %c0_16 = arith.constant 0 : index
      %19 = vector.load %arg7[%c0_15, %c0_16] : memref<8x256xf32, #tpu.memory_space<vmem>>, vector<8x256xf32>
      %20 = arith.addf %18, %19 : vector<8x256xf32>
      %cst_17 = arith.constant 0.000000e+00 : f32
      %21 = vector.broadcast %cst_17 : f32 to vector<8x256xf32>
      %22 = arith.maximumf %20, %21 : vector<8x256xf32>
      %c0_18 = arith.constant 0 : index
      %c0_19 = arith.constant 0 : index
      %23 = vector.load %arg8[%c0_18, %c0_19] : memref<8x256xf32, #tpu.memory_space<vmem>>, vector<8x256xf32>
      tpu.vector_store %arg8[%c0_18, %c0_19], %22 {strides = array<i32>} : memref<8x256xf32, #tpu.memory_space<vmem>>, vector<8x256xf32>,
    } else {
    }
    return
  }
  func.func @transform_0(%arg0: i32, %arg1: i32, %arg2: i32) -> (i32, i32) {
    %c0_i32 = arith.constant 0 : i32
    return %arg0, %arg2 : i32, i32
  }
  func.func @transform_1(%arg0: i32, %arg1: i32, %arg2: i32) -> (i32, i32) {
    %c0_i32 = arith.constant 0 : i32
    return %arg2, %arg1 : i32, i32
  }
  func.func @transform_2(%arg0: i32, %arg1: i32, %arg2: i32) -> (i32, i32) {
    %c0_i32 = arith.constant 0 : i32
    %c0_i32_0 = arith.constant 0 : i32
    return %c0_i32, %arg1 : i32, i32
  }
  func.func @transform_3(%arg0: i32, %arg1: i32, %arg2: i32) -> (i32, i32) {
    %c0_i32 = arith.constant 0 : i32
    %c0_i32_0 = arith.constant 0 : i32
    return %c0_i32, %arg1 : i32, i32
  }
  func.func @transform_4(%arg0: i32, %arg1: i32, %arg2: i32) -> (i32, i32) {
    %c0_i32 = arith.constant 0 : i32
    return %arg0, %arg1 : i32, i32
  }
  func.func @transform_5(%arg0: i32, %arg1: i32, %arg2: i32) -> (i32, i32) {
    %c0_i32 = arith.constant 0 : i32
    return %arg0, %arg1 : i32, i32
  }
}

module attributes {stable_mosaic.version = 11 : i64} {
  func.func @kernel(%arg0: i32, %arg1: i32, %arg2: i32, %arg3: memref<8x128xbf16, #tpu.memory_space<vmem>>, %arg4: memref<128x256xbf16, #tpu.memory_space<vmem>>, %arg5: memref<1x256xf32, #tpu.memory_space<vmem>>, %arg6: memref<1x256xf32, #tpu.memory_space<vmem>>, %arg7: memref<8x256xf32, #tpu.memory_space<vmem>>, %arg8: memref<8x256xf32, #tpu.memory_space<vmem>>) attributes {dimension_semantics = [#tpu.dimension_semantics<parallel>, #tpu.dimension_semantics<parallel>, #tpu.dimension_semantics<arbitrary>], iteration_bounds = array<i64: 1, 1, 1>, scalar_prefetch = 0 : i64, scratch_operands = 1 : i64, tpu.core_type = #tpu.core_type<tc>, window_params = [{transform_indices = @transform_0, window_bounds = array<i64: 8, 128>}, {transform_indices = @transform_1, window_bounds = array<i64: 128, 256>}, {transform_indices = @transform_2, window_bounds = array<i64: 1, 256>}, {transform_indices = @transform_3, window_bounds = array<i64: 1, 256>}, {transform_indices = @transform_4, window_bounds = array<i64: 8, 256>}]} {
    %c0_i32 = arith.constant 0 : i32
    %0 = arith.cmpi eq, %arg2, %c0_i32 : i32
    %1 = arith.extui %0 : i1 to i32
    %c0_i32_0 = arith.constant 0 : i32
    %2 = arith.cmpi ne, %1, %c0_i32_0 : i32
    scf.if %2 {
      %cst_10 = arith.constant 0.000000e+00 : f32
      %12 = vector.broadcast %cst_10 : f32 to vector<8x256xf32>
      %c0_11 = arith.constant 0 : index
      %c0_12 = arith.constant 0 : index
      %13 = vector.load %arg8[%c0_11, %c0_12] : memref<8x256xf32, #tpu.memory_space<vmem>>, vector<8x256xf32>
      tpu.vector_store %arg8[%c0_11, %c0_12], %12 {strides = array<i32>} : memref<8x256xf32, #tpu.memory_space<vmem>>, vector<8x256xf32>,
    } else {
    }
    %c0 = arith.constant 0 : index
    %c0_1 = arith.constant 0 : index
    %3 = vector.load %arg8[%c0, %c0_1] : memref<8x256xf32, #tpu.memory_space<vmem>>, vector<8x256xf32>
    %c0_2 = arith.constant 0 : index
    %c0_3 = arith.constant 0 : index
    %4 = vector.load %arg3[%c0_2, %c0_3] : memref<8x128xbf16, #tpu.memory_space<vmem>>, vector<8x128xbf16>
    %c0_4 = arith.constant 0 : index
    %c0_5 = arith.constant 0 : index
    %5 = vector.load %arg4[%c0_4, %c0_5] : memref<128x256xbf16, #tpu.memory_space<vmem>>, vector<128x256xbf16>
    %cst = arith.constant dense<0.000000e+00> : vector<8x256xf32>
    %6 = tpu.matmul %4, %5, %cst {dimension_numbers = #tpu.dot_dimension_numbers<[1], [0], [0], [1], [0, 0, 1, 1], [], []>} : vector<8x128xbf16>, vector<128x256xbf16>, vector<8x256xf32> -> vector<8x256xf32>
    %7 = arith.addf %3, %6 : vector<8x256xf32>
    %c0_6 = arith.constant 0 : index
    %c0_7 = arith.constant 0 : index
    %8 = vector.load %arg8[%c0_6, %c0_7] : memref<8x256xf32, #tpu.memory_space<vmem>>, vector<8x256xf32>
    tpu.vector_store %arg8[%c0_6, %c0_7], %7 {strides = array<i32>} : memref<8x256xf32, #tpu.memory_space<vmem>>, vector<8x256xf32>,
    %c0_i32_8 = arith.constant 0 : i32
    %9 = arith.cmpi eq, %arg2, %c0_i32_8 : i32
    %10 = arith.extui %9 : i1 to i32
    %c0_i32_9 = arith.constant 0 : i32
    %11 = arith.cmpi ne, %10, %c0_i32_9 : i32
    scf.if %11 {
      %c0_10 = arith.constant 0 : index
      %c0_11 = arith.constant 0 : index
      %12 = vector.load %arg8[%c0_10, %c0_11] : memref<8x256xf32, #tpu.memory_space<vmem>>, vector<8x256xf32>
      %c0_12 = arith.constant 0 : index
      %c0_13 = arith.constant 0 : index
      %13 = vector.load %arg5[%c0_12, %c0_13] : memref<1x256xf32, #tpu.memory_space<vmem>>, vector<1x256xf32>
      %14 = vector.broadcast %13 : vector<1x256xf32> to vector<8x256xf32>
      %15 = arith.mulf %12, %14 : vector<8x256xf32>
      %c0_14 = arith.constant 0 : index
      %c0_15 = arith.constant 0 : index
      %16 = vector.load %arg6[%c0_14, %c0_15] : memref<1x256xf32, #tpu.memory_space<vmem>>, vector<1x256xf32>
      %17 = vector.broadcast %16 : vector<1x256xf32> to vector<8x256xf32>
      %18 = arith.addf %15, %17 : vector<8x256xf32>
      %c0_16 = arith.constant 0 : index
      %c0_17 = arith.constant 0 : index
      %19 = vector.load %arg7[%c0_16, %c0_17] : memref<8x256xf32, #tpu.memory_space<vmem>>, vector<8x256xf32>
      tpu.vector_store %arg7[%c0_16, %c0_17], %18 {strides = array<i32>} : memref<8x256xf32, #tpu.memory_space<vmem>>, vector<8x256xf32>,
    } else {
    }
    return
  }
  func.func @transform_0(%arg0: i32, %arg1: i32, %arg2: i32) -> (i32, i32) {
    %c0_i32 = arith.constant 0 : i32
    return %arg0, %arg2 : i32, i32
  }
  func.func @transform_1(%arg0: i32, %arg1: i32, %arg2: i32) -> (i32, i32) {
    %c0_i32 = arith.constant 0 : i32
    return %arg2, %arg1 : i32, i32
  }
  func.func @transform_2(%arg0: i32, %arg1: i32, %arg2: i32) -> (i32, i32) {
    %c0_i32 = arith.constant 0 : i32
    %c0_i32_0 = arith.constant 0 : i32
    return %c0_i32, %arg1 : i32, i32
  }
  func.func @transform_3(%arg0: i32, %arg1: i32, %arg2: i32) -> (i32, i32) {
    %c0_i32 = arith.constant 0 : i32
    %c0_i32_0 = arith.constant 0 : i32
    return %c0_i32, %arg1 : i32, i32
  }
  func.func @transform_4(%arg0: i32, %arg1: i32, %arg2: i32) -> (i32, i32) {
    %c0_i32 = arith.constant 0 : i32
    return %arg0, %arg1 : i32, i32
  }
}

module attributes {stable_mosaic.version = 11 : i64} {
  func.func @kernel(%arg0: i32, %arg1: i32, %arg2: i32, %arg3: memref<8x768xbf16, #tpu.memory_space<vmem>>, %arg4: memref<768x256xbf16, #tpu.memory_space<vmem>>, %arg5: memref<1x256xf32, #tpu.memory_space<vmem>>, %arg6: memref<1x256xf32, #tpu.memory_space<vmem>>, %arg7: memref<8x256xf32, #tpu.memory_space<vmem>>, %arg8: memref<8x256xf32, #tpu.memory_space<vmem>>) attributes {dimension_semantics = [#tpu.dimension_semantics<parallel>, #tpu.dimension_semantics<parallel>, #tpu.dimension_semantics<arbitrary>], iteration_bounds = array<i64: 1, 2, 3>, scalar_prefetch = 0 : i64, scratch_operands = 1 : i64, tpu.core_type = #tpu.core_type<tc>, window_params = [{transform_indices = @transform_0, window_bounds = array<i64: 8, 768>}, {transform_indices = @transform_1, window_bounds = array<i64: 768, 256>}, {transform_indices = @transform_2, window_bounds = array<i64: 1, 256>}, {transform_indices = @transform_3, window_bounds = array<i64: 1, 256>}, {transform_indices = @transform_4, window_bounds = array<i64: 8, 256>}]} {
    %c0_i32 = arith.constant 0 : i32
    %0 = arith.cmpi eq, %arg2, %c0_i32 : i32
    %1 = arith.extui %0 : i1 to i32
    %c0_i32_0 = arith.constant 0 : i32
    %2 = arith.cmpi ne, %1, %c0_i32_0 : i32
    scf.if %2 {
      %cst_9 = arith.constant 0.000000e+00 : f32
      %12 = vector.broadcast %cst_9 : f32 to vector<8x256xf32>
      %c0_10 = arith.constant 0 : index
      %c0_11 = arith.constant 0 : index
      %13 = vector.load %arg8[%c0_10, %c0_11] : memref<8x256xf32, #tpu.memory_space<vmem>>, vector<8x256xf32>
      tpu.vector_store %arg8[%c0_10, %c0_11], %12 {strides = array<i32>} : memref<8x256xf32, #tpu.memory_space<vmem>>, vector<8x256xf32>,
    } else {
    }
    %c0 = arith.constant 0 : index
    %c0_1 = arith.constant 0 : index
    %3 = vector.load %arg8[%c0, %c0_1] : memref<8x256xf32, #tpu.memory_space<vmem>>, vector<8x256xf32>
    %c0_2 = arith.constant 0 : index
    %c0_3 = arith.constant 0 : index
    %4 = vector.load %arg3[%c0_2, %c0_3] : memref<8x768xbf16, #tpu.memory_space<vmem>>, vector<8x768xbf16>
    %c0_4 = arith.constant 0 : index
    %c0_5 = arith.constant 0 : index
    %5 = vector.load %arg4[%c0_4, %c0_5] : memref<768x256xbf16, #tpu.memory_space<vmem>>, vector<768x256xbf16>
    %cst = arith.constant dense<0.000000e+00> : vector<8x256xf32>
    %6 = tpu.matmul %4, %5, %cst {dimension_numbers = #tpu.dot_dimension_numbers<[1], [0], [0], [1], [0, 0, 1, 1], [], []>} : vector<8x768xbf16>, vector<768x256xbf16>, vector<8x256xf32> -> vector<8x256xf32>
    %7 = arith.addf %3, %6 : vector<8x256xf32>
    %c0_6 = arith.constant 0 : index
    %c0_7 = arith.constant 0 : index
    %8 = vector.load %arg8[%c0_6, %c0_7] : memref<8x256xf32, #tpu.memory_space<vmem>>, vector<8x256xf32>
    tpu.vector_store %arg8[%c0_6, %c0_7], %7 {strides = array<i32>} : memref<8x256xf32, #tpu.memory_space<vmem>>, vector<8x256xf32>,
    %c2_i32 = arith.constant 2 : i32
    %9 = arith.cmpi eq, %arg2, %c2_i32 : i32
    %10 = arith.extui %9 : i1 to i32
    %c0_i32_8 = arith.constant 0 : i32
    %11 = arith.cmpi ne, %10, %c0_i32_8 : i32
    scf.if %11 {
      %c0_9 = arith.constant 0 : index
      %c0_10 = arith.constant 0 : index
      %12 = vector.load %arg8[%c0_9, %c0_10] : memref<8x256xf32, #tpu.memory_space<vmem>>, vector<8x256xf32>
      %c0_11 = arith.constant 0 : index
      %c0_12 = arith.constant 0 : index
      %13 = vector.load %arg5[%c0_11, %c0_12] : memref<1x256xf32, #tpu.memory_space<vmem>>, vector<1x256xf32>
      %14 = vector.broadcast %13 : vector<1x256xf32> to vector<8x256xf32>
      %15 = arith.mulf %12, %14 : vector<8x256xf32>
      %c0_13 = arith.constant 0 : index
      %c0_14 = arith.constant 0 : index
      %16 = vector.load %arg6[%c0_13, %c0_14] : memref<1x256xf32, #tpu.memory_space<vmem>>, vector<1x256xf32>
      %17 = vector.broadcast %16 : vector<1x256xf32> to vector<8x256xf32>
      %18 = arith.addf %15, %17 : vector<8x256xf32>
      %cst_15 = arith.constant 0.000000e+00 : f32
      %19 = vector.broadcast %cst_15 : f32 to vector<8x256xf32>
      %20 = arith.maximumf %18, %19 : vector<8x256xf32>
      %c0_16 = arith.constant 0 : index
      %c0_17 = arith.constant 0 : index
      %21 = vector.load %arg7[%c0_16, %c0_17] : memref<8x256xf32, #tpu.memory_space<vmem>>, vector<8x256xf32>
      tpu.vector_store %arg7[%c0_16, %c0_17], %20 {strides = array<i32>} : memref<8x256xf32, #tpu.memory_space<vmem>>, vector<8x256xf32>,
    } else {
    }
    return
  }
  func.func @transform_0(%arg0: i32, %arg1: i32, %arg2: i32) -> (i32, i32) {
    %c0_i32 = arith.constant 0 : i32
    return %arg0, %arg2 : i32, i32
  }
  func.func @transform_1(%arg0: i32, %arg1: i32, %arg2: i32) -> (i32, i32) {
    %c0_i32 = arith.constant 0 : i32
    return %arg2, %arg1 : i32, i32
  }
  func.func @transform_2(%arg0: i32, %arg1: i32, %arg2: i32) -> (i32, i32) {
    %c0_i32 = arith.constant 0 : i32
    %c0_i32_0 = arith.constant 0 : i32
    return %c0_i32, %arg1 : i32, i32
  }
  func.func @transform_3(%arg0: i32, %arg1: i32, %arg2: i32) -> (i32, i32) {
    %c0_i32 = arith.constant 0 : i32
    %c0_i32_0 = arith.constant 0 : i32
    return %c0_i32, %arg1 : i32, i32
  }
  func.func @transform_4(%arg0: i32, %arg1: i32, %arg2: i32) -> (i32, i32) {
    %c0_i32 = arith.constant 0 : i32
    return %arg0, %arg1 : i32, i32
  }
}

module attributes {stable_mosaic.version = 11 : i64} {
  func.func @kernel(%arg0: i32, %arg1: i32, %arg2: i32, %arg3: memref<8x256xbf16, #tpu.memory_space<vmem>>, %arg4: memref<256x256xbf16, #tpu.memory_space<vmem>>, %arg5: memref<1x256xf32, #tpu.memory_space<vmem>>, %arg6: memref<1x256xf32, #tpu.memory_space<vmem>>, %arg7: memref<8x256xf32, #tpu.memory_space<vmem>>, %arg8: memref<8x256xf32, #tpu.memory_space<vmem>>) attributes {dimension_semantics = [#tpu.dimension_semantics<parallel>, #tpu.dimension_semantics<parallel>, #tpu.dimension_semantics<arbitrary>], iteration_bounds = array<i64: 1, 2, 1>, scalar_prefetch = 0 : i64, scratch_operands = 1 : i64, tpu.core_type = #tpu.core_type<tc>, window_params = [{transform_indices = @transform_0, window_bounds = array<i64: 8, 256>}, {transform_indices = @transform_1, window_bounds = array<i64: 256, 256>}, {transform_indices = @transform_2, window_bounds = array<i64: 1, 256>}, {transform_indices = @transform_3, window_bounds = array<i64: 1, 256>}, {transform_indices = @transform_4, window_bounds = array<i64: 8, 256>}]} {
    %c0_i32 = arith.constant 0 : i32
    %0 = arith.cmpi eq, %arg2, %c0_i32 : i32
    %1 = arith.extui %0 : i1 to i32
    %c0_i32_0 = arith.constant 0 : i32
    %2 = arith.cmpi ne, %1, %c0_i32_0 : i32
    scf.if %2 {
      %cst_10 = arith.constant 0.000000e+00 : f32
      %12 = vector.broadcast %cst_10 : f32 to vector<8x256xf32>
      %c0_11 = arith.constant 0 : index
      %c0_12 = arith.constant 0 : index
      %13 = vector.load %arg8[%c0_11, %c0_12] : memref<8x256xf32, #tpu.memory_space<vmem>>, vector<8x256xf32>
      tpu.vector_store %arg8[%c0_11, %c0_12], %12 {strides = array<i32>} : memref<8x256xf32, #tpu.memory_space<vmem>>, vector<8x256xf32>,
    } else {
    }
    %c0 = arith.constant 0 : index
    %c0_1 = arith.constant 0 : index
    %3 = vector.load %arg8[%c0, %c0_1] : memref<8x256xf32, #tpu.memory_space<vmem>>, vector<8x256xf32>
    %c0_2 = arith.constant 0 : index
    %c0_3 = arith.constant 0 : index
    %4 = vector.load %arg3[%c0_2, %c0_3] : memref<8x256xbf16, #tpu.memory_space<vmem>>, vector<8x256xbf16>
    %c0_4 = arith.constant 0 : index
    %c0_5 = arith.constant 0 : index
    %5 = vector.load %arg4[%c0_4, %c0_5] : memref<256x256xbf16, #tpu.memory_space<vmem>>, vector<256x256xbf16>
    %cst = arith.constant dense<0.000000e+00> : vector<8x256xf32>
    %6 = tpu.matmul %4, %5, %cst {dimension_numbers = #tpu.dot_dimension_numbers<[1], [0], [0], [1], [0, 0, 1, 1], [], []>} : vector<8x256xbf16>, vector<256x256xbf16>, vector<8x256xf32> -> vector<8x256xf32>
    %7 = arith.addf %3, %6 : vector<8x256xf32>
    %c0_6 = arith.constant 0 : index
    %c0_7 = arith.constant 0 : index
    %8 = vector.load %arg8[%c0_6, %c0_7] : memref<8x256xf32, #tpu.memory_space<vmem>>, vector<8x256xf32>
    tpu.vector_store %arg8[%c0_6, %c0_7], %7 {strides = array<i32>} : memref<8x256xf32, #tpu.memory_space<vmem>>, vector<8x256xf32>,
    %c0_i32_8 = arith.constant 0 : i32
    %9 = arith.cmpi eq, %arg2, %c0_i32_8 : i32
    %10 = arith.extui %9 : i1 to i32
    %c0_i32_9 = arith.constant 0 : i32
    %11 = arith.cmpi ne, %10, %c0_i32_9 : i32
    scf.if %11 {
      %c0_10 = arith.constant 0 : index
      %c0_11 = arith.constant 0 : index
      %12 = vector.load %arg8[%c0_10, %c0_11] : memref<8x256xf32, #tpu.memory_space<vmem>>, vector<8x256xf32>
      %c0_12 = arith.constant 0 : index
      %c0_13 = arith.constant 0 : index
      %13 = vector.load %arg5[%c0_12, %c0_13] : memref<1x256xf32, #tpu.memory_space<vmem>>, vector<1x256xf32>
      %14 = vector.broadcast %13 : vector<1x256xf32> to vector<8x256xf32>
      %15 = arith.mulf %12, %14 : vector<8x256xf32>
      %c0_14 = arith.constant 0 : index
      %c0_15 = arith.constant 0 : index
      %16 = vector.load %arg6[%c0_14, %c0_15] : memref<1x256xf32, #tpu.memory_space<vmem>>, vector<1x256xf32>
      %17 = vector.broadcast %16 : vector<1x256xf32> to vector<8x256xf32>
      %18 = arith.addf %15, %17 : vector<8x256xf32>
      %c0_16 = arith.constant 0 : index
      %c0_17 = arith.constant 0 : index
      %19 = vector.load %arg7[%c0_16, %c0_17] : memref<8x256xf32, #tpu.memory_space<vmem>>, vector<8x256xf32>
      tpu.vector_store %arg7[%c0_16, %c0_17], %18 {strides = array<i32>} : memref<8x256xf32, #tpu.memory_space<vmem>>, vector<8x256xf32>,
    } else {
    }
    return
  }
  func.func @transform_0(%arg0: i32, %arg1: i32, %arg2: i32) -> (i32, i32) {
    %c0_i32 = arith.constant 0 : i32
    return %arg0, %arg2 : i32, i32
  }
  func.func @transform_1(%arg0: i32, %arg1: i32, %arg2: i32) -> (i32, i32) {
    %c0_i32 = arith.constant 0 : i32
    return %arg2, %arg1 : i32, i32
  }
  func.func @transform_2(%arg0: i32, %arg1: i32, %arg2: i32) -> (i32, i32) {
    %c0_i32 = arith.constant 0 : i32
    %c0_i32_0 = arith.constant 0 : i32
    return %c0_i32, %arg1 : i32, i32
  }
  func.func @transform_3(%arg0: i32, %arg1: i32, %arg2: i32) -> (i32, i32) {
    %c0_i32 = arith.constant 0 : i32
    %c0_i32_0 = arith.constant 0 : i32
    return %c0_i32, %arg1 : i32, i32
  }
  func.func @transform_4(%arg0: i32, %arg1: i32, %arg2: i32) -> (i32, i32) {
    %c0_i32 = arith.constant 0 : i32
    return %arg0, %arg1 : i32, i32
  }
}

module attributes {stable_mosaic.version = 11 : i64} {
  func.func @kernel(%arg0: i32, %arg1: i32, %arg2: i32, %arg3: memref<8x768xbf16, #tpu.memory_space<vmem>>, %arg4: memref<768x256xbf16, #tpu.memory_space<vmem>>, %arg5: memref<1x256xf32, #tpu.memory_space<vmem>>, %arg6: memref<1x256xf32, #tpu.memory_space<vmem>>, %arg7: memref<8x256xf32, #tpu.memory_space<vmem>>, %arg8: memref<8x256xf32, #tpu.memory_space<vmem>>, %arg9: memref<8x256xf32, #tpu.memory_space<vmem>>) attributes {dimension_semantics = [#tpu.dimension_semantics<parallel>, #tpu.dimension_semantics<parallel>, #tpu.dimension_semantics<arbitrary>], iteration_bounds = array<i64: 1, 2, 6>, scalar_prefetch = 0 : i64, scratch_operands = 1 : i64, tpu.core_type = #tpu.core_type<tc>, window_params = [{transform_indices = @transform_0, window_bounds = array<i64: 8, 768>}, {transform_indices = @transform_1, window_bounds = array<i64: 768, 256>}, {transform_indices = @transform_2, window_bounds = array<i64: 1, 256>}, {transform_indices = @transform_3, window_bounds = array<i64: 1, 256>}, {transform_indices = @transform_4, window_bounds = array<i64: 8, 256>}, {transform_indices = @transform_5, window_bounds = array<i64: 8, 256>}]} {
    %c0_i32 = arith.constant 0 : i32
    %0 = arith.cmpi eq, %arg2, %c0_i32 : i32
    %1 = arith.extui %0 : i1 to i32
    %c0_i32_0 = arith.constant 0 : i32
    %2 = arith.cmpi ne, %1, %c0_i32_0 : i32
    scf.if %2 {
      %cst_9 = arith.constant 0.000000e+00 : f32
      %12 = vector.broadcast %cst_9 : f32 to vector<8x256xf32>
      %c0_10 = arith.constant 0 : index
      %c0_11 = arith.constant 0 : index
      %13 = vector.load %arg9[%c0_10, %c0_11] : memref<8x256xf32, #tpu.memory_space<vmem>>, vector<8x256xf32>
      tpu.vector_store %arg9[%c0_10, %c0_11], %12 {strides = array<i32>} : memref<8x256xf32, #tpu.memory_space<vmem>>, vector<8x256xf32>,
    } else {
    }
    %c0 = arith.constant 0 : index
    %c0_1 = arith.constant 0 : index
    %3 = vector.load %arg9[%c0, %c0_1] : memref<8x256xf32, #tpu.memory_space<vmem>>, vector<8x256xf32>
    %c0_2 = arith.constant 0 : index
    %c0_3 = arith.constant 0 : index
    %4 = vector.load %arg3[%c0_2, %c0_3] : memref<8x768xbf16, #tpu.memory_space<vmem>>, vector<8x768xbf16>
    %c0_4 = arith.constant 0 : index
    %c0_5 = arith.constant 0 : index
    %5 = vector.load %arg4[%c0_4, %c0_5] : memref<768x256xbf16, #tpu.memory_space<vmem>>, vector<768x256xbf16>
    %cst = arith.constant dense<0.000000e+00> : vector<8x256xf32>
    %6 = tpu.matmul %4, %5, %cst {dimension_numbers = #tpu.dot_dimension_numbers<[1], [0], [0], [1], [0, 0, 1, 1], [], []>} : vector<8x768xbf16>, vector<768x256xbf16>, vector<8x256xf32> -> vector<8x256xf32>
    %7 = arith.addf %3, %6 : vector<8x256xf32>
    %c0_6 = arith.constant 0 : index
    %c0_7 = arith.constant 0 : index
    %8 = vector.load %arg9[%c0_6, %c0_7] : memref<8x256xf32, #tpu.memory_space<vmem>>, vector<8x256xf32>
    tpu.vector_store %arg9[%c0_6, %c0_7], %7 {strides = array<i32>} : memref<8x256xf32, #tpu.memory_space<vmem>>, vector<8x256xf32>,
    %c5_i32 = arith.constant 5 : i32
    %9 = arith.cmpi eq, %arg2, %c5_i32 : i32
    %10 = arith.extui %9 : i1 to i32
    %c0_i32_8 = arith.constant 0 : i32
    %11 = arith.cmpi ne, %10, %c0_i32_8 : i32
    scf.if %11 {
      %c0_9 = arith.constant 0 : index
      %c0_10 = arith.constant 0 : index
      %12 = vector.load %arg9[%c0_9, %c0_10] : memref<8x256xf32, #tpu.memory_space<vmem>>, vector<8x256xf32>
      %c0_11 = arith.constant 0 : index
      %c0_12 = arith.constant 0 : index
      %13 = vector.load %arg5[%c0_11, %c0_12] : memref<1x256xf32, #tpu.memory_space<vmem>>, vector<1x256xf32>
      %14 = vector.broadcast %13 : vector<1x256xf32> to vector<8x256xf32>
      %15 = arith.mulf %12, %14 : vector<8x256xf32>
      %c0_13 = arith.constant 0 : index
      %c0_14 = arith.constant 0 : index
      %16 = vector.load %arg6[%c0_13, %c0_14] : memref<1x256xf32, #tpu.memory_space<vmem>>, vector<1x256xf32>
      %17 = vector.broadcast %16 : vector<1x256xf32> to vector<8x256xf32>
      %18 = arith.addf %15, %17 : vector<8x256xf32>
      %c0_15 = arith.constant 0 : index
      %c0_16 = arith.constant 0 : index
      %19 = vector.load %arg7[%c0_15, %c0_16] : memref<8x256xf32, #tpu.memory_space<vmem>>, vector<8x256xf32>
      %20 = arith.addf %18, %19 : vector<8x256xf32>
      %cst_17 = arith.constant 0.000000e+00 : f32
      %21 = vector.broadcast %cst_17 : f32 to vector<8x256xf32>
      %22 = arith.maximumf %20, %21 : vector<8x256xf32>
      %c0_18 = arith.constant 0 : index
      %c0_19 = arith.constant 0 : index
      %23 = vector.load %arg8[%c0_18, %c0_19] : memref<8x256xf32, #tpu.memory_space<vmem>>, vector<8x256xf32>
      tpu.vector_store %arg8[%c0_18, %c0_19], %22 {strides = array<i32>} : memref<8x256xf32, #tpu.memory_space<vmem>>, vector<8x256xf32>,
    } else {
    }
    return
  }
  func.func @transform_0(%arg0: i32, %arg1: i32, %arg2: i32) -> (i32, i32) {
    %c0_i32 = arith.constant 0 : i32
    return %arg0, %arg2 : i32, i32
  }
  func.func @transform_1(%arg0: i32, %arg1: i32, %arg2: i32) -> (i32, i32) {
    %c0_i32 = arith.constant 0 : i32
    return %arg2, %arg1 : i32, i32
  }
  func.func @transform_2(%arg0: i32, %arg1: i32, %arg2: i32) -> (i32, i32) {
    %c0_i32 = arith.constant 0 : i32
    %c0_i32_0 = arith.constant 0 : i32
    return %c0_i32, %arg1 : i32, i32
  }
  func.func @transform_3(%arg0: i32, %arg1: i32, %arg2: i32) -> (i32, i32) {
    %c0_i32 = arith.constant 0 : i32
    %c0_i32_0 = arith.constant 0 : i32
    return %c0_i32, %arg1 : i32, i32
  }
  func.func @transform_4(%arg0: i32, %arg1: i32, %arg2: i32) -> (i32, i32) {
    %c0_i32 = arith.constant 0 : i32
    return %arg0, %arg1 : i32, i32
  }
  func.func @transform_5(%arg0: i32, %arg1: i32, %arg2: i32) -> (i32, i32) {
    %c0_i32 = arith.constant 0 : i32
    return %arg0, %arg1 : i32, i32
  }
}

module attributes {stable_mosaic.version = 11 : i64} {
  func.func @kernel(%arg0: i32, %arg1: i32, %arg2: i32, %arg3: memref<8x768xbf16, #tpu.memory_space<vmem>>, %arg4: memref<768x256xbf16, #tpu.memory_space<vmem>>, %arg5: memref<1x256xf32, #tpu.memory_space<vmem>>, %arg6: memref<1x256xf32, #tpu.memory_space<vmem>>, %arg7: memref<8x256xf32, #tpu.memory_space<vmem>>, %arg8: memref<8x256xf32, #tpu.memory_space<vmem>>) attributes {dimension_semantics = [#tpu.dimension_semantics<parallel>, #tpu.dimension_semantics<parallel>, #tpu.dimension_semantics<arbitrary>], iteration_bounds = array<i64: 1, 2, 6>, scalar_prefetch = 0 : i64, scratch_operands = 1 : i64, tpu.core_type = #tpu.core_type<tc>, window_params = [{transform_indices = @transform_0, window_bounds = array<i64: 8, 768>}, {transform_indices = @transform_1, window_bounds = array<i64: 768, 256>}, {transform_indices = @transform_2, window_bounds = array<i64: 1, 256>}, {transform_indices = @transform_3, window_bounds = array<i64: 1, 256>}, {transform_indices = @transform_4, window_bounds = array<i64: 8, 256>}]} {
    %c0_i32 = arith.constant 0 : i32
    %0 = arith.cmpi eq, %arg2, %c0_i32 : i32
    %1 = arith.extui %0 : i1 to i32
    %c0_i32_0 = arith.constant 0 : i32
    %2 = arith.cmpi ne, %1, %c0_i32_0 : i32
    scf.if %2 {
      %cst_9 = arith.constant 0.000000e+00 : f32
      %12 = vector.broadcast %cst_9 : f32 to vector<8x256xf32>
      %c0_10 = arith.constant 0 : index
      %c0_11 = arith.constant 0 : index
      %13 = vector.load %arg8[%c0_10, %c0_11] : memref<8x256xf32, #tpu.memory_space<vmem>>, vector<8x256xf32>
      tpu.vector_store %arg8[%c0_10, %c0_11], %12 {strides = array<i32>} : memref<8x256xf32, #tpu.memory_space<vmem>>, vector<8x256xf32>,
    } else {
    }
    %c0 = arith.constant 0 : index
    %c0_1 = arith.constant 0 : index
    %3 = vector.load %arg8[%c0, %c0_1] : memref<8x256xf32, #tpu.memory_space<vmem>>, vector<8x256xf32>
    %c0_2 = arith.constant 0 : index
    %c0_3 = arith.constant 0 : index
    %4 = vector.load %arg3[%c0_2, %c0_3] : memref<8x768xbf16, #tpu.memory_space<vmem>>, vector<8x768xbf16>
    %c0_4 = arith.constant 0 : index
    %c0_5 = arith.constant 0 : index
    %5 = vector.load %arg4[%c0_4, %c0_5] : memref<768x256xbf16, #tpu.memory_space<vmem>>, vector<768x256xbf16>
    %cst = arith.constant dense<0.000000e+00> : vector<8x256xf32>
    %6 = tpu.matmul %4, %5, %cst {dimension_numbers = #tpu.dot_dimension_numbers<[1], [0], [0], [1], [0, 0, 1, 1], [], []>} : vector<8x768xbf16>, vector<768x256xbf16>, vector<8x256xf32> -> vector<8x256xf32>
    %7 = arith.addf %3, %6 : vector<8x256xf32>
    %c0_6 = arith.constant 0 : index
    %c0_7 = arith.constant 0 : index
    %8 = vector.load %arg8[%c0_6, %c0_7] : memref<8x256xf32, #tpu.memory_space<vmem>>, vector<8x256xf32>
    tpu.vector_store %arg8[%c0_6, %c0_7], %7 {strides = array<i32>} : memref<8x256xf32, #tpu.memory_space<vmem>>, vector<8x256xf32>,
    %c5_i32 = arith.constant 5 : i32
    %9 = arith.cmpi eq, %arg2, %c5_i32 : i32
    %10 = arith.extui %9 : i1 to i32
    %c0_i32_8 = arith.constant 0 : i32
    %11 = arith.cmpi ne, %10, %c0_i32_8 : i32
    scf.if %11 {
      %c0_9 = arith.constant 0 : index
      %c0_10 = arith.constant 0 : index
      %12 = vector.load %arg8[%c0_9, %c0_10] : memref<8x256xf32, #tpu.memory_space<vmem>>, vector<8x256xf32>
      %c0_11 = arith.constant 0 : index
      %c0_12 = arith.constant 0 : index
      %13 = vector.load %arg5[%c0_11, %c0_12] : memref<1x256xf32, #tpu.memory_space<vmem>>, vector<1x256xf32>
      %14 = vector.broadcast %13 : vector<1x256xf32> to vector<8x256xf32>
      %15 = arith.mulf %12, %14 : vector<8x256xf32>
      %c0_13 = arith.constant 0 : index
      %c0_14 = arith.constant 0 : index
      %16 = vector.load %arg6[%c0_13, %c0_14] : memref<1x256xf32, #tpu.memory_space<vmem>>, vector<1x256xf32>
      %17 = vector.broadcast %16 : vector<1x256xf32> to vector<8x256xf32>
      %18 = arith.addf %15, %17 : vector<8x256xf32>
      %cst_15 = arith.constant 0.000000e+00 : f32
      %19 = vector.broadcast %cst_15 : f32 to vector<8x256xf32>
      %20 = arith.maximumf %18, %19 : vector<8x256xf32>
      %c0_16 = arith.constant 0 : index
      %c0_17 = arith.constant 0 : index
      %21 = vector.load %arg7[%c0_16, %c0_17] : memref<8x256xf32, #tpu.memory_space<vmem>>, vector<8x256xf32>
      tpu.vector_store %arg7[%c0_16, %c0_17], %20 {strides = array<i32>} : memref<8x256xf32, #tpu.memory_space<vmem>>, vector<8x256xf32>,
    } else {
    }
    return
  }
  func.func @transform_0(%arg0: i32, %arg1: i32, %arg2: i32) -> (i32, i32) {
    %c0_i32 = arith.constant 0 : i32
    return %arg0, %arg2 : i32, i32
  }
  func.func @transform_1(%arg0: i32, %arg1: i32, %arg2: i32) -> (i32, i32) {
    %c0_i32 = arith.constant 0 : i32
    return %arg2, %arg1 : i32, i32
  }
  func.func @transform_2(%arg0: i32, %arg1: i32, %arg2: i32) -> (i32, i32) {
    %c0_i32 = arith.constant 0 : i32
    %c0_i32_0 = arith.constant 0 : i32
    return %c0_i32, %arg1 : i32, i32
  }
  func.func @transform_3(%arg0: i32, %arg1: i32, %arg2: i32) -> (i32, i32) {
    %c0_i32 = arith.constant 0 : i32
    %c0_i32_0 = arith.constant 0 : i32
    return %c0_i32, %arg1 : i32, i32
  }
  func.func @transform_4(%arg0: i32, %arg1: i32, %arg2: i32) -> (i32, i32) {
    %c0_i32 = arith.constant 0 : i32
    return %arg0, %arg1 : i32, i32
  }
}

module attributes {stable_mosaic.version = 11 : i64} {
  func.func @kernel(%arg0: i32, %arg1: memref<2x1x512xf32, #tpu.memory_space<vmem>>, %arg2: memref<2x512xf32, #tpu.memory_space<vmem>>) attributes {dimension_semantics = [#tpu.dimension_semantics<arbitrary>], iteration_bounds = array<i64: 1>, scalar_prefetch = 0 : i64, scratch_operands = 0 : i64, tpu.core_type = #tpu.core_type<tc>, window_params = [{pipeline_mode = #tpu.pipeline_mode<synchronous>, transform_indices = @transform_0, window_bounds = array<i64: 2, 1, 512>}, {pipeline_mode = #tpu.pipeline_mode<synchronous>, transform_indices = @transform_1, window_bounds = array<i64: 2, 512>}]} {
    %c0 = arith.constant 0 : index
    %c0_0 = arith.constant 0 : index
    %c0_1 = arith.constant 0 : index
    %0 = vector.load %arg1[%c0, %c0_0, %c0_1] : memref<2x1x512xf32, #tpu.memory_space<vmem>>, vector<2x1x512xf32>
    %cst = arith.constant dense<0.000000e+00> : vector<2x512xf32>
    %1 = vector.multi_reduction <add>, %0, %cst [1] : vector<2x1x512xf32> to vector<2x512xf32>
    %cst_2 = arith.constant 1.000000e+00 : f32
    %2 = vector.broadcast %cst_2 : f32 to vector<2x512xf32>
    %3 = arith.mulf %1, %2 : vector<2x512xf32>
    %c0_3 = arith.constant 0 : index
    %c0_4 = arith.constant 0 : index
    %4 = vector.load %arg2[%c0_3, %c0_4] : memref<2x512xf32, #tpu.memory_space<vmem>>, vector<2x512xf32>
    tpu.vector_store %arg2[%c0_3, %c0_4], %3 {strides = array<i32>} : memref<2x512xf32, #tpu.memory_space<vmem>>, vector<2x512xf32>,
    return
  }
  func.func @transform_0(%arg0: i32) -> (i32, i32, i32) {
    %c0_i32 = arith.constant 0 : i32
    %c0_i32_0 = arith.constant 0 : i32
    %c0_i32_1 = arith.constant 0 : i32
    %c0_i32_2 = arith.constant 0 : i32
    return %c0_i32, %c0_i32_0, %c0_i32_1 : i32, i32, i32
  }
  func.func @transform_1(%arg0: i32) -> (i32, i32) {
    %c0_i32 = arith.constant 0 : i32
    %c0_i32_0 = arith.constant 0 : i32
    %c0_i32_1 = arith.constant 0 : i32
    return %c0_i32, %c0_i32_0 : i32, i32
  }
}

module attributes {stable_mosaic.version = 11 : i64} {
  func.func @kernel(%arg0: i32, %arg1: i32, %arg2: i32, %arg3: memref<8x512xbf16, #tpu.memory_space<vmem>>, %arg4: memref<512x128xbf16, #tpu.memory_space<vmem>>, %arg5: memref<1x128xf32, #tpu.memory_space<vmem>>, %arg6: memref<1x128xf32, #tpu.memory_space<vmem>>, %arg7: memref<8x128xf32, #tpu.memory_space<vmem>>, %arg8: memref<8x128xf32, #tpu.memory_space<vmem>>) attributes {dimension_semantics = [#tpu.dimension_semantics<parallel>, #tpu.dimension_semantics<parallel>, #tpu.dimension_semantics<arbitrary>], iteration_bounds = array<i64: 1, 1, 1>, scalar_prefetch = 0 : i64, scratch_operands = 1 : i64, tpu.core_type = #tpu.core_type<tc>, window_params = [{transform_indices = @transform_0, window_bounds = array<i64: 8, 512>}, {transform_indices = @transform_1, window_bounds = array<i64: 512, 128>}, {transform_indices = @transform_2, window_bounds = array<i64: 1, 128>}, {transform_indices = @transform_3, window_bounds = array<i64: 1, 128>}, {transform_indices = @transform_4, window_bounds = array<i64: 8, 128>}]} {
    %c0_i32 = arith.constant 0 : i32
    %0 = arith.cmpi eq, %arg2, %c0_i32 : i32
    %1 = arith.extui %0 : i1 to i32
    %c0_i32_0 = arith.constant 0 : i32
    %2 = arith.cmpi ne, %1, %c0_i32_0 : i32
    scf.if %2 {
      %cst_10 = arith.constant 0.000000e+00 : f32
      %12 = vector.broadcast %cst_10 : f32 to vector<8x128xf32>
      %c0_11 = arith.constant 0 : index
      %c0_12 = arith.constant 0 : index
      %13 = vector.load %arg8[%c0_11, %c0_12] : memref<8x128xf32, #tpu.memory_space<vmem>>, vector<8x128xf32>
      tpu.vector_store %arg8[%c0_11, %c0_12], %12 {strides = array<i32>} : memref<8x128xf32, #tpu.memory_space<vmem>>, vector<8x128xf32>,
    } else {
    }
    %c0 = arith.constant 0 : index
    %c0_1 = arith.constant 0 : index
    %3 = vector.load %arg8[%c0, %c0_1] : memref<8x128xf32, #tpu.memory_space<vmem>>, vector<8x128xf32>
    %c0_2 = arith.constant 0 : index
    %c0_3 = arith.constant 0 : index
    %4 = vector.load %arg3[%c0_2, %c0_3] : memref<8x512xbf16, #tpu.memory_space<vmem>>, vector<8x512xbf16>
    %c0_4 = arith.constant 0 : index
    %c0_5 = arith.constant 0 : index
    %5 = vector.load %arg4[%c0_4, %c0_5] : memref<512x128xbf16, #tpu.memory_space<vmem>>, vector<512x128xbf16>
    %cst = arith.constant dense<0.000000e+00> : vector<8x128xf32>
    %6 = tpu.matmul %4, %5, %cst {dimension_numbers = #tpu.dot_dimension_numbers<[1], [0], [0], [1], [0, 0, 1, 1], [], []>} : vector<8x512xbf16>, vector<512x128xbf16>, vector<8x128xf32> -> vector<8x128xf32>
    %7 = arith.addf %3, %6 : vector<8x128xf32>
    %c0_6 = arith.constant 0 : index
    %c0_7 = arith.constant 0 : index
    %8 = vector.load %arg8[%c0_6, %c0_7] : memref<8x128xf32, #tpu.memory_space<vmem>>, vector<8x128xf32>
    tpu.vector_store %arg8[%c0_6, %c0_7], %7 {strides = array<i32>} : memref<8x128xf32, #tpu.memory_space<vmem>>, vector<8x128xf32>,
    %c0_i32_8 = arith.constant 0 : i32
    %9 = arith.cmpi eq, %arg2, %c0_i32_8 : i32
    %10 = arith.extui %9 : i1 to i32
    %c0_i32_9 = arith.constant 0 : i32
    %11 = arith.cmpi ne, %10, %c0_i32_9 : i32
    scf.if %11 {
      %c0_10 = arith.constant 0 : index
      %c0_11 = arith.constant 0 : index
      %12 = vector.load %arg8[%c0_10, %c0_11] : memref<8x128xf32, #tpu.memory_space<vmem>>, vector<8x128xf32>
      %c0_12 = arith.constant 0 : index
      %c0_13 = arith.constant 0 : index
      %13 = vector.load %arg5[%c0_12, %c0_13] : memref<1x128xf32, #tpu.memory_space<vmem>>, vector<1x128xf32>
      %14 = vector.broadcast %13 : vector<1x128xf32> to vector<8x128xf32>
      %15 = arith.mulf %12, %14 : vector<8x128xf32>
      %c0_14 = arith.constant 0 : index
      %c0_15 = arith.constant 0 : index
      %16 = vector.load %arg6[%c0_14, %c0_15] : memref<1x128xf32, #tpu.memory_space<vmem>>, vector<1x128xf32>
      %17 = vector.broadcast %16 : vector<1x128xf32> to vector<8x128xf32>
      %18 = arith.addf %15, %17 : vector<8x128xf32>
      %c0_16 = arith.constant 0 : index
      %c0_17 = arith.constant 0 : index
      %19 = vector.load %arg7[%c0_16, %c0_17] : memref<8x128xf32, #tpu.memory_space<vmem>>, vector<8x128xf32>
      tpu.vector_store %arg7[%c0_16, %c0_17], %18 {strides = array<i32>} : memref<8x128xf32, #tpu.memory_space<vmem>>, vector<8x128xf32>,
    } else {
    }
    return
  }
  func.func @transform_0(%arg0: i32, %arg1: i32, %arg2: i32) -> (i32, i32) {
    %c0_i32 = arith.constant 0 : i32
    return %arg0, %arg2 : i32, i32
  }
  func.func @transform_1(%arg0: i32, %arg1: i32, %arg2: i32) -> (i32, i32) {
    %c0_i32 = arith.constant 0 : i32
    return %arg2, %arg1 : i32, i32
  }
  func.func @transform_2(%arg0: i32, %arg1: i32, %arg2: i32) -> (i32, i32) {
    %c0_i32 = arith.constant 0 : i32
    %c0_i32_0 = arith.constant 0 : i32
    return %c0_i32, %arg1 : i32, i32
  }
  func.func @transform_3(%arg0: i32, %arg1: i32, %arg2: i32) -> (i32, i32) {
    %c0_i32 = arith.constant 0 : i32
    %c0_i32_0 = arith.constant 0 : i32
    return %c0_i32, %arg1 : i32, i32
  }
  func.func @transform_4(%arg0: i32, %arg1: i32, %arg2: i32) -> (i32, i32) {
    %c0_i32 = arith.constant 0 : i32
    return %arg0, %arg1 : i32, i32
  }
}

</mosaic_0001>

<bundles_post_ra>
// kernel: _lambda_.24
= control target key start
LH: loop header
LB: loop body
LE: loop exit
PB: predicated region body
PF: predicated region fallthrough
CT: control target
= control target key end

     0   :  { %s406_s0 = inlined_call_operand.vmem [shape: f32[9,64,128], index: 0, kind: input, shape index: {}]   ;;  %s407_s1 = inlined_call_operand.vmem [shape: f32[64,128], index: 1, kind: output, shape index: {}]  }
   0x1   :  { %v8_v0 = vld [vmem:[%s406_s0] sm:$0xff]  ;;  %v9_v6 = vld [vmem:[%s406_s0 + $0x8] sm:$0xff]  ;;  %v10_v15 = vld [vmem:[%s406_s0 + $0x10] sm:$0xff] }
   0x2   :  { %v16_v1 = vld [vmem:[%s406_s0 + $0x40] sm:$0xff]  ;;  %v17_v7 = vld [vmem:[%s406_s0 + $0x48] sm:$0xff]  ;;  %v18_v16 = vld [vmem:[%s406_s0 + $0x50] sm:$0xff] }
   0x3   :  { %v24_v2 = vld [vmem:[%s406_s0 + $0x80] sm:$0xff]  ;;  %v80_v3 = vmax.f32 %v8_v0, %v16_v1  ;;  %v25_v8 = vld [vmem:[%s406_s0 + $0x88] sm:$0xff]  ;;  %v88_v10 = vmax.f32 %v9_v6, %v17_v7  ;;  %v26_v17 = vld [vmem:[%s406_s0 + $0x90] sm:$0xff]  ;;  %v96_v20 = vmax.f32 %v10_v15, %v18_v16 }
   0x4   :  { %v32_v4 = vld [vmem:[%s406_s0 + $0xc0] sm:$0xff]  ;;  %v33_v13 = vld [vmem:[%s406_s0 + $0xc8] sm:$0xff]  ;;  %v34_v24 = vld [vmem:[%s406_s0 + $0xd0] sm:$0xff] }
   0x5   :  { %v81_v5 = vmax.f32 %v80_v3, %v24_v2  ;;  %v40_v9 = vld [vmem:[%s406_s0 + $0x100] sm:$0xff]  ;;  %v89_v14 = vmax.f32 %v88_v10, %v25_v8  ;;  %v41_v19 = vld [vmem:[%s406_s0 + $0x108] sm:$0xff]  ;;  %v97_v26 = vmax.f32 %v96_v20, %v26_v17  ;;  %v11_v27 = vld [vmem:[%s406_s0 + $0x18] sm:$0xff] }
   0x6   :  { %v48_v11 = vld [vmem:[%s406_s0 + $0x140] sm:$0xff]  ;;  %v49_v22 = vld [vmem:[%s406_s0 + $0x148] sm:$0xff]  ;;  %v19_v28 = vld [vmem:[%s406_s0 + $0x58] sm:$0xff] }
   0x7   :  { %v82_v12 = vmax.f32 %v81_v5, %v32_v4  ;;  %v56_v21 = vld [vmem:[%s406_s0 + $0x180] sm:$0xff]  ;;  %v90_v23 = vmax.f32 %v89_v14, %v33_v13  ;;  %v27_v29 = vld [vmem:[%s406_s0 + $0x98] sm:$0xff]  ;;  %v42_v33 = vld [vmem:[%s406_s0 + $0x110] sm:$0xff]  ;;  %v104_v34 = vmax.f32 %v11_v27, %v19_v28  ;;  %v98_v38 = vmax.f32 %v97_v26, %v34_v24 }
   0x8   :  { %v64_v30 = vld [vmem:[%s406_s0 + $0x1c0] sm:$0xff]  ;;  %v57_v36 = vld [vmem:[%s406_s0 + $0x188] sm:$0xff]  ;;  %v50_v37 = vld [vmem:[%s406_s0 + $0x150] sm:$0xff] }
   0x9   :  { %v83_v18 = vmax.f32 %v82_v12, %v40_v9  ;;  %v72_v31 = vld [vmem:[%s406_s0 + $0x200] sm:$0xff]  ;;  %v91_v32 = vmax.f32 %v90_v23, %v41_v19  ;;  %v35_v39 = vld [vmem:[%s406_s0 + $0xd8] sm:$0xff]  ;;  %v105_v41 = vmax.f32 %v104_v34, %v27_v29  ;;  %v65_v46 = vld [vmem:[%s406_s0 + $0x1c8] sm:$0xff]  ;;  %v99_v48 = vmax.f32 %v98_v38, %v42_v33 }
   0xa   :  { %v12_v42 = vld [vmem:[%s406_s0 + $0x20] sm:$0xff]  ;;  %v73_v47 = vld [vmem:[%s406_s0 + $0x208] sm:$0xff]  ;;  %v43_v49 = vld [vmem:[%s406_s0 + $0x118] sm:$0xff] }
   0xb   :  { %v84_v25 = vmax.f32 %v83_v18, %v48_v11  ;;  %v92_v40 = vmax.f32 %v91_v32, %v49_v22  ;;  %v20_v43 = vld [vmem:[%s406_s0 + $0x60] sm:$0xff]  ;;  %v58_v52 = vld [vmem:[%s406_s0 + $0x190] sm:$0xff]  ;;  %v51_v53 = vld [vmem:[%s406_s0 + $0x158] sm:$0xff]  ;;  %v106_v54 = vmax.f32 %v105_v41, %v35_v39  ;;  %v100_v57 = vmax.f32 %v99_v48, %v50_v37 }
   0xc   :  { %v28_v44 = vld [vmem:[%s406_s0 + $0xa0] sm:$0xff]  ;;  %v112_v50 = vmax.f32 %v12_v42, %v20_v43  ;;  %v13_v59 = vld [vmem:[%s406_s0 + $0x28] sm:$0xff]  ;;  %v66_v63 = vld [vmem:[%s406_s0 + $0x1d0] sm:$0xff] }
   0xd   :  { %v85_v35 = vmax.f32 %v84_v25, %v56_v21  ;;  %v93_v51 = vmax.f32 %v92_v40, %v57_v36  ;;  %v36_v55 = vld [vmem:[%s406_s0 + $0xe0] sm:$0xff]  ;;  %v21_v60 = vld [vmem:[%s406_s0 + $0x68] sm:$0xff]  ;;  %v74_v0 = vld [vmem:[%s406_s0 + $0x210] sm:$0xff]  ;;  %v107_v1 = vmax.f32 %v106_v54, %v43_v49  ;;  %v101_v4 = vmax.f32 %v100_v57, %v58_v52 }
   0xe   :  { %v113_v58 = vmax.f32 %v112_v50, %v28_v44  ;;  %v29_v61 = vld [vmem:[%s406_s0 + $0xa8] sm:$0xff]  ;;  %v44_v2 = vld [vmem:[%s406_s0 + $0x120] sm:$0xff]  ;;  %v120_v3 = vmax.f32 %v13_v59, %v21_v60  ;;  %v59_v5 = vld [vmem:[%s406_s0 + $0x198] sm:$0xff] }
   0xf   :  { %v86_v45 = vmax.f32 %v85_v35, %v64_v30  ;;  %v94_v62 = vmax.f32 %v93_v51, %v65_v46  ;;  %v52_v6 = vld [vmem:[%s406_s0 + $0x160] sm:$0xff]  ;;  %v37_v8 = vld [vmem:[%s406_s0 + $0xe8] sm:$0xff]  ;;  %v108_v10 = vmax.f32 %v107_v1, %v51_v53  ;;  %v14_v12 = vld [vmem:[%s406_s0 + $0x30] sm:$0xff]  ;;  %v102_v15 = vmax.f32 %v101_v4, %v66_v63 }
  0x10   :  { %v114_v7 = vmax.f32 %v113_v58, %v36_v55  ;;  %v121_v11 = vmax.f32 %v120_v3, %v29_v61  ;;  %v22_v13 = vld [vmem:[%s406_s0 + $0x70] sm:$0xff]  ;;  %v67_v16 = vld [vmem:[%s406_s0 + $0x1d8] sm:$0xff]  ;;  %v45_v19 = vld [vmem:[%s406_s0 + $0x128] sm:$0xff] }
  0x11   :  { %v87_v56 = vmax.f32 %v86_v45, %v72_v31  ;;  %v95_v9 = vmax.f32 %v94_v62, %v73_v47  ;;  %v30_v14 = vld [vmem:[%s406_s0 + $0xb0] sm:$0xff]  ;;  %v75_v17 = vld [vmem:[%s406_s0 + $0x218] sm:$0xff]  ;;  %v128_v20 = vmax.f32 %v14_v12, %v22_v13  ;;  %v109_v21 = vmax.f32 %v108_v10, %v59_v5  ;;  %v60_v22 = vld [vmem:[%s406_s0 + $0x1a0] sm:$0xff] }
  0x12   :  { %v115_v18 = vmax.f32 %v114_v7, %v44_v2  ;;  %v53_v23 = vld [vmem:[%s406_s0 + $0x168] sm:$0xff]  ;;  %v122_v24 = vmax.f32 %v121_v11, %v37_v8  ;;  %v38_v25 = vld [vmem:[%s406_s0 + $0xf0] sm:$0xff]  ;;  %v103_v26 = vmax.f32 %v102_v15, %v74_v0  ;;  %v15_v29 = vld [vmem:[%s406_s0 + $0x38] sm:$0xff] }
  0x13   :  { %144 = vst [vmem:[%s407_s1] sm:$0xff] %v87_v56  ;;  %145 = vst [vmem:[%s407_s1 + $0x8] sm:$0xff] %v95_v9  ;;  %v129_v28 = vmax.f32 %v128_v20, %v30_v14  ;;  %v23_v30 = vld [vmem:[%s406_s0 + $0x78] sm:$0xff]  ;;  %v110_v32 = vmax.f32 %v109_v21, %v67_v16  ;;  %v68_v33 = vld [vmem:[%s406_s0 + $0x1e0] sm:$0xff] }
  0x14   :  { %v116_v27 = vmax.f32 %v115_v18, %v52_v6  ;;  %v31_v31 = vld [vmem:[%s406_s0 + $0xb8] sm:$0xff]  ;;  %v123_v34 = vmax.f32 %v122_v24, %v45_v19  ;;  %v46_v35 = vld [vmem:[%s406_s0 + $0x130] sm:$0xff]  ;;  %v136_v36 = vmax.f32 %v15_v29, %v23_v30  ;;  %146 = vst [vmem:[%s407_s1 + $0x10] sm:$0xff] %v103_v26  ;;  %v61_v38 = vld [vmem:[%s406_s0 + $0x1a8] sm:$0xff] }
  0x15   :  { %v130_v39 = vmax.f32 %v129_v28, %v38_v25  ;;  %v39_v40 = vld [vmem:[%s406_s0 + $0xf8] sm:$0xff]  ;;  %v111_v41 = vmax.f32 %v110_v32, %v75_v17  ;;  %v76_v42 = vld [vmem:[%s406_s0 + $0x220] sm:$0xff]  ;;  %v54_v44 = vld [vmem:[%s406_s0 + $0x170] sm:$0xff] }
  0x16   :  { %v117_v37 = vmax.f32 %v116_v27, %v60_v22  ;;  %v124_v43 = vmax.f32 %v123_v34, %v53_v23  ;;  %v137_v45 = vmax.f32 %v136_v36, %v31_v31  ;;  %v69_v47 = vld [vmem:[%s406_s0 + $0x1e8] sm:$0xff]  ;;  %v47_v49 = vld [vmem:[%s406_s0 + $0x138] sm:$0xff]  ;;  %v62_v51 = vld [vmem:[%s406_s0 + $0x1b0] sm:$0xff] }
  0x17   :  { %v131_v48 = vmax.f32 %v130_v39, %v46_v35  ;;  %147 = vst [vmem:[%s407_s1 + $0x18] sm:$0xff] %v111_v41  ;;  %v77_v54 = vld [vmem:[%s406_s0 + $0x228] sm:$0xff]  ;;  %v55_v56 = vld [vmem:[%s406_s0 + $0x178] sm:$0xff]  ;;  %v70_v58 = vld [vmem:[%s406_s0 + $0x1f0] sm:$0xff] }
  0x18   :  { %v118_v46 = vmax.f32 %v117_v37, %v68_v33  ;;  %v125_v50 = vmax.f32 %v124_v43, %v61_v38  ;;  %v138_v52 = vmax.f32 %v137_v45, %v39_v40  ;;  %v63_v61 = vld [vmem:[%s406_s0 + $0x1b8] sm:$0xff]  ;;  %v78_v63 = vld [vmem:[%s406_s0 + $0x230] sm:$0xff] }
  0x19   :  { %v132_v55 = vmax.f32 %v131_v48, %v54_v44  ;;  %v71_v2 = vld [vmem:[%s406_s0 + $0x1f8] sm:$0xff] }
  0x1a   :  { %v119_v53 = vmax.f32 %v118_v46, %v76_v42  ;;  %v126_v57 = vmax.f32 %v125_v50, %v69_v47  ;;  %v139_v59 = vmax.f32 %v138_v52, %v47_v49  ;;  %v79_v5 = vld [vmem:[%s406_s0 + $0x238] sm:$0xff] }
  0x1b   :  { %v133_v60 = vmax.f32 %v132_v55, %v62_v51 }
  0x1c   :  { %148 = vst [vmem:[%s407_s1 + $0x20] sm:$0xff] %v119_v53  ;;  %v127_v62 = vmax.f32 %v126_v57, %v77_v54  ;;  %v140_v0 = vmax.f32 %v139_v59, %v55_v56 }
  0x1d   :  { %v134_v1 = vmax.f32 %v133_v60, %v70_v58 }
  0x1e   :  { %149 = vst [vmem:[%s407_s1 + $0x28] sm:$0xff] %v127_v62  ;;  %v141_v3 = vmax.f32 %v140_v0, %v63_v61 }
  0x1f   :  { %v135_v4 = vmax.f32 %v134_v1, %v78_v63 }
  0x20   :  { %v142_v6 = vmax.f32 %v141_v3, %v71_v2 }
  0x21   :  { %150 = vst [vmem:[%s407_s1 + $0x30] sm:$0xff] %v135_v4 }
  0x22   :  { %v143_v7 = vmax.f32 %v142_v6, %v79_v5 }
  0x24   :  { %151 = vst [vmem:[%s407_s1 + $0x38] sm:$0xff] %v143_v7 }

// kernel: _lambda_.23
= control target key start
LH: loop header
LB: loop body
LE: loop exit
PB: predicated region body
PF: predicated region fallthrough
CT: control target
= control target key end

     0   :  { %9 = vsyncpa [#allocation4], 0  ;;  %s1706_s0 = inlined_call_operand.vmem [shape: bf16[512,128], index: 0, kind: input, shape index: {}]   ;;  %s1707_s1 = inlined_call_operand.hbm [shape: bf16[128,128], index: 1, kind: input, shape index: {}]   ;;  %s1708_s2 = inlined_call_operand.hbm [shape: f32[1,128], index: 2, kind: input, shape index: {}]   ;;  %s1709_s3 = inlined_call_operand.hbm [shape: f32[1,128], index: 3, kind: input, shape index: {}]   ;;  %s1710_s4 = inlined_call_operand.vmem [shape: f32[512,128], index: 4, kind: output, shape index: {}]  }
   0x1   :  { %10 = vsyncpa [#allocation6], 0  ;;  %s1446_s15 = smov 0   ;;  %s1448_s16 = smov 0  }
   0x2   :  { %s1450_s17 = smov 0  }
   0x3 LB: > { %s1416_s18 = smov [#allocation5]   ;;  %s1088_s20 = sadd.s32 4294967295, %s1414_s17   ;;  %s1414_s17 = sphi %s1450_s17, %s16_s17   ;;  %s1410_s16 = sphi %s1448_s16, %s1723_s16   ;;  %s1406_s15 = sphi %s1446_s15, %s1722_s15  }
   0x4   : > { %s208_s19 = sshll.u32 %s1416_s18, 4  ;;  %p1090_p0 = scmp.ge.s32.totalorder %s1414_s17, 1  ;;  %s209_s19 = int_to_ptr.vmem [resolvable:$true] %s208_s19 }
   0x5   : > { %p176_p1 = scmp.lt.s32.totalorder %s1414_s17, 3  ;;  %p1464_p2 = scmp.eq.s32.totalorder %s1088_s20, 0 }
   0x6   : > { %s35_s23 = sadd.s32 1, %s1410_s16  ;;  %s1417_s26 = smov [#allocation3]  }
   0x7   : > { %s1714_s21 = scalar_select %p1464_p2, 1, 0 }
   0x8   : > { %p1468_p3 = pnand %p1090_p0, %p176_p1  ;;  %p1481_p6 = scmp.ge.s32.totalorder %s35_s23, 2 }
   0x9   : > { %s192_s27 = sshll.u32 %s1417_s26, 4  ;;  %s1300_s30 = scalar_lea.hbm %s1708_s2, 16  ;;  %s1485_s27 = int_to_ptr.vmem [resolvable:$true] %s192_s27 }
   0xa   : > { %s1715_s22 = scalar_select %p1468_p3, 1, 0 }
   0xb   : > { %p1231_p4 = pneg %p1468_p3  ;;  %p1301_p7 = scmp.ne.s32.totalorder %s1708_s2, %s1300_s30 }
   0xc   : > { %s1717_s25 = scalar_select %p1481_p6, 1, 0 }
   0xd   : > { %p1477_p5 = pnand %p1464_p2, %p1231_p4  ;;  %p1307_p11 = scmp.lt.u32.totalorder %s1300_s30, %s1708_s2 }
   0xf   : > { %p1495_p8 = pneg %p1477_p5 }
  0x11   : > { %p1303_p9 = pnand %p1495_p8, %p1301_p7 }
  0x13   : > { %p1304_p10 = pneg %p1303_p9 }
  0x15   : > { %p1309_p12 = pnand %p1307_p11, %p1304_p10 }
  0x17   : > { %1312 = shalt.err (!%p1309_p12)
}
  0x18   : > { %s1313_s10 = scalar_lea.vmem %s209_s19, 16  ;;  %s1320_s11 = scalar_lea.vmem %s209_s19, 32 }
  0x19   : > { %p1314_p13 = scmp.ne.s32.totalorder %s209_s19, %s1313_s10  ;;  %p1321_p4 = scmp.lt.s32.totalorder %s209_s19, %s209_s19 }
  0x1a   : > { %p1322_p2 = scmp.lt.s32.totalorder %s1320_s11, %s1313_s10 }
  0x1b   : > { %p1316_p0 = pnand %p1314_p13, %p1495_p8 }
  0x1c   : > { %p1323_p3 = por %p1322_p2, %p1321_p4 }
  0x1d   : > { %p1317_p1 = pneg %p1316_p0 }
  0x1f   : > { %p1324_p6 = pnand %p1323_p3, %p1317_p1 }
  0x21   : > { %1327 = shalt.err (!%p1324_p6)
}
  0x22   : > { %1237 = dma.hbm_to_vmem [thread:$0]  (!%p1477_p5), %s1708_s2, 16, %s209_s19, [#allocation6]  }
  0x23   : > { %p1719_p7 = scmp.ne.s32.totalorder %s1717_s25, 0  ;;  %s1328_s20 = scalar_lea.hbm %s1707_s1, 1024 }
  0x24   : > { %p1329_p2 = scmp.ne.s32.totalorder %s1707_s1, %s1328_s20  ;;  %p1335_p9 = scmp.lt.u32.totalorder %s1328_s20, %s1707_s1 }
  0x25   : > { %s1725_s23 = smov (%p1719_p7, %s35_s23), 0 }
  0x26   : > { %p1331_p3 = pnand %p1329_p2, %p1495_p8 }
  0x28   : > { %p1332_p6 = pneg %p1331_p3 }
  0x2a   : > { %p1337_p10 = pnand %p1335_p9, %p1332_p6 }
  0x2c   : > { %1340 = shalt.err (!%p1337_p10)
}
  0x2d   : > { %s1341_s19 = scalar_lea.vmem %s1485_s27, 1024  ;;  %p1349_p0 = scmp.lt.s32.totalorder %s1485_s27, %s1485_s27 }
  0x2e   : > { %p1342_p11 = scmp.ne.s32.totalorder %s1485_s27, %s1341_s19  ;;  %p1350_p1 = scmp.lt.s32.totalorder %s1341_s19, %s1341_s19 }
  0x30   : > { %p1344_p12 = pnand %p1342_p11, %p1495_p8  ;;  %p1351_p4 = por %p1350_p1, %p1349_p0 }
  0x32   : > { %p1345_p13 = pneg %p1344_p12 }
  0x34   : > { %p1352_p7 = pnand %p1351_p4, %p1345_p13 }
  0x36   : > { %1355 = shalt.err (!%p1352_p7)
}
  0x37   : > { %s1418_s25 = smov 64   ;;  %s1419_s5 = smov 4  }
  0x38   : > { %1234 = dma.hbm_to_vmem [thread:$0]  (!%p1477_p5), %s1707_s1, 1024, %s1485_s27, [#allocation4], %s1418_s25, %s1418_s25, %s1419_s5  }
  0x39   : > { %s1420_s9 = smov [#allocation7]   ;;  %s1356_s13 = scalar_lea.hbm %s1709_s3, 16 }
  0x3a   : > { %s221_s10 = sshll.u32 %s1420_s9, 4  ;;  %p1357_p2 = scmp.ne.s32.totalorder %s1709_s3, %s1356_s13  ;;  %s222_s10 = int_to_ptr.vmem [resolvable:$true] %s221_s10 }
  0x3b   : > { %p1363_p9 = scmp.lt.u32.totalorder %s1356_s13, %s1709_s3 }
  0x3c   : > { %p1359_p3 = pnand %p1357_p2, %p1495_p8 }
  0x3e   : > { %p1360_p6 = pneg %p1359_p3 }
  0x40   : > { %p1365_p10 = pnand %p1363_p9, %p1360_p6 }
  0x42   : > { %1368 = shalt.err (!%p1365_p10)
}
  0x43   : > { %s1369_s27 = scalar_lea.vmem %s222_s10, 16  ;;  %s1376_s28 = scalar_lea.vmem %s222_s10, 32 }
  0x44   : > { %p1370_p11 = scmp.ne.s32.totalorder %s222_s10, %s1369_s27  ;;  %p1377_p0 = scmp.lt.s32.totalorder %s222_s10, %s222_s10 }
  0x45   : > { %p1378_p1 = scmp.lt.s32.totalorder %s1376_s28, %s1369_s27 }
  0x46   : > { %p1372_p12 = pnand %p1370_p11, %p1495_p8 }
  0x47   : > { %p1379_p4 = por %p1378_p1, %p1377_p0 }
  0x48   : > { %p1373_p13 = pneg %p1372_p12 }
  0x4a   : > { %p1380_p7 = pnand %p1379_p4, %p1373_p13 }
  0x4c   : > { %1383 = shalt.err (!%p1380_p7)
}
  0x4d   : > { %1240 = dma.hbm_to_vmem [thread:$0]  (!%p1477_p5), %s1709_s3, 16, %s222_s10, [#allocation6]  }
  0x4e   : > { %p1720_p2 = scmp.ne.s32.totalorder %s1715_s22, 0 }
  0x4f   : > { %p1721_p3 = scmp.ne.s32.totalorder (!%p1720_p2), %s1714_s21, 0 }
  0x50   : > { %246 = sbr.rel (%p1720_p2) target bundleno = 369 (0x171), region = 36 }
  0x57   : > { %1397 = dma.done.wait (%p1721_p3), [#allocation4], 1024  }
  0x58   : > { %1399 = vsyncadd (%p1721_p3), [#allocation4], 4294966272 }
  0x59   : > { %1401 = dma.done.wait (%p1721_p3), [#allocation6], 32  }
  0x5a   : > { %1403 = vsyncadd (%p1721_p3), [#allocation6], 4294967264  ;;  %s1099_s24 = sshll.u32 %s1406_s15, 5  ;;  %v1276_v0 = vld [vmem:[#allocation3] sm:$0xff]   ;;  %v1277_v1 = vld [vmem:[#allocation3 + $0x8] sm:$0xff]  }
  0x5b   : > { %p287_p8 = scmp.lt.s32.totalorder %s1099_s24, 63  ;;  %1155 = vmatprep.subr.bf16.mxu0 %v1276_v0  ;;  %1203 = vmatprep.subr.bf16.mxu1 %v1276_v0  ;;  %v1278_v2 = vld [vmem:[#allocation3 + $0x10] sm:$0xff]   ;;  %v1279_v3 = vld [vmem:[#allocation3 + $0x18] sm:$0xff]   ;;  %v1280_v6 = vld [vmem:[#allocation3 + $0x20] sm:$0xff]  }
  0x5c   : > { %1156 = vmatpush3.bf16.msra.mxu0 %v1276_v0  ;;  %1211 = vmatpush3.bf16.msra.mxu1 %v1276_v0  ;;  %v1281_v7 = vld [vmem:[#allocation3 + $0x28] sm:$0xff]   ;;  %v1282_v8 = vld [vmem:[#allocation3 + $0x30] sm:$0xff]   ;;  %v1283_v9 = vld [vmem:[#allocation3 + $0x38] sm:$0xff]  }
  0x5d   : > { %s1727_s24 = smov (!%p287_p8, %s1099_s24), 63  ;;  %1157 = vmatprep.subr.bf16.mxu0 %v1277_v1  ;;  %1204 = vmatprep.subr.bf16.mxu1 %v1277_v1  ;;  %v1591_v24 = vld [vmem:[#allocation5] ss:$0 sm:$0xff]  ;;  %v1593_v26 = vld [vmem:[#allocation7] ss:$0 sm:$0xff] }
  0x5e   : > { %s1100_s22 = sshll.u32 %s1727_s24, 2  ;;  %s1102_s15 = sshll.u32 %s1727_s24, 3 }
  0x5f   : > { %s1573_s21 = scalar_lea.vmem %s1706_s0, %s1100_s22  ;;  %s1607_s6 = scalar_lea.vmem %s1710_s4, %s1102_s15 }
  0x60   : > { %1158 = vmatpush3.bf16.msra.mxu0 %v1277_v1  ;;  %1212 = vmatpush3.bf16.msra.mxu1 %v1277_v1  ;;  %v1284_v4 = vld [vmem:[%s1573_s21] sm:$0xff]   ;;  %v1286_v10 = vld [vmem:[%s1573_s21 + $0x8] sm:$0xff]   ;;  %v1288_v12 = vld [vmem:[%s1573_s21 + $0x10] sm:$0xff]  }
  0x61   : > { %1159 = vmatprep.subr.bf16.mxu0 %v1278_v2  ;;  %1205 = vmatprep.subr.bf16.mxu1 %v1278_v2  ;;  %v1285_v5 = vld [vmem:[%s1573_s21 + $0x40] sm:$0xff]   ;;  %v1287_v11 = vld [vmem:[%s1573_s21 + $0x48] sm:$0xff]   ;;  %v1289_v13 = vld [vmem:[%s1573_s21 + $0x50] sm:$0xff]  }
  0x62   : > { %1171 = vmatprep.mubr.bf16.mxu0 %v1284_v4  ;;  %1187 = vmatprep.mubr.bf16.mxu1 %v1285_v5  ;;  %v1290_v14 = vld [vmem:[%s1573_s21 + $0x18] sm:$0xff]   ;;  %v1292_v16 = vld [vmem:[%s1573_s21 + $0x20] sm:$0xff]   ;;  %v1294_v18 = vld [vmem:[%s1573_s21 + $0x28] sm:$0xff]  }
  0x63   : > { %v1291_v15 = vld [vmem:[%s1573_s21 + $0x58] sm:$0xff]   ;;  %v1293_v17 = vld [vmem:[%s1573_s21 + $0x60] sm:$0xff]   ;;  %v1295_v19 = vld [vmem:[%s1573_s21 + $0x68] sm:$0xff]  }
  0x64   : > { %1160 = vmatpush3.bf16.msra.mxu0 %v1278_v2  ;;  %1213 = vmatpush3.bf16.msra.mxu1 %v1278_v2  ;;  %v1296_v20 = vld [vmem:[%s1573_s21 + $0x30] sm:$0xff]   ;;  %v1298_v22 = vld [vmem:[%s1573_s21 + $0x38] sm:$0xff]  }
  0x65   : > { %1161 = vmatprep.subr.bf16.mxu0 %v1279_v3  ;;  %1206 = vmatprep.subr.bf16.mxu1 %v1279_v3  ;;  %v1297_v21 = vld [vmem:[%s1573_s21 + $0x70] sm:$0xff]   ;;  %v1299_v23 = vld [vmem:[%s1573_s21 + $0x78] sm:$0xff]  }
  0x68   : > { %1162 = vmatpush3.bf16.msra.mxu0 %v1279_v3  ;;  %1214 = vmatpush3.bf16.msra.mxu1 %v1279_v3 }
  0x69   : > { %1163 = vmatprep.subr.bf16.mxu0 %v1280_v6  ;;  %1207 = vmatprep.subr.bf16.mxu1 %v1280_v6 }
  0x6c   : > { %1164 = vmatpush3.bf16.msra.mxu0 %v1280_v6  ;;  %1215 = vmatpush3.bf16.msra.mxu1 %v1280_v6 }
  0x6d   : > { %1165 = vmatprep.subr.bf16.mxu0 %v1281_v7  ;;  %1208 = vmatprep.subr.bf16.mxu1 %v1281_v7 }
  0x70   : > { %1166 = vmatpush3.bf16.msra.mxu0 %v1281_v7  ;;  %1216 = vmatpush3.bf16.msra.mxu1 %v1281_v7 }
  0x71   : > { %1167 = vmatprep.subr.bf16.mxu0 %v1282_v8  ;;  %1209 = vmatprep.subr.bf16.mxu1 %v1282_v8 }
  0x74   : > { %1168 = vmatpush3.bf16.msra.mxu0 %v1282_v8  ;;  %1217 = vmatpush3.bf16.msra.mxu1 %v1282_v8 }
  0x75   : > { %1169 = vmatprep.subr.bf16.mxu0 %v1283_v9  ;;  %1210 = vmatprep.subr.bf16.mxu1 %v1283_v9 }
  0x78   : > { %1170 = vmatpush3.bf16.msra.mxu0 %v1283_v9  ;;  %1218 = vmatpush3.bf16.msra.mxu1 %v1283_v9 }
  0x7b   : > { %1172 = vmatmul.mubr.bf16.vlgmr.msra.gmra.mrb[0].mxu0 %v1286_v10  ;;  %1188 = vmatmul.mubr.bf16.vlgmr.msra.gmra.mrb[0].mxu1 %v1287_v11 }
  0x7c   : > { %1175 = vmatprep.mubr.bf16.mxu0 %v1288_v12  ;;  %1191 = vmatprep.mubr.bf16.mxu1 %v1289_v13 }
  0x83   : > { %1176 = vmatmul.mubr.bf16.gmra.mrb[4].mxu0 %v1290_v14  ;;  %1192 = vmatmul.mubr.bf16.gmra.mrb[4].mxu1 %v1291_v15 }
  0x84   : > { %1179 = vmatprep.mubr.bf16.mxu0 %v1292_v16  ;;  %1195 = vmatprep.mubr.bf16.mxu1 %v1293_v17 }
  0x8b   : > { %1180 = vmatmul.mubr.bf16.gmra.mrb[8].mxu0 %v1294_v18  ;;  %1196 = vmatmul.mubr.bf16.gmra.mrb[8].mxu1 %v1295_v19 }
  0x8c   : > { %1183 = vmatprep.mubr.bf16.mxu0 %v1296_v20  ;;  %1199 = vmatprep.mubr.bf16.mxu1 %v1297_v21 }
  0x93   : > { %1184 = vmatmul.mubr.bf16.gmra.mrb[12].mxu0 %v1298_v22  ;;  %1200 = vmatmul.mubr.bf16.gmra.mrb[12].mxu1 %v1299_v23 }
 0x14e   : > { %v1173_v25 = vpop.f32.mrb[0].mxu0  ;;  %v1189_v27 = vpop.f32.mrb[0].mxu1 }
 0x14f   : > { %v835_v28 = vmul.f32 %v1173_v25, %v1591_v24  ;;  %v851_v29 = vmul.f32 %v1189_v27, %v1591_v24  ;;  %v600_v30 = vpop.f32.mrb[1].mxu0  ;;  %v664_v31 = vpop.f32.mrb[1].mxu1 }
 0x150   : > { %v833_v32 = vmul.f32 %v1591_v24, %v600_v30  ;;  %v849_v33 = vmul.f32 %v1591_v24, %v664_v31  ;;  %v1174_v34 = vpop.f32.mrb[2].mxu0  ;;  %v1190_v35 = vpop.f32.mrb[2].mxu1 }
 0x151   : > { %v874_v36 = vadd.f32 %v1593_v26, %v835_v28  ;;  %v890_v37 = vadd.f32 %v1593_v26, %v851_v29  ;;  %v836_v38 = vmul.f32 %v1174_v34, %v1591_v24  ;;  %v852_v39 = vmul.f32 %v1190_v35, %v1591_v24  ;;  %v603_v40 = vpop.f32.mrb[3].mxu0  ;;  %v667_v41 = vpop.f32.mrb[3].mxu1 }
 0x152   : > { %v872_v42 = vadd.f32 %v1593_v26, %v833_v32  ;;  %v888_v43 = vadd.f32 %v1593_v26, %v849_v33  ;;  %v834_v44 = vmul.f32 %v1591_v24, %v603_v40  ;;  %v850_v45 = vmul.f32 %v1591_v24, %v667_v41 }
 0x153   : > { %v906_v46 = vmax.f32 %v874_v36, 0.0  ;;  %v922_v47 = vmax.f32 %v890_v37, 0.0  ;;  %v875_v48 = vadd.f32 %v1593_v26, %v836_v38  ;;  %v891_v49 = vadd.f32 %v1593_v26, %v852_v39 }
 0x154   : > { %v904_v50 = vmax.f32 %v872_v42, 0.0  ;;  %v920_v51 = vmax.f32 %v888_v43, 0.0  ;;  %v873_v52 = vadd.f32 %v1593_v26, %v834_v44  ;;  %v889_v53 = vadd.f32 %v1593_v26, %v850_v45 }
 0x155   : > { %938 = vst [vmem:[%s1607_s6 + $0x10] sm:$0xff] %v906_v46  ;;  %954 = vst [vmem:[%s1607_s6 + $0x90] sm:$0xff] %v922_v47  ;;  %v907_v54 = vmax.f32 %v875_v48, 0.0  ;;  %v923_v55 = vmax.f32 %v891_v49, 0.0 }
 0x156   : > { %936 = vst [vmem:[%s1607_s6] sm:$0xff] %v904_v50  ;;  %952 = vst [vmem:[%s1607_s6 + $0x80] sm:$0xff] %v920_v51  ;;  %v905_v56 = vmax.f32 %v873_v52, 0.0  ;;  %v921_v57 = vmax.f32 %v889_v53, 0.0  ;;  %v1177_v58 = vpop.f32.mrb[4].mxu0  ;;  %v1193_v59 = vpop.f32.mrb[4].mxu1 }
 0x157   : > { %939 = vst [vmem:[%s1607_s6 + $0x18] sm:$0xff] %v907_v54  ;;  %955 = vst [vmem:[%s1607_s6 + $0x98] sm:$0xff] %v923_v55  ;;  %v839_v60 = vmul.f32 %v1177_v58, %v1591_v24  ;;  %v855_v61 = vmul.f32 %v1193_v59, %v1591_v24  ;;  %v616_v62 = vpop.f32.mrb[5].mxu0  ;;  %v680_v63 = vpop.f32.mrb[5].mxu1 }
 0x158   : > { %937 = vst [vmem:[%s1607_s6 + $0x8] sm:$0xff] %v905_v56  ;;  %953 = vst [vmem:[%s1607_s6 + $0x88] sm:$0xff] %v921_v57  ;;  %v837_v0 = vmul.f32 %v1591_v24, %v616_v62  ;;  %v853_v1 = vmul.f32 %v1591_v24, %v680_v63  ;;  %v1178_v2 = vpop.f32.mrb[6].mxu0  ;;  %v1194_v3 = vpop.f32.mrb[6].mxu1 }
 0x159   : > { %v878_v4 = vadd.f32 %v1593_v26, %v839_v60  ;;  %v894_v5 = vadd.f32 %v1593_v26, %v855_v61  ;;  %v840_v6 = vmul.f32 %v1178_v2, %v1591_v24  ;;  %v856_v7 = vmul.f32 %v1194_v3, %v1591_v24  ;;  %v619_v8 = vpop.f32.mrb[7].mxu0  ;;  %v683_v9 = vpop.f32.mrb[7].mxu1 }
 0x15a   : > { %v876_v10 = vadd.f32 %v1593_v26, %v837_v0  ;;  %v892_v11 = vadd.f32 %v1593_v26, %v853_v1  ;;  %v838_v12 = vmul.f32 %v1591_v24, %v619_v8  ;;  %v854_v13 = vmul.f32 %v1591_v24, %v683_v9 }
 0x15b   : > { %v910_v14 = vmax.f32 %v878_v4, 0.0  ;;  %v926_v15 = vmax.f32 %v894_v5, 0.0  ;;  %v879_v16 = vadd.f32 %v1593_v26, %v840_v6  ;;  %v895_v17 = vadd.f32 %v1593_v26, %v856_v7 }
 0x15c   : > { %v908_v18 = vmax.f32 %v876_v10, 0.0  ;;  %v924_v19 = vmax.f32 %v892_v11, 0.0  ;;  %v877_v20 = vadd.f32 %v1593_v26, %v838_v12  ;;  %v893_v21 = vadd.f32 %v1593_v26, %v854_v13 }
 0x15d   : > { %942 = vst [vmem:[%s1607_s6 + $0x30] sm:$0xff] %v910_v14  ;;  %958 = vst [vmem:[%s1607_s6 + $0xb0] sm:$0xff] %v926_v15  ;;  %v911_v22 = vmax.f32 %v879_v16, 0.0  ;;  %v927_v23 = vmax.f32 %v895_v17, 0.0 }
 0x15e   : > { %940 = vst [vmem:[%s1607_s6 + $0x20] sm:$0xff] %v908_v18  ;;  %956 = vst [vmem:[%s1607_s6 + $0xa0] sm:$0xff] %v924_v19  ;;  %v909_v25 = vmax.f32 %v877_v20, 0.0  ;;  %v925_v27 = vmax.f32 %v893_v21, 0.0  ;;  %v1181_v28 = vpop.f32.mrb[8].mxu0  ;;  %v1197_v29 = vpop.f32.mrb[8].mxu1 }
 0x15f   : > { %943 = vst [vmem:[%s1607_s6 + $0x38] sm:$0xff] %v911_v22  ;;  %959 = vst [vmem:[%s1607_s6 + $0xb8] sm:$0xff] %v927_v23  ;;  %v843_v30 = vmul.f32 %v1181_v28, %v1591_v24  ;;  %v859_v31 = vmul.f32 %v1197_v29, %v1591_v24  ;;  %v632_v32 = vpop.f32.mrb[9].mxu0  ;;  %v696_v33 = vpop.f32.mrb[9].mxu1 }
 0x160   : > { %941 = vst [vmem:[%s1607_s6 + $0x28] sm:$0xff] %v909_v25  ;;  %957 = vst [vmem:[%s1607_s6 + $0xa8] sm:$0xff] %v925_v27  ;;  %v841_v34 = vmul.f32 %v1591_v24, %v632_v32  ;;  %v857_v35 = vmul.f32 %v1591_v24, %v696_v33  ;;  %v1182_v36 = vpop.f32.mrb[10].mxu0  ;;  %v1198_v37 = vpop.f32.mrb[10].mxu1 }
 0x161   : > { %v882_v38 = vadd.f32 %v1593_v26, %v843_v30  ;;  %v898_v39 = vadd.f32 %v1593_v26, %v859_v31  ;;  %v844_v40 = vmul.f32 %v1182_v36, %v1591_v24  ;;  %v860_v41 = vmul.f32 %v1198_v37, %v1591_v24  ;;  %v635_v42 = vpop.f32.mrb[11].mxu0  ;;  %v699_v43 = vpop.f32.mrb[11].mxu1 }
 0x162   : > { %v880_v44 = vadd.f32 %v1593_v26, %v841_v34  ;;  %v896_v45 = vadd.f32 %v1593_v26, %v857_v35  ;;  %v842_v46 = vmul.f32 %v1591_v24, %v635_v42  ;;  %v858_v47 = vmul.f32 %v1591_v24, %v699_v43 }
 0x163   : > { %v914_v48 = vmax.f32 %v882_v38, 0.0  ;;  %v930_v49 = vmax.f32 %v898_v39, 0.0  ;;  %v883_v50 = vadd.f32 %v1593_v26, %v844_v40  ;;  %v899_v51 = vadd.f32 %v1593_v26, %v860_v41 }
 0x164   : > { %v912_v52 = vmax.f32 %v880_v44, 0.0  ;;  %v928_v53 = vmax.f32 %v896_v45, 0.0  ;;  %v881_v54 = vadd.f32 %v1593_v26, %v842_v46  ;;  %v897_v55 = vadd.f32 %v1593_v26, %v858_v47 }
 0x165   : > { %946 = vst [vmem:[%s1607_s6 + $0x50] sm:$0xff] %v914_v48  ;;  %962 = vst [vmem:[%s1607_s6 + $0xd0] sm:$0xff] %v930_v49  ;;  %v915_v56 = vmax.f32 %v883_v50, 0.0  ;;  %v931_v57 = vmax.f32 %v899_v51, 0.0 }
 0x166   : > { %944 = vst [vmem:[%s1607_s6 + $0x40] sm:$0xff] %v912_v52  ;;  %960 = vst [vmem:[%s1607_s6 + $0xc0] sm:$0xff] %v928_v53  ;;  %v913_v58 = vmax.f32 %v881_v54, 0.0  ;;  %v929_v59 = vmax.f32 %v897_v55, 0.0  ;;  %v1185_v60 = vpop.f32.mrb[12].mxu0  ;;  %v1201_v61 = vpop.f32.mrb[12].mxu1 }
 0x167   : > { %947 = vst [vmem:[%s1607_s6 + $0x58] sm:$0xff] %v915_v56  ;;  %963 = vst [vmem:[%s1607_s6 + $0xd8] sm:$0xff] %v931_v57  ;;  %v847_v62 = vmul.f32 %v1185_v60, %v1591_v24  ;;  %v863_v63 = vmul.f32 %v1201_v61, %v1591_v24  ;;  %v648_v0 = vpop.f32.mrb[13].mxu0  ;;  %v712_v1 = vpop.f32.mrb[13].mxu1 }
 0x168   : > { %945 = vst [vmem:[%s1607_s6 + $0x48] sm:$0xff] %v913_v58  ;;  %961 = vst [vmem:[%s1607_s6 + $0xc8] sm:$0xff] %v929_v59  ;;  %v845_v2 = vmul.f32 %v1591_v24, %v648_v0  ;;  %v861_v3 = vmul.f32 %v1591_v24, %v712_v1  ;;  %v1186_v4 = vpop.f32.mrb[14].mxu0  ;;  %v1202_v5 = vpop.f32.mrb[14].mxu1 }
 0x169   : > { %v886_v6 = vadd.f32 %v1593_v26, %v847_v62  ;;  %v902_v7 = vadd.f32 %v1593_v26, %v863_v63  ;;  %v848_v8 = vmul.f32 %v1186_v4, %v1591_v24  ;;  %v864_v9 = vmul.f32 %v1202_v5, %v1591_v24  ;;  %v651_v10 = vpop.f32.mrb[15].mxu0  ;;  %v715_v11 = vpop.f32.mrb[15].mxu1 }
 0x16a   : > { %v884_v12 = vadd.f32 %v1593_v26, %v845_v2  ;;  %v900_v13 = vadd.f32 %v1593_v26, %v861_v3  ;;  %v846_v14 = vmul.f32 %v1591_v24, %v651_v10  ;;  %v862_v15 = vmul.f32 %v1591_v24, %v715_v11 }
 0x16b   : > { %v918_v16 = vmax.f32 %v886_v6, 0.0  ;;  %v934_v17 = vmax.f32 %v902_v7, 0.0  ;;  %v887_v18 = vadd.f32 %v1593_v26, %v848_v8  ;;  %v903_v19 = vadd.f32 %v1593_v26, %v864_v9 }
 0x16c   : > { %v916_v20 = vmax.f32 %v884_v12, 0.0  ;;  %v932_v21 = vmax.f32 %v900_v13, 0.0  ;;  %v885_v22 = vadd.f32 %v1593_v26, %v846_v14  ;;  %v901_v23 = vadd.f32 %v1593_v26, %v862_v15 }
 0x16d   : > { %950 = vst [vmem:[%s1607_s6 + $0x70] sm:$0xff] %v918_v16  ;;  %966 = vst [vmem:[%s1607_s6 + $0xf0] sm:$0xff] %v934_v17  ;;  %v919_v25 = vmax.f32 %v887_v18, 0.0  ;;  %v935_v24 = vmax.f32 %v903_v19, 0.0 }
 0x16e   : > { %948 = vst [vmem:[%s1607_s6 + $0x60] sm:$0xff] %v916_v20  ;;  %964 = vst [vmem:[%s1607_s6 + $0xe0] sm:$0xff] %v932_v21  ;;  %v917_v27 = vmax.f32 %v885_v22, 0.0  ;;  %v933_v28 = vmax.f32 %v901_v23, 0.0 }
 0x16f   : > { %951 = vst [vmem:[%s1607_s6 + $0x78] sm:$0xff] %v919_v25  ;;  %967 = vst [vmem:[%s1607_s6 + $0xf8] sm:$0xff] %v935_v24 }
 0x170   : > { %949 = vst [vmem:[%s1607_s6 + $0x68] sm:$0xff] %v917_v27  ;;  %965 = vst [vmem:[%s1607_s6 + $0xe8] sm:$0xff] %v933_v28 }
 0x171 PF: > { %s16_s17 = sadd.s32 1, %s1414_s17   ;;  %s1722_s15 = smov %s1410_s16 }
 0x172   : > { %p13_p5 = scmp.ge.s32.totalorder %s16_s17, 4   ;;  %s1723_s16 = smov %s1725_s23 }
 0x174   :  { %15 = sbr.rel (!%p13_p5) target bundleno = 3 (0x3), region = 90 }
 0x17b   :  { %996 = vsyncpa [#allocation4], 1 }
 0x17c   :  { %998 = vsyncpa [#allocation4 + $0x1], 1 }
 0x17d   :  { %999 = vsyncpa [#allocation6], 1 }

// kernel: _lambda_.25
= control target key start
LH: loop header
LB: loop body
LE: loop exit
PB: predicated region body
PF: predicated region fallthrough
CT: control target
= control target key end

     0   :  { %s1815_s1 = inlined_call_operand.vmem [shape: bf16[640,128], index: 1, kind: input, shape index: {}]   ;;  %s1816_s0 = inlined_call_operand.vmem [shape: bf16[128,640], index: 0, kind: input, shape index: {}]   ;;  %s1817_s2 = inlined_call_operand.vmem [shape: f32[1,128], index: 2, kind: input, shape index: {}]   ;;  %s1818_s3 = inlined_call_operand.vmem [shape: f32[1,128], index: 3, kind: input, shape index: {}]   ;;  %s1819_s4 = inlined_call_operand.vmem [shape: f32[128,128], index: 4, kind: output, shape index: {}]  }
   0x1   :  { %v1328_v0 = vld [vmem:[%s1815_s1 + $0x40] sm:$0xff]   ;;  %v1332_v4 = vld [vmem:[%s1815_s1 + $0x48] sm:$0xff]   ;;  %v1336_v8 = vld [vmem:[%s1815_s1 + $0x50] sm:$0xff]  }
   0x2   :  { %v1329_v1 = vld [vmem:[%s1815_s1 + $0xc0] sm:$0xff]   ;;  %1136 = vmatprep.subr.bf16.mxu0 %v1328_v0  ;;  %v1333_v5 = vld [vmem:[%s1815_s1 + $0xc8] sm:$0xff]   ;;  %v1337_v9 = vld [vmem:[%s1815_s1 + $0xd0] sm:$0xff]  }
   0x3   :  { %v1330_v2 = vld [vmem:[%s1815_s1] sm:$0xff]   ;;  %1200 = vmatprep.subr.bf16.mxu1 %v1329_v1  ;;  %v1334_v6 = vld [vmem:[%s1815_s1 + $0x8] sm:$0xff]   ;;  %v1338_v10 = vld [vmem:[%s1815_s1 + $0x10] sm:$0xff]  }
   0x4   :  { %v1331_v3 = vld [vmem:[%s1815_s1 + $0x80] sm:$0xff]   ;;  %1137 = vmatpush3.bf16.msra.mxu0 %v1330_v2  ;;  %v1335_v7 = vld [vmem:[%s1815_s1 + $0x88] sm:$0xff]   ;;  %v1339_v11 = vld [vmem:[%s1815_s1 + $0x90] sm:$0xff]  }
   0x5   :  { %1201 = vmatpush3.bf16.msra.mxu1 %v1331_v3  ;;  %1138 = vmatprep.subr.bf16.mxu0 %v1332_v4  ;;  %v1340_v12 = vld [vmem:[%s1815_s1 + $0x58] sm:$0xff]   ;;  %v1344_v16 = vld [vmem:[%s1815_s1 + $0x60] sm:$0xff]   ;;  %v1348_v20 = vld [vmem:[%s1815_s1 + $0x68] sm:$0xff]  }
   0x6   :  { %1202 = vmatprep.subr.bf16.mxu1 %v1333_v5  ;;  %v1341_v13 = vld [vmem:[%s1815_s1 + $0xd8] sm:$0xff]   ;;  %v1345_v17 = vld [vmem:[%s1815_s1 + $0xe0] sm:$0xff]   ;;  %v1349_v21 = vld [vmem:[%s1815_s1 + $0xe8] sm:$0xff]  }
   0x7   :  { %v1342_v14 = vld [vmem:[%s1815_s1 + $0x18] sm:$0xff]   ;;  %v1346_v18 = vld [vmem:[%s1815_s1 + $0x20] sm:$0xff]   ;;  %v1350_v22 = vld [vmem:[%s1815_s1 + $0x28] sm:$0xff]  }
   0x8   :  { %1139 = vmatpush3.bf16.msra.mxu0 %v1334_v6  ;;  %v1343_v15 = vld [vmem:[%s1815_s1 + $0x98] sm:$0xff]   ;;  %v1347_v19 = vld [vmem:[%s1815_s1 + $0xa0] sm:$0xff]   ;;  %v1351_v23 = vld [vmem:[%s1815_s1 + $0xa8] sm:$0xff]  }
   0x9   :  { %1203 = vmatpush3.bf16.msra.mxu1 %v1335_v7  ;;  %1140 = vmatprep.subr.bf16.mxu0 %v1336_v8  ;;  %v1352_v24 = vld [vmem:[%s1815_s1 + $0x70] sm:$0xff]   ;;  %v1356_v28 = vld [vmem:[%s1815_s1 + $0x78] sm:$0xff]   ;;  %v1365_v35 = vld [vmem:[%s1816_s0 + $0xc] ss:$20 sps:$4 sm:$0xff]  }
   0xa   :  { %1204 = vmatprep.subr.bf16.mxu1 %v1337_v9  ;;  %v1353_v25 = vld [vmem:[%s1815_s1 + $0xf0] sm:$0xff]   ;;  %v1357_v29 = vld [vmem:[%s1815_s1 + $0xf8] sm:$0xff]   ;;  %v1366_v36 = vld [vmem:[%s1815_s1 + $0x100] sm:$0xff]   ;;  %759 = vmatprep.mubr.bf16.mxu1 %v1365_v35 }
   0xb   :  { %v1354_v26 = vld [vmem:[%s1815_s1 + $0x30] sm:$0xff]   ;;  %v1358_v30 = vld [vmem:[%s1815_s1 + $0x38] sm:$0xff]   ;;  %v1367_v37 = vld [vmem:[%s1816_s0 + $0x2c] ss:$20 sps:$4 sm:$0xff]  }
   0xc   :  { %1141 = vmatpush3.bf16.msra.mxu0 %v1338_v10  ;;  %v1355_v27 = vld [vmem:[%s1815_s1 + $0xb0] sm:$0xff]   ;;  %v1359_v31 = vld [vmem:[%s1815_s1 + $0xb8] sm:$0xff]   ;;  %v1373_v39 = vld [vmem:[%s1815_s1 + $0x108] sm:$0xff]  }
   0xd   :  { %1205 = vmatpush3.bf16.msra.mxu1 %v1339_v11  ;;  %1142 = vmatprep.subr.bf16.mxu0 %v1340_v12  ;;  %v1360_v32 = vld [vmem:[%s1816_s0] ss:$20 sps:$4 sm:$0xff]   ;;  %v1362_v33 = vld [vmem:[%s1816_s0 + $0x4] ss:$20 sps:$4 sm:$0xff]   ;;  %v1363_v34 = vld [vmem:[%s1816_s0 + $0x8] ss:$20 sps:$4 sm:$0xff]  }
   0xe   :  { %1206 = vmatprep.subr.bf16.mxu1 %v1341_v13  ;;  %662 = vmatprep.mubr.bf16.mxu0 %v1362_v33  ;;  %v1369_v38 = vld [vmem:[%s1816_s0 + $0x34] ss:$20 sps:$4 sm:$0xff]   ;;  %v1372_v41 = vld [vmem:[%s1816_s0 + $0x30] ss:$20 sps:$4 sm:$0xff]   ;;  %v1387_v45 = vld [vmem:[%s1815_s1 + $0x118] sm:$0xff]  }
   0xf   :  { %v1371_v40 = vld [vmem:[%s1816_s0 + $0x28] ss:$20 sps:$4 sm:$0xff]   ;;  %v1380_v44 = vld [vmem:[%s1815_s1 + $0x110] sm:$0xff]   ;;  %v1379_v47 = vld [vmem:[%s1816_s0 + $0x58] ss:$20 sps:$4 sm:$0xff]  }
  0x10   :  { %1143 = vmatpush3.bf16.msra.mxu0 %v1342_v14  ;;  %v1374_v42 = vld [vmem:[%s1816_s0 + $0x54] ss:$20 sps:$4 sm:$0xff]   ;;  %v1376_v43 = vld [vmem:[%s1816_s0 + $0x5c] ss:$20 sps:$4 sm:$0xff]   ;;  %v1383_v49 = vld [vmem:[%s1816_s0 + $0x84] ss:$20 sps:$4 sm:$0xff]  }
  0x11   :  { %1207 = vmatpush3.bf16.msra.mxu1 %v1343_v15  ;;  %1144 = vmatprep.subr.bf16.mxu0 %v1344_v16  ;;  %v1378_v46 = vld [vmem:[%s1816_s0 + $0x50] ss:$20 sps:$4 sm:$0xff]   ;;  %v1401_v51 = vld [vmem:[%s1815_s1 + $0x128] sm:$0xff]   ;;  %v1386_v53 = vld [vmem:[%s1816_s0 + $0x80] ss:$20 sps:$4 sm:$0xff]  }
  0x12   :  { %1208 = vmatprep.subr.bf16.mxu1 %v1345_v17  ;;  %v1381_v48 = vld [vmem:[%s1816_s0 + $0x7c] ss:$20 sps:$4 sm:$0xff]   ;;  %v1394_v50 = vld [vmem:[%s1815_s1 + $0x120] sm:$0xff]   ;;  %v1385_v52 = vld [vmem:[%s1816_s0 + $0x78] ss:$20 sps:$4 sm:$0xff]  }
  0x13   :  { %v1388_v54 = vld [vmem:[%s1816_s0 + $0xa4] ss:$20 sps:$4 sm:$0xff]   ;;  %v1408_v55 = vld [vmem:[%s1815_s1 + $0x130] sm:$0xff]   ;;  %v1390_v56 = vld [vmem:[%s1816_s0 + $0xac] ss:$20 sps:$4 sm:$0xff]  }
  0x14   :  { %1145 = vmatpush3.bf16.msra.mxu0 %v1346_v18  ;;  %v1415_v57 = vld [vmem:[%s1815_s1 + $0x138] sm:$0xff]   ;;  %v1392_v58 = vld [vmem:[%s1816_s0 + $0xa0] ss:$20 sps:$4 sm:$0xff]   ;;  %v1400_v63 = vld [vmem:[%s1816_s0 + $0xd0] ss:$20 sps:$4 sm:$0xff]  }
  0x15   :  { %1209 = vmatpush3.bf16.msra.mxu1 %v1347_v19  ;;  %1146 = vmatprep.subr.bf16.mxu0 %v1348_v20  ;;  %v1393_v59 = vld [vmem:[%s1816_s0 + $0xa8] ss:$20 sps:$4 sm:$0xff]   ;;  %v1395_v60 = vld [vmem:[%s1816_s0 + $0xcc] ss:$20 sps:$4 sm:$0xff]   ;;  %v1406_v2 = vld [vmem:[%s1816_s0 + $0xf0] ss:$20 sps:$4 sm:$0xff]  }
  0x16   :  { %1210 = vmatprep.subr.bf16.mxu1 %v1349_v21  ;;  %v1397_v61 = vld [vmem:[%s1816_s0 + $0xd4] ss:$20 sps:$4 sm:$0xff]   ;;  %v1404_v1 = vld [vmem:[%s1816_s0 + $0xfc] ss:$20 sps:$4 sm:$0xff]   ;;  %v1407_v3 = vld [vmem:[%s1816_s0 + $0xf8] ss:$20 sps:$4 sm:$0xff]  }
  0x17   :  { %v1399_v62 = vld [vmem:[%s1816_s0 + $0xc8] ss:$20 sps:$4 sm:$0xff]   ;;  %v1411_v5 = vld [vmem:[%s1816_s0 + $0x124] ss:$20 sps:$4 sm:$0xff]   ;;  %v1414_v7 = vld [vmem:[%s1816_s0 + $0x120] ss:$20 sps:$4 sm:$0xff]  }
  0x18   :  { %1147 = vmatpush3.bf16.msra.mxu0 %v1350_v22  ;;  %v1402_v0 = vld [vmem:[%s1816_s0 + $0xf4] ss:$20 sps:$4 sm:$0xff]   ;;  %v1409_v4 = vld [vmem:[%s1816_s0 + $0x11c] ss:$20 sps:$4 sm:$0xff]   ;;  %v1413_v6 = vld [vmem:[%s1816_s0 + $0x118] ss:$20 sps:$4 sm:$0xff]  }
  0x19   :  { %1211 = vmatpush3.bf16.msra.mxu1 %v1351_v23  ;;  %1148 = vmatprep.subr.bf16.mxu0 %v1352_v24  ;;  %v1416_v8 = vld [vmem:[%s1816_s0 + $0x10] ss:$20 sps:$4 sm:$0xff]   ;;  %v1418_v10 = vld [vmem:[%s1816_s0 + $0x38] ss:$20 sps:$4 sm:$0xff]   ;;  %v1420_v12 = vld [vmem:[%s1816_s0 + $0x60] ss:$20 sps:$4 sm:$0xff]  }
  0x1a   :  { %1212 = vmatprep.subr.bf16.mxu1 %v1353_v25  ;;  %v1417_v9 = vld [vmem:[%s1816_s0 + $0xb0] ss:$20 sps:$4 sm:$0xff]   ;;  %v1419_v11 = vld [vmem:[%s1816_s0 + $0xd8] ss:$20 sps:$4 sm:$0xff]   ;;  %v1421_v13 = vld [vmem:[%s1816_s0 + $0x100] ss:$20 sps:$4 sm:$0xff]  }
  0x1b   :  { %v1422_v14 = vld [vmem:[%s1816_s0 + $0x88] ss:$20 sps:$4 sm:$0xff]  }
  0x1c   :  { %1149 = vmatpush3.bf16.msra.mxu0 %v1354_v26  ;;  %v1423_v15 = vld [vmem:[%s1816_s0 + $0x128] ss:$20 sps:$4 sm:$0xff]  }
  0x1d   :  { %1213 = vmatpush3.bf16.msra.mxu1 %v1355_v27  ;;  %1150 = vmatprep.subr.bf16.mxu0 %v1356_v28 }
  0x1e   :  { %1214 = vmatprep.subr.bf16.mxu1 %v1357_v29 }
  0x20   :  { %1151 = vmatpush3.bf16.msra.mxu0 %v1358_v30 }
  0x21   :  { %1215 = vmatpush3.bf16.msra.mxu1 %v1359_v31  ;;  %1280 = vmatprep.subr.bf16.mxu0 %v1366_v36 }
  0x22   :  { %1312 = vmatprep.subr.bf16.mxu1 %v1366_v36 }
  0x23   :  { %663 = vmatmul.mubr.bf16.vlgmr.msra.gmra.mrb[0].mxu0 %v1360_v32 }
  0x24   :  { %760 = vmatmul.mubr.bf16.vlgmr.msra.gmra.mrb[0].mxu1 %v1363_v34  ;;  %1281 = vmatpush3.bf16.msra.mxu0 %v1366_v36 }
  0x25   :  { %1320 = vmatpush3.bf16.msra.mxu1 %v1366_v36  ;;  %670 = vmatprep.mubr.bf16.mxu0 %v1367_v37 }
  0x26   :  { %767 = vmatprep.mubr.bf16.mxu1 %v1369_v38  ;;  %1282 = vmatprep.subr.bf16.mxu0 %v1373_v39 }
  0x27   :  { %1313 = vmatprep.subr.bf16.mxu1 %v1373_v39 }
  0x28   :  { %1283 = vmatpush3.bf16.msra.mxu0 %v1373_v39 }
  0x29   :  { %1321 = vmatpush3.bf16.msra.mxu1 %v1373_v39  ;;  %1284 = vmatprep.subr.bf16.mxu0 %v1380_v44 }
  0x2a   :  { %1314 = vmatprep.subr.bf16.mxu1 %v1380_v44 }
  0x2b   :  { %671 = vmatmul.mubr.bf16.gmra.mrb[4].mxu0 %v1371_v40 }
  0x2c   :  { %768 = vmatmul.mubr.bf16.gmra.mrb[4].mxu1 %v1372_v41  ;;  %678 = vmatprep.mubr.bf16.mxu0 %v1374_v42 }
  0x2d   :  { %775 = vmatprep.mubr.bf16.mxu1 %v1376_v43  ;;  %1285 = vmatpush3.bf16.msra.mxu0 %v1380_v44 }
  0x2e   :  { %1322 = vmatpush3.bf16.msra.mxu1 %v1380_v44  ;;  %1286 = vmatprep.subr.bf16.mxu0 %v1387_v45 }
  0x2f   :  { %1315 = vmatprep.subr.bf16.mxu1 %v1387_v45 }
  0x31   :  { %1287 = vmatpush3.bf16.msra.mxu0 %v1387_v45 }
  0x32   :  { %1323 = vmatpush3.bf16.msra.mxu1 %v1387_v45  ;;  %1288 = vmatprep.subr.bf16.mxu0 %v1394_v50 }
  0x33   :  { %679 = vmatmul.mubr.bf16.gmra.mrb[8].mxu0 %v1378_v46  ;;  %1316 = vmatprep.subr.bf16.mxu1 %v1394_v50 }
  0x34   :  { %776 = vmatmul.mubr.bf16.gmra.mrb[8].mxu1 %v1379_v47  ;;  %686 = vmatprep.mubr.bf16.mxu0 %v1381_v48 }
  0x35   :  { %783 = vmatprep.mubr.bf16.mxu1 %v1383_v49  ;;  %1289 = vmatpush3.bf16.msra.mxu0 %v1394_v50 }
  0x36   :  { %1324 = vmatpush3.bf16.msra.mxu1 %v1394_v50  ;;  %1290 = vmatprep.subr.bf16.mxu0 %v1401_v51 }
  0x37   :  { %1317 = vmatprep.subr.bf16.mxu1 %v1401_v51 }
  0x39   :  { %1291 = vmatpush3.bf16.msra.mxu0 %v1401_v51 }
  0x3a   :  { %1325 = vmatpush3.bf16.msra.mxu1 %v1401_v51  ;;  %1292 = vmatprep.subr.bf16.mxu0 %v1408_v55 }
  0x3b   :  { %687 = vmatmul.mubr.bf16.gmra.mrb[12].mxu0 %v1385_v52  ;;  %1318 = vmatprep.subr.bf16.mxu1 %v1408_v55 }
  0x3c   :  { %784 = vmatmul.mubr.bf16.gmra.mrb[12].mxu1 %v1386_v53  ;;  %694 = vmatprep.mubr.bf16.mxu0 %v1388_v54 }
  0x3d   :  { %791 = vmatprep.mubr.bf16.mxu1 %v1390_v56  ;;  %1293 = vmatpush3.bf16.msra.mxu0 %v1408_v55 }
  0x3e   :  { %1326 = vmatpush3.bf16.msra.mxu1 %v1408_v55  ;;  %1294 = vmatprep.subr.bf16.mxu0 %v1415_v57 }
  0x3f   :  { %1319 = vmatprep.subr.bf16.mxu1 %v1415_v57 }
  0x41   :  { %1295 = vmatpush3.bf16.msra.mxu0 %v1415_v57 }
  0x42   :  { %1327 = vmatpush3.bf16.msra.mxu1 %v1415_v57 }
  0x43   :  { %695 = vmatmul.mubr.bf16.gmra.mrb[16].mxu0 %v1392_v58 }
  0x44   :  { %792 = vmatmul.mubr.bf16.gmra.mrb[16].mxu1 %v1393_v59  ;;  %702 = vmatprep.mubr.bf16.mxu0 %v1395_v60 }
  0x45   :  { %799 = vmatprep.mubr.bf16.mxu1 %v1397_v61 }
  0x4b   :  { %703 = vmatmul.mubr.bf16.gmra.mrb[20].mxu0 %v1399_v62 }
  0x4c   :  { %800 = vmatmul.mubr.bf16.gmra.mrb[20].mxu1 %v1400_v63  ;;  %710 = vmatprep.mubr.bf16.mxu0 %v1402_v0 }
  0x4d   :  { %807 = vmatprep.mubr.bf16.mxu1 %v1404_v1 }
  0x53   :  { %711 = vmatmul.mubr.bf16.gmra.mrb[24].mxu0 %v1406_v2 }
  0x54   :  { %808 = vmatmul.mubr.bf16.gmra.mrb[24].mxu1 %v1407_v3  ;;  %718 = vmatprep.mubr.bf16.mxu0 %v1409_v4 }
  0x55   :  { %815 = vmatprep.mubr.bf16.mxu1 %v1411_v5 }
  0x5b   :  { %719 = vmatmul.mubr.bf16.gmra.mrb[28].mxu0 %v1413_v6 }
  0x5c   :  { %816 = vmatmul.mubr.bf16.gmra.mrb[28].mxu1 %v1414_v7  ;;  %1296 = vmatprep.mubr.bf16.mxu0 %v1416_v8 }
  0x5d   :  { %1304 = vmatprep.mubr.bf16.mxu1 %v1417_v9 }
  0x63   :  { %1297 = vmatmul.mubr.bf16.vlgmr.msra.gmra.mrb[32].mxu0 %v1418_v10 }
  0x64   :  { %1305 = vmatmul.mubr.bf16.vlgmr.msra.gmra.mrb[32].mxu1 %v1419_v11  ;;  %1300 = vmatprep.mubr.bf16.mxu0 %v1420_v12 }
  0x65   :  { %1308 = vmatprep.mubr.bf16.mxu1 %v1421_v13 }
  0x6b   :  { %1301 = vmatmul.mubr.bf16.gmra.mrb[36].mxu0 %v1422_v14 }
  0x6c   :  { %1309 = vmatmul.mubr.bf16.gmra.mrb[36].mxu1 %v1423_v15 }
  0xf6   :  { %v1152_v16 = vpop.f32.mrb[0].mxu0 }
  0xf7   :  { %v1216_v17 = vpop.f32.mrb[0].mxu1  ;;  %v1153_v18 = vpop.f32.mrb[1].mxu0 }
  0xf8   :  { %v1154_v19 = vadd.f32 %v1153_v18, %v1152_v16  ;;  %v1217_v20 = vpop.f32.mrb[1].mxu1  ;;  %v1155_v21 = vpop.f32.mrb[2].mxu0 }
  0xf9   :  { %v1218_v22 = vadd.f32 %v1217_v20, %v1216_v17  ;;  %v1219_v23 = vpop.f32.mrb[2].mxu1  ;;  %v1156_v24 = vpop.f32.mrb[3].mxu0 }
  0xfa   :  { %v1157_v25 = vadd.f32 %v1156_v24, %v1155_v21  ;;  %v1220_v26 = vpop.f32.mrb[3].mxu1 }
  0xfb   :  { %v1221_v27 = vadd.f32 %v1220_v26, %v1219_v23  ;;  %v1689_v28 = vadd.f32 %v1218_v22, %v1154_v19 }
  0xfd   :  { %v1691_v29 = vadd.f32 %v1221_v27, %v1157_v25 }
  0xfe   :  { %v1158_v30 = vpop.f32.mrb[4].mxu0 }
  0xff   :  { %v1222_v31 = vpop.f32.mrb[4].mxu1  ;;  %v1159_v32 = vpop.f32.mrb[5].mxu0 }
 0x100   :  { %v1160_v33 = vadd.f32 %v1159_v32, %v1158_v30  ;;  %v1223_v34 = vpop.f32.mrb[5].mxu1  ;;  %v1161_v35 = vpop.f32.mrb[6].mxu0 }
 0x101   :  { %v1224_v36 = vadd.f32 %v1223_v34, %v1222_v31  ;;  %v1225_v37 = vpop.f32.mrb[6].mxu1  ;;  %v1162_v38 = vpop.f32.mrb[7].mxu0 }
 0x102   :  { %v1163_v39 = vadd.f32 %v1162_v38, %v1161_v35  ;;  %v1226_v40 = vpop.f32.mrb[7].mxu1 }
 0x103   :  { %v1227_v41 = vadd.f32 %v1226_v40, %v1225_v37  ;;  %v1693_v42 = vadd.f32 %v1224_v36, %v1160_v33 }
 0x105   :  { %v1695_v43 = vadd.f32 %v1227_v41, %v1163_v39 }
 0x106   :  { %v1164_v44 = vpop.f32.mrb[8].mxu0 }
 0x107   :  { %v1228_v45 = vpop.f32.mrb[8].mxu1  ;;  %v1165_v46 = vpop.f32.mrb[9].mxu0 }
 0x108   :  { %v1166_v47 = vadd.f32 %v1165_v46, %v1164_v44  ;;  %v1229_v48 = vpop.f32.mrb[9].mxu1  ;;  %v1167_v49 = vpop.f32.mrb[10].mxu0 }
 0x109   :  { %v1230_v50 = vadd.f32 %v1229_v48, %v1228_v45  ;;  %v1231_v51 = vpop.f32.mrb[10].mxu1  ;;  %v1168_v52 = vpop.f32.mrb[11].mxu0 }
 0x10a   :  { %v1169_v53 = vadd.f32 %v1168_v52, %v1167_v49  ;;  %v1232_v54 = vpop.f32.mrb[11].mxu1 }
 0x10b   :  { %v1233_v55 = vadd.f32 %v1232_v54, %v1231_v51  ;;  %v1697_v56 = vadd.f32 %v1230_v50, %v1166_v47 }
 0x10d   :  { %v1699_v57 = vadd.f32 %v1233_v55, %v1169_v53 }
 0x10e   :  { %v1170_v58 = vpop.f32.mrb[12].mxu0 }
 0x10f   :  { %v1234_v59 = vpop.f32.mrb[12].mxu1  ;;  %v1171_v60 = vpop.f32.mrb[13].mxu0 }
 0x110   :  { %v1172_v61 = vadd.f32 %v1171_v60, %v1170_v58  ;;  %v1235_v62 = vpop.f32.mrb[13].mxu1  ;;  %v1173_v63 = vpop.f32.mrb[14].mxu0 }
 0x111   :  { %v1236_v0 = vadd.f32 %v1235_v62, %v1234_v59  ;;  %v1237_v1 = vpop.f32.mrb[14].mxu1  ;;  %v1174_v2 = vpop.f32.mrb[15].mxu0 }
 0x112   :  { %v1175_v3 = vadd.f32 %v1174_v2, %v1173_v63  ;;  %v1238_v4 = vpop.f32.mrb[15].mxu1 }
 0x113   :  { %v1239_v5 = vadd.f32 %v1238_v4, %v1237_v1  ;;  %v1701_v6 = vadd.f32 %v1236_v0, %v1172_v61 }
 0x115   :  { %v1703_v7 = vadd.f32 %v1239_v5, %v1175_v3 }
 0x116   :  { %v1176_v8 = vpop.f32.mrb[16].mxu0 }
 0x117   :  { %v1240_v9 = vpop.f32.mrb[16].mxu1  ;;  %v1177_v10 = vpop.f32.mrb[17].mxu0 }
 0x118   :  { %v1178_v11 = vadd.f32 %v1177_v10, %v1176_v8  ;;  %v1241_v12 = vpop.f32.mrb[17].mxu1  ;;  %v1179_v13 = vpop.f32.mrb[18].mxu0 }
 0x119   :  { %v1242_v14 = vadd.f32 %v1241_v12, %v1240_v9  ;;  %v1243_v15 = vpop.f32.mrb[18].mxu1  ;;  %v1180_v16 = vpop.f32.mrb[19].mxu0  ;;  %v1716_v9 = vld [vmem:[%s1817_s2] ss:$0 sm:$0xff] }
 0x11a   :  { %v1181_v17 = vadd.f32 %v1180_v16, %v1179_v13  ;;  %v1244_v18 = vpop.f32.mrb[19].mxu1  ;;  %v1722_v13 = vld [vmem:[%s1818_s3] ss:$0 sm:$0xff] }
 0x11b   :  { %v1245_v19 = vadd.f32 %v1244_v18, %v1243_v15  ;;  %v794_v20 = vadd.f32 %v1242_v14, %v1178_v11 }
 0x11d   :  { %v1705_v21 = vadd.f32 %v1245_v19, %v1181_v17 }
 0x11e   :  { %v1182_v22 = vpop.f32.mrb[20].mxu0 }
 0x11f   :  { %v1246_v23 = vpop.f32.mrb[20].mxu1  ;;  %v1183_v24 = vpop.f32.mrb[21].mxu0 }
 0x120   :  { %v1184_v25 = vadd.f32 %v1183_v24, %v1182_v22  ;;  %v1247_v26 = vpop.f32.mrb[21].mxu1  ;;  %v1185_v27 = vpop.f32.mrb[22].mxu0 }
 0x121   :  { %v1248_v30 = vadd.f32 %v1247_v26, %v1246_v23  ;;  %v1249_v31 = vpop.f32.mrb[22].mxu1  ;;  %v1186_v32 = vpop.f32.mrb[23].mxu0 }
 0x122   :  { %v1187_v33 = vadd.f32 %v1186_v32, %v1185_v27  ;;  %v1250_v34 = vpop.f32.mrb[23].mxu1 }
 0x123   :  { %v1251_v35 = vadd.f32 %v1250_v34, %v1249_v31  ;;  %v802_v36 = vadd.f32 %v1248_v30, %v1184_v25 }
 0x125   :  { %v805_v37 = vadd.f32 %v1251_v35, %v1187_v33 }
 0x126   :  { %v1188_v38 = vpop.f32.mrb[24].mxu0 }
 0x127   :  { %v1252_v39 = vpop.f32.mrb[24].mxu1  ;;  %v1189_v40 = vpop.f32.mrb[25].mxu0 }
 0x128   :  { %v1190_v41 = vadd.f32 %v1189_v40, %v1188_v38  ;;  %v1253_v44 = vpop.f32.mrb[25].mxu1  ;;  %v1191_v45 = vpop.f32.mrb[26].mxu0 }
 0x129   :  { %v1254_v46 = vadd.f32 %v1253_v44, %v1252_v39  ;;  %v1255_v47 = vpop.f32.mrb[26].mxu1  ;;  %v1192_v48 = vpop.f32.mrb[27].mxu0 }
 0x12a   :  { %v1193_v49 = vadd.f32 %v1192_v48, %v1191_v45  ;;  %v1256_v50 = vpop.f32.mrb[27].mxu1 }
 0x12b   :  { %v1257_v51 = vadd.f32 %v1256_v50, %v1255_v47  ;;  %v1707_v52 = vadd.f32 %v1254_v46, %v1190_v41 }
 0x12d   :  { %v1709_v53 = vadd.f32 %v1257_v51, %v1193_v49 }
 0x12e   :  { %v1194_v54 = vpop.f32.mrb[28].mxu0 }
 0x12f   :  { %v1258_v55 = vpop.f32.mrb[28].mxu1  ;;  %v1195_v58 = vpop.f32.mrb[29].mxu0 }
 0x130   :  { %v1196_v59 = vadd.f32 %v1195_v58, %v1194_v54  ;;  %v1259_v60 = vpop.f32.mrb[29].mxu1  ;;  %v1197_v61 = vpop.f32.mrb[30].mxu0 }
 0x131   :  { %v1260_v62 = vadd.f32 %v1259_v60, %v1258_v55  ;;  %v1261_v63 = vpop.f32.mrb[30].mxu1  ;;  %v1198_v0 = vpop.f32.mrb[31].mxu0 }
 0x132   :  { %v1199_v1 = vadd.f32 %v1198_v0, %v1197_v61  ;;  %v1262_v2 = vpop.f32.mrb[31].mxu1 }
 0x133   :  { %v1263_v3 = vadd.f32 %v1262_v2, %v1261_v63  ;;  %v818_v4 = vadd.f32 %v1260_v62, %v1196_v59 }
 0x135   :  { %v1711_v5 = vadd.f32 %v1263_v3, %v1199_v1 }
 0x136   :  { %v1298_v8 = vpop.f32.mrb[32].mxu0 }
 0x137   :  { %v867_v10 = vadd.f32 %v1298_v8, %v1693_v42  ;;  %v1306_v11 = vpop.f32.mrb[32].mxu1  ;;  %v858_v12 = vpop.f32.mrb[33].mxu0 }
 0x138   :  { %v899_v14 = vadd.f32 %v1306_v11, %v802_v36  ;;  %v859_v15 = vadd.f32 %v858_v12, %v1689_v28  ;;  %v890_v16 = vpop.f32.mrb[33].mxu1  ;;  %v1299_v17 = vpop.f32.mrb[34].mxu0 }
 0x139   :  { %v981_v18 = vmul.f32 %v1716_v9, %v867_v10  ;;  %v891_v19 = vadd.f32 %v890_v16, %v794_v20  ;;  %v870_v22 = vadd.f32 %v1299_v17, %v1695_v43  ;;  %v1307_v23 = vpop.f32.mrb[34].mxu1  ;;  %v861_v24 = vpop.f32.mrb[35].mxu0 }
 0x13a   :  { %v989_v42 = vmul.f32 %v1716_v9, %v899_v14  ;;  %v979_v25 = vmul.f32 %v1716_v9, %v859_v15  ;;  %v902_v26 = vadd.f32 %v1307_v23, %v805_v37  ;;  %v862_v27 = vadd.f32 %v861_v24, %v1691_v29  ;;  %v893_v30 = vpop.f32.mrb[35].mxu1 }
 0x13b   :  { %v1004_v31 = vadd.f32 %v1722_v13, %v981_v18  ;;  %v987_v28 = vmul.f32 %v1716_v9, %v891_v19  ;;  %v982_v32 = vmul.f32 %v1716_v9, %v870_v22  ;;  %v894_v20 = vadd.f32 %v893_v30, %v1705_v21 }
 0x13c   :  { %v1012_v43 = vadd.f32 %v1722_v13, %v989_v42  ;;  %v1002_v33 = vadd.f32 %v1722_v13, %v979_v25  ;;  %v990_v34 = vmul.f32 %v1716_v9, %v902_v26  ;;  %v980_v35 = vmul.f32 %v1716_v9, %v862_v27 }
 0x13d   :  { %v1020_v36 = vmax.f32 %v1004_v31, 0.0  ;;  %v1010_v29 = vadd.f32 %v1722_v13, %v987_v28  ;;  %v1005_v37 = vadd.f32 %v1722_v13, %v982_v32  ;;  %v988_v38 = vmul.f32 %v1716_v9, %v894_v20 }
 0x13e   :  { %v1028_v39 = vmax.f32 %v1012_v43, 0.0  ;;  %v1018_v40 = vmax.f32 %v1002_v33, 0.0  ;;  %v1013_v41 = vadd.f32 %v1722_v13, %v990_v34  ;;  %v1003_v21 = vadd.f32 %v1722_v13, %v980_v35  ;;  %v1302_v44 = vpop.f32.mrb[36].mxu0 }
 0x13f   :  { %1036 = vst [vmem:[%s1819_s4 + $0x10] sm:$0xff] %v1020_v36  ;;  %v1026_v45 = vmax.f32 %v1010_v29, 0.0  ;;  %v1021_v46 = vmax.f32 %v1005_v37, 0.0  ;;  %v1011_v47 = vadd.f32 %v1722_v13, %v988_v38  ;;  %v883_v48 = vadd.f32 %v1302_v44, %v1701_v6  ;;  %v1310_v49 = vpop.f32.mrb[36].mxu1  ;;  %v874_v50 = vpop.f32.mrb[37].mxu0 }
 0x140   :  { %1044 = vst [vmem:[%s1819_s4 + $0x50] sm:$0xff] %v1028_v39  ;;  %1034 = vst [vmem:[%s1819_s4] sm:$0xff] %v1018_v40  ;;  %v1029_v51 = vmax.f32 %v1013_v41, 0.0  ;;  %v1019_v54 = vmax.f32 %v1003_v21, 0.0  ;;  %v915_v55 = vadd.f32 %v1310_v49, %v818_v4  ;;  %v875_v58 = vadd.f32 %v874_v50, %v1697_v56  ;;  %v906_v59 = vpop.f32.mrb[37].mxu1  ;;  %v1303_v60 = vpop.f32.mrb[38].mxu0 }
 0x141   :  { %1042 = vst [vmem:[%s1819_s4 + $0x40] sm:$0xff] %v1026_v45  ;;  %1037 = vst [vmem:[%s1819_s4 + $0x18] sm:$0xff] %v1021_v46  ;;  %v1027_v6 = vmax.f32 %v1011_v47, 0.0  ;;  %v985_v61 = vmul.f32 %v1716_v9, %v883_v48  ;;  %v907_v62 = vadd.f32 %v906_v59, %v1707_v52  ;;  %v886_v63 = vadd.f32 %v1303_v60, %v1703_v7  ;;  %v1311_v0 = vpop.f32.mrb[38].mxu1  ;;  %v877_v1 = vpop.f32.mrb[39].mxu0 }
 0x142   :  { %1045 = vst [vmem:[%s1819_s4 + $0x58] sm:$0xff] %v1029_v51  ;;  %1035 = vst [vmem:[%s1819_s4 + $0x8] sm:$0xff] %v1019_v54  ;;  %v993_v56 = vmul.f32 %v1716_v9, %v915_v55  ;;  %v983_v2 = vmul.f32 %v1716_v9, %v875_v58  ;;  %v918_v3 = vadd.f32 %v1311_v0, %v1711_v5  ;;  %v909_v4 = vpop.f32.mrb[39].mxu1 }
 0x143   :  { %v878_v52 = vadd.f32 %v877_v1, %v1699_v57  ;;  %1043 = vst [vmem:[%s1819_s4 + $0x48] sm:$0xff] %v1027_v6  ;;  %v1008_v7 = vadd.f32 %v1722_v13, %v985_v61  ;;  %v991_v8 = vmul.f32 %v1716_v9, %v907_v62  ;;  %v986_v10 = vmul.f32 %v1716_v9, %v886_v63 }
 0x144   :  { %v910_v11 = vadd.f32 %v909_v4, %v1709_v53  ;;  %v1016_v12 = vadd.f32 %v1722_v13, %v993_v56  ;;  %v1006_v14 = vadd.f32 %v1722_v13, %v983_v2  ;;  %v994_v5 = vmul.f32 %v1716_v9, %v918_v3 }
 0x145   :  { %v984_v57 = vmul.f32 %v1716_v9, %v878_v52  ;;  %v1024_v15 = vmax.f32 %v1008_v7, 0.0  ;;  %v1014_v16 = vadd.f32 %v1722_v13, %v991_v8  ;;  %v1009_v17 = vadd.f32 %v1722_v13, %v986_v10 }
 0x146   :  { %v992_v18 = vmul.f32 %v1716_v9, %v910_v11  ;;  %v1032_v19 = vmax.f32 %v1016_v12, 0.0  ;;  %v1022_v22 = vmax.f32 %v1006_v14, 0.0  ;;  %v1017_v23 = vadd.f32 %v1722_v13, %v994_v5 }
 0x147   :  { %v1007_v53 = vadd.f32 %v1722_v13, %v984_v57  ;;  %1040 = vst [vmem:[%s1819_s4 + $0x30] sm:$0xff] %v1024_v15  ;;  %v1030_v24 = vmax.f32 %v1014_v16, 0.0  ;;  %v1025_v42 = vmax.f32 %v1009_v17, 0.0 }
 0x148   :  { %v1015_v25 = vadd.f32 %v1722_v13, %v992_v18  ;;  %1048 = vst [vmem:[%s1819_s4 + $0x70] sm:$0xff] %v1032_v19  ;;  %1038 = vst [vmem:[%s1819_s4 + $0x20] sm:$0xff] %v1022_v22  ;;  %v1033_v9 = vmax.f32 %v1017_v23, 0.0 }
 0x149   :  { %v1023_v26 = vmax.f32 %v1007_v53, 0.0  ;;  %1046 = vst [vmem:[%s1819_s4 + $0x60] sm:$0xff] %v1030_v24  ;;  %1041 = vst [vmem:[%s1819_s4 + $0x38] sm:$0xff] %v1025_v42 }
 0x14a   :  { %v1031_v27 = vmax.f32 %v1015_v25, 0.0  ;;  %1049 = vst [vmem:[%s1819_s4 + $0x78] sm:$0xff] %v1033_v9 }
 0x14b   :  { %1039 = vst [vmem:[%s1819_s4 + $0x28] sm:$0xff] %v1023_v26 }
 0x14c   :  { %1047 = vst [vmem:[%s1819_s4 + $0x68] sm:$0xff] %v1031_v27 }

// kernel: _lambda_.26
= control target key start
LH: loop header
LB: loop body
LE: loop exit
PB: predicated region body
PF: predicated region fallthrough
CT: control target
= control target key end

     0   :  { %s1906_s1 = inlined_call_operand.vmem [shape: bf16[640,128], index: 1, kind: input, shape index: {}]   ;;  %s1907_s0 = inlined_call_operand.vmem [shape: bf16[128,640], index: 0, kind: input, shape index: {}]   ;;  %s1908_s2 = inlined_call_operand.vmem [shape: f32[1,128], index: 2, kind: input, shape index: {}]   ;;  %s1909_s3 = inlined_call_operand.vmem [shape: f32[1,128], index: 3, kind: input, shape index: {}]   ;;  %s1910_s4 = inlined_call_operand.vmem [shape: f32[128,128], index: 4, kind: input, shape index: {}]   ;;  %s1911_s5 = inlined_call_operand.vmem [shape: f32[128,128], index: 5, kind: output, shape index: {}]  }
   0x1   :  { %v1363_v0 = vld [vmem:[%s1906_s1 + $0x40] sm:$0xff]   ;;  %v1367_v4 = vld [vmem:[%s1906_s1 + $0x48] sm:$0xff]   ;;  %v1371_v8 = vld [vmem:[%s1906_s1 + $0x50] sm:$0xff]  }
   0x2   :  { %v1364_v1 = vld [vmem:[%s1906_s1 + $0xc0] sm:$0xff]   ;;  %1171 = vmatprep.subr.bf16.mxu0 %v1363_v0  ;;  %v1368_v5 = vld [vmem:[%s1906_s1 + $0xc8] sm:$0xff]   ;;  %v1372_v9 = vld [vmem:[%s1906_s1 + $0xd0] sm:$0xff]  }
   0x3   :  { %v1365_v2 = vld [vmem:[%s1906_s1] sm:$0xff]   ;;  %1235 = vmatprep.subr.bf16.mxu1 %v1364_v1  ;;  %v1369_v6 = vld [vmem:[%s1906_s1 + $0x8] sm:$0xff]   ;;  %v1373_v10 = vld [vmem:[%s1906_s1 + $0x10] sm:$0xff]  }
   0x4   :  { %v1366_v3 = vld [vmem:[%s1906_s1 + $0x80] sm:$0xff]   ;;  %1172 = vmatpush3.bf16.msra.mxu0 %v1365_v2  ;;  %v1370_v7 = vld [vmem:[%s1906_s1 + $0x88] sm:$0xff]   ;;  %v1374_v11 = vld [vmem:[%s1906_s1 + $0x90] sm:$0xff]  }
   0x5   :  { %1236 = vmatpush3.bf16.msra.mxu1 %v1366_v3  ;;  %1173 = vmatprep.subr.bf16.mxu0 %v1367_v4  ;;  %v1375_v12 = vld [vmem:[%s1906_s1 + $0x58] sm:$0xff]   ;;  %v1379_v16 = vld [vmem:[%s1906_s1 + $0x60] sm:$0xff]   ;;  %v1383_v20 = vld [vmem:[%s1906_s1 + $0x68] sm:$0xff]  }
   0x6   :  { %1237 = vmatprep.subr.bf16.mxu1 %v1368_v5  ;;  %v1376_v13 = vld [vmem:[%s1906_s1 + $0xd8] sm:$0xff]   ;;  %v1380_v17 = vld [vmem:[%s1906_s1 + $0xe0] sm:$0xff]   ;;  %v1384_v21 = vld [vmem:[%s1906_s1 + $0xe8] sm:$0xff]  }
   0x7   :  { %v1377_v14 = vld [vmem:[%s1906_s1 + $0x18] sm:$0xff]   ;;  %v1381_v18 = vld [vmem:[%s1906_s1 + $0x20] sm:$0xff]   ;;  %v1385_v22 = vld [vmem:[%s1906_s1 + $0x28] sm:$0xff]  }
   0x8   :  { %1174 = vmatpush3.bf16.msra.mxu0 %v1369_v6  ;;  %v1378_v15 = vld [vmem:[%s1906_s1 + $0x98] sm:$0xff]   ;;  %v1382_v19 = vld [vmem:[%s1906_s1 + $0xa0] sm:$0xff]   ;;  %v1386_v23 = vld [vmem:[%s1906_s1 + $0xa8] sm:$0xff]  }
   0x9   :  { %1238 = vmatpush3.bf16.msra.mxu1 %v1370_v7  ;;  %1175 = vmatprep.subr.bf16.mxu0 %v1371_v8  ;;  %v1387_v24 = vld [vmem:[%s1906_s1 + $0x70] sm:$0xff]   ;;  %v1391_v28 = vld [vmem:[%s1906_s1 + $0x78] sm:$0xff]   ;;  %v1400_v35 = vld [vmem:[%s1907_s0 + $0xc] ss:$20 sps:$4 sm:$0xff]  }
   0xa   :  { %1239 = vmatprep.subr.bf16.mxu1 %v1372_v9  ;;  %v1388_v25 = vld [vmem:[%s1906_s1 + $0xf0] sm:$0xff]   ;;  %v1392_v29 = vld [vmem:[%s1906_s1 + $0xf8] sm:$0xff]   ;;  %v1401_v36 = vld [vmem:[%s1906_s1 + $0x100] sm:$0xff]   ;;  %762 = vmatprep.mubr.bf16.mxu1 %v1400_v35 }
   0xb   :  { %v1389_v26 = vld [vmem:[%s1906_s1 + $0x30] sm:$0xff]   ;;  %v1393_v30 = vld [vmem:[%s1906_s1 + $0x38] sm:$0xff]   ;;  %v1402_v37 = vld [vmem:[%s1907_s0 + $0x2c] ss:$20 sps:$4 sm:$0xff]  }
   0xc   :  { %1176 = vmatpush3.bf16.msra.mxu0 %v1373_v10  ;;  %v1390_v27 = vld [vmem:[%s1906_s1 + $0xb0] sm:$0xff]   ;;  %v1394_v31 = vld [vmem:[%s1906_s1 + $0xb8] sm:$0xff]   ;;  %v1408_v39 = vld [vmem:[%s1906_s1 + $0x108] sm:$0xff]  }
   0xd   :  { %1240 = vmatpush3.bf16.msra.mxu1 %v1374_v11  ;;  %1177 = vmatprep.subr.bf16.mxu0 %v1375_v12  ;;  %v1395_v32 = vld [vmem:[%s1907_s0] ss:$20 sps:$4 sm:$0xff]   ;;  %v1397_v33 = vld [vmem:[%s1907_s0 + $0x4] ss:$20 sps:$4 sm:$0xff]   ;;  %v1398_v34 = vld [vmem:[%s1907_s0 + $0x8] ss:$20 sps:$4 sm:$0xff]  }
   0xe   :  { %1241 = vmatprep.subr.bf16.mxu1 %v1376_v13  ;;  %665 = vmatprep.mubr.bf16.mxu0 %v1397_v33  ;;  %v1404_v38 = vld [vmem:[%s1907_s0 + $0x34] ss:$20 sps:$4 sm:$0xff]   ;;  %v1407_v41 = vld [vmem:[%s1907_s0 + $0x30] ss:$20 sps:$4 sm:$0xff]   ;;  %v1422_v45 = vld [vmem:[%s1906_s1 + $0x118] sm:$0xff]  }
   0xf   :  { %v1406_v40 = vld [vmem:[%s1907_s0 + $0x28] ss:$20 sps:$4 sm:$0xff]   ;;  %v1415_v44 = vld [vmem:[%s1906_s1 + $0x110] sm:$0xff]   ;;  %v1414_v47 = vld [vmem:[%s1907_s0 + $0x58] ss:$20 sps:$4 sm:$0xff]  }
  0x10   :  { %1178 = vmatpush3.bf16.msra.mxu0 %v1377_v14  ;;  %v1409_v42 = vld [vmem:[%s1907_s0 + $0x54] ss:$20 sps:$4 sm:$0xff]   ;;  %v1411_v43 = vld [vmem:[%s1907_s0 + $0x5c] ss:$20 sps:$4 sm:$0xff]   ;;  %v1418_v49 = vld [vmem:[%s1907_s0 + $0x84] ss:$20 sps:$4 sm:$0xff]  }
  0x11   :  { %1242 = vmatpush3.bf16.msra.mxu1 %v1378_v15  ;;  %1179 = vmatprep.subr.bf16.mxu0 %v1379_v16  ;;  %v1413_v46 = vld [vmem:[%s1907_s0 + $0x50] ss:$20 sps:$4 sm:$0xff]   ;;  %v1436_v51 = vld [vmem:[%s1906_s1 + $0x128] sm:$0xff]   ;;  %v1421_v53 = vld [vmem:[%s1907_s0 + $0x80] ss:$20 sps:$4 sm:$0xff]  }
  0x12   :  { %1243 = vmatprep.subr.bf16.mxu1 %v1380_v17  ;;  %v1416_v48 = vld [vmem:[%s1907_s0 + $0x7c] ss:$20 sps:$4 sm:$0xff]   ;;  %v1429_v50 = vld [vmem:[%s1906_s1 + $0x120] sm:$0xff]   ;;  %v1420_v52 = vld [vmem:[%s1907_s0 + $0x78] ss:$20 sps:$4 sm:$0xff]  }
  0x13   :  { %v1423_v54 = vld [vmem:[%s1907_s0 + $0xa4] ss:$20 sps:$4 sm:$0xff]   ;;  %v1443_v55 = vld [vmem:[%s1906_s1 + $0x130] sm:$0xff]   ;;  %v1425_v56 = vld [vmem:[%s1907_s0 + $0xac] ss:$20 sps:$4 sm:$0xff]  }
  0x14   :  { %1180 = vmatpush3.bf16.msra.mxu0 %v1381_v18  ;;  %v1450_v57 = vld [vmem:[%s1906_s1 + $0x138] sm:$0xff]   ;;  %v1427_v58 = vld [vmem:[%s1907_s0 + $0xa0] ss:$20 sps:$4 sm:$0xff]   ;;  %v1435_v63 = vld [vmem:[%s1907_s0 + $0xd0] ss:$20 sps:$4 sm:$0xff]  }
  0x15   :  { %1244 = vmatpush3.bf16.msra.mxu1 %v1382_v19  ;;  %1181 = vmatprep.subr.bf16.mxu0 %v1383_v20  ;;  %v1428_v59 = vld [vmem:[%s1907_s0 + $0xa8] ss:$20 sps:$4 sm:$0xff]   ;;  %v1430_v60 = vld [vmem:[%s1907_s0 + $0xcc] ss:$20 sps:$4 sm:$0xff]   ;;  %v1441_v2 = vld [vmem:[%s1907_s0 + $0xf0] ss:$20 sps:$4 sm:$0xff]  }
  0x16   :  { %1245 = vmatprep.subr.bf16.mxu1 %v1384_v21  ;;  %v1432_v61 = vld [vmem:[%s1907_s0 + $0xd4] ss:$20 sps:$4 sm:$0xff]   ;;  %v1439_v1 = vld [vmem:[%s1907_s0 + $0xfc] ss:$20 sps:$4 sm:$0xff]   ;;  %v1442_v3 = vld [vmem:[%s1907_s0 + $0xf8] ss:$20 sps:$4 sm:$0xff]  }
  0x17   :  { %v1434_v62 = vld [vmem:[%s1907_s0 + $0xc8] ss:$20 sps:$4 sm:$0xff]   ;;  %v1446_v5 = vld [vmem:[%s1907_s0 + $0x124] ss:$20 sps:$4 sm:$0xff]   ;;  %v1449_v7 = vld [vmem:[%s1907_s0 + $0x120] ss:$20 sps:$4 sm:$0xff]  }
  0x18   :  { %1182 = vmatpush3.bf16.msra.mxu0 %v1385_v22  ;;  %v1437_v0 = vld [vmem:[%s1907_s0 + $0xf4] ss:$20 sps:$4 sm:$0xff]   ;;  %v1444_v4 = vld [vmem:[%s1907_s0 + $0x11c] ss:$20 sps:$4 sm:$0xff]   ;;  %v1448_v6 = vld [vmem:[%s1907_s0 + $0x118] ss:$20 sps:$4 sm:$0xff]  }
  0x19   :  { %1246 = vmatpush3.bf16.msra.mxu1 %v1386_v23  ;;  %1183 = vmatprep.subr.bf16.mxu0 %v1387_v24  ;;  %v1451_v8 = vld [vmem:[%s1907_s0 + $0x10] ss:$20 sps:$4 sm:$0xff]   ;;  %v1453_v10 = vld [vmem:[%s1907_s0 + $0x38] ss:$20 sps:$4 sm:$0xff]   ;;  %v1455_v12 = vld [vmem:[%s1907_s0 + $0x60] ss:$20 sps:$4 sm:$0xff]  }
  0x1a   :  { %1247 = vmatprep.subr.bf16.mxu1 %v1388_v25  ;;  %v1452_v9 = vld [vmem:[%s1907_s0 + $0xb0] ss:$20 sps:$4 sm:$0xff]   ;;  %v1454_v11 = vld [vmem:[%s1907_s0 + $0xd8] ss:$20 sps:$4 sm:$0xff]   ;;  %v1456_v13 = vld [vmem:[%s1907_s0 + $0x100] ss:$20 sps:$4 sm:$0xff]  }
  0x1b   :  { %v1457_v14 = vld [vmem:[%s1907_s0 + $0x88] ss:$20 sps:$4 sm:$0xff]  }
  0x1c   :  { %1184 = vmatpush3.bf16.msra.mxu0 %v1389_v26  ;;  %v1458_v15 = vld [vmem:[%s1907_s0 + $0x128] ss:$20 sps:$4 sm:$0xff]  }
  0x1d   :  { %1248 = vmatpush3.bf16.msra.mxu1 %v1390_v27  ;;  %1185 = vmatprep.subr.bf16.mxu0 %v1391_v28 }
  0x1e   :  { %1249 = vmatprep.subr.bf16.mxu1 %v1392_v29 }
  0x20   :  { %1186 = vmatpush3.bf16.msra.mxu0 %v1393_v30 }
  0x21   :  { %1250 = vmatpush3.bf16.msra.mxu1 %v1394_v31  ;;  %1315 = vmatprep.subr.bf16.mxu0 %v1401_v36 }
  0x22   :  { %1347 = vmatprep.subr.bf16.mxu1 %v1401_v36 }
  0x23   :  { %666 = vmatmul.mubr.bf16.vlgmr.msra.gmra.mrb[0].mxu0 %v1395_v32 }
  0x24   :  { %763 = vmatmul.mubr.bf16.vlgmr.msra.gmra.mrb[0].mxu1 %v1398_v34  ;;  %1316 = vmatpush3.bf16.msra.mxu0 %v1401_v36 }
  0x25   :  { %1355 = vmatpush3.bf16.msra.mxu1 %v1401_v36  ;;  %673 = vmatprep.mubr.bf16.mxu0 %v1402_v37 }
  0x26   :  { %770 = vmatprep.mubr.bf16.mxu1 %v1404_v38  ;;  %1317 = vmatprep.subr.bf16.mxu0 %v1408_v39 }
  0x27   :  { %1348 = vmatprep.subr.bf16.mxu1 %v1408_v39 }
  0x28   :  { %1318 = vmatpush3.bf16.msra.mxu0 %v1408_v39 }
  0x29   :  { %1356 = vmatpush3.bf16.msra.mxu1 %v1408_v39  ;;  %1319 = vmatprep.subr.bf16.mxu0 %v1415_v44 }
  0x2a   :  { %1349 = vmatprep.subr.bf16.mxu1 %v1415_v44 }
  0x2b   :  { %674 = vmatmul.mubr.bf16.gmra.mrb[4].mxu0 %v1406_v40 }
  0x2c   :  { %771 = vmatmul.mubr.bf16.gmra.mrb[4].mxu1 %v1407_v41  ;;  %681 = vmatprep.mubr.bf16.mxu0 %v1409_v42 }
  0x2d   :  { %778 = vmatprep.mubr.bf16.mxu1 %v1411_v43  ;;  %1320 = vmatpush3.bf16.msra.mxu0 %v1415_v44 }
  0x2e   :  { %1357 = vmatpush3.bf16.msra.mxu1 %v1415_v44  ;;  %1321 = vmatprep.subr.bf16.mxu0 %v1422_v45 }
  0x2f   :  { %1350 = vmatprep.subr.bf16.mxu1 %v1422_v45 }
  0x31   :  { %1322 = vmatpush3.bf16.msra.mxu0 %v1422_v45 }
  0x32   :  { %1358 = vmatpush3.bf16.msra.mxu1 %v1422_v45  ;;  %1323 = vmatprep.subr.bf16.mxu0 %v1429_v50 }
  0x33   :  { %682 = vmatmul.mubr.bf16.gmra.mrb[8].mxu0 %v1413_v46  ;;  %1351 = vmatprep.subr.bf16.mxu1 %v1429_v50 }
  0x34   :  { %779 = vmatmul.mubr.bf16.gmra.mrb[8].mxu1 %v1414_v47  ;;  %689 = vmatprep.mubr.bf16.mxu0 %v1416_v48 }
  0x35   :  { %786 = vmatprep.mubr.bf16.mxu1 %v1418_v49  ;;  %1324 = vmatpush3.bf16.msra.mxu0 %v1429_v50 }
  0x36   :  { %1359 = vmatpush3.bf16.msra.mxu1 %v1429_v50  ;;  %1325 = vmatprep.subr.bf16.mxu0 %v1436_v51 }
  0x37   :  { %1352 = vmatprep.subr.bf16.mxu1 %v1436_v51 }
  0x39   :  { %1326 = vmatpush3.bf16.msra.mxu0 %v1436_v51 }
  0x3a   :  { %1360 = vmatpush3.bf16.msra.mxu1 %v1436_v51  ;;  %1327 = vmatprep.subr.bf16.mxu0 %v1443_v55 }
  0x3b   :  { %690 = vmatmul.mubr.bf16.gmra.mrb[12].mxu0 %v1420_v52  ;;  %1353 = vmatprep.subr.bf16.mxu1 %v1443_v55 }
  0x3c   :  { %787 = vmatmul.mubr.bf16.gmra.mrb[12].mxu1 %v1421_v53  ;;  %697 = vmatprep.mubr.bf16.mxu0 %v1423_v54 }
  0x3d   :  { %794 = vmatprep.mubr.bf16.mxu1 %v1425_v56  ;;  %1328 = vmatpush3.bf16.msra.mxu0 %v1443_v55 }
  0x3e   :  { %1361 = vmatpush3.bf16.msra.mxu1 %v1443_v55  ;;  %1329 = vmatprep.subr.bf16.mxu0 %v1450_v57 }
  0x3f   :  { %1354 = vmatprep.subr.bf16.mxu1 %v1450_v57 }
  0x41   :  { %1330 = vmatpush3.bf16.msra.mxu0 %v1450_v57 }
  0x42   :  { %1362 = vmatpush3.bf16.msra.mxu1 %v1450_v57 }
  0x43   :  { %698 = vmatmul.mubr.bf16.gmra.mrb[16].mxu0 %v1427_v58 }
  0x44   :  { %795 = vmatmul.mubr.bf16.gmra.mrb[16].mxu1 %v1428_v59  ;;  %705 = vmatprep.mubr.bf16.mxu0 %v1430_v60 }
  0x45   :  { %802 = vmatprep.mubr.bf16.mxu1 %v1432_v61 }
  0x4b   :  { %706 = vmatmul.mubr.bf16.gmra.mrb[20].mxu0 %v1434_v62 }
  0x4c   :  { %803 = vmatmul.mubr.bf16.gmra.mrb[20].mxu1 %v1435_v63  ;;  %713 = vmatprep.mubr.bf16.mxu0 %v1437_v0 }
  0x4d   :  { %810 = vmatprep.mubr.bf16.mxu1 %v1439_v1 }
  0x53   :  { %714 = vmatmul.mubr.bf16.gmra.mrb[24].mxu0 %v1441_v2 }
  0x54   :  { %811 = vmatmul.mubr.bf16.gmra.mrb[24].mxu1 %v1442_v3  ;;  %721 = vmatprep.mubr.bf16.mxu0 %v1444_v4 }
  0x55   :  { %818 = vmatprep.mubr.bf16.mxu1 %v1446_v5 }
  0x5b   :  { %722 = vmatmul.mubr.bf16.gmra.mrb[28].mxu0 %v1448_v6 }
  0x5c   :  { %819 = vmatmul.mubr.bf16.gmra.mrb[28].mxu1 %v1449_v7  ;;  %1331 = vmatprep.mubr.bf16.mxu0 %v1451_v8 }
  0x5d   :  { %1339 = vmatprep.mubr.bf16.mxu1 %v1452_v9 }
  0x63   :  { %1332 = vmatmul.mubr.bf16.vlgmr.msra.gmra.mrb[32].mxu0 %v1453_v10 }
  0x64   :  { %1340 = vmatmul.mubr.bf16.vlgmr.msra.gmra.mrb[32].mxu1 %v1454_v11  ;;  %1335 = vmatprep.mubr.bf16.mxu0 %v1455_v12 }
  0x65   :  { %1343 = vmatprep.mubr.bf16.mxu1 %v1456_v13 }
  0x6b   :  { %1336 = vmatmul.mubr.bf16.gmra.mrb[36].mxu0 %v1457_v14 }
  0x6c   :  { %1344 = vmatmul.mubr.bf16.gmra.mrb[36].mxu1 %v1458_v15 }
  0xf6   :  { %v1187_v16 = vpop.f32.mrb[0].mxu0 }
  0xf7   :  { %v1251_v17 = vpop.f32.mrb[0].mxu1  ;;  %v1188_v18 = vpop.f32.mrb[1].mxu0 }
  0xf8   :  { %v1189_v19 = vadd.f32 %v1188_v18, %v1187_v16  ;;  %v1252_v20 = vpop.f32.mrb[1].mxu1  ;;  %v1190_v21 = vpop.f32.mrb[2].mxu0 }
  0xf9   :  { %v1253_v22 = vadd.f32 %v1252_v20, %v1251_v17  ;;  %v1254_v23 = vpop.f32.mrb[2].mxu1  ;;  %v1191_v24 = vpop.f32.mrb[3].mxu0 }
  0xfa   :  { %v1192_v25 = vadd.f32 %v1191_v24, %v1190_v21  ;;  %v1255_v26 = vpop.f32.mrb[3].mxu1 }
  0xfb   :  { %v1256_v27 = vadd.f32 %v1255_v26, %v1254_v23  ;;  %v1729_v28 = vadd.f32 %v1253_v22, %v1189_v19 }
  0xfd   :  { %v1731_v29 = vadd.f32 %v1256_v27, %v1192_v25 }
  0xfe   :  { %v1193_v30 = vpop.f32.mrb[4].mxu0 }
  0xff   :  { %v1257_v31 = vpop.f32.mrb[4].mxu1  ;;  %v1194_v32 = vpop.f32.mrb[5].mxu0 }
 0x100   :  { %v1195_v33 = vadd.f32 %v1194_v32, %v1193_v30  ;;  %v1258_v34 = vpop.f32.mrb[5].mxu1  ;;  %v1196_v35 = vpop.f32.mrb[6].mxu0 }
 0x101   :  { %v1259_v36 = vadd.f32 %v1258_v34, %v1257_v31  ;;  %v1260_v37 = vpop.f32.mrb[6].mxu1  ;;  %v1197_v38 = vpop.f32.mrb[7].mxu0 }
 0x102   :  { %v1198_v39 = vadd.f32 %v1197_v38, %v1196_v35  ;;  %v1261_v40 = vpop.f32.mrb[7].mxu1 }
 0x103   :  { %v1262_v41 = vadd.f32 %v1261_v40, %v1260_v37  ;;  %v1733_v42 = vadd.f32 %v1259_v36, %v1195_v33 }
 0x105   :  { %v1735_v43 = vadd.f32 %v1262_v41, %v1198_v39 }
 0x106   :  { %v1199_v44 = vpop.f32.mrb[8].mxu0 }
 0x107   :  { %v1263_v45 = vpop.f32.mrb[8].mxu1  ;;  %v1200_v46 = vpop.f32.mrb[9].mxu0 }
 0x108   :  { %v1201_v47 = vadd.f32 %v1200_v46, %v1199_v44  ;;  %v1264_v48 = vpop.f32.mrb[9].mxu1  ;;  %v1202_v49 = vpop.f32.mrb[10].mxu0 }
 0x109   :  { %v1265_v50 = vadd.f32 %v1264_v48, %v1263_v45  ;;  %v1266_v51 = vpop.f32.mrb[10].mxu1  ;;  %v1203_v52 = vpop.f32.mrb[11].mxu0 }
 0x10a   :  { %v1204_v53 = vadd.f32 %v1203_v52, %v1202_v49  ;;  %v1267_v54 = vpop.f32.mrb[11].mxu1 }
 0x10b   :  { %v1268_v55 = vadd.f32 %v1267_v54, %v1266_v51  ;;  %v1737_v56 = vadd.f32 %v1265_v50, %v1201_v47 }
 0x10d   :  { %v1739_v57 = vadd.f32 %v1268_v55, %v1204_v53 }
 0x10e   :  { %v1205_v58 = vpop.f32.mrb[12].mxu0 }
 0x10f   :  { %v1269_v59 = vpop.f32.mrb[12].mxu1  ;;  %v1206_v60 = vpop.f32.mrb[13].mxu0 }
 0x110   :  { %v1207_v61 = vadd.f32 %v1206_v60, %v1205_v58  ;;  %v1270_v62 = vpop.f32.mrb[13].mxu1  ;;  %v1208_v63 = vpop.f32.mrb[14].mxu0 }
 0x111   :  { %v1271_v0 = vadd.f32 %v1270_v62, %v1269_v59  ;;  %v1272_v1 = vpop.f32.mrb[14].mxu1  ;;  %v1209_v2 = vpop.f32.mrb[15].mxu0 }
 0x112   :  { %v1210_v3 = vadd.f32 %v1209_v2, %v1208_v63  ;;  %v1273_v4 = vpop.f32.mrb[15].mxu1 }
 0x113   :  { %v1274_v5 = vadd.f32 %v1273_v4, %v1272_v1  ;;  %v1741_v6 = vadd.f32 %v1271_v0, %v1207_v61 }
 0x115   :  { %v1743_v7 = vadd.f32 %v1274_v5, %v1210_v3 }
 0x116   :  { %v1211_v8 = vpop.f32.mrb[16].mxu0 }
 0x117   :  { %v1275_v9 = vpop.f32.mrb[16].mxu1  ;;  %v1212_v10 = vpop.f32.mrb[17].mxu0 }
 0x118   :  { %v1213_v11 = vadd.f32 %v1212_v10, %v1211_v8  ;;  %v1276_v12 = vpop.f32.mrb[17].mxu1  ;;  %v1214_v13 = vpop.f32.mrb[18].mxu0 }
 0x119   :  { %v1277_v14 = vadd.f32 %v1276_v12, %v1275_v9  ;;  %v1278_v15 = vpop.f32.mrb[18].mxu1  ;;  %v1215_v16 = vpop.f32.mrb[19].mxu0  ;;  %v1758_v9 = vld [vmem:[%s1908_s2] ss:$0 sm:$0xff] }
 0x11a   :  { %v1216_v17 = vadd.f32 %v1215_v16, %v1214_v13  ;;  %v1279_v18 = vpop.f32.mrb[19].mxu1  ;;  %v1764_v13 = vld [vmem:[%s1909_s3] ss:$0 sm:$0xff] }
 0x11b   :  { %v1280_v19 = vadd.f32 %v1279_v18, %v1278_v15  ;;  %v797_v20 = vadd.f32 %v1277_v14, %v1213_v11 }
 0x11d   :  { %v1745_v21 = vadd.f32 %v1280_v19, %v1216_v17 }
 0x11e   :  { %v1217_v22 = vpop.f32.mrb[20].mxu0 }
 0x11f   :  { %v1281_v23 = vpop.f32.mrb[20].mxu1  ;;  %v1218_v24 = vpop.f32.mrb[21].mxu0 }
 0x120   :  { %v1219_v25 = vadd.f32 %v1218_v24, %v1217_v22  ;;  %v1282_v26 = vpop.f32.mrb[21].mxu1  ;;  %v1220_v27 = vpop.f32.mrb[22].mxu0 }
 0x121   :  { %v1283_v30 = vadd.f32 %v1282_v26, %v1281_v23  ;;  %v1284_v31 = vpop.f32.mrb[22].mxu1  ;;  %v1221_v32 = vpop.f32.mrb[23].mxu0 }
 0x122   :  { %v1222_v33 = vadd.f32 %v1221_v32, %v1220_v27  ;;  %v1285_v34 = vpop.f32.mrb[23].mxu1 }
 0x123   :  { %v1286_v35 = vadd.f32 %v1285_v34, %v1284_v31  ;;  %v805_v36 = vadd.f32 %v1283_v30, %v1219_v25 }
 0x125   :  { %v808_v37 = vadd.f32 %v1286_v35, %v1222_v33 }
 0x126   :  { %v1223_v38 = vpop.f32.mrb[24].mxu0 }
 0x127   :  { %v1287_v39 = vpop.f32.mrb[24].mxu1  ;;  %v1224_v40 = vpop.f32.mrb[25].mxu0 }
 0x128   :  { %v1225_v41 = vadd.f32 %v1224_v40, %v1223_v38  ;;  %v1288_v44 = vpop.f32.mrb[25].mxu1  ;;  %v1226_v45 = vpop.f32.mrb[26].mxu0 }
 0x129   :  { %v1289_v46 = vadd.f32 %v1288_v44, %v1287_v39  ;;  %v1290_v47 = vpop.f32.mrb[26].mxu1  ;;  %v1227_v48 = vpop.f32.mrb[27].mxu0  ;;  %v1032_v44 = vld [vmem:[%s1910_s4 + $0x58] sm:$0xff] }
 0x12a   :  { %v1228_v49 = vadd.f32 %v1227_v48, %v1226_v45  ;;  %v1291_v50 = vpop.f32.mrb[27].mxu1  ;;  %v1022_v45 = vld [vmem:[%s1910_s4 + $0x8] sm:$0xff] }
 0x12b   :  { %v1292_v51 = vadd.f32 %v1291_v50, %v1290_v47  ;;  %v1747_v52 = vadd.f32 %v1289_v46, %v1225_v41 }
 0x12d   :  { %v1749_v53 = vadd.f32 %v1292_v51, %v1228_v49  ;;  %v1030_v51 = vld [vmem:[%s1910_s4 + $0x48] sm:$0xff] }
 0x12e   :  { %v1229_v54 = vpop.f32.mrb[28].mxu0 }
 0x12f   :  { %v1293_v55 = vpop.f32.mrb[28].mxu1  ;;  %v1230_v58 = vpop.f32.mrb[29].mxu0 }
 0x130   :  { %v1231_v59 = vadd.f32 %v1230_v58, %v1229_v54  ;;  %v1294_v60 = vpop.f32.mrb[29].mxu1  ;;  %v1232_v61 = vpop.f32.mrb[30].mxu0 }
 0x131   :  { %v1295_v62 = vadd.f32 %v1294_v60, %v1293_v55  ;;  %v1296_v63 = vpop.f32.mrb[30].mxu1  ;;  %v1233_v0 = vpop.f32.mrb[31].mxu0 }
 0x132   :  { %v1234_v1 = vadd.f32 %v1233_v0, %v1232_v61  ;;  %v1297_v2 = vpop.f32.mrb[31].mxu1 }
 0x133   :  { %v1298_v3 = vadd.f32 %v1297_v2, %v1296_v63  ;;  %v1751_v4 = vadd.f32 %v1295_v62, %v1231_v59 }
 0x135   :  { %v1753_v5 = vadd.f32 %v1298_v3, %v1234_v1 }
 0x136   :  { %v1333_v8 = vpop.f32.mrb[32].mxu0 }
 0x137   :  { %v870_v10 = vadd.f32 %v1333_v8, %v1733_v42  ;;  %v1341_v11 = vpop.f32.mrb[32].mxu1  ;;  %v861_v12 = vpop.f32.mrb[33].mxu0  ;;  %v1023_v42 = vld [vmem:[%s1910_s4 + $0x10] sm:$0xff] }
 0x138   :  { %v902_v14 = vadd.f32 %v1341_v11, %v805_v36  ;;  %v862_v15 = vadd.f32 %v861_v12, %v1729_v28  ;;  %v893_v16 = vpop.f32.mrb[33].mxu1  ;;  %v1334_v17 = vpop.f32.mrb[34].mxu0  ;;  %v1029_v36 = vld [vmem:[%s1910_s4 + $0x40] sm:$0xff] }
 0x139   :  { %v984_v18 = vmul.f32 %v1758_v9, %v870_v10  ;;  %v894_v19 = vadd.f32 %v893_v16, %v797_v20  ;;  %v873_v22 = vadd.f32 %v1334_v17, %v1735_v43  ;;  %v1342_v23 = vpop.f32.mrb[34].mxu1  ;;  %v864_v24 = vpop.f32.mrb[35].mxu0  ;;  %v1031_v43 = vld [vmem:[%s1910_s4 + $0x50] sm:$0xff]  ;;  %v1021_v20 = vld [vmem:[%s1910_s4] sm:$0xff] }
 0x13a   :  { %v992_v25 = vmul.f32 %v1758_v9, %v902_v14  ;;  %v982_v26 = vmul.f32 %v1758_v9, %v862_v15  ;;  %v905_v27 = vadd.f32 %v1342_v23, %v808_v37  ;;  %v865_v28 = vadd.f32 %v864_v24, %v1731_v29  ;;  %v896_v30 = vpop.f32.mrb[35].mxu1  ;;  %v1024_v37 = vld [vmem:[%s1910_s4 + $0x18] sm:$0xff] }
 0x13b   :  { %v1007_v31 = vadd.f32 %v1764_v13, %v984_v18  ;;  %v990_v32 = vmul.f32 %v1758_v9, %v894_v19  ;;  %v985_v33 = vmul.f32 %v1758_v9, %v873_v22  ;;  %v897_v34 = vadd.f32 %v896_v30, %v1745_v21  ;;  %v1025_v30 = vld [vmem:[%s1910_s4 + $0x20] sm:$0xff] }
 0x13c   :  { %v1015_v35 = vadd.f32 %v1764_v13, %v992_v25  ;;  %v1005_v29 = vadd.f32 %v1764_v13, %v982_v26  ;;  %v993_v38 = vmul.f32 %v1758_v9, %v905_v27  ;;  %v983_v39 = vmul.f32 %v1758_v9, %v865_v28  ;;  %v1035_v28 = vld [vmem:[%s1910_s4 + $0x70] sm:$0xff] }
 0x13d   :  { %v1039_v40 = vadd.f32 %v1023_v42, %v1007_v31  ;;  %v1013_v41 = vadd.f32 %v1764_v13, %v990_v32  ;;  %v1008_v21 = vadd.f32 %v1764_v13, %v985_v33  ;;  %v991_v46 = vmul.f32 %v1758_v9, %v897_v34  ;;  %v1033_v32 = vld [vmem:[%s1910_s4 + $0x60] sm:$0xff]  ;;  %v1028_v33 = vld [vmem:[%s1910_s4 + $0x38] sm:$0xff] }
 0x13e   :  { %v1047_v47 = vadd.f32 %v1031_v43, %v1015_v35  ;;  %v1037_v48 = vadd.f32 %v1021_v20, %v1005_v29  ;;  %v1016_v49 = vadd.f32 %v1764_v13, %v993_v38  ;;  %v1006_v50 = vadd.f32 %v1764_v13, %v983_v39  ;;  %v1337_v54 = vpop.f32.mrb[36].mxu0  ;;  %v1026_v38 = vld [vmem:[%s1910_s4 + $0x28] sm:$0xff] }
 0x13f   :  { %v1055_v55 = vmax.f32 %v1039_v40, 0.0  ;;  %v1045_v58 = vadd.f32 %v1029_v36, %v1013_v41  ;;  %v1040_v59 = vadd.f32 %v1024_v37, %v1008_v21  ;;  %v1014_v60 = vadd.f32 %v1764_v13, %v991_v46  ;;  %v1345_v61 = vpop.f32.mrb[36].mxu1  ;;  %v877_v62 = vpop.f32.mrb[37].mxu0  ;;  %v1036_v37 = vld [vmem:[%s1910_s4 + $0x78] sm:$0xff] }
 0x140   :  { %v1063_v63 = vmax.f32 %v1047_v47, 0.0  ;;  %v1053_v0 = vmax.f32 %v1037_v48, 0.0  ;;  %v1048_v1 = vadd.f32 %v1032_v44, %v1016_v49  ;;  %v1038_v2 = vadd.f32 %v1022_v45, %v1006_v50  ;;  %v909_v3 = vpop.f32.mrb[37].mxu1  ;;  %v1338_v8 = vpop.f32.mrb[38].mxu0  ;;  %v1034_v45 = vld [vmem:[%s1910_s4 + $0x68] sm:$0xff] }
 0x141   :  { %1071 = vst [vmem:[%s1911_s5 + $0x10] sm:$0xff] %v1055_v55  ;;  %v1061_v10 = vmax.f32 %v1045_v58, 0.0  ;;  %v1056_v11 = vmax.f32 %v1040_v59, 0.0  ;;  %v1046_v12 = vadd.f32 %v1030_v51, %v1014_v60  ;;  %v886_v14 = vadd.f32 %v1337_v54, %v1741_v6  ;;  %v1346_v15 = vpop.f32.mrb[38].mxu1  ;;  %v880_v16 = vpop.f32.mrb[39].mxu0 }
 0x142   :  { %1079 = vst [vmem:[%s1911_s5 + $0x50] sm:$0xff] %v1063_v63  ;;  %1069 = vst [vmem:[%s1911_s5] sm:$0xff] %v1053_v0  ;;  %v1064_v17 = vmax.f32 %v1048_v1, 0.0  ;;  %v1054_v18 = vmax.f32 %v1038_v2, 0.0  ;;  %v918_v19 = vadd.f32 %v1345_v61, %v1751_v4  ;;  %v878_v22 = vadd.f32 %v877_v62, %v1737_v56  ;;  %v912_v23 = vpop.f32.mrb[39].mxu1  ;;  %v1027_v56 = vld [vmem:[%s1910_s4 + $0x30] sm:$0xff] }
 0x143   :  { %1077 = vst [vmem:[%s1911_s5 + $0x40] sm:$0xff] %v1061_v10  ;;  %1072 = vst [vmem:[%s1911_s5 + $0x18] sm:$0xff] %v1056_v11  ;;  %v1062_v6 = vmax.f32 %v1046_v12, 0.0  ;;  %v988_v24 = vmul.f32 %v1758_v9, %v886_v14  ;;  %v910_v42 = vadd.f32 %v909_v3, %v1747_v52  ;;  %v889_v25 = vadd.f32 %v1338_v8, %v1743_v7 }
 0x144   :  { %1080 = vst [vmem:[%s1911_s5 + $0x58] sm:$0xff] %v1064_v17  ;;  %1070 = vst [vmem:[%s1911_s5 + $0x8] sm:$0xff] %v1054_v18  ;;  %v996_v4 = vmul.f32 %v1758_v9, %v918_v19  ;;  %v986_v26 = vmul.f32 %v1758_v9, %v878_v22  ;;  %v921_v52 = vadd.f32 %v1346_v15, %v1753_v5 }
 0x145   :  { %v881_v7 = vadd.f32 %v880_v16, %v1739_v57  ;;  %1078 = vst [vmem:[%s1911_s5 + $0x48] sm:$0xff] %v1062_v6  ;;  %v1011_v27 = vadd.f32 %v1764_v13, %v988_v24  ;;  %v994_v31 = vmul.f32 %v1758_v9, %v910_v42  ;;  %v989_v5 = vmul.f32 %v1758_v9, %v889_v25 }
 0x146   :  { %v913_v57 = vadd.f32 %v912_v23, %v1749_v53  ;;  %v1019_v43 = vadd.f32 %v1764_v13, %v996_v4  ;;  %v1009_v20 = vadd.f32 %v1764_v13, %v986_v26  ;;  %v997_v34 = vmul.f32 %v1758_v9, %v921_v52 }
 0x147   :  { %v987_v35 = vmul.f32 %v1758_v9, %v881_v7  ;;  %v1043_v29 = vadd.f32 %v1027_v56, %v1011_v27  ;;  %v1017_v36 = vadd.f32 %v1764_v13, %v994_v31  ;;  %v1012_v53 = vadd.f32 %v1764_v13, %v989_v5 }
 0x148   :  { %v995_v39 = vmul.f32 %v1758_v9, %v913_v57  ;;  %v1051_v40 = vadd.f32 %v1035_v28, %v1019_v43  ;;  %v1041_v41 = vadd.f32 %v1025_v30, %v1009_v20  ;;  %v1020_v21 = vadd.f32 %v1764_v13, %v997_v34 }
 0x149   :  { %v1010_v44 = vadd.f32 %v1764_v13, %v987_v35  ;;  %v1059_v46 = vmax.f32 %v1043_v29, 0.0  ;;  %v1049_v47 = vadd.f32 %v1033_v32, %v1017_v36  ;;  %v1044_v48 = vadd.f32 %v1028_v33, %v1012_v53 }
 0x14a   :  { %v1018_v49 = vadd.f32 %v1764_v13, %v995_v39  ;;  %v1067_v50 = vmax.f32 %v1051_v40, 0.0  ;;  %v1057_v51 = vmax.f32 %v1041_v41, 0.0  ;;  %v1052_v54 = vadd.f32 %v1036_v37, %v1020_v21 }
 0x14b   :  { %v1042_v55 = vadd.f32 %v1026_v38, %v1010_v44  ;;  %1075 = vst [vmem:[%s1911_s5 + $0x30] sm:$0xff] %v1059_v46  ;;  %v1065_v9 = vmax.f32 %v1049_v47, 0.0  ;;  %v1060_v58 = vmax.f32 %v1044_v48, 0.0 }
 0x14c   :  { %v1050_v59 = vadd.f32 %v1034_v45, %v1018_v49  ;;  %1083 = vst [vmem:[%s1911_s5 + $0x70] sm:$0xff] %v1067_v50  ;;  %1073 = vst [vmem:[%s1911_s5 + $0x20] sm:$0xff] %v1057_v51  ;;  %v1068_v13 = vmax.f32 %v1052_v54, 0.0 }
 0x14d   :  { %v1058_v60 = vmax.f32 %v1042_v55, 0.0  ;;  %1081 = vst [vmem:[%s1911_s5 + $0x60] sm:$0xff] %v1065_v9  ;;  %1076 = vst [vmem:[%s1911_s5 + $0x38] sm:$0xff] %v1060_v58 }
 0x14e   :  { %v1066_v61 = vmax.f32 %v1050_v59, 0.0  ;;  %1084 = vst [vmem:[%s1911_s5 + $0x78] sm:$0xff] %v1068_v13 }
 0x14f   :  { %1074 = vst [vmem:[%s1911_s5 + $0x28] sm:$0xff] %v1058_v60 }
 0x150   :  { %1082 = vst [vmem:[%s1911_s5 + $0x68] sm:$0xff] %v1066_v61 }

// kernel: _lambda_.30
= control target key start
LH: loop header
LB: loop body
LE: loop exit
PB: predicated region body
PF: predicated region fallthrough
CT: control target
= control target key end

     0   :  { %s995_s1 = inlined_call_operand.vmem [shape: bf16[640,128], index: 1, kind: input, shape index: {}]   ;;  %s996_s0 = inlined_call_operand.vmem [shape: bf16[32,640], index: 0, kind: input, shape index: {}]   ;;  %s997_s2 = inlined_call_operand.vmem [shape: f32[1,128], index: 2, kind: input, shape index: {}]   ;;  %s998_s3 = inlined_call_operand.vmem [shape: f32[1,128], index: 3, kind: input, shape index: {}]   ;;  %s999_s4 = inlined_call_operand.vmem [shape: f32[32,128], index: 4, kind: output, shape index: {}]  }
   0x1   :  { %v748_v0 = vld [vmem:[%s995_s1 + $0x40] sm:$0xff]   ;;  %v752_v4 = vld [vmem:[%s995_s1 + $0x48] sm:$0xff]   ;;  %v756_v8 = vld [vmem:[%s995_s1 + $0x50] sm:$0xff]  }
   0x2   :  { %v749_v1 = vld [vmem:[%s995_s1 + $0xc0] sm:$0xff]   ;;  %662 = vmatprep.subr.bf16.mxu0 %v748_v0  ;;  %v753_v5 = vld [vmem:[%s995_s1 + $0xc8] sm:$0xff]   ;;  %v757_v9 = vld [vmem:[%s995_s1 + $0xd0] sm:$0xff]  }
   0x3   :  { %v750_v2 = vld [vmem:[%s995_s1] sm:$0xff]   ;;  %690 = vmatprep.subr.bf16.mxu1 %v749_v1  ;;  %v754_v6 = vld [vmem:[%s995_s1 + $0x8] sm:$0xff]   ;;  %v758_v10 = vld [vmem:[%s995_s1 + $0x10] sm:$0xff]  }
   0x4   :  { %v751_v3 = vld [vmem:[%s995_s1 + $0x80] sm:$0xff]   ;;  %663 = vmatpush3.bf16.msra.mxu0 %v750_v2  ;;  %v755_v7 = vld [vmem:[%s995_s1 + $0x88] sm:$0xff]   ;;  %v759_v11 = vld [vmem:[%s995_s1 + $0x90] sm:$0xff]  }
   0x5   :  { %691 = vmatpush3.bf16.msra.mxu1 %v751_v3  ;;  %664 = vmatprep.subr.bf16.mxu0 %v752_v4  ;;  %v760_v12 = vld [vmem:[%s995_s1 + $0x58] sm:$0xff]   ;;  %v764_v16 = vld [vmem:[%s995_s1 + $0x60] sm:$0xff]   ;;  %v768_v20 = vld [vmem:[%s995_s1 + $0x68] sm:$0xff]  }
   0x6   :  { %692 = vmatprep.subr.bf16.mxu1 %v753_v5  ;;  %v761_v13 = vld [vmem:[%s995_s1 + $0xd8] sm:$0xff]   ;;  %v765_v17 = vld [vmem:[%s995_s1 + $0xe0] sm:$0xff]   ;;  %v769_v21 = vld [vmem:[%s995_s1 + $0xe8] sm:$0xff]  }
   0x7   :  { %v762_v14 = vld [vmem:[%s995_s1 + $0x18] sm:$0xff]   ;;  %v766_v18 = vld [vmem:[%s995_s1 + $0x20] sm:$0xff]   ;;  %v770_v22 = vld [vmem:[%s995_s1 + $0x28] sm:$0xff]  }
   0x8   :  { %665 = vmatpush3.bf16.msra.mxu0 %v754_v6  ;;  %v763_v15 = vld [vmem:[%s995_s1 + $0x98] sm:$0xff]   ;;  %v767_v19 = vld [vmem:[%s995_s1 + $0xa0] sm:$0xff]   ;;  %v771_v23 = vld [vmem:[%s995_s1 + $0xa8] sm:$0xff]  }
   0x9   :  { %693 = vmatpush3.bf16.msra.mxu1 %v755_v7  ;;  %666 = vmatprep.subr.bf16.mxu0 %v756_v8  ;;  %v772_v24 = vld [vmem:[%s995_s1 + $0x70] sm:$0xff]   ;;  %v776_v28 = vld [vmem:[%s995_s1 + $0x78] sm:$0xff]   ;;  %v785_v35 = vld [vmem:[%s996_s0 + $0xc] ss:$20 sps:$4 sm:$0xff]  }
   0xa   :  { %694 = vmatprep.subr.bf16.mxu1 %v757_v9  ;;  %v773_v25 = vld [vmem:[%s995_s1 + $0xf0] sm:$0xff]   ;;  %v777_v29 = vld [vmem:[%s995_s1 + $0xf8] sm:$0xff]   ;;  %v786_v36 = vld [vmem:[%s995_s1 + $0x100] sm:$0xff]   ;;  %495 = vmatprep.mubr.bf16.mxu1 %v785_v35 }
   0xb   :  { %v774_v26 = vld [vmem:[%s995_s1 + $0x30] sm:$0xff]   ;;  %v778_v30 = vld [vmem:[%s995_s1 + $0x38] sm:$0xff]   ;;  %v787_v37 = vld [vmem:[%s995_s1 + $0x108] sm:$0xff]  }
   0xc   :  { %667 = vmatpush3.bf16.msra.mxu0 %v758_v10  ;;  %v775_v27 = vld [vmem:[%s995_s1 + $0xb0] sm:$0xff]   ;;  %v779_v31 = vld [vmem:[%s995_s1 + $0xb8] sm:$0xff]   ;;  %v791_v39 = vld [vmem:[%s996_s0 + $0x2c] ss:$20 sps:$4 sm:$0xff]  }
   0xd   :  { %695 = vmatpush3.bf16.msra.mxu1 %v759_v11  ;;  %668 = vmatprep.subr.bf16.mxu0 %v760_v12  ;;  %v780_v32 = vld [vmem:[%s996_s0] ss:$20 sps:$4 sm:$0xff]   ;;  %v782_v33 = vld [vmem:[%s996_s0 + $0x4] ss:$20 sps:$4 sm:$0xff]   ;;  %v783_v34 = vld [vmem:[%s996_s0 + $0x8] ss:$20 sps:$4 sm:$0xff]  }
   0xe   :  { %696 = vmatprep.subr.bf16.mxu1 %v761_v13  ;;  %446 = vmatprep.mubr.bf16.mxu0 %v782_v33  ;;  %v788_v38 = vld [vmem:[%s995_s1 + $0x110] sm:$0xff]   ;;  %v789_v41 = vld [vmem:[%s995_s1 + $0x118] sm:$0xff]   ;;  %v790_v45 = vld [vmem:[%s995_s1 + $0x120] sm:$0xff]  }
   0xf   :  { %v793_v40 = vld [vmem:[%s996_s0 + $0x34] ss:$20 sps:$4 sm:$0xff]   ;;  %v797_v43 = vld [vmem:[%s996_s0 + $0x30] ss:$20 sps:$4 sm:$0xff]   ;;  %v799_v48 = vld [vmem:[%s995_s1 + $0x138] sm:$0xff]  }
  0x10   :  { %669 = vmatpush3.bf16.msra.mxu0 %v762_v14  ;;  %v796_v42 = vld [vmem:[%s996_s0 + $0x28] ss:$20 sps:$4 sm:$0xff]   ;;  %v800_v44 = vld [vmem:[%s996_s0 + $0x10] ss:$20 sps:$4 sm:$0xff]   ;;  %v801_v49 = vld [vmem:[%s996_s0 + $0x38] ss:$20 sps:$4 sm:$0xff]  }
  0x11   :  { %697 = vmatpush3.bf16.msra.mxu1 %v763_v15  ;;  %670 = vmatprep.subr.bf16.mxu0 %v764_v16  ;;  %v795_v46 = vld [vmem:[%s995_s1 + $0x128] sm:$0xff]   ;;  %v798_v47 = vld [vmem:[%s995_s1 + $0x130] sm:$0xff]   ;;  %v660_v15 = vld [vmem:[%s997_s2] ss:$0 sm:$0xff] }
  0x12   :  { %698 = vmatprep.subr.bf16.mxu1 %v765_v17 }
  0x14   :  { %671 = vmatpush3.bf16.msra.mxu0 %v766_v18  ;;  %v661_v18 = vld [vmem:[%s998_s3] ss:$0 sm:$0xff] }
  0x15   :  { %699 = vmatpush3.bf16.msra.mxu1 %v767_v19  ;;  %672 = vmatprep.subr.bf16.mxu0 %v768_v20 }
  0x16   :  { %700 = vmatprep.subr.bf16.mxu1 %v769_v21 }
  0x18   :  { %673 = vmatpush3.bf16.msra.mxu0 %v770_v22 }
  0x19   :  { %701 = vmatpush3.bf16.msra.mxu1 %v771_v23  ;;  %674 = vmatprep.subr.bf16.mxu0 %v772_v24 }
  0x1a   :  { %702 = vmatprep.subr.bf16.mxu1 %v773_v25 }
  0x1c   :  { %675 = vmatpush3.bf16.msra.mxu0 %v774_v26 }
  0x1d   :  { %703 = vmatpush3.bf16.msra.mxu1 %v775_v27  ;;  %676 = vmatprep.subr.bf16.mxu0 %v776_v28 }
  0x1e   :  { %704 = vmatprep.subr.bf16.mxu1 %v777_v29 }
  0x20   :  { %677 = vmatpush3.bf16.msra.mxu0 %v778_v30 }
  0x21   :  { %705 = vmatpush3.bf16.msra.mxu1 %v779_v31  ;;  %728 = vmatprep.subr.bf16.mxu0 %v786_v36 }
  0x23   :  { %447 = vmatmul.mubr.bf16.vlgmr.msra.gmra.mrb[0].mxu0 %v780_v32 }
  0x24   :  { %496 = vmatmul.mubr.bf16.vlgmr.msra.gmra.mrb[0].mxu1 %v783_v34  ;;  %729 = vmatpush3.bf16.msra.mxu0 %v786_v36 }
  0x25   :  { %730 = vmatprep.subr.bf16.mxu0 %v787_v37  ;;  %454 = vmatprep.mubr.bf16.mxu0 %v791_v39 }
  0x26   :  { %503 = vmatprep.mubr.bf16.mxu1 %v793_v40 }
  0x28   :  { %731 = vmatpush3.bf16.msra.mxu0 %v787_v37 }
  0x29   :  { %732 = vmatprep.subr.bf16.mxu0 %v788_v38 }
  0x2b   :  { %455 = vmatmul.mubr.bf16.gmra.mrb[4].mxu0 %v796_v42 }
  0x2c   :  { %504 = vmatmul.mubr.bf16.gmra.mrb[4].mxu1 %v797_v43  ;;  %733 = vmatpush3.bf16.msra.mxu0 %v788_v38 }
  0x2d   :  { %734 = vmatprep.subr.bf16.mxu0 %v789_v41  ;;  %744 = vmatprep.mubr.bf16.mxu0 %v800_v44 }
  0x30   :  { %735 = vmatpush3.bf16.msra.mxu0 %v789_v41 }
  0x31   :  { %736 = vmatprep.subr.bf16.mxu0 %v790_v45 }
  0x34   :  { %737 = vmatpush3.bf16.msra.mxu0 %v790_v45 }
  0x35   :  { %738 = vmatprep.subr.bf16.mxu0 %v795_v46 }
  0x38   :  { %739 = vmatpush3.bf16.msra.mxu0 %v795_v46 }
  0x39   :  { %740 = vmatprep.subr.bf16.mxu0 %v798_v47 }
  0x3c   :  { %741 = vmatpush3.bf16.msra.mxu0 %v798_v47 }
  0x3d   :  { %742 = vmatprep.subr.bf16.mxu0 %v799_v48 }
  0x40   :  { %743 = vmatpush3.bf16.msra.mxu0 %v799_v48 }
  0x43   :  { %745 = vmatmul.mubr.bf16.vlgmr.msra.gmra.mrb[8].mxu0 %v801_v49 }
  0xf6   :  { %v678_v50 = vpop.f32.mrb[0].mxu0 }
  0xf7   :  { %v706_v51 = vpop.f32.mrb[0].mxu1  ;;  %v679_v52 = vpop.f32.mrb[1].mxu0 }
  0xf8   :  { %v680_v53 = vadd.f32 %v679_v52, %v678_v50  ;;  %v707_v54 = vpop.f32.mrb[1].mxu1  ;;  %v681_v55 = vpop.f32.mrb[2].mxu0 }
  0xf9   :  { %v708_v56 = vadd.f32 %v707_v54, %v706_v51  ;;  %v709_v57 = vpop.f32.mrb[2].mxu1  ;;  %v682_v58 = vpop.f32.mrb[3].mxu0 }
  0xfa   :  { %v683_v59 = vadd.f32 %v682_v58, %v681_v55  ;;  %v710_v60 = vpop.f32.mrb[3].mxu1 }
  0xfb   :  { %v711_v61 = vadd.f32 %v710_v60, %v709_v57  ;;  %v498_v62 = vadd.f32 %v708_v56, %v680_v53 }
  0xfd   :  { %v501_v63 = vadd.f32 %v711_v61, %v683_v59 }
  0xfe   :  { %v684_v0 = vpop.f32.mrb[4].mxu0 }
  0xff   :  { %v712_v1 = vpop.f32.mrb[4].mxu1  ;;  %v685_v2 = vpop.f32.mrb[5].mxu0 }
 0x100   :  { %v686_v3 = vadd.f32 %v685_v2, %v684_v0  ;;  %v713_v4 = vpop.f32.mrb[5].mxu1  ;;  %v687_v5 = vpop.f32.mrb[6].mxu0 }
 0x101   :  { %v714_v6 = vadd.f32 %v713_v4, %v712_v1  ;;  %v715_v7 = vpop.f32.mrb[6].mxu1  ;;  %v688_v8 = vpop.f32.mrb[7].mxu0 }
 0x102   :  { %v689_v9 = vadd.f32 %v688_v8, %v687_v5  ;;  %v716_v10 = vpop.f32.mrb[7].mxu1 }
 0x103   :  { %v717_v11 = vadd.f32 %v716_v10, %v715_v7  ;;  %v506_v12 = vadd.f32 %v714_v6, %v686_v3 }
 0x105   :  { %v509_v13 = vadd.f32 %v717_v11, %v689_v9 }
 0x116   :  { %v746_v14 = vpop.f32.mrb[8].mxu0 }
 0x117   :  { %v555_v16 = vadd.f32 %v746_v14, %v506_v12  ;;  %v546_v17 = vpop.f32.mrb[9].mxu0 }
 0x118   :  { %v547_v19 = vadd.f32 %v546_v17, %v498_v62  ;;  %v747_v20 = vpop.f32.mrb[10].mxu0 }
 0x119   :  { %v585_v21 = vmul.f32 %v660_v15, %v555_v16  ;;  %v558_v22 = vadd.f32 %v747_v20, %v509_v13  ;;  %v549_v23 = vpop.f32.mrb[11].mxu0 }
 0x11a   :  { %v583_v24 = vmul.f32 %v660_v15, %v547_v19  ;;  %v550_v25 = vadd.f32 %v549_v23, %v501_v63 }
 0x11b   :  { %v596_v26 = vadd.f32 %v661_v18, %v585_v21  ;;  %v586_v27 = vmul.f32 %v660_v15, %v558_v22 }
 0x11c   :  { %v594_v28 = vadd.f32 %v661_v18, %v583_v24  ;;  %v584_v29 = vmul.f32 %v660_v15, %v550_v25 }
 0x11d   :  { %v600_v30 = vmax.f32 %v596_v26, 0.0  ;;  %v597_v31 = vadd.f32 %v661_v18, %v586_v27 }
 0x11e   :  { %v598_v32 = vmax.f32 %v594_v28, 0.0  ;;  %v595_v33 = vadd.f32 %v661_v18, %v584_v29 }
 0x11f   :  { %604 = vst [vmem:[%s999_s4 + $0x10] sm:$0xff] %v600_v30  ;;  %v601_v34 = vmax.f32 %v597_v31, 0.0 }
 0x120   :  { %602 = vst [vmem:[%s999_s4] sm:$0xff] %v598_v32  ;;  %v599_v35 = vmax.f32 %v595_v33, 0.0 }
 0x121   :  { %605 = vst [vmem:[%s999_s4 + $0x18] sm:$0xff] %v601_v34 }
 0x122   :  { %603 = vst [vmem:[%s999_s4 + $0x8] sm:$0xff] %v599_v35 }

// kernel: _lambda_.31
= control target key start
LH: loop header
LB: loop body
LE: loop exit
PB: predicated region body
PF: predicated region fallthrough
CT: control target
= control target key end

     0   :  { %s1199_s18 = smov 0   ;;  %s1201_s19 = smov 0   ;;  %s1330_s0 = inlined_call_operand.vmem [shape: bf16[32,1152], index: 0, kind: input, shape index: {}]   ;;  %s1331_s1 = inlined_call_operand.vmem [shape: bf16[1152,128], index: 1, kind: input, shape index: {}]   ;;  %s1332_s2 = inlined_call_operand.vmem [shape: f32[1,128], index: 2, kind: input, shape index: {}]   ;;  %s1333_s3 = inlined_call_operand.vmem [shape: f32[1,128], index: 3, kind: input, shape index: {}]   ;;  %s1334_s4 = inlined_call_operand.vmem [shape: f32[32,128], index: 4, kind: input, shape index: {}]   ;;  %s1335_s5 = inlined_call_operand.vmem [shape: f32[32,128], index: 5, kind: output, shape index: {}]  }
   0x1   :  { %s1203_s20 = smov 0   ;;  %s1205_s21 = smov 0  }
   0x2   :  { %s1207_s22 = smov 0  }
   0x3 LB: > { %s27_s23 = sadd.s32 1, %s1162_s21  ;;  %p50_p1 = scmp.ne.s32.totalorder %s1154_s19, %s1150_s18  ;;  %s1166_s22 = sphi %s1207_s22, %s15_s22   ;;  %s1162_s21 = sphi %s1205_s21, %s1339_s21   ;;  %s1158_s20 = sphi %s1203_s20, %s1338_s20   ;;  %s1154_s19 = sphi %s1201_s19, %s1337_s19   ;;  %s1150_s18 = sphi %s1199_s18, %s1336_s18  }
   0x4   : > { %p28_p0 = scmp.ge.s32.totalorder %s27_s23, 3  ;;  %p51_p2 = scmp.eq.s32.totalorder %s1166_s22, 0 }
   0x5   : > { %s43_s25 = sadd.s32 1, %s1154_s19  ;;  %p944_p5 = scmp.ge.s32.totalorder %s1166_s22, 3 }
   0x6   : > { %s1341_s23 = smov (%p28_p0, %s27_s23), 0  ;;  %p52_p3 = por %p51_p2, %p50_p1 }
   0x7   : > { %s39_s24 = ssub.s32 %s1162_s21, %s1341_s23  ;;  %236 = sbr.rel (%p944_p5) target bundleno = 23 (0x17), region = 28 }
   0x8   : > { %p41_p4 = scmp.eq.s32.totalorder %s39_s24, 0 }
   0xa   : > { %s1234_s26 = scalar_select %p41_p4, %s1154_s19, %s43_s25  }
   0xe   : > { %239 = sbr.rel (!%p52_p3) target bundleno = 23 (0x17), region = 32  ;;  %s241_s27 = sand.u32 (%p52_p3), 1, %s1154_s19  }
   0xf   : > { %s994_s28 = smul.u32 (%p52_p3), 12, %s1162_s21 }
  0x10   : > { %s1053_s29 = smul.u32 (%p52_p3), 48, %s241_s27 }
  0x11   : > { %s249_s7 = scalar_lea.vmem (%p52_p3), %s1330_s0, %s994_s28 }
  0x12   : > { %v264_v0 = vld [vmem:[%s249_s7] sm:$0xff] (%p52_p3)  ;;  %v268_v2 = vld [vmem:[%s249_s7 + $0x48] sm:$0xff] (%p52_p3)  ;;  %s243_s8 = scalar_lea.vmem (%p52_p3), [#allocation3], %s1053_s29  ;;  %v950_v6 = vld [vmem:[%s249_s7 + $0x50] sm:$0xf] (%p52_p3) }
  0x13   : > { %v266_v1 = vld [vmem:[%s249_s7 + $0x24] sm:$0xff] (%p52_p3)  ;;  %265 = vst [vmem:[%s243_s8] sm:$0xff] (%p52_p3), %v264_v0  ;;  %269 = vst [vmem:[%s243_s8 + $0x18] sm:$0xff] (%p52_p3), %v268_v2  ;;  %v270_v3 = vld [vmem:[%s249_s7 + $0x6c] sm:$0xff] (%p52_p3) }
  0x14   : > { %267 = vst [vmem:[%s243_s8 + $0xc] sm:$0xff] (%p52_p3), %v266_v1  ;;  %v946_v4 = vld [vmem:[%s249_s7 + $0x8] sm:$0xf] (%p52_p3)  ;;  %v948_v5 = vld [vmem:[%s249_s7 + $0x2c] sm:$0xf] (%p52_p3)  ;;  %271 = vst [vmem:[%s243_s8 + $0x24] sm:$0xff] (%p52_p3), %v270_v3 }
  0x15   : > { %947 = vst [vmem:[%s243_s8 + $0x8] sm:$0xf] %v946_v4  ;;  %949 = vst [vmem:[%s243_s8 + $0x14] sm:$0xf] %v948_v5  ;;  %v952_v7 = vld [vmem:[%s249_s7 + $0x74] sm:$0xf] }
  0x16   : > { %951 = vst [vmem:[%s243_s8 + $0x20] sm:$0xf] %v950_v6  ;;  %953 = vst [vmem:[%s243_s8 + $0x2c] sm:$0xf] %v952_v7 }
  0x17 PF: > { %p954_p6 = scmp.ge.s32.totalorder %s1166_s22, 1  ;;  %p303_p7 = scmp.lt.s32.totalorder %s1166_s22, 4 }
  0x19   : > { %p304_p8 = pnand %p954_p6, %p303_p7 }
  0x1a   : > { %s310_s9 = sand.u32 (!%p304_p8), 1, %s1150_s18   ;;  %s364_s10 = smul.u32 (!%p304_p8), 48, %s1158_s20 }
  0x1b   : > { %307 = sbr.rel (%p304_p8) target bundleno = 320 (0x140), region = 62  ;;  %p956_p10 = scmp.ne.s32.totalorder (!%p304_p8), %s1158_s20, 0 }
  0x1c   : > { %s1054_s11 = smul.u32 (!%p304_p8), 48, %s310_s9  ;;  %p365_p9 = scmp.lt.s32.totalorder (!%p304_p8), %s364_s10, 143 }
  0x1e   : > { %s1251_s16 = scalar_lea.vmem (!%p304_p8), [#allocation3], %s1054_s11 }
  0x22   : > { %s1343_s10 = smov (!%p365_p9, %s364_s10), 143  ;;  %401 = sbr.rel (%p956_p10) target bundleno = 41 (0x29), region = 70 }
  0x23   : > { %s955_s12 = sshll.u32 %s1343_s10, 2  ;;  %v1168_v8 = vmov (!%p956_p10), 0.0  }
  0x24   : > { %s1249_s15 = scalar_lea.vmem %s1331_s1, %s955_s12  ;;  %402 = vst [vmem:[#allocation2] sm:$0xff] (!%p956_p10), %v1168_v8  ;;  %403 = vst [vmem:[#allocation2 + $0x8] sm:$0xff] (!%p956_p10), %v1168_v8 }
  0x25   : > { %404 = vst [vmem:[#allocation2 + $0x10] sm:$0xff] (!%p956_p10), %v1168_v8  ;;  %405 = vst [vmem:[#allocation2 + $0x18] sm:$0xff] (!%p956_p10), %v1168_v8 }
  0x29 PF: > { %v1096_v9 = vld [vmem:[%s1249_s15 + $0x40] sm:$0xff]   ;;  %v1099_v12 = vld [vmem:[%s1249_s15 + $0x48] sm:$0xff]   ;;  %v1102_v15 = vld [vmem:[%s1249_s15 + $0x50] sm:$0xff]   ;;  %p987_p11 = scmp.ne.s32.totalorder %s1158_s20, 2 }
  0x2a   : > { %v1097_v10 = vld [vmem:[%s1249_s15] sm:$0xff]   ;;  %995 = vmatprep.subr.bf16.mxu0 %v1096_v9  ;;  %v1100_v13 = vld [vmem:[%s1249_s15 + $0x8] sm:$0xff]   ;;  %v1103_v16 = vld [vmem:[%s1249_s15 + $0x10] sm:$0xff]  }
  0x2b   : > { %v1098_v11 = vld [vmem:[%s1249_s15 + $0x80] sm:$0xff]   ;;  %996 = vmatpush3.bf16.msra.mxu0 %v1097_v10  ;;  %v1101_v14 = vld [vmem:[%s1249_s15 + $0x88] sm:$0xff]   ;;  %v1104_v17 = vld [vmem:[%s1249_s15 + $0x90] sm:$0xff]  }
  0x2c   : > { %1033 = vmatprep.subr.bf16.mxu1 %v1098_v11  ;;  %997 = vmatprep.subr.bf16.mxu0 %v1099_v12  ;;  %v1105_v18 = vld [vmem:[%s1249_s15 + $0x58] sm:$0xff]   ;;  %v1108_v21 = vld [vmem:[%s1249_s15 + $0x60] sm:$0xff]   ;;  %v1111_v24 = vld [vmem:[%s1249_s15 + $0x68] sm:$0xff]  }
  0x2d   : > { %1034 = vmatpush3.bf16.msra.mxu1 %v1098_v11  ;;  %v1106_v19 = vld [vmem:[%s1249_s15 + $0x18] sm:$0xff]   ;;  %v1110_v22 = vld [vmem:[%s1249_s15 + $0xa0] sm:$0xff]   ;;  %v1113_v25 = vld [vmem:[%s1249_s15 + $0xa8] sm:$0xff]  }
  0x2e   : > { %1035 = vmatprep.subr.bf16.mxu1 %v1101_v14  ;;  %v1107_v20 = vld [vmem:[%s1249_s15 + $0x98] sm:$0xff]   ;;  %v1109_v23 = vld [vmem:[%s1249_s15 + $0x20] sm:$0xff]   ;;  %v1112_v26 = vld [vmem:[%s1249_s15 + $0x28] sm:$0xff]  }
  0x2f   : > { %998 = vmatpush3.bf16.msra.mxu0 %v1100_v13  ;;  %v1114_v27 = vld [vmem:[%s1249_s15 + $0x70] sm:$0xff]   ;;  %v1117_v30 = vld [vmem:[%s1249_s15 + $0x78] sm:$0xff]   ;;  %v406_v45 = vld [vmem:[#allocation2] sm:$0xff] }
  0x30   : > { %999 = vmatprep.subr.bf16.mxu0 %v1102_v15  ;;  %v1115_v28 = vld [vmem:[%s1249_s15 + $0x30] sm:$0xff]   ;;  %v1119_v31 = vld [vmem:[%s1249_s15 + $0xb8] sm:$0xff]   ;;  %v407_v50 = vld [vmem:[#allocation2 + $0x8] sm:$0xff] }
  0x31   : > { %1036 = vmatpush3.bf16.msra.mxu1 %v1101_v14  ;;  %v1116_v29 = vld [vmem:[%s1249_s15 + $0xb0] sm:$0xff]   ;;  %v1118_v34 = vld [vmem:[%s1249_s15 + $0x38] sm:$0xff]   ;;  %v988_v4 = vld [vmem:[%s1332_s2] ss:$0 sm:$0xff] (!%p987_p11) }
  0x32   : > { %1037 = vmatprep.subr.bf16.mxu1 %v1104_v17  ;;  %v1122_v32 = vld [vmem:[%s1251_s16 + $0x4] ss:$12 sps:$4 sm:$0xff]   ;;  %v1123_v33 = vld [vmem:[%s1251_s16 + $0x8] ss:$12 sps:$4 sm:$0xff]   ;;  %v1120_v35 = vld [vmem:[%s1251_s16] ss:$12 sps:$4 sm:$0xff]  }
  0x33   : > { %1000 = vmatpush3.bf16.msra.mxu0 %v1103_v16  ;;  %674 = vmatprep.mubr.bf16.mxu0 %v1122_v32  ;;  %v1125_v36 = vld [vmem:[%s1251_s16 + $0x1c] ss:$12 sps:$4 sm:$0xff]   ;;  %v1124_v37 = vld [vmem:[%s1251_s16 + $0x20] ss:$12 sps:$4 sm:$0xff]   ;;  %v1127_v38 = vld [vmem:[%s1251_s16 + $0x18] ss:$12 sps:$4 sm:$0xff]  }
  0x34   : > { %1001 = vmatprep.subr.bf16.mxu0 %v1105_v18  ;;  %1049 = vmatprep.mubr.bf16.mxu1 %v1123_v33  ;;  %v408_v59 = vld [vmem:[#allocation2 + $0x10] sm:$0xff]  ;;  %v409_v63 = vld [vmem:[#allocation2 + $0x18] sm:$0xff]  ;;  %v989_v5 = vld [vmem:[%s1333_s3] ss:$0 sm:$0xff] (!%p987_p11) }
  0x35   : > { %1038 = vmatpush3.bf16.msra.mxu1 %v1104_v17  ;;  %v778_v8 = vld [vmem:[%s1334_s4] sm:$0xff] (!%p987_p11)  ;;  %v779_v13 = vld [vmem:[%s1334_s4 + $0x8] sm:$0xff] (!%p987_p11)  ;;  %v780_v17 = vld [vmem:[%s1334_s4 + $0x10] sm:$0xff] (!%p987_p11) }
  0x36   : > { %1039 = vmatprep.subr.bf16.mxu1 %v1107_v20  ;;  %v781_v18 = vld [vmem:[%s1334_s4 + $0x18] sm:$0xff] (!%p987_p11) }
  0x37   : > { %1002 = vmatpush3.bf16.msra.mxu0 %v1106_v19 }
  0x38   : > { %1003 = vmatprep.subr.bf16.mxu0 %v1108_v21 }
  0x39   : > { %1040 = vmatpush3.bf16.msra.mxu1 %v1107_v20 }
  0x3a   : > { %1041 = vmatprep.subr.bf16.mxu1 %v1110_v22 }
  0x3b   : > { %1004 = vmatpush3.bf16.msra.mxu0 %v1109_v23 }
  0x3c   : > { %1005 = vmatprep.subr.bf16.mxu0 %v1111_v24 }
  0x3d   : > { %1042 = vmatpush3.bf16.msra.mxu1 %v1110_v22 }
  0x3e   : > { %1043 = vmatprep.subr.bf16.mxu1 %v1113_v25 }
  0x3f   : > { %1006 = vmatpush3.bf16.msra.mxu0 %v1112_v26 }
  0x40   : > { %1007 = vmatprep.subr.bf16.mxu0 %v1114_v27 }
  0x41   : > { %1044 = vmatpush3.bf16.msra.mxu1 %v1113_v25 }
  0x42   : > { %1045 = vmatprep.subr.bf16.mxu1 %v1116_v29 }
  0x43   : > { %1008 = vmatpush3.bf16.msra.mxu0 %v1115_v28 }
  0x44   : > { %1009 = vmatprep.subr.bf16.mxu0 %v1117_v30 }
  0x45   : > { %1046 = vmatpush3.bf16.msra.mxu1 %v1116_v29 }
  0x46   : > { %1047 = vmatprep.subr.bf16.mxu1 %v1119_v31 }
  0x47   : > { %1010 = vmatpush3.bf16.msra.mxu0 %v1118_v34 }
  0x49   : > { %1048 = vmatpush3.bf16.msra.mxu1 %v1119_v31 }
  0x4a   : > { %675 = vmatmul.mubr.bf16.vlgmr.msra.gmra.mrb[0].mxu0 %v1120_v35 }
  0x4b   : > { %682 = vmatprep.mubr.bf16.mxu0 %v1125_v36 }
  0x4c   : > { %1050 = vmatmul.mubr.bf16.vlgmr.msra.gmra.mrb[0].mxu1 %v1124_v37 }
  0x52   : > { %683 = vmatmul.mubr.bf16.gmra.mrb[4].mxu0 %v1127_v38 }
 0x11d   : > { %v1011_v39 = vpop.f32.mrb[0].mxu0 }
 0x11e   : > { %v1012_v40 = vpop.f32.mrb[1].mxu0 }
 0x11f   : > { %v1013_v41 = vadd.f32 %v1012_v40, %v1011_v39  ;;  %v1014_v42 = vpop.f32.mrb[2].mxu0  ;;  %v1051_v43 = vpop.f32.mrb[0].mxu1 }
 0x120   : > { %v1015_v44 = vpop.f32.mrb[3].mxu0  ;;  %v725_v46 = vpop.f32.mrb[1].mxu1 }
 0x121   : > { %v1016_v47 = vadd.f32 %v1015_v44, %v1014_v42  ;;  %v726_v48 = vadd.f32 %v1013_v41, %v725_v46  ;;  %v1052_v49 = vpop.f32.mrb[2].mxu1 }
 0x122   : > { %v728_v51 = vpop.f32.mrb[3].mxu1 }
 0x123   : > { %v740_v52 = vadd.f32 %v726_v48, %v406_v45  ;;  %v729_v53 = vadd.f32 %v1016_v47, %v728_v51 }
 0x125   : > { %744 = vst [vmem:[#allocation2] sm:$0xff] %v740_v52  ;;  %v741_v54 = vadd.f32 %v729_v53, %v407_v50  ;;  %v1017_v55 = vpop.f32.mrb[4].mxu0 }
 0x126   : > { %v1018_v56 = vpop.f32.mrb[5].mxu0 }
 0x127   : > { %745 = vst [vmem:[#allocation2 + $0x8] sm:$0xff] %v741_v54  ;;  %v1019_v57 = vadd.f32 %v1018_v56, %v1017_v55  ;;  %v1020_v58 = vpop.f32.mrb[6].mxu0 }
 0x128   : > { %v1021_v60 = vpop.f32.mrb[7].mxu0 }
 0x129   : > { %v734_v61 = vadd.f32 %v1051_v43, %v1019_v57  ;;  %v1022_v62 = vadd.f32 %v1021_v60, %v1020_v58  ;;  %751 = sbr.rel (%p987_p11) target bundleno = 320 (0x140), region = 74 }
 0x12b   : > { %v742_v0 = vadd.f32 %v734_v61, %v408_v59  ;;  %v737_v1 = vadd.f32 %v1052_v49, %v1022_v62 }
 0x12c   : > { %v752_v3 = vld [vmem:[#allocation2] sm:$0xff] (!%p987_p11) }
 0x12d   : > { %746 = vst [vmem:[#allocation2 + $0x10] sm:$0xff] %v742_v0  ;;  %v743_v2 = vadd.f32 %v737_v1, %v409_v63  ;;  %v763_v6 = vmul.f32 (!%p987_p11), %v988_v4, %v752_v3 }
 0x12e   : > { %v753_v7 = vld [vmem:[#allocation2 + $0x8] sm:$0xff] (!%p987_p11) }
 0x12f   : > { %747 = vst [vmem:[#allocation2 + $0x18] sm:$0xff] %v743_v2  ;;  %v764_v9 = vmul.f32 (!%p987_p11), %v988_v4, %v753_v7  ;;  %v774_v12 = vadd.f32 (!%p987_p11), %v989_v5, %v763_v6 }
 0x131   : > { %v775_v16 = vadd.f32 %v989_v5, %v764_v9  ;;  %v782_v19 = vadd.f32 %v778_v8, %v774_v12 }
 0x133   : > { %v783_v22 = vadd.f32 %v779_v13, %v775_v16  ;;  %v786_v23 = vmax.f32 %v782_v19, 0.0 }
 0x134   : > { %v754_v10 = vld [vmem:[#allocation2 + $0x10] sm:$0xff] }
 0x135   : > { %v765_v14 = vmul.f32 %v988_v4, %v754_v10  ;;  %v787_v26 = vmax.f32 %v783_v22, 0.0  ;;  %790 = vst [vmem:[%s1335_s5] sm:$0xff] %v786_v23 }
 0x136   : > { %v755_v11 = vld [vmem:[#allocation2 + $0x18] sm:$0xff] }
 0x137   : > { %v766_v15 = vmul.f32 %v988_v4, %v755_v11  ;;  %v776_v20 = vadd.f32 %v989_v5, %v765_v14  ;;  %791 = vst [vmem:[%s1335_s5 + $0x8] sm:$0xff] %v787_v26 }
 0x139   : > { %v777_v21 = vadd.f32 %v989_v5, %v766_v15  ;;  %v784_v24 = vadd.f32 %v780_v17, %v776_v20 }
 0x13b   : > { %v785_v25 = vadd.f32 %v781_v18, %v777_v21  ;;  %v788_v27 = vmax.f32 %v784_v24, 0.0 }
 0x13d   : > { %v789_v28 = vmax.f32 %v785_v25, 0.0  ;;  %792 = vst [vmem:[%s1335_s5 + $0x10] sm:$0xff] %v788_v27 }
 0x13f   : > { %793 = vst [vmem:[%s1335_s5 + $0x18] sm:$0xff] %v789_v28 }
 0x140 PF: > { %s15_s22 = sadd.s32 1, %s1166_s22   ;;  %s1336_s18 = smov %s1154_s19 }
 0x141   : > { %p12_p12 = scmp.ge.s32.totalorder %s15_s22, 5   ;;  %s1337_s19 = smov %s1234_s26 }
 0x142   : > { %s1338_s20 = smov %s1162_s21  ;;  %s1339_s21 = smov %s1341_s23 }
 0x143   :  { %14 = sbr.rel (!%p12_p12) target bundleno = 3 (0x3), region = 127 }

// kernel: _lambda_.32
= control target key start
LH: loop header
LB: loop body
LE: loop exit
PB: predicated region body
PF: predicated region fallthrough
CT: control target
= control target key end

     0   :  { %s1107_s15 = smov 0   ;;  %s1109_s16 = smov 0   ;;  %s1226_s0 = inlined_call_operand.vmem [shape: bf16[32,1152], index: 0, kind: input, shape index: {}]   ;;  %s1227_s1 = inlined_call_operand.vmem [shape: bf16[1152,128], index: 1, kind: input, shape index: {}]   ;;  %s1228_s2 = inlined_call_operand.vmem [shape: f32[1,128], index: 2, kind: input, shape index: {}]   ;;  %s1229_s3 = inlined_call_operand.vmem [shape: f32[1,128], index: 3, kind: input, shape index: {}]   ;;  %s1230_s4 = inlined_call_operand.vmem [shape: f32[32,128], index: 4, kind: output, shape index: {}]  }
   0x1   :  { %s1111_s17 = smov 0   ;;  %s1113_s18 = smov 0  }
   0x2   :  { %s1115_s19 = smov 0  }
   0x3 LB: > { %s26_s20 = sadd.s32 1, %s1075_s18  ;;  %p49_p1 = scmp.ne.s32.totalorder %s1067_s16, %s1063_s15  ;;  %s1079_s19 = sphi %s1115_s19, %s14_s19   ;;  %s1075_s18 = sphi %s1113_s18, %s1234_s18   ;;  %s1071_s17 = sphi %s1111_s17, %s1233_s17   ;;  %s1067_s16 = sphi %s1109_s16, %s1232_s16   ;;  %s1063_s15 = sphi %s1107_s15, %s1231_s15  }
   0x4   : > { %p27_p0 = scmp.ge.s32.totalorder %s26_s20, 3  ;;  %p50_p2 = scmp.eq.s32.totalorder %s1079_s19, 0 }
   0x5   : > { %s42_s22 = sadd.s32 1, %s1067_s16  ;;  %p857_p5 = scmp.ge.s32.totalorder %s1079_s19, 3 }
   0x6   : > { %s1236_s20 = smov (%p27_p0, %s26_s20), 0  ;;  %p51_p3 = por %p50_p2, %p49_p1 }
   0x7   : > { %s38_s21 = ssub.s32 %s1075_s18, %s1236_s20  ;;  %195 = sbr.rel (%p857_p5) target bundleno = 23 (0x17), region = 24 }
   0x8   : > { %p40_p4 = scmp.eq.s32.totalorder %s38_s21, 0 }
   0xa   : > { %s1142_s23 = scalar_select %p40_p4, %s1067_s16, %s42_s22  }
   0xe   : > { %198 = sbr.rel (!%p51_p3) target bundleno = 23 (0x17), region = 28  ;;  %s200_s24 = sand.u32 (%p51_p3), 1, %s1067_s16  }
   0xf   : > { %s907_s25 = smul.u32 (%p51_p3), 12, %s1075_s18 }
  0x10   : > { %s966_s26 = smul.u32 (%p51_p3), 48, %s200_s24 }
  0x11   : > { %s208_s29 = scalar_lea.vmem (%p51_p3), %s1226_s0, %s907_s25 }
  0x12   : > { %v223_v0 = vld [vmem:[%s208_s29] sm:$0xff] (%p51_p3)  ;;  %v227_v2 = vld [vmem:[%s208_s29 + $0x48] sm:$0xff] (%p51_p3)  ;;  %s202_s30 = scalar_lea.vmem (%p51_p3), [#allocation3], %s966_s26  ;;  %v863_v6 = vld [vmem:[%s208_s29 + $0x50] sm:$0xf] (%p51_p3) }
  0x13   : > { %v225_v1 = vld [vmem:[%s208_s29 + $0x24] sm:$0xff] (%p51_p3)  ;;  %224 = vst [vmem:[%s202_s30] sm:$0xff] (%p51_p3), %v223_v0  ;;  %228 = vst [vmem:[%s202_s30 + $0x18] sm:$0xff] (%p51_p3), %v227_v2  ;;  %v229_v3 = vld [vmem:[%s208_s29 + $0x6c] sm:$0xff] (%p51_p3) }
  0x14   : > { %226 = vst [vmem:[%s202_s30 + $0xc] sm:$0xff] (%p51_p3), %v225_v1  ;;  %v859_v4 = vld [vmem:[%s208_s29 + $0x8] sm:$0xf] (%p51_p3)  ;;  %v861_v5 = vld [vmem:[%s208_s29 + $0x2c] sm:$0xf] (%p51_p3)  ;;  %230 = vst [vmem:[%s202_s30 + $0x24] sm:$0xff] (%p51_p3), %v229_v3 }
  0x15   : > { %860 = vst [vmem:[%s202_s30 + $0x8] sm:$0xf] %v859_v4  ;;  %862 = vst [vmem:[%s202_s30 + $0x14] sm:$0xf] %v861_v5  ;;  %v865_v7 = vld [vmem:[%s208_s29 + $0x74] sm:$0xf] }
  0x16   : > { %864 = vst [vmem:[%s202_s30 + $0x20] sm:$0xf] %v863_v6  ;;  %866 = vst [vmem:[%s202_s30 + $0x2c] sm:$0xf] %v865_v7 }
  0x17 PF: > { %p867_p6 = scmp.ge.s32.totalorder %s1079_s19, 1  ;;  %p262_p7 = scmp.lt.s32.totalorder %s1079_s19, 4 }
  0x19   : > { %p263_p8 = pnand %p867_p6, %p262_p7 }
  0x1a   : > { %s269_s5 = sand.u32 (!%p263_p8), 1, %s1063_s15   ;;  %s313_s6 = smul.u32 (!%p263_p8), 48, %s1071_s17 }
  0x1b   : > { %266 = sbr.rel (%p263_p8) target bundleno = 318 (0x13e), region = 58  ;;  %p869_p10 = scmp.ne.s32.totalorder (!%p263_p8), %s1071_s17, 0 }
  0x1c   : > { %s967_s7 = smul.u32 (!%p263_p8), 48, %s269_s5  ;;  %p314_p9 = scmp.lt.s32.totalorder (!%p263_p8), %s313_s6, 143 }
  0x1e   : > { %s1159_s12 = scalar_lea.vmem (!%p263_p8), [#allocation3], %s967_s7 }
  0x22   : > { %s1238_s6 = smov (!%p314_p9, %s313_s6), 143  ;;  %341 = sbr.rel (%p869_p10) target bundleno = 41 (0x29), region = 66 }
  0x23   : > { %s868_s8 = sshll.u32 %s1238_s6, 2  ;;  %v1081_v8 = vmov (!%p869_p10), 0.0  }
  0x24   : > { %s1157_s11 = scalar_lea.vmem %s1227_s1, %s868_s8  ;;  %342 = vst [vmem:[#allocation2] sm:$0xff] (!%p869_p10), %v1081_v8  ;;  %343 = vst [vmem:[#allocation2 + $0x8] sm:$0xff] (!%p869_p10), %v1081_v8 }
  0x25   : > { %344 = vst [vmem:[#allocation2 + $0x10] sm:$0xff] (!%p869_p10), %v1081_v8  ;;  %345 = vst [vmem:[#allocation2 + $0x18] sm:$0xff] (!%p869_p10), %v1081_v8 }
  0x29 PF: > { %v1009_v9 = vld [vmem:[%s1157_s11 + $0x40] sm:$0xff]   ;;  %v1012_v12 = vld [vmem:[%s1157_s11 + $0x48] sm:$0xff]   ;;  %v1015_v15 = vld [vmem:[%s1157_s11 + $0x50] sm:$0xff]   ;;  %p900_p11 = scmp.ne.s32.totalorder %s1071_s17, 2 }
  0x2a   : > { %v1010_v10 = vld [vmem:[%s1157_s11] sm:$0xff]   ;;  %908 = vmatprep.subr.bf16.mxu0 %v1009_v9  ;;  %v1013_v13 = vld [vmem:[%s1157_s11 + $0x8] sm:$0xff]   ;;  %v1016_v16 = vld [vmem:[%s1157_s11 + $0x10] sm:$0xff]  }
  0x2b   : > { %v1011_v11 = vld [vmem:[%s1157_s11 + $0x80] sm:$0xff]   ;;  %909 = vmatpush3.bf16.msra.mxu0 %v1010_v10  ;;  %v1014_v14 = vld [vmem:[%s1157_s11 + $0x88] sm:$0xff]   ;;  %v1017_v17 = vld [vmem:[%s1157_s11 + $0x90] sm:$0xff]  }
  0x2c   : > { %946 = vmatprep.subr.bf16.mxu1 %v1011_v11  ;;  %910 = vmatprep.subr.bf16.mxu0 %v1012_v12  ;;  %v1018_v18 = vld [vmem:[%s1157_s11 + $0x58] sm:$0xff]   ;;  %v1021_v21 = vld [vmem:[%s1157_s11 + $0x60] sm:$0xff]   ;;  %v1024_v24 = vld [vmem:[%s1157_s11 + $0x68] sm:$0xff]  }
  0x2d   : > { %947 = vmatpush3.bf16.msra.mxu1 %v1011_v11  ;;  %v1019_v19 = vld [vmem:[%s1157_s11 + $0x18] sm:$0xff]   ;;  %v1023_v22 = vld [vmem:[%s1157_s11 + $0xa0] sm:$0xff]   ;;  %v1026_v25 = vld [vmem:[%s1157_s11 + $0xa8] sm:$0xff]  }
  0x2e   : > { %948 = vmatprep.subr.bf16.mxu1 %v1014_v14  ;;  %v1020_v20 = vld [vmem:[%s1157_s11 + $0x98] sm:$0xff]   ;;  %v1022_v23 = vld [vmem:[%s1157_s11 + $0x20] sm:$0xff]   ;;  %v1025_v26 = vld [vmem:[%s1157_s11 + $0x28] sm:$0xff]  }
  0x2f   : > { %911 = vmatpush3.bf16.msra.mxu0 %v1013_v13  ;;  %v1027_v27 = vld [vmem:[%s1157_s11 + $0x70] sm:$0xff]   ;;  %v1030_v30 = vld [vmem:[%s1157_s11 + $0x78] sm:$0xff]   ;;  %v346_v45 = vld [vmem:[#allocation2] sm:$0xff] }
  0x30   : > { %912 = vmatprep.subr.bf16.mxu0 %v1015_v15  ;;  %v1028_v28 = vld [vmem:[%s1157_s11 + $0x30] sm:$0xff]   ;;  %v1032_v31 = vld [vmem:[%s1157_s11 + $0xb8] sm:$0xff]   ;;  %v347_v50 = vld [vmem:[#allocation2 + $0x8] sm:$0xff] }
  0x31   : > { %949 = vmatpush3.bf16.msra.mxu1 %v1014_v14  ;;  %v1029_v29 = vld [vmem:[%s1157_s11 + $0xb0] sm:$0xff]   ;;  %v1031_v34 = vld [vmem:[%s1157_s11 + $0x38] sm:$0xff]   ;;  %v901_v4 = vld [vmem:[%s1228_s2] ss:$0 sm:$0xff] (!%p900_p11) }
  0x32   : > { %950 = vmatprep.subr.bf16.mxu1 %v1017_v17  ;;  %v1035_v32 = vld [vmem:[%s1159_s12 + $0x4] ss:$12 sps:$4 sm:$0xff]   ;;  %v1036_v33 = vld [vmem:[%s1159_s12 + $0x8] ss:$12 sps:$4 sm:$0xff]   ;;  %v1033_v35 = vld [vmem:[%s1159_s12] ss:$12 sps:$4 sm:$0xff]  }
  0x33   : > { %913 = vmatpush3.bf16.msra.mxu0 %v1016_v16  ;;  %614 = vmatprep.mubr.bf16.mxu0 %v1035_v32  ;;  %v1038_v36 = vld [vmem:[%s1159_s12 + $0x1c] ss:$12 sps:$4 sm:$0xff]   ;;  %v1037_v37 = vld [vmem:[%s1159_s12 + $0x20] ss:$12 sps:$4 sm:$0xff]   ;;  %v1040_v38 = vld [vmem:[%s1159_s12 + $0x18] ss:$12 sps:$4 sm:$0xff]  }
  0x34   : > { %914 = vmatprep.subr.bf16.mxu0 %v1018_v18  ;;  %962 = vmatprep.mubr.bf16.mxu1 %v1036_v33  ;;  %v348_v59 = vld [vmem:[#allocation2 + $0x10] sm:$0xff]  ;;  %v349_v63 = vld [vmem:[#allocation2 + $0x18] sm:$0xff]  ;;  %v902_v5 = vld [vmem:[%s1229_s3] ss:$0 sm:$0xff] (!%p900_p11) }
  0x35   : > { %951 = vmatpush3.bf16.msra.mxu1 %v1017_v17 }
  0x36   : > { %952 = vmatprep.subr.bf16.mxu1 %v1020_v20 }
  0x37   : > { %915 = vmatpush3.bf16.msra.mxu0 %v1019_v19 }
  0x38   : > { %916 = vmatprep.subr.bf16.mxu0 %v1021_v21 }
  0x39   : > { %953 = vmatpush3.bf16.msra.mxu1 %v1020_v20 }
  0x3a   : > { %954 = vmatprep.subr.bf16.mxu1 %v1023_v22 }
  0x3b   : > { %917 = vmatpush3.bf16.msra.mxu0 %v1022_v23 }
  0x3c   : > { %918 = vmatprep.subr.bf16.mxu0 %v1024_v24 }
  0x3d   : > { %955 = vmatpush3.bf16.msra.mxu1 %v1023_v22 }
  0x3e   : > { %956 = vmatprep.subr.bf16.mxu1 %v1026_v25 }
  0x3f   : > { %919 = vmatpush3.bf16.msra.mxu0 %v1025_v26 }
  0x40   : > { %920 = vmatprep.subr.bf16.mxu0 %v1027_v27 }
  0x41   : > { %957 = vmatpush3.bf16.msra.mxu1 %v1026_v25 }
  0x42   : > { %958 = vmatprep.subr.bf16.mxu1 %v1029_v29 }
  0x43   : > { %921 = vmatpush3.bf16.msra.mxu0 %v1028_v28 }
  0x44   : > { %922 = vmatprep.subr.bf16.mxu0 %v1030_v30 }
  0x45   : > { %959 = vmatpush3.bf16.msra.mxu1 %v1029_v29 }
  0x46   : > { %960 = vmatprep.subr.bf16.mxu1 %v1032_v31 }
  0x47   : > { %923 = vmatpush3.bf16.msra.mxu0 %v1031_v34 }
  0x49   : > { %961 = vmatpush3.bf16.msra.mxu1 %v1032_v31 }
  0x4a   : > { %615 = vmatmul.mubr.bf16.vlgmr.msra.gmra.mrb[0].mxu0 %v1033_v35 }
  0x4b   : > { %622 = vmatprep.mubr.bf16.mxu0 %v1038_v36 }
  0x4c   : > { %963 = vmatmul.mubr.bf16.vlgmr.msra.gmra.mrb[0].mxu1 %v1037_v37 }
  0x52   : > { %623 = vmatmul.mubr.bf16.gmra.mrb[4].mxu0 %v1040_v38 }
 0x11d   : > { %v924_v39 = vpop.f32.mrb[0].mxu0 }
 0x11e   : > { %v925_v40 = vpop.f32.mrb[1].mxu0 }
 0x11f   : > { %v926_v41 = vadd.f32 %v925_v40, %v924_v39  ;;  %v927_v42 = vpop.f32.mrb[2].mxu0  ;;  %v964_v43 = vpop.f32.mrb[0].mxu1 }
 0x120   : > { %v928_v44 = vpop.f32.mrb[3].mxu0  ;;  %v665_v46 = vpop.f32.mrb[1].mxu1 }
 0x121   : > { %v929_v47 = vadd.f32 %v928_v44, %v927_v42  ;;  %v666_v48 = vadd.f32 %v926_v41, %v665_v46  ;;  %v965_v49 = vpop.f32.mrb[2].mxu1 }
 0x122   : > { %v668_v51 = vpop.f32.mrb[3].mxu1 }
 0x123   : > { %v680_v52 = vadd.f32 %v666_v48, %v346_v45  ;;  %v669_v53 = vadd.f32 %v929_v47, %v668_v51 }
 0x125   : > { %684 = vst [vmem:[#allocation2] sm:$0xff] %v680_v52  ;;  %v681_v54 = vadd.f32 %v669_v53, %v347_v50  ;;  %v930_v55 = vpop.f32.mrb[4].mxu0 }
 0x126   : > { %v931_v56 = vpop.f32.mrb[5].mxu0 }
 0x127   : > { %685 = vst [vmem:[#allocation2 + $0x8] sm:$0xff] %v681_v54  ;;  %v932_v57 = vadd.f32 %v931_v56, %v930_v55  ;;  %v933_v58 = vpop.f32.mrb[6].mxu0 }
 0x128   : > { %v934_v60 = vpop.f32.mrb[7].mxu0 }
 0x129   : > { %v674_v61 = vadd.f32 %v964_v43, %v932_v57  ;;  %v935_v62 = vadd.f32 %v934_v60, %v933_v58  ;;  %691 = sbr.rel (%p900_p11) target bundleno = 318 (0x13e), region = 70 }
 0x12b   : > { %v682_v0 = vadd.f32 %v674_v61, %v348_v59  ;;  %v677_v1 = vadd.f32 %v965_v49, %v935_v62 }
 0x12c   : > { %v692_v3 = vld [vmem:[#allocation2] sm:$0xff] (!%p900_p11) }
 0x12d   : > { %686 = vst [vmem:[#allocation2 + $0x10] sm:$0xff] %v682_v0  ;;  %v683_v2 = vadd.f32 %v677_v1, %v349_v63  ;;  %v703_v6 = vmul.f32 (!%p900_p11), %v901_v4, %v692_v3 }
 0x12e   : > { %v693_v7 = vld [vmem:[#allocation2 + $0x8] sm:$0xff] (!%p900_p11) }
 0x12f   : > { %687 = vst [vmem:[#allocation2 + $0x18] sm:$0xff] %v683_v2  ;;  %v704_v10 = vmul.f32 (!%p900_p11), %v901_v4, %v693_v7  ;;  %v714_v13 = vadd.f32 (!%p900_p11), %v902_v5, %v703_v6 }
 0x131   : > { %v715_v14 = vadd.f32 %v902_v5, %v704_v10  ;;  %v718_v17 = vmax.f32 %v714_v13, 0.0 }
 0x133   : > { %v719_v18 = vmax.f32 %v715_v14, 0.0  ;;  %722 = vst [vmem:[%s1230_s4] sm:$0xff] %v718_v17 }
 0x134   : > { %v694_v8 = vld [vmem:[#allocation2 + $0x10] sm:$0xff] }
 0x135   : > { %v705_v11 = vmul.f32 %v901_v4, %v694_v8  ;;  %723 = vst [vmem:[%s1230_s4 + $0x8] sm:$0xff] %v719_v18 }
 0x136   : > { %v695_v9 = vld [vmem:[#allocation2 + $0x18] sm:$0xff] }
 0x137   : > { %v706_v12 = vmul.f32 %v901_v4, %v695_v9  ;;  %v716_v15 = vadd.f32 %v902_v5, %v705_v11 }
 0x139   : > { %v717_v16 = vadd.f32 %v902_v5, %v706_v12  ;;  %v720_v19 = vmax.f32 %v716_v15, 0.0 }
 0x13b   : > { %v721_v20 = vmax.f32 %v717_v16, 0.0  ;;  %724 = vst [vmem:[%s1230_s4 + $0x10] sm:$0xff] %v720_v19 }
 0x13d   : > { %725 = vst [vmem:[%s1230_s4 + $0x18] sm:$0xff] %v721_v20 }
 0x13e PF: > { %s14_s19 = sadd.s32 1, %s1079_s19   ;;  %s1231_s15 = smov %s1067_s16 }
 0x13f   : > { %p11_p12 = scmp.ge.s32.totalorder %s14_s19, 5   ;;  %s1232_s16 = smov %s1142_s23 }
 0x140   : > { %s1233_s17 = smov %s1075_s18  ;;  %s1234_s18 = smov %s1236_s20 }
 0x141   :  { %13 = sbr.rel (!%p11_p12) target bundleno = 3 (0x3), region = 120 }

// kernel: _lambda_.29
= control target key start
LH: loop header
LB: loop body
LE: loop exit
PB: predicated region body
PF: predicated region fallthrough
CT: control target
= control target key end

     0   :  { %s329_s1 = inlined_call_operand.vmem [shape: bf16[128,128], index: 1, kind: input, shape index: {}]   ;;  %s330_s0 = inlined_call_operand.vmem [shape: bf16[32,128], index: 0, kind: input, shape index: {}]   ;;  %s331_s2 = inlined_call_operand.vmem [shape: f32[1,128], index: 2, kind: input, shape index: {}]   ;;  %s332_s3 = inlined_call_operand.vmem [shape: f32[1,128], index: 3, kind: input, shape index: {}]   ;;  %s333_s4 = inlined_call_operand.vmem [shape: f32[32,128], index: 4, kind: output, shape index: {}]  }
   0x1   :  { %v246_v0 = vld [vmem:[%s329_s1] sm:$0xff]   ;;  %v247_v1 = vld [vmem:[%s329_s1 + $0x8] sm:$0xff]   ;;  %v248_v2 = vld [vmem:[%s329_s1 + $0x10] sm:$0xff]  }
   0x2   :  { %226 = vmatprep.subr.bf16.mxu0 %v246_v0  ;;  %v249_v3 = vld [vmem:[%s329_s1 + $0x18] sm:$0xff]   ;;  %v254_v4 = vld [vmem:[%s330_s0] sm:$0xff]   ;;  %v251_v6 = vld [vmem:[%s329_s1 + $0x28] sm:$0xff]  }
   0x3   :  { %227 = vmatpush3.bf16.msra.mxu0 %v246_v0  ;;  %242 = vmatprep.mubr.bf16.mxu0 %v254_v4  ;;  %v250_v5 = vld [vmem:[%s329_s1 + $0x20] sm:$0xff]   ;;  %v252_v7 = vld [vmem:[%s329_s1 + $0x30] sm:$0xff]   ;;  %v253_v8 = vld [vmem:[%s329_s1 + $0x38] sm:$0xff]  }
   0x4   :  { %228 = vmatprep.subr.bf16.mxu0 %v247_v1  ;;  %v255_v9 = vld [vmem:[%s330_s0 + $0x8] sm:$0xff]   ;;  %v214_v10 = vld [vmem:[%s331_s2] ss:$0 sm:$0xff] }
   0x5   :  { %v215_v12 = vld [vmem:[%s332_s3] ss:$0 sm:$0xff] }
   0x7   :  { %229 = vmatpush3.bf16.msra.mxu0 %v247_v1 }
   0x8   :  { %230 = vmatprep.subr.bf16.mxu0 %v248_v2 }
   0xb   :  { %231 = vmatpush3.bf16.msra.mxu0 %v248_v2 }
   0xc   :  { %232 = vmatprep.subr.bf16.mxu0 %v249_v3 }
   0xf   :  { %233 = vmatpush3.bf16.msra.mxu0 %v249_v3 }
  0x10   :  { %234 = vmatprep.subr.bf16.mxu0 %v250_v5 }
  0x13   :  { %235 = vmatpush3.bf16.msra.mxu0 %v250_v5 }
  0x14   :  { %236 = vmatprep.subr.bf16.mxu0 %v251_v6 }
  0x17   :  { %237 = vmatpush3.bf16.msra.mxu0 %v251_v6 }
  0x18   :  { %238 = vmatprep.subr.bf16.mxu0 %v252_v7 }
  0x1b   :  { %239 = vmatpush3.bf16.msra.mxu0 %v252_v7 }
  0x1c   :  { %240 = vmatprep.subr.bf16.mxu0 %v253_v8 }
  0x1f   :  { %241 = vmatpush3.bf16.msra.mxu0 %v253_v8 }
  0x22   :  { %243 = vmatmul.mubr.bf16.vlgmr.msra.gmra.mrb[0].mxu0 %v255_v9 }
  0xf5   :  { %v244_v11 = vpop.f32.mrb[0].mxu0 }
  0xf6   :  { %v183_v13 = vmul.f32 %v244_v11, %v214_v10  ;;  %v144_v14 = vpop.f32.mrb[1].mxu0 }
  0xf7   :  { %v181_v15 = vmul.f32 %v214_v10, %v144_v14  ;;  %v245_v16 = vpop.f32.mrb[2].mxu0 }
  0xf8   :  { %v194_v17 = vadd.f32 %v215_v12, %v183_v13  ;;  %v184_v18 = vmul.f32 %v245_v16, %v214_v10  ;;  %v147_v19 = vpop.f32.mrb[3].mxu0 }
  0xf9   :  { %v192_v20 = vadd.f32 %v215_v12, %v181_v15  ;;  %v182_v21 = vmul.f32 %v214_v10, %v147_v19 }
  0xfa   :  { %198 = vst [vmem:[%s333_s4 + $0x10] sm:$0xff] %v194_v17  ;;  %v195_v22 = vadd.f32 %v215_v12, %v184_v18 }
  0xfb   :  { %196 = vst [vmem:[%s333_s4] sm:$0xff] %v192_v20  ;;  %v193_v23 = vadd.f32 %v215_v12, %v182_v21 }
  0xfc   :  { %199 = vst [vmem:[%s333_s4 + $0x18] sm:$0xff] %v195_v22 }
  0xfd   :  { %197 = vst [vmem:[%s333_s4 + $0x8] sm:$0xff] %v193_v23 }

// kernel: _lambda_.35
= control target key start
LH: loop header
LB: loop body
LE: loop exit
PB: predicated region body
PF: predicated region fallthrough
CT: control target
= control target key end

     0   :  { %s1105_s15 = smov 0   ;;  %s1107_s16 = smov 0   ;;  %s1210_s0 = inlined_call_operand.vmem [shape: bf16[8,1152], index: 0, kind: input, shape index: {}]   ;;  %s1211_s1 = inlined_call_operand.vmem [shape: bf16[1152,256], index: 1, kind: input, shape index: {}]   ;;  %s1212_s2 = inlined_call_operand.vmem [shape: f32[1,256], index: 2, kind: input, shape index: {}]   ;;  %s1213_s3 = inlined_call_operand.vmem [shape: f32[1,256], index: 3, kind: input, shape index: {}]   ;;  %s1214_s4 = inlined_call_operand.vmem [shape: f32[8,256], index: 4, kind: output, shape index: {}]  }
   0x1   :  { %s1109_s17 = smov 0  }
   0x2 LB: > { %s26_s18 = sadd.s32 1, %s1072_s16  ;;  %p891_p0 = scmp.ge.s32.totalorder %s1076_s17, 1  ;;  %s1076_s17 = sphi %s1109_s17, %s14_s17   ;;  %s1072_s16 = sphi %s1107_s16, %s1216_s16   ;;  %s1068_s15 = sphi %s1105_s15, %s1215_s15  }
   0x3   : > { %p27_p1 = scmp.ge.s32.totalorder %s26_s18, 3  ;;  %p229_p2 = scmp.lt.s32.totalorder %s1076_s17, 4 }
   0x5   : > { %s1218_s18 = smov (%p27_p1, %s26_s18), 0  ;;  %p230_p3 = pnand %p891_p0, %p229_p2 }
   0x6   : > { %s281_s19 = smul.u32 (!%p230_p3), 3, %s1068_s15  ;;  %p895_p6 = scmp.ne.s32.totalorder (!%p230_p3), %s1068_s15, 0 }
   0x7   : > { %233 = sbr.rel (%p230_p3) target bundleno = 321 (0x141), region = 36 }
   0x8   : > { %s291_s20 = smul.u32 (!%p230_p3), 48, %s1068_s15  ;;  %p284_p4 = scmp.lt.s32.totalorder (!%p230_p3), %s281_s19, 8 }
   0xa   : > { %p293_p5 = scmp.lt.s32.totalorder (!%p230_p3), %s291_s20, 143 }
   0xe   : > { %s1220_s19 = smov (!%p284_p4, %s281_s19), 8  ;;  %s1222_s20 = smov (!%p293_p5, %s291_s20), 143 }
   0xf   : > { %s892_s21 = sshll.u32 %s1220_s19, 2  ;;  %s952_s25 = sshll.u32 %s1222_s20, 3  ;;  %v1078_v0 = vmov (!%p895_p6), 0.0  }
  0x10   : > { %s1130_s24 = scalar_lea.vmem %s1210_s0, %s892_s21  ;;  %s1135_s28 = scalar_lea.vmem %s1211_s1, %s952_s25  ;;  %328 = vst [vmem:[#allocation2] sm:$0xff] (!%p895_p6), %v1078_v0  ;;  %329 = vst [vmem:[#allocation2 + $0x8] sm:$0xff] (!%p895_p6), %v1078_v0 }
  0x11   : > { %327 = sbr.rel (%p895_p6) target bundleno = 24 (0x18), region = 40 }
  0x18 PF: > { %v979_v1 = vld [vmem:[%s1135_s28 + $0x4] ss:$8 sps:$4 sm:$0xff]   ;;  %v981_v2 = vld [vmem:[%s1135_s28] ss:$8 sps:$4 sm:$0xff]   ;;  %v1079_v3 = vmov 0   ;;  %p947_p7 = scmp.ne.s32.totalorder %s1068_s15, 2 }
  0x19   : > { %706 = vmatprep.mubr.bf16.mxu1 %v1079_v3  ;;  %633 = vmatprep.subr.bf16.mxu0 %v979_v1  ;;  %v982_v4 = vld [vmem:[%s1135_s28 + $0x14] ss:$8 sps:$4 sm:$0xff]   ;;  %v984_v5 = vld [vmem:[%s1135_s28 + $0x10] ss:$8 sps:$4 sm:$0xff]   ;;  %v985_v6 = vld [vmem:[%s1135_s28 + $0x24] ss:$8 sps:$4 sm:$0xff]  }
  0x1a   : > { %634 = vmatpush1.bf16.msra.mxu0 %v981_v2  ;;  %v987_v7 = vld [vmem:[%s1135_s28 + $0x20] ss:$8 sps:$4 sm:$0xff]   ;;  %v988_v8 = vld [vmem:[%s1135_s28 + $0x34] ss:$8 sps:$4 sm:$0xff]   ;;  %v990_v9 = vld [vmem:[%s1135_s28 + $0x30] ss:$8 sps:$4 sm:$0xff]  }
  0x1b   : > { %635 = vmatprep.subr.bf16.mxu0 %v982_v4  ;;  %v1003_v10 = vld [vmem:[%s1135_s28 + $0x104] ss:$8 sps:$4 sm:$0xff]   ;;  %v1005_v11 = vld [vmem:[%s1135_s28 + $0x100] ss:$8 sps:$4 sm:$0xff]   ;;  %v1009_v13 = vld [vmem:[%s1135_s28 + $0x114] ss:$8 sps:$4 sm:$0xff]   ;;  %v727_v4 = vlaneseq (!%p947_p7) }
  0x1c   : > { %v991_v12 = vld [vmem:[%s1135_s28 + $0x44] ss:$8 sps:$4 sm:$0xff]   ;;  %674 = vmatprep.subr.bf16.mxu1 %v1003_v10  ;;  %v1011_v14 = vld [vmem:[%s1135_s28 + $0x110] ss:$8 sps:$4 sm:$0xff]   ;;  %v993_v15 = vld [vmem:[%s1135_s28 + $0x40] ss:$8 sps:$4 sm:$0xff]  }
  0x1d   : > { %675 = vmatpush1.bf16.msra.mxu1 %v1005_v11  ;;  %v994_v16 = vld [vmem:[%s1135_s28 + $0x54] ss:$8 sps:$4 sm:$0xff]   ;;  %v1015_v17 = vld [vmem:[%s1135_s28 + $0x124] ss:$8 sps:$4 sm:$0xff]   ;;  %v1017_v18 = vld [vmem:[%s1135_s28 + $0x120] ss:$8 sps:$4 sm:$0xff]  }
  0x1e   : > { %636 = vmatpush1.bf16.msra.mxu0 %v984_v5  ;;  %676 = vmatprep.subr.bf16.mxu1 %v1009_v13  ;;  %v996_v19 = vld [vmem:[%s1135_s28 + $0x50] ss:$8 sps:$4 sm:$0xff]   ;;  %v1021_v20 = vld [vmem:[%s1135_s28 + $0x134] ss:$8 sps:$4 sm:$0xff]   ;;  %v997_v21 = vld [vmem:[%s1135_s28 + $0x64] ss:$8 sps:$4 sm:$0xff]  }
  0x1f   : > { %637 = vmatprep.subr.bf16.mxu0 %v985_v6  ;;  %v1023_v22 = vld [vmem:[%s1135_s28 + $0x130] ss:$8 sps:$4 sm:$0xff]   ;;  %v999_v23 = vld [vmem:[%s1135_s28 + $0x60] ss:$8 sps:$4 sm:$0xff]   ;;  %v1027_v24 = vld [vmem:[%s1135_s28 + $0x144] ss:$8 sps:$4 sm:$0xff]  }
  0x20   : > { %v1000_v25 = vld [vmem:[%s1135_s28 + $0x74] ss:$8 sps:$4 sm:$0xff]   ;;  %v1029_v26 = vld [vmem:[%s1135_s28 + $0x140] ss:$8 sps:$4 sm:$0xff]   ;;  %v1002_v27 = vld [vmem:[%s1135_s28 + $0x70] ss:$8 sps:$4 sm:$0xff]  }
  0x21   : > { %677 = vmatpush1.bf16.msra.mxu1 %v1011_v14  ;;  %v1033_v28 = vld [vmem:[%s1135_s28 + $0x154] ss:$8 sps:$4 sm:$0xff]   ;;  %v1006_v29 = vld [vmem:[%s1135_s28 + $0x84] ss:$8 sps:$4 sm:$0xff]   ;;  %v1035_v30 = vld [vmem:[%s1135_s28 + $0x150] ss:$8 sps:$4 sm:$0xff]  }
  0x22   : > { %638 = vmatpush1.bf16.msra.mxu0 %v987_v7  ;;  %678 = vmatprep.subr.bf16.mxu1 %v1015_v17  ;;  %v1008_v31 = vld [vmem:[%s1135_s28 + $0x80] ss:$8 sps:$4 sm:$0xff]   ;;  %v1039_v32 = vld [vmem:[%s1135_s28 + $0x164] ss:$8 sps:$4 sm:$0xff]   ;;  %v1012_v33 = vld [vmem:[%s1135_s28 + $0x94] ss:$8 sps:$4 sm:$0xff]  }
  0x23   : > { %639 = vmatprep.subr.bf16.mxu0 %v988_v8  ;;  %v332_v34 = vld [vmem:[%s1130_s24] sm:$0xff]  ;;  %v1014_v37 = vld [vmem:[%s1135_s28 + $0x90] ss:$8 sps:$4 sm:$0xff]   ;;  %v1045_v38 = vld [vmem:[%s1135_s28 + $0x174] ss:$8 sps:$4 sm:$0xff]   ;;  %v728_v5 = vshrl.u32 (!%p947_p7), %v727_v4, 7 }
  0x24   : > { %v897_v35 = vcombine.high %v332_v34, %v332_v34  ;;  %v1041_v36 = vld [vmem:[%s1135_s28 + $0x160] ss:$8 sps:$4 sm:$0xff]   ;;  %v1018_v39 = vld [vmem:[%s1135_s28 + $0xa4] ss:$8 sps:$4 sm:$0xff]   ;;  %v1047_v40 = vld [vmem:[%s1135_s28 + $0x170] ss:$8 sps:$4 sm:$0xff]   ;;  %v896_v53 = vcombine.low %v332_v34, %v332_v34 }
  0x25   : > { %679 = vmatpush1.bf16.msra.mxu1 %v1017_v18  ;;  %v1020_v41 = vld [vmem:[%s1135_s28 + $0xa0] ss:$8 sps:$4 sm:$0xff]   ;;  %v1024_v42 = vld [vmem:[%s1135_s28 + $0xb4] ss:$8 sps:$4 sm:$0xff]   ;;  %v1026_v44 = vld [vmem:[%s1135_s28 + $0xb0] ss:$8 sps:$4 sm:$0xff]  }
  0x26   : > { %640 = vmatpush1.bf16.msra.mxu0 %v990_v9  ;;  %680 = vmatprep.subr.bf16.mxu1 %v1021_v20  ;;  %v1051_v43 = vld [vmem:[%s1130_s24 + $0x8] ss:$0 sps:$4 sm:$0xff]   ;;  %v1030_v45 = vld [vmem:[%s1135_s28 + $0xc4] ss:$8 sps:$4 sm:$0xff]   ;;  %v1036_v47 = vld [vmem:[%s1135_s28 + $0xd4] ss:$8 sps:$4 sm:$0xff]  }
  0x27   : > { %641 = vmatprep.subr.bf16.mxu0 %v991_v12  ;;  %665 = vmatprep.mubr.bf16.mxu0 %v897_v35  ;;  %v1032_v46 = vld [vmem:[%s1135_s28 + $0xc0] ss:$8 sps:$4 sm:$0xff]   ;;  %v1038_v48 = vld [vmem:[%s1135_s28 + $0xd0] ss:$8 sps:$4 sm:$0xff]   ;;  %v1042_v49 = vld [vmem:[%s1135_s28 + $0xe4] ss:$8 sps:$4 sm:$0xff]  }
  0x28   : > { %v1044_v50 = vld [vmem:[%s1135_s28 + $0xe0] ss:$8 sps:$4 sm:$0xff]   ;;  %v1048_v51 = vld [vmem:[%s1135_s28 + $0xf4] ss:$8 sps:$4 sm:$0xff]   ;;  %v1050_v52 = vld [vmem:[%s1135_s28 + $0xf0] ss:$8 sps:$4 sm:$0xff]  }
  0x29   : > { %681 = vmatpush1.bf16.msra.mxu1 %v1023_v22  ;;  %v330_v58 = vld [vmem:[#allocation2] sm:$0xff]  ;;  %v331_v61 = vld [vmem:[#allocation2 + $0x8] sm:$0xff]  ;;  %v729_v8 = vsub.s32 (!%p947_p7), 0, %v728_v5  ;;  %v733_v9 = vsub.s32 (!%p947_p7), 1, %v728_v5 }
  0x2a   : > { %642 = vmatpush1.bf16.msra.mxu0 %v993_v15  ;;  %682 = vmatprep.subr.bf16.mxu1 %v1027_v24  ;;  %v725_v6 = vld [vmem:[%s1212_s2] sm:$0x3] (!%p947_p7) }
  0x2b   : > { %643 = vmatprep.subr.bf16.mxu0 %v994_v16  ;;  %v739_v7 = vld [vmem:[%s1213_s3] sm:$0x3] (!%p947_p7)  ;;  %v730_v12 = vrot.slane (!%p947_p7), %v725_v6, %v729_v8  ;;  %v734_v14 = vrot.slane (!%p947_p7), %v725_v6, %v733_v9 }
  0x2c   : > { %v744_v13 = vrot.slane (!%p947_p7), %v739_v7, %v729_v8  ;;  %v748_v15 = vrot.slane (!%p947_p7), %v739_v7, %v733_v9 }
  0x2d   : > { %683 = vmatpush1.bf16.msra.mxu1 %v1029_v26 }
  0x2e   : > { %644 = vmatpush1.bf16.msra.mxu0 %v996_v19  ;;  %684 = vmatprep.subr.bf16.mxu1 %v1033_v28 }
  0x2f   : > { %645 = vmatprep.subr.bf16.mxu0 %v997_v21 }
  0x31   : > { %685 = vmatpush1.bf16.msra.mxu1 %v1035_v30 }
  0x32   : > { %646 = vmatpush1.bf16.msra.mxu0 %v999_v23  ;;  %686 = vmatprep.subr.bf16.mxu1 %v1039_v32 }
  0x33   : > { %647 = vmatprep.subr.bf16.mxu0 %v1000_v25 }
  0x35   : > { %687 = vmatpush1.bf16.msra.mxu1 %v1041_v36 }
  0x36   : > { %648 = vmatpush1.bf16.msra.mxu0 %v1002_v27  ;;  %688 = vmatprep.subr.bf16.mxu1 %v1045_v38 }
  0x37   : > { %649 = vmatprep.subr.bf16.mxu0 %v1006_v29 }
  0x39   : > { %689 = vmatpush1.bf16.msra.mxu1 %v1047_v40 }
  0x3a   : > { %650 = vmatpush1.bf16.msra.mxu0 %v1008_v31 }
  0x3b   : > { %651 = vmatprep.subr.bf16.mxu0 %v1012_v33 }
  0x3c   : > { %707 = vmatmul.mubr.bf16.vlgmr.msra.gmra.mrb[0].mxu1 %v1051_v43 }
  0x3e   : > { %652 = vmatpush1.bf16.msra.mxu0 %v1014_v37 }
  0x3f   : > { %653 = vmatprep.subr.bf16.mxu0 %v1018_v39 }
  0x42   : > { %654 = vmatpush1.bf16.msra.mxu0 %v1020_v41 }
  0x43   : > { %655 = vmatprep.subr.bf16.mxu0 %v1024_v42 }
  0x46   : > { %656 = vmatpush1.bf16.msra.mxu0 %v1026_v44 }
  0x47   : > { %657 = vmatprep.subr.bf16.mxu0 %v1030_v45 }
  0x4a   : > { %658 = vmatpush1.bf16.msra.mxu0 %v1032_v46 }
  0x4b   : > { %659 = vmatprep.subr.bf16.mxu0 %v1036_v47 }
  0x4e   : > { %660 = vmatpush1.bf16.msra.mxu0 %v1038_v48 }
  0x4f   : > { %661 = vmatprep.subr.bf16.mxu0 %v1042_v49 }
  0x52   : > { %662 = vmatpush1.bf16.msra.mxu0 %v1044_v50 }
  0x53   : > { %663 = vmatprep.subr.bf16.mxu0 %v1048_v51 }
  0x56   : > { %664 = vmatpush1.bf16.msra.mxu0 %v1050_v52 }
  0x59   : > { %666 = vmatmul.mubr.bf16.vlgmr.msra.gmra.mrb[0].mxu0 %v896_v53 }
 0x10f   : > { %v708_v54 = vpop.f32.mrb[0].mxu1 }
 0x110   : > { %v710_v55 = vpop.f32.mrb[1].mxu1 }
 0x111   : > { %v712_v56 = vpop.f32.mrb[2].mxu1 }
 0x112   : > { %v713_v57 = vpop.f32.mrb[3].mxu1 }
 0x12c   : > { %v667_v59 = vpop.f32.mrb[0].mxu0  ;;  %722 = sbr.rel (%p947_p7) target bundleno = 321 (0x141), region = 44 }
 0x12d   : > { %v709_v60 = vadd.f32 %v708_v54, %v667_v59  ;;  %v669_v62 = vpop.f32.mrb[1].mxu0 }
 0x12e   : > { %v711_v63 = vadd.f32 %v710_v55, %v669_v62  ;;  %v671_v0 = vpop.f32.mrb[2].mxu0 }
 0x12f   : > { %v715_v1 = vadd.f32 %v709_v60, %v330_v58  ;;  %v672_v2 = vpop.f32.mrb[3].mxu0 }
 0x130   : > { %v716_v3 = vadd.f32 %v711_v63, %v331_v61 }
 0x131   : > { %717 = vst [vmem:[#allocation2] sm:$0xff] %v715_v1 }
 0x132   : > { %718 = vst [vmem:[#allocation2 + $0x8] sm:$0xff] %v716_v3 }
 0x138   : > { %v723_v10 = vld [vmem:[#allocation2] sm:$0xff] }
 0x139   : > { %v724_v11 = vld [vmem:[#allocation2 + $0x8] sm:$0xff]  ;;  %v737_v16 = vmul.f32 %v730_v12, %v723_v10 }
 0x13a   : > { %v738_v17 = vmul.f32 %v734_v14, %v724_v11 }
 0x13b   : > { %v751_v18 = vadd.f32 %v744_v13, %v737_v16 }
 0x13c   : > { %v752_v19 = vadd.f32 %v748_v15, %v738_v17 }
 0x13d   : > { %v753_v20 = vmax.f32 %v751_v18, 0.0 }
 0x13e   : > { %v754_v21 = vmax.f32 %v752_v19, 0.0 }
 0x13f   : > { %755 = vst [vmem:[%s1214_s4] sm:$0xff] %v753_v20 }
 0x140   : > { %756 = vst [vmem:[%s1214_s4 + $0x8] sm:$0xff] %v754_v21 }
 0x141 PF: > { %s14_s17 = sadd.s32 1, %s1076_s17   ;;  %s1215_s15 = smov %s1072_s16 }
 0x142   : > { %p11_p8 = scmp.ge.s32.totalorder %s14_s17, 5   ;;  %s1216_s16 = smov %s1218_s18 }
 0x144   :  { %13 = sbr.rel (!%p11_p8) target bundleno = 2 (0x2), region = 83 }

// kernel: _lambda_.36
= control target key start
LH: loop header
LB: loop body
LE: loop exit
PB: predicated region body
PF: predicated region fallthrough
CT: control target
= control target key end

     0   :  { %s1662_s18 = smov 0   ;;  %s1664_s19 = smov 0   ;;  %s1828_s0 = inlined_call_operand.vmem [shape: bf16[8,2304], index: 0, kind: input, shape index: {}]   ;;  %s1829_s1 = inlined_call_operand.vmem [shape: bf16[2304,256], index: 1, kind: input, shape index: {}]   ;;  %s1830_s2 = inlined_call_operand.vmem [shape: f32[1,256], index: 2, kind: input, shape index: {}]   ;;  %s1831_s3 = inlined_call_operand.vmem [shape: f32[1,256], index: 3, kind: input, shape index: {}]   ;;  %s1832_s4 = inlined_call_operand.vmem [shape: f32[8,256], index: 4, kind: input, shape index: {}]   ;;  %s1833_s5 = inlined_call_operand.vmem [shape: f32[8,256], index: 5, kind: output, shape index: {}]  }
   0x1   :  { %s1666_s20 = smov 0  }
   0x2 LB: > { %s27_s21 = sadd.s32 1, %s1625_s19  ;;  %p1319_p0 = scmp.ge.s32.totalorder %s1629_s20, 1  ;;  %s1629_s20 = sphi %s1666_s20, %s15_s20   ;;  %s1625_s19 = sphi %s1664_s19, %s1835_s19   ;;  %s1621_s18 = sphi %s1662_s18, %s1834_s18  }
   0x3   : > { %p28_p1 = scmp.ge.s32.totalorder %s27_s21, 3  ;;  %p271_p2 = scmp.lt.s32.totalorder %s1629_s20, 4 }
   0x5   : > { %s1837_s21 = smov (%p28_p1, %s27_s21), 0  ;;  %p272_p3 = pnand %p1319_p0, %p271_p2 }
   0x6   : > { %s334_s22 = smul.u32 (!%p272_p3), 6, %s1621_s18  ;;  %p1323_p6 = scmp.ne.s32.totalorder (!%p272_p3), %s1621_s18, 0 }
   0x7   : > { %275 = sbr.rel (%p272_p3) target bundleno = 387 (0x183), region = 40 }
   0x8   : > { %s344_s23 = smul.u32 (!%p272_p3), 96, %s1621_s18  ;;  %p337_p4 = scmp.lt.s32.totalorder (!%p272_p3), %s334_s22, 17 }
   0xa   : > { %p346_p5 = scmp.lt.s32.totalorder (!%p272_p3), %s344_s23, 287 }
   0xe   : > { %s1839_s22 = smov (!%p337_p4, %s334_s22), 17  ;;  %s1841_s23 = smov (!%p346_p5, %s344_s23), 287 }
   0xf   : > { %s1320_s24 = sshll.u32 %s1839_s22, 2  ;;  %s1431_s28 = sshll.u32 %s1841_s23, 3  ;;  %v1631_v0 = vmov (!%p1323_p6), 0.0  }
  0x10   : > { %s1687_s27 = scalar_lea.vmem %s1828_s0, %s1320_s24  ;;  %s1692_s6 = scalar_lea.vmem %s1829_s1, %s1431_s28  ;;  %390 = vst [vmem:[#allocation2] sm:$0xff] (!%p1323_p6), %v1631_v0  ;;  %391 = vst [vmem:[#allocation2 + $0x8] sm:$0xff] (!%p1323_p6), %v1631_v0 }
  0x11   : > { %389 = sbr.rel (%p1323_p6) target bundleno = 24 (0x18), region = 44 }
  0x18 PF: > { %v1457_v1 = vld [vmem:[%s1692_s6 + $0x4] ss:$8 sps:$4 sm:$0xff]   ;;  %v1461_v3 = vld [vmem:[%s1692_s6] ss:$8 sps:$4 sm:$0xff]   ;;  %v1463_v5 = vld [vmem:[%s1692_s6 + $0x14] ss:$8 sps:$4 sm:$0xff]  }
  0x19   : > { %v1459_v2 = vld [vmem:[%s1692_s6 + $0x104] ss:$8 sps:$4 sm:$0xff]   ;;  %994 = vmatprep.subr.bf16.mxu0 %v1457_v1  ;;  %v1462_v4 = vld [vmem:[%s1692_s6 + $0x100] ss:$8 sps:$4 sm:$0xff]   ;;  %v1465_v6 = vld [vmem:[%s1692_s6 + $0x114] ss:$8 sps:$4 sm:$0xff]  }
  0x1a   : > { %1035 = vmatprep.subr.bf16.mxu1 %v1459_v2  ;;  %995 = vmatpush1.bf16.msra.mxu0 %v1461_v3  ;;  %v1467_v7 = vld [vmem:[%s1692_s6 + $0x10] ss:$8 sps:$4 sm:$0xff]   ;;  %v1469_v9 = vld [vmem:[%s1692_s6 + $0x24] ss:$8 sps:$4 sm:$0xff]   ;;  %v1473_v11 = vld [vmem:[%s1692_s6 + $0x20] ss:$8 sps:$4 sm:$0xff]  }
  0x1b   : > { %1036 = vmatpush1.bf16.msra.mxu1 %v1462_v4  ;;  %996 = vmatprep.subr.bf16.mxu0 %v1463_v5  ;;  %v1468_v8 = vld [vmem:[%s1692_s6 + $0x110] ss:$8 sps:$4 sm:$0xff]   ;;  %v1471_v10 = vld [vmem:[%s1692_s6 + $0x124] ss:$8 sps:$4 sm:$0xff]   ;;  %v1474_v12 = vld [vmem:[%s1692_s6 + $0x120] ss:$8 sps:$4 sm:$0xff]  }
  0x1c   : > { %1037 = vmatprep.subr.bf16.mxu1 %v1465_v6  ;;  %v1475_v13 = vld [vmem:[%s1692_s6 + $0x34] ss:$8 sps:$4 sm:$0xff]   ;;  %v1479_v15 = vld [vmem:[%s1692_s6 + $0x30] ss:$8 sps:$4 sm:$0xff]   ;;  %v1481_v17 = vld [vmem:[%s1692_s6 + $0x44] ss:$8 sps:$4 sm:$0xff]  }
  0x1d   : > { %v1477_v14 = vld [vmem:[%s1692_s6 + $0x134] ss:$8 sps:$4 sm:$0xff]   ;;  %v1480_v16 = vld [vmem:[%s1692_s6 + $0x130] ss:$8 sps:$4 sm:$0xff]   ;;  %v1483_v18 = vld [vmem:[%s1692_s6 + $0x144] ss:$8 sps:$4 sm:$0xff]  }
  0x1e   : > { %997 = vmatpush1.bf16.msra.mxu0 %v1467_v7  ;;  %v1485_v19 = vld [vmem:[%s1692_s6 + $0x40] ss:$8 sps:$4 sm:$0xff]   ;;  %v1487_v21 = vld [vmem:[%s1692_s6 + $0x54] ss:$8 sps:$4 sm:$0xff]   ;;  %v1491_v23 = vld [vmem:[%s1692_s6 + $0x50] ss:$8 sps:$4 sm:$0xff]  }
  0x1f   : > { %1038 = vmatpush1.bf16.msra.mxu1 %v1468_v8  ;;  %998 = vmatprep.subr.bf16.mxu0 %v1469_v9  ;;  %v1486_v20 = vld [vmem:[%s1692_s6 + $0x140] ss:$8 sps:$4 sm:$0xff]   ;;  %v1489_v22 = vld [vmem:[%s1692_s6 + $0x154] ss:$8 sps:$4 sm:$0xff]   ;;  %v1492_v24 = vld [vmem:[%s1692_s6 + $0x150] ss:$8 sps:$4 sm:$0xff]  }
  0x20   : > { %1039 = vmatprep.subr.bf16.mxu1 %v1471_v10  ;;  %v1493_v25 = vld [vmem:[%s1692_s6 + $0x64] ss:$8 sps:$4 sm:$0xff]   ;;  %v1497_v27 = vld [vmem:[%s1692_s6 + $0x60] ss:$8 sps:$4 sm:$0xff]   ;;  %v1499_v29 = vld [vmem:[%s1692_s6 + $0x74] ss:$8 sps:$4 sm:$0xff]  }
  0x21   : > { %v1495_v26 = vld [vmem:[%s1692_s6 + $0x164] ss:$8 sps:$4 sm:$0xff]   ;;  %v1498_v28 = vld [vmem:[%s1692_s6 + $0x160] ss:$8 sps:$4 sm:$0xff]   ;;  %v1501_v30 = vld [vmem:[%s1692_s6 + $0x174] ss:$8 sps:$4 sm:$0xff]  }
  0x22   : > { %999 = vmatpush1.bf16.msra.mxu0 %v1473_v11  ;;  %v1503_v31 = vld [vmem:[%s1692_s6 + $0x70] ss:$8 sps:$4 sm:$0xff]   ;;  %v1505_v33 = vld [vmem:[%s1692_s6 + $0x84] ss:$8 sps:$4 sm:$0xff]   ;;  %v1509_v35 = vld [vmem:[%s1692_s6 + $0x80] ss:$8 sps:$4 sm:$0xff]  }
  0x23   : > { %1040 = vmatpush1.bf16.msra.mxu1 %v1474_v12  ;;  %1000 = vmatprep.subr.bf16.mxu0 %v1475_v13  ;;  %v1504_v32 = vld [vmem:[%s1692_s6 + $0x170] ss:$8 sps:$4 sm:$0xff]   ;;  %v1507_v34 = vld [vmem:[%s1692_s6 + $0x184] ss:$8 sps:$4 sm:$0xff]   ;;  %v1510_v36 = vld [vmem:[%s1692_s6 + $0x180] ss:$8 sps:$4 sm:$0xff]  }
  0x24   : > { %1041 = vmatprep.subr.bf16.mxu1 %v1477_v14  ;;  %v1511_v37 = vld [vmem:[%s1692_s6 + $0x94] ss:$8 sps:$4 sm:$0xff]   ;;  %v1515_v39 = vld [vmem:[%s1692_s6 + $0x90] ss:$8 sps:$4 sm:$0xff]   ;;  %v1517_v41 = vld [vmem:[%s1692_s6 + $0xa4] ss:$8 sps:$4 sm:$0xff]  }
  0x25   : > { %v1513_v38 = vld [vmem:[%s1692_s6 + $0x194] ss:$8 sps:$4 sm:$0xff]   ;;  %v1516_v40 = vld [vmem:[%s1692_s6 + $0x190] ss:$8 sps:$4 sm:$0xff]   ;;  %v1519_v42 = vld [vmem:[%s1692_s6 + $0x1a4] ss:$8 sps:$4 sm:$0xff]  }
  0x26   : > { %1001 = vmatpush1.bf16.msra.mxu0 %v1479_v15  ;;  %v1521_v43 = vld [vmem:[%s1692_s6 + $0xa0] ss:$8 sps:$4 sm:$0xff]   ;;  %v1523_v45 = vld [vmem:[%s1692_s6 + $0xb4] ss:$8 sps:$4 sm:$0xff]   ;;  %v1527_v50 = vld [vmem:[%s1692_s6 + $0xb0] ss:$8 sps:$4 sm:$0xff]  }
  0x27   : > { %1042 = vmatpush1.bf16.msra.mxu1 %v1480_v16  ;;  %1002 = vmatprep.subr.bf16.mxu0 %v1481_v17  ;;  %v1522_v44 = vld [vmem:[%s1692_s6 + $0x1a0] ss:$8 sps:$4 sm:$0xff]   ;;  %v1525_v46 = vld [vmem:[%s1692_s6 + $0x1b4] ss:$8 sps:$4 sm:$0xff]   ;;  %v1528_v51 = vld [vmem:[%s1692_s6 + $0x1b0] ss:$8 sps:$4 sm:$0xff]  }
  0x28   : > { %1043 = vmatprep.subr.bf16.mxu1 %v1483_v18  ;;  %v394_v47 = vld [vmem:[%s1687_s27] sm:$0xff]  ;;  %v395_v49 = vld [vmem:[%s1687_s27 + $0x8] sm:$0xff]  ;;  %v1535_v57 = vld [vmem:[%s1692_s6 + $0xd4] ss:$8 sps:$4 sm:$0xff]   ;;  %p1426_p7 = scmp.ne.s32.totalorder %s1621_s18, 2 }
  0x29   : > { %v1325_v48 = vcombine.high %v394_v47, %v394_v47  ;;  %v1327_v52 = vcombine.high %v395_v49, %v395_v49  ;;  %v1529_v53 = vld [vmem:[%s1692_s6 + $0xc4] ss:$8 sps:$4 sm:$0xff]   ;;  %v1533_v55 = vld [vmem:[%s1692_s6 + $0xc0] ss:$8 sps:$4 sm:$0xff]   ;;  %v1537_v58 = vld [vmem:[%s1692_s6 + $0x1d4] ss:$8 sps:$4 sm:$0xff]   ;;  %v1324_v6 = vcombine.low %v394_v47, %v394_v47  ;;  %v1326_v7 = vcombine.low %v395_v49, %v395_v49 }
  0x2a   : > { %1003 = vmatpush1.bf16.msra.mxu0 %v1485_v19  ;;  %v1531_v54 = vld [vmem:[%s1692_s6 + $0x1c4] ss:$8 sps:$4 sm:$0xff]   ;;  %v1534_v56 = vld [vmem:[%s1692_s6 + $0x1c0] ss:$8 sps:$4 sm:$0xff]   ;;  %v1539_v59 = vld [vmem:[%s1692_s6 + $0xd0] ss:$8 sps:$4 sm:$0xff]  }
  0x2b   : > { %1044 = vmatpush1.bf16.msra.mxu1 %v1486_v20  ;;  %1004 = vmatprep.subr.bf16.mxu0 %v1487_v21  ;;  %v1540_v60 = vld [vmem:[%s1692_s6 + $0x1d0] ss:$8 sps:$4 sm:$0xff]   ;;  %v1541_v61 = vld [vmem:[%s1692_s6 + $0xe4] ss:$8 sps:$4 sm:$0xff]   ;;  %v1545_v63 = vld [vmem:[%s1692_s6 + $0xe0] ss:$8 sps:$4 sm:$0xff]  }
  0x2c   : > { %1045 = vmatprep.subr.bf16.mxu1 %v1489_v22  ;;  %1026 = vmatprep.mubr.bf16.mxu0 %v1325_v48  ;;  %v1543_v62 = vld [vmem:[%s1692_s6 + $0x1e4] ss:$8 sps:$4 sm:$0xff]   ;;  %v1546_v0 = vld [vmem:[%s1692_s6 + $0x1e0] ss:$8 sps:$4 sm:$0xff]   ;;  %v1547_v1 = vld [vmem:[%s1692_s6 + $0xf4] ss:$8 sps:$4 sm:$0xff]  }
  0x2d   : > { %1067 = vmatprep.mubr.bf16.mxu1 %v1327_v52  ;;  %v1549_v2 = vld [vmem:[%s1692_s6 + $0x1f4] ss:$8 sps:$4 sm:$0xff]   ;;  %v1551_v3 = vld [vmem:[%s1692_s6 + $0xf0] ss:$8 sps:$4 sm:$0xff]   ;;  %v1559_v5 = vld [vmem:[%s1692_s6 + $0x204] ss:$8 sps:$4 sm:$0xff]  }
  0x2e   : > { %1005 = vmatpush1.bf16.msra.mxu0 %v1491_v23  ;;  %v1552_v4 = vld [vmem:[%s1692_s6 + $0x1f0] ss:$8 sps:$4 sm:$0xff]   ;;  %v1557_v8 = vld [vmem:[%s1692_s6 + $0x200] ss:$8 sps:$4 sm:$0xff]   ;;  %v1562_v10 = vld [vmem:[%s1692_s6 + $0x214] ss:$8 sps:$4 sm:$0xff]  }
  0x2f   : > { %1046 = vmatpush1.bf16.msra.mxu1 %v1492_v24  ;;  %1006 = vmatprep.subr.bf16.mxu0 %v1493_v25  ;;  %v1764_v9 = vld [vmem:[%s1687_s27 + $0x10] sm:$0xff]  ;;  %v1565_v13 = vld [vmem:[%s1692_s6 + $0x224] ss:$8 sps:$4 sm:$0xff]   ;;  %v1563_v14 = vld [vmem:[%s1692_s6 + $0x220] ss:$8 sps:$4 sm:$0xff]  }
  0x30   : > { %1047 = vmatprep.subr.bf16.mxu1 %v1495_v26  ;;  %v1329_v11 = vcombine.high %v1764_v9, %v1764_v9  ;;  %v1560_v12 = vld [vmem:[%s1692_s6 + $0x210] ss:$8 sps:$4 sm:$0xff]   ;;  %v1568_v15 = vld [vmem:[%s1692_s6 + $0x234] ss:$8 sps:$4 sm:$0xff]   ;;  %v1571_v17 = vld [vmem:[%s1692_s6 + $0x244] ss:$8 sps:$4 sm:$0xff]  }
  0x31   : > { %v1566_v16 = vld [vmem:[%s1692_s6 + $0x230] ss:$8 sps:$4 sm:$0xff]   ;;  %v1569_v18 = vld [vmem:[%s1692_s6 + $0x240] ss:$8 sps:$4 sm:$0xff]   ;;  %v1574_v19 = vld [vmem:[%s1692_s6 + $0x254] ss:$8 sps:$4 sm:$0xff]  }
  0x32   : > { %1007 = vmatpush1.bf16.msra.mxu0 %v1497_v27  ;;  %v1572_v20 = vld [vmem:[%s1692_s6 + $0x250] ss:$8 sps:$4 sm:$0xff]   ;;  %v1577_v21 = vld [vmem:[%s1692_s6 + $0x264] ss:$8 sps:$4 sm:$0xff]   ;;  %v1575_v22 = vld [vmem:[%s1692_s6 + $0x260] ss:$8 sps:$4 sm:$0xff]  }
  0x33   : > { %1048 = vmatpush1.bf16.msra.mxu1 %v1498_v28  ;;  %1008 = vmatprep.subr.bf16.mxu0 %v1499_v29  ;;  %v1580_v23 = vld [vmem:[%s1692_s6 + $0x274] ss:$8 sps:$4 sm:$0xff]   ;;  %v1578_v24 = vld [vmem:[%s1692_s6 + $0x270] ss:$8 sps:$4 sm:$0xff]   ;;  %v1583_v25 = vld [vmem:[%s1692_s6 + $0x284] ss:$8 sps:$4 sm:$0xff]  }
  0x34   : > { %1049 = vmatprep.subr.bf16.mxu1 %v1501_v30  ;;  %v1581_v26 = vld [vmem:[%s1692_s6 + $0x280] ss:$8 sps:$4 sm:$0xff]   ;;  %v1586_v27 = vld [vmem:[%s1692_s6 + $0x294] ss:$8 sps:$4 sm:$0xff]   ;;  %v1584_v28 = vld [vmem:[%s1692_s6 + $0x290] ss:$8 sps:$4 sm:$0xff]  }
  0x35   : > { %v1589_v29 = vld [vmem:[%s1692_s6 + $0x2a4] ss:$8 sps:$4 sm:$0xff]   ;;  %v1587_v30 = vld [vmem:[%s1692_s6 + $0x2a0] ss:$8 sps:$4 sm:$0xff]  }
  0x36   : > { %1009 = vmatpush1.bf16.msra.mxu0 %v1503_v31  ;;  %v1592_v31 = vld [vmem:[%s1692_s6 + $0x2b4] ss:$8 sps:$4 sm:$0xff]   ;;  %v392_v52 = vld [vmem:[#allocation2] sm:$0xff] }
  0x37   : > { %1050 = vmatpush1.bf16.msra.mxu1 %v1504_v32  ;;  %1010 = vmatprep.subr.bf16.mxu0 %v1505_v33  ;;  %v1590_v32 = vld [vmem:[%s1692_s6 + $0x2b0] ss:$8 sps:$4 sm:$0xff]   ;;  %v1595_v33 = vld [vmem:[%s1692_s6 + $0x2c4] ss:$8 sps:$4 sm:$0xff]  }
  0x38   : > { %1051 = vmatprep.subr.bf16.mxu1 %v1507_v34  ;;  %v1593_v34 = vld [vmem:[%s1692_s6 + $0x2c0] ss:$8 sps:$4 sm:$0xff]  }
  0x3a   : > { %1011 = vmatpush1.bf16.msra.mxu0 %v1509_v35  ;;  %v1598_v35 = vld [vmem:[%s1692_s6 + $0x2d4] ss:$8 sps:$4 sm:$0xff]  }
  0x3b   : > { %1052 = vmatpush1.bf16.msra.mxu1 %v1510_v36  ;;  %1012 = vmatprep.subr.bf16.mxu0 %v1511_v37  ;;  %v1596_v36 = vld [vmem:[%s1692_s6 + $0x2d0] ss:$8 sps:$4 sm:$0xff]   ;;  %v1601_v37 = vld [vmem:[%s1692_s6 + $0x2e4] ss:$8 sps:$4 sm:$0xff]  }
  0x3c   : > { %1053 = vmatprep.subr.bf16.mxu1 %v1513_v38  ;;  %v1599_v38 = vld [vmem:[%s1692_s6 + $0x2e0] ss:$8 sps:$4 sm:$0xff]  }
  0x3e   : > { %1013 = vmatpush1.bf16.msra.mxu0 %v1515_v39  ;;  %v1604_v39 = vld [vmem:[%s1692_s6 + $0x2f4] ss:$8 sps:$4 sm:$0xff]  }
  0x3f   : > { %1054 = vmatpush1.bf16.msra.mxu1 %v1516_v40  ;;  %1014 = vmatprep.subr.bf16.mxu0 %v1517_v41  ;;  %v1602_v40 = vld [vmem:[%s1692_s6 + $0x2f0] ss:$8 sps:$4 sm:$0xff]   ;;  %v1328_v41 = vcombine.low %v1764_v9, %v1764_v9 }
  0x40   : > { %1055 = vmatprep.subr.bf16.mxu1 %v1519_v42 }
  0x42   : > { %1015 = vmatpush1.bf16.msra.mxu0 %v1521_v43 }
  0x43   : > { %1056 = vmatpush1.bf16.msra.mxu1 %v1522_v44  ;;  %1016 = vmatprep.subr.bf16.mxu0 %v1523_v45 }
  0x44   : > { %1057 = vmatprep.subr.bf16.mxu1 %v1525_v46 }
  0x46   : > { %1017 = vmatpush1.bf16.msra.mxu0 %v1527_v50 }
  0x47   : > { %1058 = vmatpush1.bf16.msra.mxu1 %v1528_v51  ;;  %1018 = vmatprep.subr.bf16.mxu0 %v1529_v53 }
  0x48   : > { %1059 = vmatprep.subr.bf16.mxu1 %v1531_v54 }
  0x4a   : > { %1019 = vmatpush1.bf16.msra.mxu0 %v1533_v55  ;;  %v393_v55 = vld [vmem:[#allocation2 + $0x8] sm:$0xff] }
  0x4b   : > { %1060 = vmatpush1.bf16.msra.mxu1 %v1534_v56  ;;  %1020 = vmatprep.subr.bf16.mxu0 %v1535_v57 }
  0x4c   : > { %1061 = vmatprep.subr.bf16.mxu1 %v1537_v58 }
  0x4e   : > { %1021 = vmatpush1.bf16.msra.mxu0 %v1539_v59 }
  0x4f   : > { %1062 = vmatpush1.bf16.msra.mxu1 %v1540_v60  ;;  %1022 = vmatprep.subr.bf16.mxu0 %v1541_v61 }
  0x50   : > { %1063 = vmatprep.subr.bf16.mxu1 %v1543_v62  ;;  %v1129_v62 = vlaneseq (!%p1426_p7) }
  0x52   : > { %1023 = vmatpush1.bf16.msra.mxu0 %v1545_v63  ;;  %v1130_v63 = vshrl.u32 (!%p1426_p7), %v1129_v62, 7 }
  0x53   : > { %1064 = vmatpush1.bf16.msra.mxu1 %v1546_v0  ;;  %1024 = vmatprep.subr.bf16.mxu0 %v1547_v1  ;;  %v1127_v0 = vld [vmem:[%s1830_s2] sm:$0x3] (!%p1426_p7) }
  0x54   : > { %1065 = vmatprep.subr.bf16.mxu1 %v1549_v2  ;;  %v1141_v1 = vld [vmem:[%s1831_s3] sm:$0x3] (!%p1426_p7)  ;;  %v1131_v2 = vsub.s32 (!%p1426_p7), 0, %v1130_v63 }
  0x56   : > { %1025 = vmatpush1.bf16.msra.mxu0 %v1551_v3  ;;  %v1135_v3 = vsub.s32 (!%p1426_p7), 1, %v1130_v63 }
  0x57   : > { %1066 = vmatpush1.bf16.msra.mxu1 %v1552_v4  ;;  %1076 = vmatprep.subr.bf16.mxu0 %v1559_v5 }
  0x58   : > { %v1150_v9 = vrot.slane (!%p1426_p7), %v1141_v1, %v1135_v3 }
  0x59   : > { %1027 = vmatmul.mubr.bf16.vlgmr.msra.gmra.mrb[0].mxu0 %v1324_v6  ;;  %v1132_v6 = vrot.slane (!%p1426_p7), %v1127_v0, %v1131_v2 }
  0x5a   : > { %1068 = vmatmul.mubr.bf16.vlgmr.msra.gmra.mrb[0].mxu1 %v1326_v7  ;;  %1077 = vmatpush1.bf16.msra.mxu0 %v1557_v8  ;;  %v1146_v7 = vrot.slane (!%p1426_p7), %v1141_v1, %v1131_v2  ;;  %v1136_v8 = vrot.slane (!%p1426_p7), %v1127_v0, %v1135_v3 }
  0x5b   : > { %1108 = vmatprep.mubr.bf16.mxu0 %v1329_v11  ;;  %1078 = vmatprep.subr.bf16.mxu0 %v1562_v10 }
  0x5e   : > { %1079 = vmatpush1.bf16.msra.mxu0 %v1560_v12  ;;  %v1155_v12 = vld [vmem:[%s1832_s4] sm:$0xff] (!%p1426_p7) }
  0x5f   : > { %1080 = vmatprep.subr.bf16.mxu0 %v1565_v13  ;;  %v1156_v13 = vld [vmem:[%s1832_s4 + $0x8] sm:$0xff] (!%p1426_p7) }
  0x62   : > { %1081 = vmatpush1.bf16.msra.mxu0 %v1563_v14 }
  0x63   : > { %1082 = vmatprep.subr.bf16.mxu0 %v1568_v15 }
  0x66   : > { %1083 = vmatpush1.bf16.msra.mxu0 %v1566_v16 }
  0x67   : > { %1084 = vmatprep.subr.bf16.mxu0 %v1571_v17 }
  0x6a   : > { %1085 = vmatpush1.bf16.msra.mxu0 %v1569_v18 }
  0x6b   : > { %1086 = vmatprep.subr.bf16.mxu0 %v1574_v19 }
  0x6e   : > { %1087 = vmatpush1.bf16.msra.mxu0 %v1572_v20 }
  0x6f   : > { %1088 = vmatprep.subr.bf16.mxu0 %v1577_v21 }
  0x72   : > { %1089 = vmatpush1.bf16.msra.mxu0 %v1575_v22 }
  0x73   : > { %1090 = vmatprep.subr.bf16.mxu0 %v1580_v23 }
  0x76   : > { %1091 = vmatpush1.bf16.msra.mxu0 %v1578_v24 }
  0x77   : > { %1092 = vmatprep.subr.bf16.mxu0 %v1583_v25 }
  0x7a   : > { %1093 = vmatpush1.bf16.msra.mxu0 %v1581_v26 }
  0x7b   : > { %1094 = vmatprep.subr.bf16.mxu0 %v1586_v27 }
  0x7e   : > { %1095 = vmatpush1.bf16.msra.mxu0 %v1584_v28 }
  0x7f   : > { %1096 = vmatprep.subr.bf16.mxu0 %v1589_v29 }
  0x82   : > { %1097 = vmatpush1.bf16.msra.mxu0 %v1587_v30 }
  0x83   : > { %1098 = vmatprep.subr.bf16.mxu0 %v1592_v31 }
  0x86   : > { %1099 = vmatpush1.bf16.msra.mxu0 %v1590_v32 }
  0x87   : > { %1100 = vmatprep.subr.bf16.mxu0 %v1595_v33 }
  0x8a   : > { %1101 = vmatpush1.bf16.msra.mxu0 %v1593_v34 }
  0x8b   : > { %1102 = vmatprep.subr.bf16.mxu0 %v1598_v35 }
  0x8e   : > { %1103 = vmatpush1.bf16.msra.mxu0 %v1596_v36 }
  0x8f   : > { %1104 = vmatprep.subr.bf16.mxu0 %v1601_v37 }
  0x92   : > { %1105 = vmatpush1.bf16.msra.mxu0 %v1599_v38 }
  0x93   : > { %1106 = vmatprep.subr.bf16.mxu0 %v1604_v39 }
  0x96   : > { %1107 = vmatpush1.bf16.msra.mxu0 %v1602_v40 }
  0x99   : > { %1109 = vmatmul.mubr.bf16.vlgmr.msra.gmra.mrb[4].mxu0 %v1328_v41 }
 0x12c   : > { %v1028_v42 = vpop.f32.mrb[0].mxu0 }
 0x12d   : > { %v1069_v43 = vpop.f32.mrb[0].mxu1  ;;  %v1030_v45 = vpop.f32.mrb[1].mxu0 }
 0x12e   : > { %v1070_v44 = vadd.f32 %v1069_v43, %v1028_v42  ;;  %v1071_v46 = vpop.f32.mrb[1].mxu1  ;;  %v1032_v48 = vpop.f32.mrb[2].mxu0 }
 0x12f   : > { %v1072_v47 = vadd.f32 %v1071_v46, %v1030_v45  ;;  %v1073_v49 = vpop.f32.mrb[2].mxu1  ;;  %v1033_v50 = vpop.f32.mrb[3].mxu0 }
 0x130   : > { %v1074_v51 = vpop.f32.mrb[3].mxu1 }
 0x16c   : > { %v1110_v53 = vpop.f32.mrb[4].mxu0  ;;  %1124 = sbr.rel (%p1426_p7) target bundleno = 387 (0x183), region = 48 }
 0x16d   : > { %v1111_v54 = vadd.f32 %v1110_v53, %v1070_v44  ;;  %v1112_v56 = vpop.f32.mrb[5].mxu0 }
 0x16e   : > { %v1113_v57 = vadd.f32 %v1112_v56, %v1072_v47  ;;  %v1114_v58 = vpop.f32.mrb[6].mxu0 }
 0x16f   : > { %v1117_v59 = vadd.f32 %v1111_v54, %v392_v52  ;;  %v1115_v60 = vpop.f32.mrb[7].mxu0 }
 0x170   : > { %v1118_v61 = vadd.f32 %v1113_v57, %v393_v55 }
 0x171   : > { %1119 = vst [vmem:[#allocation2] sm:$0xff] %v1117_v59 }
 0x172   : > { %1120 = vst [vmem:[#allocation2 + $0x8] sm:$0xff] %v1118_v61 }
 0x178   : > { %v1125_v4 = vld [vmem:[#allocation2] sm:$0xff] }
 0x179   : > { %v1126_v5 = vld [vmem:[#allocation2 + $0x8] sm:$0xff]  ;;  %v1139_v10 = vmul.f32 %v1132_v6, %v1125_v4 }
 0x17a   : > { %v1140_v11 = vmul.f32 %v1136_v8, %v1126_v5 }
 0x17b   : > { %v1153_v14 = vadd.f32 %v1146_v7, %v1139_v10 }
 0x17c   : > { %v1154_v15 = vadd.f32 %v1150_v9, %v1140_v11 }
 0x17d   : > { %v1157_v16 = vadd.f32 %v1155_v12, %v1153_v14 }
 0x17e   : > { %v1158_v17 = vadd.f32 %v1156_v13, %v1154_v15 }
 0x17f   : > { %v1159_v18 = vmax.f32 %v1157_v16, 0.0 }
 0x180   : > { %v1160_v19 = vmax.f32 %v1158_v17, 0.0 }
 0x181   : > { %1161 = vst [vmem:[%s1833_s5] sm:$0xff] %v1159_v18 }
 0x182   : > { %1162 = vst [vmem:[%s1833_s5 + $0x8] sm:$0xff] %v1160_v19 }
 0x183 PF: > { %s15_s20 = sadd.s32 1, %s1629_s20   ;;  %s1834_s18 = smov %s1625_s19 }
 0x184   : > { %p12_p8 = scmp.ge.s32.totalorder %s15_s20, 5   ;;  %s1835_s19 = smov %s1837_s21 }
 0x186   :  { %14 = sbr.rel (!%p12_p8) target bundleno = 2 (0x2), region = 90 }

// kernel: _lambda_.37
= control target key start
LH: loop header
LB: loop body
LE: loop exit
PB: predicated region body
PF: predicated region fallthrough
CT: control target
= control target key end

     0   :  { %s1568_s15 = smov 0   ;;  %s1570_s16 = smov 0   ;;  %s1728_s0 = inlined_call_operand.vmem [shape: bf16[8,2304], index: 0, kind: input, shape index: {}]   ;;  %s1729_s1 = inlined_call_operand.vmem [shape: bf16[2304,256], index: 1, kind: input, shape index: {}]   ;;  %s1730_s2 = inlined_call_operand.vmem [shape: f32[1,256], index: 2, kind: input, shape index: {}]   ;;  %s1731_s3 = inlined_call_operand.vmem [shape: f32[1,256], index: 3, kind: input, shape index: {}]   ;;  %s1732_s4 = inlined_call_operand.vmem [shape: f32[8,256], index: 4, kind: output, shape index: {}]  }
   0x1   :  { %s1572_s17 = smov 0  }
   0x2 LB: > { %s26_s18 = sadd.s32 1, %s1536_s16  ;;  %p1230_p0 = scmp.ge.s32.totalorder %s1540_s17, 1  ;;  %s1540_s17 = sphi %s1572_s17, %s14_s17   ;;  %s1536_s16 = sphi %s1570_s16, %s1734_s16   ;;  %s1532_s15 = sphi %s1568_s15, %s1733_s15  }
   0x3   : > { %p27_p1 = scmp.ge.s32.totalorder %s26_s18, 3  ;;  %p229_p2 = scmp.lt.s32.totalorder %s1540_s17, 4 }
   0x5   : > { %s1736_s18 = smov (%p27_p1, %s26_s18), 0  ;;  %p230_p3 = pnand %p1230_p0, %p229_p2 }
   0x6   : > { %s281_s19 = smul.u32 (!%p230_p3), 6, %s1532_s15  ;;  %p1234_p6 = scmp.ne.s32.totalorder (!%p230_p3), %s1532_s15, 0 }
   0x7   : > { %233 = sbr.rel (%p230_p3) target bundleno = 385 (0x181), region = 36 }
   0x8   : > { %s291_s20 = smul.u32 (!%p230_p3), 96, %s1532_s15  ;;  %p284_p4 = scmp.lt.s32.totalorder (!%p230_p3), %s281_s19, 17 }
   0xa   : > { %p293_p5 = scmp.lt.s32.totalorder (!%p230_p3), %s291_s20, 287 }
   0xe   : > { %s1738_s19 = smov (!%p284_p4, %s281_s19), 17  ;;  %s1740_s20 = smov (!%p293_p5, %s291_s20), 287 }
   0xf   : > { %s1231_s21 = sshll.u32 %s1738_s19, 2  ;;  %s1342_s25 = sshll.u32 %s1740_s20, 3  ;;  %v1542_v0 = vmov (!%p1234_p6), 0.0  }
  0x10   : > { %s1593_s24 = scalar_lea.vmem %s1728_s0, %s1231_s21  ;;  %s1598_s28 = scalar_lea.vmem %s1729_s1, %s1342_s25  ;;  %327 = vst [vmem:[#allocation2] sm:$0xff] (!%p1234_p6), %v1542_v0  ;;  %328 = vst [vmem:[#allocation2 + $0x8] sm:$0xff] (!%p1234_p6), %v1542_v0 }
  0x11   : > { %326 = sbr.rel (%p1234_p6) target bundleno = 24 (0x18), region = 40 }
  0x18 PF: > { %v1368_v1 = vld [vmem:[%s1598_s28 + $0x4] ss:$8 sps:$4 sm:$0xff]   ;;  %v1372_v3 = vld [vmem:[%s1598_s28] ss:$8 sps:$4 sm:$0xff]   ;;  %v1374_v5 = vld [vmem:[%s1598_s28 + $0x14] ss:$8 sps:$4 sm:$0xff]  }
  0x19   : > { %v1370_v2 = vld [vmem:[%s1598_s28 + $0x104] ss:$8 sps:$4 sm:$0xff]   ;;  %931 = vmatprep.subr.bf16.mxu0 %v1368_v1  ;;  %v1373_v4 = vld [vmem:[%s1598_s28 + $0x100] ss:$8 sps:$4 sm:$0xff]   ;;  %v1376_v6 = vld [vmem:[%s1598_s28 + $0x114] ss:$8 sps:$4 sm:$0xff]  }
  0x1a   : > { %972 = vmatprep.subr.bf16.mxu1 %v1370_v2  ;;  %932 = vmatpush1.bf16.msra.mxu0 %v1372_v3  ;;  %v1378_v7 = vld [vmem:[%s1598_s28 + $0x10] ss:$8 sps:$4 sm:$0xff]   ;;  %v1380_v9 = vld [vmem:[%s1598_s28 + $0x24] ss:$8 sps:$4 sm:$0xff]   ;;  %v1384_v11 = vld [vmem:[%s1598_s28 + $0x20] ss:$8 sps:$4 sm:$0xff]  }
  0x1b   : > { %973 = vmatpush1.bf16.msra.mxu1 %v1373_v4  ;;  %933 = vmatprep.subr.bf16.mxu0 %v1374_v5  ;;  %v1379_v8 = vld [vmem:[%s1598_s28 + $0x110] ss:$8 sps:$4 sm:$0xff]   ;;  %v1382_v10 = vld [vmem:[%s1598_s28 + $0x124] ss:$8 sps:$4 sm:$0xff]   ;;  %v1385_v12 = vld [vmem:[%s1598_s28 + $0x120] ss:$8 sps:$4 sm:$0xff]  }
  0x1c   : > { %974 = vmatprep.subr.bf16.mxu1 %v1376_v6  ;;  %v1386_v13 = vld [vmem:[%s1598_s28 + $0x34] ss:$8 sps:$4 sm:$0xff]   ;;  %v1390_v15 = vld [vmem:[%s1598_s28 + $0x30] ss:$8 sps:$4 sm:$0xff]   ;;  %v1392_v17 = vld [vmem:[%s1598_s28 + $0x44] ss:$8 sps:$4 sm:$0xff]  }
  0x1d   : > { %v1388_v14 = vld [vmem:[%s1598_s28 + $0x134] ss:$8 sps:$4 sm:$0xff]   ;;  %v1391_v16 = vld [vmem:[%s1598_s28 + $0x130] ss:$8 sps:$4 sm:$0xff]   ;;  %v1394_v18 = vld [vmem:[%s1598_s28 + $0x144] ss:$8 sps:$4 sm:$0xff]  }
  0x1e   : > { %934 = vmatpush1.bf16.msra.mxu0 %v1378_v7  ;;  %v1396_v19 = vld [vmem:[%s1598_s28 + $0x40] ss:$8 sps:$4 sm:$0xff]   ;;  %v1398_v21 = vld [vmem:[%s1598_s28 + $0x54] ss:$8 sps:$4 sm:$0xff]   ;;  %v1402_v23 = vld [vmem:[%s1598_s28 + $0x50] ss:$8 sps:$4 sm:$0xff]  }
  0x1f   : > { %975 = vmatpush1.bf16.msra.mxu1 %v1379_v8  ;;  %935 = vmatprep.subr.bf16.mxu0 %v1380_v9  ;;  %v1397_v20 = vld [vmem:[%s1598_s28 + $0x140] ss:$8 sps:$4 sm:$0xff]   ;;  %v1400_v22 = vld [vmem:[%s1598_s28 + $0x154] ss:$8 sps:$4 sm:$0xff]   ;;  %v1403_v24 = vld [vmem:[%s1598_s28 + $0x150] ss:$8 sps:$4 sm:$0xff]  }
  0x20   : > { %976 = vmatprep.subr.bf16.mxu1 %v1382_v10  ;;  %v1404_v25 = vld [vmem:[%s1598_s28 + $0x64] ss:$8 sps:$4 sm:$0xff]   ;;  %v1408_v27 = vld [vmem:[%s1598_s28 + $0x60] ss:$8 sps:$4 sm:$0xff]   ;;  %v1410_v29 = vld [vmem:[%s1598_s28 + $0x74] ss:$8 sps:$4 sm:$0xff]  }
  0x21   : > { %v1406_v26 = vld [vmem:[%s1598_s28 + $0x164] ss:$8 sps:$4 sm:$0xff]   ;;  %v1409_v28 = vld [vmem:[%s1598_s28 + $0x160] ss:$8 sps:$4 sm:$0xff]   ;;  %v1412_v30 = vld [vmem:[%s1598_s28 + $0x174] ss:$8 sps:$4 sm:$0xff]  }
  0x22   : > { %936 = vmatpush1.bf16.msra.mxu0 %v1384_v11  ;;  %v1414_v31 = vld [vmem:[%s1598_s28 + $0x70] ss:$8 sps:$4 sm:$0xff]   ;;  %v1416_v33 = vld [vmem:[%s1598_s28 + $0x84] ss:$8 sps:$4 sm:$0xff]   ;;  %v1420_v35 = vld [vmem:[%s1598_s28 + $0x80] ss:$8 sps:$4 sm:$0xff]  }
  0x23   : > { %977 = vmatpush1.bf16.msra.mxu1 %v1385_v12  ;;  %937 = vmatprep.subr.bf16.mxu0 %v1386_v13  ;;  %v1415_v32 = vld [vmem:[%s1598_s28 + $0x170] ss:$8 sps:$4 sm:$0xff]   ;;  %v1418_v34 = vld [vmem:[%s1598_s28 + $0x184] ss:$8 sps:$4 sm:$0xff]   ;;  %v1421_v36 = vld [vmem:[%s1598_s28 + $0x180] ss:$8 sps:$4 sm:$0xff]  }
  0x24   : > { %978 = vmatprep.subr.bf16.mxu1 %v1388_v14  ;;  %v1422_v37 = vld [vmem:[%s1598_s28 + $0x94] ss:$8 sps:$4 sm:$0xff]   ;;  %v1426_v39 = vld [vmem:[%s1598_s28 + $0x90] ss:$8 sps:$4 sm:$0xff]   ;;  %v1428_v41 = vld [vmem:[%s1598_s28 + $0xa4] ss:$8 sps:$4 sm:$0xff]  }
  0x25   : > { %v1424_v38 = vld [vmem:[%s1598_s28 + $0x194] ss:$8 sps:$4 sm:$0xff]   ;;  %v1427_v40 = vld [vmem:[%s1598_s28 + $0x190] ss:$8 sps:$4 sm:$0xff]   ;;  %v1430_v42 = vld [vmem:[%s1598_s28 + $0x1a4] ss:$8 sps:$4 sm:$0xff]  }
  0x26   : > { %938 = vmatpush1.bf16.msra.mxu0 %v1390_v15  ;;  %v1432_v43 = vld [vmem:[%s1598_s28 + $0xa0] ss:$8 sps:$4 sm:$0xff]   ;;  %v1434_v45 = vld [vmem:[%s1598_s28 + $0xb4] ss:$8 sps:$4 sm:$0xff]   ;;  %v1438_v50 = vld [vmem:[%s1598_s28 + $0xb0] ss:$8 sps:$4 sm:$0xff]  }
  0x27   : > { %979 = vmatpush1.bf16.msra.mxu1 %v1391_v16  ;;  %939 = vmatprep.subr.bf16.mxu0 %v1392_v17  ;;  %v1433_v44 = vld [vmem:[%s1598_s28 + $0x1a0] ss:$8 sps:$4 sm:$0xff]   ;;  %v1436_v46 = vld [vmem:[%s1598_s28 + $0x1b4] ss:$8 sps:$4 sm:$0xff]   ;;  %v1439_v51 = vld [vmem:[%s1598_s28 + $0x1b0] ss:$8 sps:$4 sm:$0xff]  }
  0x28   : > { %980 = vmatprep.subr.bf16.mxu1 %v1394_v18  ;;  %v331_v47 = vld [vmem:[%s1593_s24] sm:$0xff]  ;;  %v332_v49 = vld [vmem:[%s1593_s24 + $0x8] sm:$0xff]  ;;  %v1446_v57 = vld [vmem:[%s1598_s28 + $0xd4] ss:$8 sps:$4 sm:$0xff]   ;;  %p1337_p7 = scmp.ne.s32.totalorder %s1532_s15, 2 }
  0x29   : > { %v1236_v48 = vcombine.high %v331_v47, %v331_v47  ;;  %v1238_v52 = vcombine.high %v332_v49, %v332_v49  ;;  %v1440_v53 = vld [vmem:[%s1598_s28 + $0xc4] ss:$8 sps:$4 sm:$0xff]   ;;  %v1444_v55 = vld [vmem:[%s1598_s28 + $0xc0] ss:$8 sps:$4 sm:$0xff]   ;;  %v1448_v58 = vld [vmem:[%s1598_s28 + $0x1d4] ss:$8 sps:$4 sm:$0xff]   ;;  %v1235_v6 = vcombine.low %v331_v47, %v331_v47  ;;  %v1237_v7 = vcombine.low %v332_v49, %v332_v49 }
  0x2a   : > { %940 = vmatpush1.bf16.msra.mxu0 %v1396_v19  ;;  %v1442_v54 = vld [vmem:[%s1598_s28 + $0x1c4] ss:$8 sps:$4 sm:$0xff]   ;;  %v1445_v56 = vld [vmem:[%s1598_s28 + $0x1c0] ss:$8 sps:$4 sm:$0xff]   ;;  %v1450_v59 = vld [vmem:[%s1598_s28 + $0xd0] ss:$8 sps:$4 sm:$0xff]  }
  0x2b   : > { %981 = vmatpush1.bf16.msra.mxu1 %v1397_v20  ;;  %941 = vmatprep.subr.bf16.mxu0 %v1398_v21  ;;  %v1451_v60 = vld [vmem:[%s1598_s28 + $0x1d0] ss:$8 sps:$4 sm:$0xff]   ;;  %v1452_v61 = vld [vmem:[%s1598_s28 + $0xe4] ss:$8 sps:$4 sm:$0xff]   ;;  %v1456_v63 = vld [vmem:[%s1598_s28 + $0xe0] ss:$8 sps:$4 sm:$0xff]  }
  0x2c   : > { %982 = vmatprep.subr.bf16.mxu1 %v1400_v22  ;;  %963 = vmatprep.mubr.bf16.mxu0 %v1236_v48  ;;  %v1454_v62 = vld [vmem:[%s1598_s28 + $0x1e4] ss:$8 sps:$4 sm:$0xff]   ;;  %v1457_v0 = vld [vmem:[%s1598_s28 + $0x1e0] ss:$8 sps:$4 sm:$0xff]   ;;  %v1458_v1 = vld [vmem:[%s1598_s28 + $0xf4] ss:$8 sps:$4 sm:$0xff]  }
  0x2d   : > { %1004 = vmatprep.mubr.bf16.mxu1 %v1238_v52  ;;  %v1460_v2 = vld [vmem:[%s1598_s28 + $0x1f4] ss:$8 sps:$4 sm:$0xff]   ;;  %v1462_v3 = vld [vmem:[%s1598_s28 + $0xf0] ss:$8 sps:$4 sm:$0xff]   ;;  %v1470_v5 = vld [vmem:[%s1598_s28 + $0x204] ss:$8 sps:$4 sm:$0xff]  }
  0x2e   : > { %942 = vmatpush1.bf16.msra.mxu0 %v1402_v23  ;;  %v1463_v4 = vld [vmem:[%s1598_s28 + $0x1f0] ss:$8 sps:$4 sm:$0xff]   ;;  %v1468_v8 = vld [vmem:[%s1598_s28 + $0x200] ss:$8 sps:$4 sm:$0xff]   ;;  %v1473_v10 = vld [vmem:[%s1598_s28 + $0x214] ss:$8 sps:$4 sm:$0xff]  }
  0x2f   : > { %983 = vmatpush1.bf16.msra.mxu1 %v1403_v24  ;;  %943 = vmatprep.subr.bf16.mxu0 %v1404_v25  ;;  %v1670_v9 = vld [vmem:[%s1593_s24 + $0x10] sm:$0xff]  ;;  %v1476_v13 = vld [vmem:[%s1598_s28 + $0x224] ss:$8 sps:$4 sm:$0xff]   ;;  %v1474_v14 = vld [vmem:[%s1598_s28 + $0x220] ss:$8 sps:$4 sm:$0xff]  }
  0x30   : > { %984 = vmatprep.subr.bf16.mxu1 %v1406_v26  ;;  %v1240_v11 = vcombine.high %v1670_v9, %v1670_v9  ;;  %v1471_v12 = vld [vmem:[%s1598_s28 + $0x210] ss:$8 sps:$4 sm:$0xff]   ;;  %v1479_v15 = vld [vmem:[%s1598_s28 + $0x234] ss:$8 sps:$4 sm:$0xff]   ;;  %v1482_v17 = vld [vmem:[%s1598_s28 + $0x244] ss:$8 sps:$4 sm:$0xff]  }
  0x31   : > { %v1477_v16 = vld [vmem:[%s1598_s28 + $0x230] ss:$8 sps:$4 sm:$0xff]   ;;  %v1480_v18 = vld [vmem:[%s1598_s28 + $0x240] ss:$8 sps:$4 sm:$0xff]   ;;  %v1485_v19 = vld [vmem:[%s1598_s28 + $0x254] ss:$8 sps:$4 sm:$0xff]  }
  0x32   : > { %944 = vmatpush1.bf16.msra.mxu0 %v1408_v27  ;;  %v1483_v20 = vld [vmem:[%s1598_s28 + $0x250] ss:$8 sps:$4 sm:$0xff]   ;;  %v1488_v21 = vld [vmem:[%s1598_s28 + $0x264] ss:$8 sps:$4 sm:$0xff]   ;;  %v1486_v22 = vld [vmem:[%s1598_s28 + $0x260] ss:$8 sps:$4 sm:$0xff]  }
  0x33   : > { %985 = vmatpush1.bf16.msra.mxu1 %v1409_v28  ;;  %945 = vmatprep.subr.bf16.mxu0 %v1410_v29  ;;  %v1491_v23 = vld [vmem:[%s1598_s28 + $0x274] ss:$8 sps:$4 sm:$0xff]   ;;  %v1489_v24 = vld [vmem:[%s1598_s28 + $0x270] ss:$8 sps:$4 sm:$0xff]   ;;  %v1494_v25 = vld [vmem:[%s1598_s28 + $0x284] ss:$8 sps:$4 sm:$0xff]  }
  0x34   : > { %986 = vmatprep.subr.bf16.mxu1 %v1412_v30  ;;  %v1492_v26 = vld [vmem:[%s1598_s28 + $0x280] ss:$8 sps:$4 sm:$0xff]   ;;  %v1497_v27 = vld [vmem:[%s1598_s28 + $0x294] ss:$8 sps:$4 sm:$0xff]   ;;  %v1495_v28 = vld [vmem:[%s1598_s28 + $0x290] ss:$8 sps:$4 sm:$0xff]  }
  0x35   : > { %v1500_v29 = vld [vmem:[%s1598_s28 + $0x2a4] ss:$8 sps:$4 sm:$0xff]   ;;  %v1498_v30 = vld [vmem:[%s1598_s28 + $0x2a0] ss:$8 sps:$4 sm:$0xff]  }
  0x36   : > { %946 = vmatpush1.bf16.msra.mxu0 %v1414_v31  ;;  %v1503_v31 = vld [vmem:[%s1598_s28 + $0x2b4] ss:$8 sps:$4 sm:$0xff]   ;;  %v329_v52 = vld [vmem:[#allocation2] sm:$0xff] }
  0x37   : > { %987 = vmatpush1.bf16.msra.mxu1 %v1415_v32  ;;  %947 = vmatprep.subr.bf16.mxu0 %v1416_v33  ;;  %v1501_v32 = vld [vmem:[%s1598_s28 + $0x2b0] ss:$8 sps:$4 sm:$0xff]   ;;  %v1506_v33 = vld [vmem:[%s1598_s28 + $0x2c4] ss:$8 sps:$4 sm:$0xff]  }
  0x38   : > { %988 = vmatprep.subr.bf16.mxu1 %v1418_v34  ;;  %v1504_v34 = vld [vmem:[%s1598_s28 + $0x2c0] ss:$8 sps:$4 sm:$0xff]  }
  0x3a   : > { %948 = vmatpush1.bf16.msra.mxu0 %v1420_v35  ;;  %v1509_v35 = vld [vmem:[%s1598_s28 + $0x2d4] ss:$8 sps:$4 sm:$0xff]  }
  0x3b   : > { %989 = vmatpush1.bf16.msra.mxu1 %v1421_v36  ;;  %949 = vmatprep.subr.bf16.mxu0 %v1422_v37  ;;  %v1507_v36 = vld [vmem:[%s1598_s28 + $0x2d0] ss:$8 sps:$4 sm:$0xff]   ;;  %v1512_v37 = vld [vmem:[%s1598_s28 + $0x2e4] ss:$8 sps:$4 sm:$0xff]  }
  0x3c   : > { %990 = vmatprep.subr.bf16.mxu1 %v1424_v38  ;;  %v1510_v38 = vld [vmem:[%s1598_s28 + $0x2e0] ss:$8 sps:$4 sm:$0xff]  }
  0x3e   : > { %950 = vmatpush1.bf16.msra.mxu0 %v1426_v39  ;;  %v1515_v39 = vld [vmem:[%s1598_s28 + $0x2f4] ss:$8 sps:$4 sm:$0xff]  }
  0x3f   : > { %991 = vmatpush1.bf16.msra.mxu1 %v1427_v40  ;;  %951 = vmatprep.subr.bf16.mxu0 %v1428_v41  ;;  %v1513_v40 = vld [vmem:[%s1598_s28 + $0x2f0] ss:$8 sps:$4 sm:$0xff]   ;;  %v1239_v41 = vcombine.low %v1670_v9, %v1670_v9 }
  0x40   : > { %992 = vmatprep.subr.bf16.mxu1 %v1430_v42 }
  0x42   : > { %952 = vmatpush1.bf16.msra.mxu0 %v1432_v43 }
  0x43   : > { %993 = vmatpush1.bf16.msra.mxu1 %v1433_v44  ;;  %953 = vmatprep.subr.bf16.mxu0 %v1434_v45 }
  0x44   : > { %994 = vmatprep.subr.bf16.mxu1 %v1436_v46 }
  0x46   : > { %954 = vmatpush1.bf16.msra.mxu0 %v1438_v50 }
  0x47   : > { %995 = vmatpush1.bf16.msra.mxu1 %v1439_v51  ;;  %955 = vmatprep.subr.bf16.mxu0 %v1440_v53 }
  0x48   : > { %996 = vmatprep.subr.bf16.mxu1 %v1442_v54 }
  0x4a   : > { %956 = vmatpush1.bf16.msra.mxu0 %v1444_v55  ;;  %v330_v55 = vld [vmem:[#allocation2 + $0x8] sm:$0xff] }
  0x4b   : > { %997 = vmatpush1.bf16.msra.mxu1 %v1445_v56  ;;  %957 = vmatprep.subr.bf16.mxu0 %v1446_v57 }
  0x4c   : > { %998 = vmatprep.subr.bf16.mxu1 %v1448_v58 }
  0x4e   : > { %958 = vmatpush1.bf16.msra.mxu0 %v1450_v59 }
  0x4f   : > { %999 = vmatpush1.bf16.msra.mxu1 %v1451_v60  ;;  %959 = vmatprep.subr.bf16.mxu0 %v1452_v61 }
  0x50   : > { %1000 = vmatprep.subr.bf16.mxu1 %v1454_v62  ;;  %v1066_v62 = vlaneseq (!%p1337_p7) }
  0x52   : > { %960 = vmatpush1.bf16.msra.mxu0 %v1456_v63  ;;  %v1067_v63 = vshrl.u32 (!%p1337_p7), %v1066_v62, 7 }
  0x53   : > { %1001 = vmatpush1.bf16.msra.mxu1 %v1457_v0  ;;  %961 = vmatprep.subr.bf16.mxu0 %v1458_v1  ;;  %v1064_v0 = vld [vmem:[%s1730_s2] sm:$0x3] (!%p1337_p7) }
  0x54   : > { %1002 = vmatprep.subr.bf16.mxu1 %v1460_v2  ;;  %v1078_v1 = vld [vmem:[%s1731_s3] sm:$0x3] (!%p1337_p7)  ;;  %v1068_v2 = vsub.s32 (!%p1337_p7), 0, %v1067_v63 }
  0x56   : > { %962 = vmatpush1.bf16.msra.mxu0 %v1462_v3  ;;  %v1072_v3 = vsub.s32 (!%p1337_p7), 1, %v1067_v63 }
  0x57   : > { %1003 = vmatpush1.bf16.msra.mxu1 %v1463_v4  ;;  %1013 = vmatprep.subr.bf16.mxu0 %v1470_v5 }
  0x58   : > { %v1087_v9 = vrot.slane (!%p1337_p7), %v1078_v1, %v1072_v3 }
  0x59   : > { %964 = vmatmul.mubr.bf16.vlgmr.msra.gmra.mrb[0].mxu0 %v1235_v6  ;;  %v1069_v6 = vrot.slane (!%p1337_p7), %v1064_v0, %v1068_v2 }
  0x5a   : > { %1005 = vmatmul.mubr.bf16.vlgmr.msra.gmra.mrb[0].mxu1 %v1237_v7  ;;  %1014 = vmatpush1.bf16.msra.mxu0 %v1468_v8  ;;  %v1083_v7 = vrot.slane (!%p1337_p7), %v1078_v1, %v1068_v2  ;;  %v1073_v8 = vrot.slane (!%p1337_p7), %v1064_v0, %v1072_v3 }
  0x5b   : > { %1045 = vmatprep.mubr.bf16.mxu0 %v1240_v11  ;;  %1015 = vmatprep.subr.bf16.mxu0 %v1473_v10 }
  0x5e   : > { %1016 = vmatpush1.bf16.msra.mxu0 %v1471_v12 }
  0x5f   : > { %1017 = vmatprep.subr.bf16.mxu0 %v1476_v13 }
  0x62   : > { %1018 = vmatpush1.bf16.msra.mxu0 %v1474_v14 }
  0x63   : > { %1019 = vmatprep.subr.bf16.mxu0 %v1479_v15 }
  0x66   : > { %1020 = vmatpush1.bf16.msra.mxu0 %v1477_v16 }
  0x67   : > { %1021 = vmatprep.subr.bf16.mxu0 %v1482_v17 }
  0x6a   : > { %1022 = vmatpush1.bf16.msra.mxu0 %v1480_v18 }
  0x6b   : > { %1023 = vmatprep.subr.bf16.mxu0 %v1485_v19 }
  0x6e   : > { %1024 = vmatpush1.bf16.msra.mxu0 %v1483_v20 }
  0x6f   : > { %1025 = vmatprep.subr.bf16.mxu0 %v1488_v21 }
  0x72   : > { %1026 = vmatpush1.bf16.msra.mxu0 %v1486_v22 }
  0x73   : > { %1027 = vmatprep.subr.bf16.mxu0 %v1491_v23 }
  0x76   : > { %1028 = vmatpush1.bf16.msra.mxu0 %v1489_v24 }
  0x77   : > { %1029 = vmatprep.subr.bf16.mxu0 %v1494_v25 }
  0x7a   : > { %1030 = vmatpush1.bf16.msra.mxu0 %v1492_v26 }
  0x7b   : > { %1031 = vmatprep.subr.bf16.mxu0 %v1497_v27 }
  0x7e   : > { %1032 = vmatpush1.bf16.msra.mxu0 %v1495_v28 }
  0x7f   : > { %1033 = vmatprep.subr.bf16.mxu0 %v1500_v29 }
  0x82   : > { %1034 = vmatpush1.bf16.msra.mxu0 %v1498_v30 }
  0x83   : > { %1035 = vmatprep.subr.bf16.mxu0 %v1503_v31 }
  0x86   : > { %1036 = vmatpush1.bf16.msra.mxu0 %v1501_v32 }
  0x87   : > { %1037 = vmatprep.subr.bf16.mxu0 %v1506_v33 }
  0x8a   : > { %1038 = vmatpush1.bf16.msra.mxu0 %v1504_v34 }
  0x8b   : > { %1039 = vmatprep.subr.bf16.mxu0 %v1509_v35 }
  0x8e   : > { %1040 = vmatpush1.bf16.msra.mxu0 %v1507_v36 }
  0x8f   : > { %1041 = vmatprep.subr.bf16.mxu0 %v1512_v37 }
  0x92   : > { %1042 = vmatpush1.bf16.msra.mxu0 %v1510_v38 }
  0x93   : > { %1043 = vmatprep.subr.bf16.mxu0 %v1515_v39 }
  0x96   : > { %1044 = vmatpush1.bf16.msra.mxu0 %v1513_v40 }
  0x99   : > { %1046 = vmatmul.mubr.bf16.vlgmr.msra.gmra.mrb[4].mxu0 %v1239_v41 }
 0x12c   : > { %v965_v42 = vpop.f32.mrb[0].mxu0 }
 0x12d   : > { %v1006_v43 = vpop.f32.mrb[0].mxu1  ;;  %v967_v45 = vpop.f32.mrb[1].mxu0 }
 0x12e   : > { %v1007_v44 = vadd.f32 %v1006_v43, %v965_v42  ;;  %v1008_v46 = vpop.f32.mrb[1].mxu1  ;;  %v969_v48 = vpop.f32.mrb[2].mxu0 }
 0x12f   : > { %v1009_v47 = vadd.f32 %v1008_v46, %v967_v45  ;;  %v1010_v49 = vpop.f32.mrb[2].mxu1  ;;  %v970_v50 = vpop.f32.mrb[3].mxu0 }
 0x130   : > { %v1011_v51 = vpop.f32.mrb[3].mxu1 }
 0x16c   : > { %v1047_v53 = vpop.f32.mrb[4].mxu0  ;;  %1061 = sbr.rel (%p1337_p7) target bundleno = 385 (0x181), region = 44 }
 0x16d   : > { %v1048_v54 = vadd.f32 %v1047_v53, %v1007_v44  ;;  %v1049_v56 = vpop.f32.mrb[5].mxu0 }
 0x16e   : > { %v1050_v57 = vadd.f32 %v1049_v56, %v1009_v47  ;;  %v1051_v58 = vpop.f32.mrb[6].mxu0 }
 0x16f   : > { %v1054_v59 = vadd.f32 %v1048_v54, %v329_v52  ;;  %v1052_v60 = vpop.f32.mrb[7].mxu0 }
 0x170   : > { %v1055_v61 = vadd.f32 %v1050_v57, %v330_v55 }
 0x171   : > { %1056 = vst [vmem:[#allocation2] sm:$0xff] %v1054_v59 }
 0x172   : > { %1057 = vst [vmem:[#allocation2 + $0x8] sm:$0xff] %v1055_v61 }
 0x178   : > { %v1062_v4 = vld [vmem:[#allocation2] sm:$0xff] }
 0x179   : > { %v1063_v5 = vld [vmem:[#allocation2 + $0x8] sm:$0xff]  ;;  %v1076_v10 = vmul.f32 %v1069_v6, %v1062_v4 }
 0x17a   : > { %v1077_v11 = vmul.f32 %v1073_v8, %v1063_v5 }
 0x17b   : > { %v1090_v12 = vadd.f32 %v1083_v7, %v1076_v10 }
 0x17c   : > { %v1091_v13 = vadd.f32 %v1087_v9, %v1077_v11 }
 0x17d   : > { %v1092_v14 = vmax.f32 %v1090_v12, 0.0 }
 0x17e   : > { %v1093_v15 = vmax.f32 %v1091_v13, 0.0 }
 0x17f   : > { %1094 = vst [vmem:[%s1732_s4] sm:$0xff] %v1092_v14 }
 0x180   : > { %1095 = vst [vmem:[%s1732_s4 + $0x8] sm:$0xff] %v1093_v15 }
 0x181 PF: > { %s14_s17 = sadd.s32 1, %s1540_s17   ;;  %s1733_s15 = smov %s1536_s16 }
 0x182   : > { %p11_p8 = scmp.ge.s32.totalorder %s14_s17, 5   ;;  %s1734_s16 = smov %s1736_s18 }
 0x184   :  { %13 = sbr.rel (!%p11_p8) target bundleno = 2 (0x2), region = 83 }

// kernel: _lambda_.34
= control target key start
LH: loop header
LB: loop body
LE: loop exit
PB: predicated region body
PF: predicated region fallthrough
CT: control target
= control target key end

     0   :  { %v248_v1 = vmov 0   ;;  %v175_v18 = vlaneseq  ;;  %s337_s1 = inlined_call_operand.vmem [shape: bf16[128,256], index: 1, kind: input, shape index: {}]   ;;  %s338_s0 = inlined_call_operand.vmem [shape: bf16[8,128], index: 0, kind: input, shape index: {}]   ;;  %s339_s2 = inlined_call_operand.vmem [shape: f32[1,256], index: 2, kind: input, shape index: {}]   ;;  %s340_s3 = inlined_call_operand.vmem [shape: f32[1,256], index: 3, kind: input, shape index: {}]   ;;  %s341_s4 = inlined_call_operand.vmem [shape: f32[8,256], index: 4, kind: output, shape index: {}]  }
   0x1   :  { %v224_v0 = vld [vmem:[%s337_s1 + $0x4] ss:$8 sps:$4 sm:$0xff]   ;;  %155 = vmatprep.mubr.bf16.mxu0 %v248_v1  ;;  %v226_v2 = vld [vmem:[%s337_s1] ss:$8 sps:$4 sm:$0xff]   ;;  %v227_v3 = vld [vmem:[%s337_s1 + $0x14] ss:$8 sps:$4 sm:$0xff]  }
   0x2   :  { %123 = vmatprep.subr.bf16.mxu0 %v224_v0  ;;  %v229_v4 = vld [vmem:[%s337_s1 + $0x10] ss:$8 sps:$4 sm:$0xff]   ;;  %v230_v5 = vld [vmem:[%s337_s1 + $0x24] ss:$8 sps:$4 sm:$0xff]   ;;  %v232_v6 = vld [vmem:[%s337_s1 + $0x20] ss:$8 sps:$4 sm:$0xff]  }
   0x3   :  { %124 = vmatpush1.bf16.msra.mxu0 %v226_v2  ;;  %v233_v7 = vld [vmem:[%s337_s1 + $0x34] ss:$8 sps:$4 sm:$0xff]   ;;  %v235_v8 = vld [vmem:[%s337_s1 + $0x30] ss:$8 sps:$4 sm:$0xff]   ;;  %v236_v9 = vld [vmem:[%s337_s1 + $0x44] ss:$8 sps:$4 sm:$0xff]  }
   0x4   :  { %125 = vmatprep.subr.bf16.mxu0 %v227_v3  ;;  %v238_v10 = vld [vmem:[%s337_s1 + $0x40] ss:$8 sps:$4 sm:$0xff]   ;;  %v239_v11 = vld [vmem:[%s337_s1 + $0x54] ss:$8 sps:$4 sm:$0xff]   ;;  %v241_v12 = vld [vmem:[%s337_s1 + $0x50] ss:$8 sps:$4 sm:$0xff]  }
   0x5   :  { %v242_v13 = vld [vmem:[%s337_s1 + $0x64] ss:$8 sps:$4 sm:$0xff]   ;;  %v244_v14 = vld [vmem:[%s337_s1 + $0x60] ss:$8 sps:$4 sm:$0xff]   ;;  %v245_v15 = vld [vmem:[%s337_s1 + $0x74] ss:$8 sps:$4 sm:$0xff]  }
   0x6   :  { %v247_v16 = vld [vmem:[%s337_s1 + $0x70] ss:$8 sps:$4 sm:$0xff]   ;;  %v26_v17 = vld [vmem:[%s338_s0] sm:$0xf]  ;;  %v176_v19 = vshrl.u32 %v175_v18, 7 }
   0x7   :  { %126 = vmatpush1.bf16.msra.mxu0 %v229_v4  ;;  %v173_v21 = vld [vmem:[%s339_s2] sm:$0x3] }
   0x8   :  { %127 = vmatprep.subr.bf16.mxu0 %v230_v5  ;;  %v177_v20 = vsub.s32 0, %v176_v19  ;;  %v181_v22 = vsub.s32 1, %v176_v19  ;;  %v187_v23 = vld [vmem:[%s340_s3] sm:$0x3] }
   0xa   :  { %v178_v24 = vrot.slane %v173_v21, %v177_v20  ;;  %v182_v25 = vrot.slane %v173_v21, %v181_v22  ;;  %v192_v26 = vrot.slane %v187_v23, %v177_v20  ;;  %v196_v28 = vrot.slane %v187_v23, %v181_v22 }
   0xb   :  { %128 = vmatpush1.bf16.msra.mxu0 %v232_v6 }
   0xc   :  { %129 = vmatprep.subr.bf16.mxu0 %v233_v7 }
   0xf   :  { %130 = vmatpush1.bf16.msra.mxu0 %v235_v8 }
  0x10   :  { %131 = vmatprep.subr.bf16.mxu0 %v236_v9 }
  0x13   :  { %132 = vmatpush1.bf16.msra.mxu0 %v238_v10 }
  0x14   :  { %133 = vmatprep.subr.bf16.mxu0 %v239_v11 }
  0x17   :  { %134 = vmatpush1.bf16.msra.mxu0 %v241_v12 }
  0x18   :  { %135 = vmatprep.subr.bf16.mxu0 %v242_v13 }
  0x1b   :  { %136 = vmatpush1.bf16.msra.mxu0 %v244_v14 }
  0x1c   :  { %137 = vmatprep.subr.bf16.mxu0 %v245_v15 }
  0x1f   :  { %138 = vmatpush1.bf16.msra.mxu0 %v247_v16 }
  0x22   :  { %156 = vmatmul.mubr.bf16.vlgmr.msra.gmra.mrb[0].mxu0 %v26_v17 }
  0xf5   :  { %v157_v27 = vpop.f32.mrb[0].mxu0 }
  0xf6   :  { %v185_v29 = vmul.f32 %v178_v24, %v157_v27  ;;  %v159_v30 = vpop.f32.mrb[1].mxu0 }
  0xf7   :  { %v186_v31 = vmul.f32 %v182_v25, %v159_v30  ;;  %v161_v32 = vpop.f32.mrb[2].mxu0 }
  0xf8   :  { %v199_v33 = vadd.f32 %v192_v26, %v185_v29  ;;  %v162_v34 = vpop.f32.mrb[3].mxu0 }
  0xf9   :  { %v200_v35 = vadd.f32 %v196_v28, %v186_v31 }
  0xfa   :  { %201 = vst [vmem:[%s341_s4] sm:$0xff] %v199_v33 }
  0xfb   :  { %202 = vst [vmem:[%s341_s4 + $0x8] sm:$0xff] %v200_v35 }

// kernel: _lambda_.40
= control target key start
LH: loop header
LB: loop body
LE: loop exit
PB: predicated region body
PF: predicated region fallthrough
CT: control target
= control target key end

     0   :  { %s2040_s15 = smov 0   ;;  %s2042_s16 = smov 0   ;;  %s2464_s0 = inlined_call_operand.vmem [shape: bf16[8,2304], index: 0, kind: input, shape index: {}]   ;;  %s2465_s1 = inlined_call_operand.vmem [shape: bf16[2304,512], index: 1, kind: input, shape index: {}]   ;;  %s2466_s2 = inlined_call_operand.vmem [shape: f32[1,512], index: 2, kind: input, shape index: {}]   ;;  %s2467_s3 = inlined_call_operand.vmem [shape: f32[1,512], index: 3, kind: input, shape index: {}]   ;;  %s2468_s4 = inlined_call_operand.vmem [shape: f32[8,512], index: 4, kind: output, shape index: {}]  }
   0x1   :  { %s2044_s17 = smov 0   ;;  %s2046_s18 = smov 0  }
   0x2   :  { %s2048_s19 = smov 0   ;;  %s2050_s20 = smov 0  }
   0x3   :  { %s2052_s21 = smov 0  }
   0x4 LB: > { %s26_s22 = sadd.s32 1, %s2004_s19  ;;  %s29_s23 = sadd.s32 1, %s2008_s20  ;;  %s2012_s21 = sphi %s2052_s21, %s14_s21   ;;  %s2008_s20 = sphi %s2050_s20, %s2474_s20   ;;  %s2004_s19 = sphi %s2048_s19, %s2473_s19   ;;  %s2000_s18 = sphi %s2046_s18, %s2472_s18   ;;  %s1996_s17 = sphi %s2044_s17, %s2471_s17   ;;  %s1992_s16 = sphi %s2042_s16, %s2470_s16   ;;  %s1988_s15 = sphi %s2040_s15, %s2469_s15  }
   0x5   : > { %p27_p0 = scmp.ge.s32.totalorder %s26_s22, 3  ;;  %p77_p1 = scmp.ne.s32.totalorder %s1992_s16, %s1988_s15 }
   0x6   : > { %p78_p2 = scmp.eq.s32.totalorder %s2012_s21, 0  ;;  %s70_s27 = sadd.s32 1, %s1992_s16 }
   0x7   : > { %s2476_s22 = smov (%p27_p0, %s26_s22), 0  ;;  %s2478_s23 = smov (!%p27_p0, %s29_s23), %s2008_s20 }
   0x8   : > { %p79_p3 = por %p78_p2, %p77_p1  ;;  %p31_p4 = scmp.ge.s32.totalorder %s2478_s23, 2 }
   0x9   : > { %s65_s24 = ssub.s32 %s2004_s19, %s2476_s22  ;;  %p1632_p6 = scmp.ge.s32.totalorder %s2012_s21, 6 }
   0xa   : > { %s2480_s23 = smov (%p31_p4, %s2478_s23), 0 }
   0xb   : > { %s66_s25 = ssub.s32 %s2008_s20, %s2480_s23  ;;  %183 = sbr.rel (%p1632_p6) target bundleno = 74 (0x4a), region = 16 }
   0xc   : > { %s67_s26 = sor.u32 %s66_s25, %s65_s24 }
   0xd   : > { %p68_p5 = scmp.eq.s32.totalorder %s67_s26, 0 }
   0xf   : > { %s2091_s28 = scalar_select %p68_p5, %s1992_s16, %s70_s27  }
  0x12   : > { %199 = sbr.rel (!%p79_p3) target bundleno = 74 (0x4a), region = 24  ;;  %s201_s29 = sand.u32 (%p79_p3), 1, %s1992_s16  }
  0x13   : > { %s1749_s30 = smul.u32 (%p79_p3), 768, %s201_s29  ;;  %s1633_s5 = sshll.u32 (%p79_p3), %s2008_s20, 1 }
  0x14   : > { %s1748_s6 = smul.u32 (%p79_p3), 384, %s2004_s19 }
  0x15   : > { %s2105_s12 = scalar_lea.vmem (%p79_p3), [#allocation3], %s1749_s30 }
  0x16   : > { %s207_s7 = sadd.s32 (%p79_p3), %s1748_s6, %s1633_s5 }
  0x17   : > { %s1635_s8 = sshll.u32 (%p79_p3), %s207_s7, 2 }
  0x18   : > { %s2100_s11 = scalar_lea.vmem (%p79_p3), %s2465_s1, %s1635_s8 }
  0x19   : > { %v427_v0 = vld [vmem:[%s2100_s11] sm:$0xff]  ;;  %v429_v1 = vld [vmem:[%s2100_s11 + $0x10] sm:$0xff] }
  0x1a   : > { %v431_v2 = vld [vmem:[%s2100_s11 + $0x20] sm:$0xff]  ;;  %428 = vst [vmem:[%s2105_s12] sm:$0xff] %v427_v0  ;;  %430 = vst [vmem:[%s2105_s12 + $0x8] sm:$0xff] %v429_v1  ;;  %v433_v3 = vld [vmem:[%s2100_s11 + $0x30] sm:$0xff] }
  0x1b   : > { %432 = vst [vmem:[%s2105_s12 + $0x10] sm:$0xff] %v431_v2  ;;  %v435_v4 = vld [vmem:[%s2100_s11 + $0x40] sm:$0xff]  ;;  %v437_v5 = vld [vmem:[%s2100_s11 + $0x50] sm:$0xff]  ;;  %434 = vst [vmem:[%s2105_s12 + $0x18] sm:$0xff] %v433_v3 }
  0x1c   : > { %436 = vst [vmem:[%s2105_s12 + $0x20] sm:$0xff] %v435_v4  ;;  %438 = vst [vmem:[%s2105_s12 + $0x28] sm:$0xff] %v437_v5  ;;  %v439_v6 = vld [vmem:[%s2100_s11 + $0x60] sm:$0xff]  ;;  %v441_v7 = vld [vmem:[%s2100_s11 + $0x70] sm:$0xff] }
  0x1d   : > { %v443_v8 = vld [vmem:[%s2100_s11 + $0x80] sm:$0xff]  ;;  %440 = vst [vmem:[%s2105_s12 + $0x30] sm:$0xff] %v439_v6  ;;  %442 = vst [vmem:[%s2105_s12 + $0x38] sm:$0xff] %v441_v7  ;;  %v445_v9 = vld [vmem:[%s2100_s11 + $0x90] sm:$0xff] }
  0x1e   : > { %444 = vst [vmem:[%s2105_s12 + $0x40] sm:$0xff] %v443_v8  ;;  %v447_v10 = vld [vmem:[%s2100_s11 + $0xa0] sm:$0xff]  ;;  %v449_v11 = vld [vmem:[%s2100_s11 + $0xb0] sm:$0xff]  ;;  %446 = vst [vmem:[%s2105_s12 + $0x48] sm:$0xff] %v445_v9 }
  0x1f   : > { %448 = vst [vmem:[%s2105_s12 + $0x50] sm:$0xff] %v447_v10  ;;  %450 = vst [vmem:[%s2105_s12 + $0x58] sm:$0xff] %v449_v11  ;;  %v451_v12 = vld [vmem:[%s2100_s11 + $0xc0] sm:$0xff]  ;;  %v453_v13 = vld [vmem:[%s2100_s11 + $0xd0] sm:$0xff] }
  0x20   : > { %v455_v14 = vld [vmem:[%s2100_s11 + $0xe0] sm:$0xff]  ;;  %452 = vst [vmem:[%s2105_s12 + $0x60] sm:$0xff] %v451_v12  ;;  %454 = vst [vmem:[%s2105_s12 + $0x68] sm:$0xff] %v453_v13  ;;  %v457_v15 = vld [vmem:[%s2100_s11 + $0xf0] sm:$0xff] }
  0x21   : > { %456 = vst [vmem:[%s2105_s12 + $0x70] sm:$0xff] %v455_v14  ;;  %v459_v16 = vld [vmem:[%s2100_s11 + $0x100] sm:$0xff]  ;;  %v461_v17 = vld [vmem:[%s2100_s11 + $0x110] sm:$0xff]  ;;  %458 = vst [vmem:[%s2105_s12 + $0x78] sm:$0xff] %v457_v15 }
  0x22   : > { %460 = vst [vmem:[%s2105_s12 + $0x80] sm:$0xff] %v459_v16  ;;  %462 = vst [vmem:[%s2105_s12 + $0x88] sm:$0xff] %v461_v17  ;;  %v463_v18 = vld [vmem:[%s2100_s11 + $0x120] sm:$0xff]  ;;  %v465_v19 = vld [vmem:[%s2100_s11 + $0x130] sm:$0xff] }
  0x23   : > { %v467_v20 = vld [vmem:[%s2100_s11 + $0x140] sm:$0xff]  ;;  %464 = vst [vmem:[%s2105_s12 + $0x90] sm:$0xff] %v463_v18  ;;  %466 = vst [vmem:[%s2105_s12 + $0x98] sm:$0xff] %v465_v19  ;;  %v469_v21 = vld [vmem:[%s2100_s11 + $0x150] sm:$0xff] }
  0x24   : > { %468 = vst [vmem:[%s2105_s12 + $0xa0] sm:$0xff] %v467_v20  ;;  %v471_v22 = vld [vmem:[%s2100_s11 + $0x160] sm:$0xff]  ;;  %v473_v23 = vld [vmem:[%s2100_s11 + $0x170] sm:$0xff]  ;;  %470 = vst [vmem:[%s2105_s12 + $0xa8] sm:$0xff] %v469_v21 }
  0x25   : > { %472 = vst [vmem:[%s2105_s12 + $0xb0] sm:$0xff] %v471_v22  ;;  %474 = vst [vmem:[%s2105_s12 + $0xb8] sm:$0xff] %v473_v23  ;;  %v475_v24 = vld [vmem:[%s2100_s11 + $0x180] sm:$0xff]  ;;  %v477_v25 = vld [vmem:[%s2100_s11 + $0x190] sm:$0xff] }
  0x26   : > { %v479_v26 = vld [vmem:[%s2100_s11 + $0x1a0] sm:$0xff]  ;;  %476 = vst [vmem:[%s2105_s12 + $0xc0] sm:$0xff] %v475_v24  ;;  %478 = vst [vmem:[%s2105_s12 + $0xc8] sm:$0xff] %v477_v25  ;;  %v481_v27 = vld [vmem:[%s2100_s11 + $0x1b0] sm:$0xff] }
  0x27   : > { %480 = vst [vmem:[%s2105_s12 + $0xd0] sm:$0xff] %v479_v26  ;;  %v483_v28 = vld [vmem:[%s2100_s11 + $0x1c0] sm:$0xff]  ;;  %v485_v29 = vld [vmem:[%s2100_s11 + $0x1d0] sm:$0xff]  ;;  %482 = vst [vmem:[%s2105_s12 + $0xd8] sm:$0xff] %v481_v27 }
  0x28   : > { %484 = vst [vmem:[%s2105_s12 + $0xe0] sm:$0xff] %v483_v28  ;;  %486 = vst [vmem:[%s2105_s12 + $0xe8] sm:$0xff] %v485_v29  ;;  %v487_v30 = vld [vmem:[%s2100_s11 + $0x1e0] sm:$0xff]  ;;  %v489_v31 = vld [vmem:[%s2100_s11 + $0x1f0] sm:$0xff] }
  0x29   : > { %v491_v32 = vld [vmem:[%s2100_s11 + $0x200] sm:$0xff]  ;;  %488 = vst [vmem:[%s2105_s12 + $0xf0] sm:$0xff] %v487_v30  ;;  %490 = vst [vmem:[%s2105_s12 + $0xf8] sm:$0xff] %v489_v31  ;;  %v493_v33 = vld [vmem:[%s2100_s11 + $0x210] sm:$0xff] }
  0x2a   : > { %492 = vst [vmem:[%s2105_s12 + $0x100] sm:$0xff] %v491_v32  ;;  %v495_v34 = vld [vmem:[%s2100_s11 + $0x220] sm:$0xff]  ;;  %v497_v35 = vld [vmem:[%s2100_s11 + $0x230] sm:$0xff]  ;;  %494 = vst [vmem:[%s2105_s12 + $0x108] sm:$0xff] %v493_v33 }
  0x2b   : > { %496 = vst [vmem:[%s2105_s12 + $0x110] sm:$0xff] %v495_v34  ;;  %498 = vst [vmem:[%s2105_s12 + $0x118] sm:$0xff] %v497_v35  ;;  %v499_v36 = vld [vmem:[%s2100_s11 + $0x240] sm:$0xff]  ;;  %v501_v37 = vld [vmem:[%s2100_s11 + $0x250] sm:$0xff] }
  0x2c   : > { %v503_v38 = vld [vmem:[%s2100_s11 + $0x260] sm:$0xff]  ;;  %500 = vst [vmem:[%s2105_s12 + $0x120] sm:$0xff] %v499_v36  ;;  %502 = vst [vmem:[%s2105_s12 + $0x128] sm:$0xff] %v501_v37  ;;  %v505_v39 = vld [vmem:[%s2100_s11 + $0x270] sm:$0xff] }
  0x2d   : > { %504 = vst [vmem:[%s2105_s12 + $0x130] sm:$0xff] %v503_v38  ;;  %v507_v40 = vld [vmem:[%s2100_s11 + $0x280] sm:$0xff]  ;;  %v509_v41 = vld [vmem:[%s2100_s11 + $0x290] sm:$0xff]  ;;  %506 = vst [vmem:[%s2105_s12 + $0x138] sm:$0xff] %v505_v39 }
  0x2e   : > { %508 = vst [vmem:[%s2105_s12 + $0x140] sm:$0xff] %v507_v40  ;;  %510 = vst [vmem:[%s2105_s12 + $0x148] sm:$0xff] %v509_v41  ;;  %v511_v42 = vld [vmem:[%s2100_s11 + $0x2a0] sm:$0xff]  ;;  %v513_v43 = vld [vmem:[%s2100_s11 + $0x2b0] sm:$0xff] }
  0x2f   : > { %v515_v44 = vld [vmem:[%s2100_s11 + $0x2c0] sm:$0xff]  ;;  %512 = vst [vmem:[%s2105_s12 + $0x150] sm:$0xff] %v511_v42  ;;  %514 = vst [vmem:[%s2105_s12 + $0x158] sm:$0xff] %v513_v43  ;;  %v517_v45 = vld [vmem:[%s2100_s11 + $0x2d0] sm:$0xff] }
  0x30   : > { %516 = vst [vmem:[%s2105_s12 + $0x160] sm:$0xff] %v515_v44  ;;  %v519_v46 = vld [vmem:[%s2100_s11 + $0x2e0] sm:$0xff]  ;;  %v521_v47 = vld [vmem:[%s2100_s11 + $0x2f0] sm:$0xff]  ;;  %518 = vst [vmem:[%s2105_s12 + $0x168] sm:$0xff] %v517_v45 }
  0x31   : > { %520 = vst [vmem:[%s2105_s12 + $0x170] sm:$0xff] %v519_v46  ;;  %522 = vst [vmem:[%s2105_s12 + $0x178] sm:$0xff] %v521_v47  ;;  %v523_v48 = vld [vmem:[%s2100_s11 + $0x300] sm:$0xff]  ;;  %v525_v49 = vld [vmem:[%s2100_s11 + $0x310] sm:$0xff] }
  0x32   : > { %v527_v50 = vld [vmem:[%s2100_s11 + $0x320] sm:$0xff]  ;;  %524 = vst [vmem:[%s2105_s12 + $0x180] sm:$0xff] %v523_v48  ;;  %526 = vst [vmem:[%s2105_s12 + $0x188] sm:$0xff] %v525_v49  ;;  %v529_v51 = vld [vmem:[%s2100_s11 + $0x330] sm:$0xff] }
  0x33   : > { %528 = vst [vmem:[%s2105_s12 + $0x190] sm:$0xff] %v527_v50  ;;  %v531_v52 = vld [vmem:[%s2100_s11 + $0x340] sm:$0xff]  ;;  %v533_v53 = vld [vmem:[%s2100_s11 + $0x350] sm:$0xff]  ;;  %530 = vst [vmem:[%s2105_s12 + $0x198] sm:$0xff] %v529_v51 }
  0x34   : > { %532 = vst [vmem:[%s2105_s12 + $0x1a0] sm:$0xff] %v531_v52  ;;  %534 = vst [vmem:[%s2105_s12 + $0x1a8] sm:$0xff] %v533_v53  ;;  %v535_v54 = vld [vmem:[%s2100_s11 + $0x360] sm:$0xff]  ;;  %v537_v55 = vld [vmem:[%s2100_s11 + $0x370] sm:$0xff] }
  0x35   : > { %v539_v56 = vld [vmem:[%s2100_s11 + $0x380] sm:$0xff]  ;;  %536 = vst [vmem:[%s2105_s12 + $0x1b0] sm:$0xff] %v535_v54  ;;  %538 = vst [vmem:[%s2105_s12 + $0x1b8] sm:$0xff] %v537_v55  ;;  %v541_v57 = vld [vmem:[%s2100_s11 + $0x390] sm:$0xff] }
  0x36   : > { %540 = vst [vmem:[%s2105_s12 + $0x1c0] sm:$0xff] %v539_v56  ;;  %v543_v58 = vld [vmem:[%s2100_s11 + $0x3a0] sm:$0xff]  ;;  %v545_v59 = vld [vmem:[%s2100_s11 + $0x3b0] sm:$0xff]  ;;  %542 = vst [vmem:[%s2105_s12 + $0x1c8] sm:$0xff] %v541_v57 }
  0x37   : > { %544 = vst [vmem:[%s2105_s12 + $0x1d0] sm:$0xff] %v543_v58  ;;  %546 = vst [vmem:[%s2105_s12 + $0x1d8] sm:$0xff] %v545_v59  ;;  %v547_v60 = vld [vmem:[%s2100_s11 + $0x3c0] sm:$0xff]  ;;  %v549_v61 = vld [vmem:[%s2100_s11 + $0x3d0] sm:$0xff] }
  0x38   : > { %v551_v62 = vld [vmem:[%s2100_s11 + $0x3e0] sm:$0xff]  ;;  %548 = vst [vmem:[%s2105_s12 + $0x1e0] sm:$0xff] %v547_v60  ;;  %550 = vst [vmem:[%s2105_s12 + $0x1e8] sm:$0xff] %v549_v61  ;;  %v553_v63 = vld [vmem:[%s2100_s11 + $0x3f0] sm:$0xff] }
  0x39   : > { %552 = vst [vmem:[%s2105_s12 + $0x1f0] sm:$0xff] %v551_v62  ;;  %v555_v0 = vld [vmem:[%s2100_s11 + $0x400] sm:$0xff]  ;;  %v557_v1 = vld [vmem:[%s2100_s11 + $0x410] sm:$0xff]  ;;  %554 = vst [vmem:[%s2105_s12 + $0x1f8] sm:$0xff] %v553_v63 }
  0x3a   : > { %556 = vst [vmem:[%s2105_s12 + $0x200] sm:$0xff] %v555_v0  ;;  %558 = vst [vmem:[%s2105_s12 + $0x208] sm:$0xff] %v557_v1  ;;  %v559_v2 = vld [vmem:[%s2100_s11 + $0x420] sm:$0xff]  ;;  %v561_v3 = vld [vmem:[%s2100_s11 + $0x430] sm:$0xff] }
  0x3b   : > { %v563_v4 = vld [vmem:[%s2100_s11 + $0x440] sm:$0xff]  ;;  %560 = vst [vmem:[%s2105_s12 + $0x210] sm:$0xff] %v559_v2  ;;  %562 = vst [vmem:[%s2105_s12 + $0x218] sm:$0xff] %v561_v3  ;;  %v565_v5 = vld [vmem:[%s2100_s11 + $0x450] sm:$0xff] }
  0x3c   : > { %564 = vst [vmem:[%s2105_s12 + $0x220] sm:$0xff] %v563_v4  ;;  %v567_v6 = vld [vmem:[%s2100_s11 + $0x460] sm:$0xff]  ;;  %v569_v7 = vld [vmem:[%s2100_s11 + $0x470] sm:$0xff]  ;;  %566 = vst [vmem:[%s2105_s12 + $0x228] sm:$0xff] %v565_v5 }
  0x3d   : > { %568 = vst [vmem:[%s2105_s12 + $0x230] sm:$0xff] %v567_v6  ;;  %570 = vst [vmem:[%s2105_s12 + $0x238] sm:$0xff] %v569_v7  ;;  %v571_v8 = vld [vmem:[%s2100_s11 + $0x480] sm:$0xff]  ;;  %v573_v9 = vld [vmem:[%s2100_s11 + $0x490] sm:$0xff] }
  0x3e   : > { %v575_v10 = vld [vmem:[%s2100_s11 + $0x4a0] sm:$0xff]  ;;  %572 = vst [vmem:[%s2105_s12 + $0x240] sm:$0xff] %v571_v8  ;;  %574 = vst [vmem:[%s2105_s12 + $0x248] sm:$0xff] %v573_v9  ;;  %v577_v11 = vld [vmem:[%s2100_s11 + $0x4b0] sm:$0xff] }
  0x3f   : > { %576 = vst [vmem:[%s2105_s12 + $0x250] sm:$0xff] %v575_v10  ;;  %v579_v12 = vld [vmem:[%s2100_s11 + $0x4c0] sm:$0xff]  ;;  %v581_v13 = vld [vmem:[%s2100_s11 + $0x4d0] sm:$0xff]  ;;  %578 = vst [vmem:[%s2105_s12 + $0x258] sm:$0xff] %v577_v11 }
  0x40   : > { %580 = vst [vmem:[%s2105_s12 + $0x260] sm:$0xff] %v579_v12  ;;  %582 = vst [vmem:[%s2105_s12 + $0x268] sm:$0xff] %v581_v13  ;;  %v583_v14 = vld [vmem:[%s2100_s11 + $0x4e0] sm:$0xff]  ;;  %v585_v15 = vld [vmem:[%s2100_s11 + $0x4f0] sm:$0xff] }
  0x41   : > { %v587_v16 = vld [vmem:[%s2100_s11 + $0x500] sm:$0xff]  ;;  %584 = vst [vmem:[%s2105_s12 + $0x270] sm:$0xff] %v583_v14  ;;  %586 = vst [vmem:[%s2105_s12 + $0x278] sm:$0xff] %v585_v15  ;;  %v589_v17 = vld [vmem:[%s2100_s11 + $0x510] sm:$0xff] }
  0x42   : > { %588 = vst [vmem:[%s2105_s12 + $0x280] sm:$0xff] %v587_v16  ;;  %v591_v18 = vld [vmem:[%s2100_s11 + $0x520] sm:$0xff]  ;;  %v593_v19 = vld [vmem:[%s2100_s11 + $0x530] sm:$0xff]  ;;  %590 = vst [vmem:[%s2105_s12 + $0x288] sm:$0xff] %v589_v17 }
  0x43   : > { %592 = vst [vmem:[%s2105_s12 + $0x290] sm:$0xff] %v591_v18  ;;  %594 = vst [vmem:[%s2105_s12 + $0x298] sm:$0xff] %v593_v19  ;;  %v595_v20 = vld [vmem:[%s2100_s11 + $0x540] sm:$0xff]  ;;  %v597_v21 = vld [vmem:[%s2100_s11 + $0x550] sm:$0xff] }
  0x44   : > { %v599_v22 = vld [vmem:[%s2100_s11 + $0x560] sm:$0xff]  ;;  %596 = vst [vmem:[%s2105_s12 + $0x2a0] sm:$0xff] %v595_v20  ;;  %598 = vst [vmem:[%s2105_s12 + $0x2a8] sm:$0xff] %v597_v21  ;;  %v601_v23 = vld [vmem:[%s2100_s11 + $0x570] sm:$0xff] }
  0x45   : > { %600 = vst [vmem:[%s2105_s12 + $0x2b0] sm:$0xff] %v599_v22  ;;  %v603_v24 = vld [vmem:[%s2100_s11 + $0x580] sm:$0xff]  ;;  %v605_v25 = vld [vmem:[%s2100_s11 + $0x590] sm:$0xff]  ;;  %602 = vst [vmem:[%s2105_s12 + $0x2b8] sm:$0xff] %v601_v23 }
  0x46   : > { %604 = vst [vmem:[%s2105_s12 + $0x2c0] sm:$0xff] %v603_v24  ;;  %606 = vst [vmem:[%s2105_s12 + $0x2c8] sm:$0xff] %v605_v25  ;;  %v607_v26 = vld [vmem:[%s2100_s11 + $0x5a0] sm:$0xff]  ;;  %v609_v27 = vld [vmem:[%s2100_s11 + $0x5b0] sm:$0xff] }
  0x47   : > { %v611_v28 = vld [vmem:[%s2100_s11 + $0x5c0] sm:$0xff]  ;;  %608 = vst [vmem:[%s2105_s12 + $0x2d0] sm:$0xff] %v607_v26  ;;  %610 = vst [vmem:[%s2105_s12 + $0x2d8] sm:$0xff] %v609_v27  ;;  %v613_v29 = vld [vmem:[%s2100_s11 + $0x5d0] sm:$0xff] }
  0x48   : > { %612 = vst [vmem:[%s2105_s12 + $0x2e0] sm:$0xff] %v611_v28  ;;  %v615_v30 = vld [vmem:[%s2100_s11 + $0x5e0] sm:$0xff]  ;;  %v617_v31 = vld [vmem:[%s2100_s11 + $0x5f0] sm:$0xff]  ;;  %614 = vst [vmem:[%s2105_s12 + $0x2e8] sm:$0xff] %v613_v29 }
  0x49   : > { %616 = vst [vmem:[%s2105_s12 + $0x2f0] sm:$0xff] %v615_v30  ;;  %618 = vst [vmem:[%s2105_s12 + $0x2f8] sm:$0xff] %v617_v31 }
  0x4a PF: > { %p1636_p7 = scmp.ge.s32.totalorder %s2012_s21, 1  ;;  %p639_p8 = scmp.lt.s32.totalorder %s2012_s21, 7 }
  0x4c   : > { %p640_p9 = pnand %p1636_p7, %p639_p8 }
  0x4d   : > { %s646_s13 = sand.u32 (!%p640_p9), 1, %s1988_s15   ;;  %s692_s14 = smul.u32 (!%p640_p9), 6, %s1996_s17 }
  0x4e   : > { %643 = sbr.rel (%p640_p9) target bundleno = 456 (0x1c8), region = 70  ;;  %s1638_s25 = sshll.u32 (!%p640_p9), %s2000_s18, 1 }
  0x4f   : > { %s1750_s24 = smul.u32 (!%p640_p9), 768, %s646_s13  ;;  %p695_p10 = scmp.lt.s32.totalorder (!%p640_p9), %s692_s14, 17 }
  0x50   : > { %p705_p11 = scmp.lt.s32.totalorder (!%p640_p9), %s1638_s25, 3  ;;  %p1642_p12 = scmp.ne.s32.totalorder (!%p640_p9), %s1996_s17, 0 }
  0x51   : > { %s2322_s13 = scalar_lea.vmem (!%p640_p9), [#allocation3], %s1750_s24 }
  0x55   : > { %s2482_s14 = smov (!%p695_p10, %s692_s14), 17  ;;  %s2484_s25 = smov (!%p705_p11, %s1638_s25), 3 }
  0x56   : > { %s1637_s26 = sshll.u32 %s2482_s14, 2  ;;  %s707_s15 = scalar_lea.vmem %s2466_s2, %s2484_s25  ;;  %v2014_v32 = vmov (!%p1642_p12), 0.0  }
  0x57   : > { %s2306_s30 = scalar_lea.vmem %s2464_s0, %s1637_s26  ;;  %s712_s8 = scalar_lea.vmem %s2467_s3, %s2484_s25  ;;  %728 = vst [vmem:[#allocation2] sm:$0xff] (!%p1642_p12), %v2014_v32  ;;  %729 = vst [vmem:[#allocation2 + $0x8] sm:$0xff] (!%p1642_p12), %v2014_v32 }
  0x58   : > { %s1641_s9 = sshll.u32 %s2484_s25, 3  ;;  %727 = sbr.rel (%p1642_p12) target bundleno = 95 (0x5f), region = 78 }
  0x59   : > { %s2320_s12 = scalar_lea.vmem %s2468_s4, %s1641_s9 }
  0x5f PF: > { %v1808_v33 = vld [vmem:[%s2322_s13 + $0x4] ss:$8 sps:$4 sm:$0xff]   ;;  %v1812_v35 = vld [vmem:[%s2322_s13] ss:$8 sps:$4 sm:$0xff]   ;;  %v1814_v37 = vld [vmem:[%s2322_s13 + $0x14] ss:$8 sps:$4 sm:$0xff]  }
  0x60   : > { %v1810_v34 = vld [vmem:[%s2322_s13 + $0x104] ss:$8 sps:$4 sm:$0xff]   ;;  %1332 = vmatprep.subr.bf16.mxu0 %v1808_v33  ;;  %v1813_v36 = vld [vmem:[%s2322_s13 + $0x100] ss:$8 sps:$4 sm:$0xff]   ;;  %v1816_v38 = vld [vmem:[%s2322_s13 + $0x114] ss:$8 sps:$4 sm:$0xff]  }
  0x61   : > { %1373 = vmatprep.subr.bf16.mxu1 %v1810_v34  ;;  %1333 = vmatpush1.bf16.msra.mxu0 %v1812_v35  ;;  %v1818_v39 = vld [vmem:[%s2322_s13 + $0x10] ss:$8 sps:$4 sm:$0xff]   ;;  %v1820_v41 = vld [vmem:[%s2322_s13 + $0x24] ss:$8 sps:$4 sm:$0xff]   ;;  %v1824_v43 = vld [vmem:[%s2322_s13 + $0x20] ss:$8 sps:$4 sm:$0xff]  }
  0x62   : > { %1374 = vmatpush1.bf16.msra.mxu1 %v1813_v36  ;;  %1334 = vmatprep.subr.bf16.mxu0 %v1814_v37  ;;  %v1819_v40 = vld [vmem:[%s2322_s13 + $0x110] ss:$8 sps:$4 sm:$0xff]   ;;  %v1822_v42 = vld [vmem:[%s2322_s13 + $0x124] ss:$8 sps:$4 sm:$0xff]   ;;  %v1825_v44 = vld [vmem:[%s2322_s13 + $0x120] ss:$8 sps:$4 sm:$0xff]  }
  0x63   : > { %1375 = vmatprep.subr.bf16.mxu1 %v1816_v38  ;;  %v1826_v45 = vld [vmem:[%s2322_s13 + $0x34] ss:$8 sps:$4 sm:$0xff]   ;;  %v1830_v47 = vld [vmem:[%s2322_s13 + $0x30] ss:$8 sps:$4 sm:$0xff]   ;;  %v1832_v49 = vld [vmem:[%s2322_s13 + $0x44] ss:$8 sps:$4 sm:$0xff]  }
  0x64   : > { %v1828_v46 = vld [vmem:[%s2322_s13 + $0x134] ss:$8 sps:$4 sm:$0xff]   ;;  %v1831_v48 = vld [vmem:[%s2322_s13 + $0x130] ss:$8 sps:$4 sm:$0xff]   ;;  %v1834_v50 = vld [vmem:[%s2322_s13 + $0x144] ss:$8 sps:$4 sm:$0xff]  }
  0x65   : > { %1335 = vmatpush1.bf16.msra.mxu0 %v1818_v39  ;;  %v1836_v51 = vld [vmem:[%s2322_s13 + $0x40] ss:$8 sps:$4 sm:$0xff]   ;;  %v1838_v53 = vld [vmem:[%s2322_s13 + $0x54] ss:$8 sps:$4 sm:$0xff]   ;;  %v1842_v55 = vld [vmem:[%s2322_s13 + $0x50] ss:$8 sps:$4 sm:$0xff]  }
  0x66   : > { %1376 = vmatpush1.bf16.msra.mxu1 %v1819_v40  ;;  %1336 = vmatprep.subr.bf16.mxu0 %v1820_v41  ;;  %v1837_v52 = vld [vmem:[%s2322_s13 + $0x140] ss:$8 sps:$4 sm:$0xff]   ;;  %v1840_v54 = vld [vmem:[%s2322_s13 + $0x154] ss:$8 sps:$4 sm:$0xff]   ;;  %v1843_v56 = vld [vmem:[%s2322_s13 + $0x150] ss:$8 sps:$4 sm:$0xff]  }
  0x67   : > { %1377 = vmatprep.subr.bf16.mxu1 %v1822_v42  ;;  %v1844_v57 = vld [vmem:[%s2322_s13 + $0x64] ss:$8 sps:$4 sm:$0xff]   ;;  %v1848_v59 = vld [vmem:[%s2322_s13 + $0x60] ss:$8 sps:$4 sm:$0xff]   ;;  %v1850_v61 = vld [vmem:[%s2322_s13 + $0x74] ss:$8 sps:$4 sm:$0xff]  }
  0x68   : > { %v1846_v58 = vld [vmem:[%s2322_s13 + $0x164] ss:$8 sps:$4 sm:$0xff]   ;;  %v1849_v60 = vld [vmem:[%s2322_s13 + $0x160] ss:$8 sps:$4 sm:$0xff]   ;;  %v1852_v62 = vld [vmem:[%s2322_s13 + $0x174] ss:$8 sps:$4 sm:$0xff]  }
  0x69   : > { %1337 = vmatpush1.bf16.msra.mxu0 %v1824_v43  ;;  %v1854_v63 = vld [vmem:[%s2322_s13 + $0x70] ss:$8 sps:$4 sm:$0xff]   ;;  %v1856_v1 = vld [vmem:[%s2322_s13 + $0x84] ss:$8 sps:$4 sm:$0xff]   ;;  %v1860_v3 = vld [vmem:[%s2322_s13 + $0x80] ss:$8 sps:$4 sm:$0xff]  }
  0x6a   : > { %1378 = vmatpush1.bf16.msra.mxu1 %v1825_v44  ;;  %1338 = vmatprep.subr.bf16.mxu0 %v1826_v45  ;;  %v1855_v0 = vld [vmem:[%s2322_s13 + $0x170] ss:$8 sps:$4 sm:$0xff]   ;;  %v1858_v2 = vld [vmem:[%s2322_s13 + $0x184] ss:$8 sps:$4 sm:$0xff]   ;;  %v1861_v4 = vld [vmem:[%s2322_s13 + $0x180] ss:$8 sps:$4 sm:$0xff]  }
  0x6b   : > { %1379 = vmatprep.subr.bf16.mxu1 %v1828_v46  ;;  %v1862_v5 = vld [vmem:[%s2322_s13 + $0x94] ss:$8 sps:$4 sm:$0xff]   ;;  %v1866_v7 = vld [vmem:[%s2322_s13 + $0x90] ss:$8 sps:$4 sm:$0xff]   ;;  %v1868_v9 = vld [vmem:[%s2322_s13 + $0xa4] ss:$8 sps:$4 sm:$0xff]  }
  0x6c   : > { %v1864_v6 = vld [vmem:[%s2322_s13 + $0x194] ss:$8 sps:$4 sm:$0xff]   ;;  %v1867_v8 = vld [vmem:[%s2322_s13 + $0x190] ss:$8 sps:$4 sm:$0xff]   ;;  %v1870_v10 = vld [vmem:[%s2322_s13 + $0x1a4] ss:$8 sps:$4 sm:$0xff]  }
  0x6d   : > { %1339 = vmatpush1.bf16.msra.mxu0 %v1830_v47  ;;  %v1872_v11 = vld [vmem:[%s2322_s13 + $0xa0] ss:$8 sps:$4 sm:$0xff]   ;;  %v1874_v13 = vld [vmem:[%s2322_s13 + $0xb4] ss:$8 sps:$4 sm:$0xff]   ;;  %v1878_v18 = vld [vmem:[%s2322_s13 + $0xb0] ss:$8 sps:$4 sm:$0xff]  }
  0x6e   : > { %1380 = vmatpush1.bf16.msra.mxu1 %v1831_v48  ;;  %1340 = vmatprep.subr.bf16.mxu0 %v1832_v49  ;;  %v1873_v12 = vld [vmem:[%s2322_s13 + $0x1a0] ss:$8 sps:$4 sm:$0xff]   ;;  %v1876_v14 = vld [vmem:[%s2322_s13 + $0x1b4] ss:$8 sps:$4 sm:$0xff]   ;;  %v1879_v19 = vld [vmem:[%s2322_s13 + $0x1b0] ss:$8 sps:$4 sm:$0xff]  }
  0x6f   : > { %1381 = vmatprep.subr.bf16.mxu1 %v1834_v50  ;;  %v732_v15 = vld [vmem:[%s2306_s30] sm:$0xff]  ;;  %v733_v17 = vld [vmem:[%s2306_s30 + $0x8] sm:$0xff]  ;;  %v1880_v21 = vld [vmem:[%s2322_s13 + $0xc4] ss:$8 sps:$4 sm:$0xff]   ;;  %p1745_p13 = scmp.ne.s32.totalorder %s1996_s17, 2 }
  0x70   : > { %v1644_v16 = vcombine.high %v732_v15, %v732_v15  ;;  %v1646_v20 = vcombine.high %v733_v17, %v733_v17  ;;  %v1882_v22 = vld [vmem:[%s2322_s13 + $0x1c4] ss:$8 sps:$4 sm:$0xff]   ;;  %v1884_v23 = vld [vmem:[%s2322_s13 + $0xc0] ss:$8 sps:$4 sm:$0xff]   ;;  %v1886_v25 = vld [vmem:[%s2322_s13 + $0xd4] ss:$8 sps:$4 sm:$0xff]   ;;  %v1643_v38 = vcombine.low %v732_v15, %v732_v15  ;;  %v1645_v39 = vcombine.low %v733_v17, %v733_v17 }
  0x71   : > { %1341 = vmatpush1.bf16.msra.mxu0 %v1836_v51  ;;  %v1885_v24 = vld [vmem:[%s2322_s13 + $0x1c0] ss:$8 sps:$4 sm:$0xff]   ;;  %v1888_v26 = vld [vmem:[%s2322_s13 + $0x1d4] ss:$8 sps:$4 sm:$0xff]   ;;  %v1890_v27 = vld [vmem:[%s2322_s13 + $0xd0] ss:$8 sps:$4 sm:$0xff]  }
  0x72   : > { %1382 = vmatpush1.bf16.msra.mxu1 %v1837_v52  ;;  %1342 = vmatprep.subr.bf16.mxu0 %v1838_v53  ;;  %v1891_v28 = vld [vmem:[%s2322_s13 + $0x1d0] ss:$8 sps:$4 sm:$0xff]   ;;  %v1892_v29 = vld [vmem:[%s2322_s13 + $0xe4] ss:$8 sps:$4 sm:$0xff]   ;;  %v1896_v31 = vld [vmem:[%s2322_s13 + $0xe0] ss:$8 sps:$4 sm:$0xff]  }
  0x73   : > { %1383 = vmatprep.subr.bf16.mxu1 %v1840_v54  ;;  %1364 = vmatprep.mubr.bf16.mxu0 %v1644_v16  ;;  %v1894_v30 = vld [vmem:[%s2322_s13 + $0x1e4] ss:$8 sps:$4 sm:$0xff]   ;;  %v1897_v32 = vld [vmem:[%s2322_s13 + $0x1e0] ss:$8 sps:$4 sm:$0xff]   ;;  %v1898_v33 = vld [vmem:[%s2322_s13 + $0xf4] ss:$8 sps:$4 sm:$0xff]  }
  0x74   : > { %1405 = vmatprep.mubr.bf16.mxu1 %v1646_v20  ;;  %v1900_v34 = vld [vmem:[%s2322_s13 + $0x1f4] ss:$8 sps:$4 sm:$0xff]   ;;  %v1902_v35 = vld [vmem:[%s2322_s13 + $0xf0] ss:$8 sps:$4 sm:$0xff]   ;;  %v1910_v37 = vld [vmem:[%s2322_s13 + $0x204] ss:$8 sps:$4 sm:$0xff]  }
  0x75   : > { %1343 = vmatpush1.bf16.msra.mxu0 %v1842_v55  ;;  %v1903_v36 = vld [vmem:[%s2322_s13 + $0x1f0] ss:$8 sps:$4 sm:$0xff]   ;;  %v1908_v40 = vld [vmem:[%s2322_s13 + $0x200] ss:$8 sps:$4 sm:$0xff]   ;;  %v1913_v42 = vld [vmem:[%s2322_s13 + $0x214] ss:$8 sps:$4 sm:$0xff]  }
  0x76   : > { %1384 = vmatpush1.bf16.msra.mxu1 %v1843_v56  ;;  %1344 = vmatprep.subr.bf16.mxu0 %v1844_v57  ;;  %v2394_v41 = vld [vmem:[%s2306_s30 + $0x10] sm:$0xff]  ;;  %v1911_v44 = vld [vmem:[%s2322_s13 + $0x210] ss:$8 sps:$4 sm:$0xff]   ;;  %v1919_v47 = vld [vmem:[%s2322_s13 + $0x234] ss:$8 sps:$4 sm:$0xff]  }
  0x77   : > { %1385 = vmatprep.subr.bf16.mxu1 %v1846_v58  ;;  %v1648_v43 = vcombine.high %v2394_v41, %v2394_v41  ;;  %v1916_v45 = vld [vmem:[%s2322_s13 + $0x224] ss:$8 sps:$4 sm:$0xff]   ;;  %v1914_v46 = vld [vmem:[%s2322_s13 + $0x220] ss:$8 sps:$4 sm:$0xff]   ;;  %v1917_v48 = vld [vmem:[%s2322_s13 + $0x230] ss:$8 sps:$4 sm:$0xff]  }
  0x78   : > { %v1922_v49 = vld [vmem:[%s2322_s13 + $0x244] ss:$8 sps:$4 sm:$0xff]   ;;  %v1920_v50 = vld [vmem:[%s2322_s13 + $0x240] ss:$8 sps:$4 sm:$0xff]   ;;  %v1925_v51 = vld [vmem:[%s2322_s13 + $0x254] ss:$8 sps:$4 sm:$0xff]  }
  0x79   : > { %1345 = vmatpush1.bf16.msra.mxu0 %v1848_v59  ;;  %v1923_v52 = vld [vmem:[%s2322_s13 + $0x250] ss:$8 sps:$4 sm:$0xff]   ;;  %v1928_v53 = vld [vmem:[%s2322_s13 + $0x264] ss:$8 sps:$4 sm:$0xff]   ;;  %v1926_v54 = vld [vmem:[%s2322_s13 + $0x260] ss:$8 sps:$4 sm:$0xff]  }
  0x7a   : > { %1386 = vmatpush1.bf16.msra.mxu1 %v1849_v60  ;;  %1346 = vmatprep.subr.bf16.mxu0 %v1850_v61  ;;  %v1931_v55 = vld [vmem:[%s2322_s13 + $0x274] ss:$8 sps:$4 sm:$0xff]   ;;  %v1929_v56 = vld [vmem:[%s2322_s13 + $0x270] ss:$8 sps:$4 sm:$0xff]   ;;  %v1934_v57 = vld [vmem:[%s2322_s13 + $0x284] ss:$8 sps:$4 sm:$0xff]  }
  0x7b   : > { %1387 = vmatprep.subr.bf16.mxu1 %v1852_v62  ;;  %v1932_v58 = vld [vmem:[%s2322_s13 + $0x280] ss:$8 sps:$4 sm:$0xff]   ;;  %v1937_v59 = vld [vmem:[%s2322_s13 + $0x294] ss:$8 sps:$4 sm:$0xff]   ;;  %v1935_v60 = vld [vmem:[%s2322_s13 + $0x290] ss:$8 sps:$4 sm:$0xff]  }
  0x7c   : > { %v1940_v61 = vld [vmem:[%s2322_s13 + $0x2a4] ss:$8 sps:$4 sm:$0xff]   ;;  %v1938_v62 = vld [vmem:[%s2322_s13 + $0x2a0] ss:$8 sps:$4 sm:$0xff]   ;;  %v730_v20 = vld [vmem:[#allocation2] sm:$0xff] }
  0x7d   : > { %1347 = vmatpush1.bf16.msra.mxu0 %v1854_v63  ;;  %v1943_v63 = vld [vmem:[%s2322_s13 + $0x2b4] ss:$8 sps:$4 sm:$0xff]  }
  0x7e   : > { %1388 = vmatpush1.bf16.msra.mxu1 %v1855_v0  ;;  %1348 = vmatprep.subr.bf16.mxu0 %v1856_v1  ;;  %v1941_v0 = vld [vmem:[%s2322_s13 + $0x2b0] ss:$8 sps:$4 sm:$0xff]   ;;  %v1946_v1 = vld [vmem:[%s2322_s13 + $0x2c4] ss:$8 sps:$4 sm:$0xff]  }
  0x7f   : > { %1389 = vmatprep.subr.bf16.mxu1 %v1858_v2  ;;  %v1944_v2 = vld [vmem:[%s2322_s13 + $0x2c0] ss:$8 sps:$4 sm:$0xff]  }
  0x81   : > { %1349 = vmatpush1.bf16.msra.mxu0 %v1860_v3  ;;  %v1949_v3 = vld [vmem:[%s2322_s13 + $0x2d4] ss:$8 sps:$4 sm:$0xff]  }
  0x82   : > { %1390 = vmatpush1.bf16.msra.mxu1 %v1861_v4  ;;  %1350 = vmatprep.subr.bf16.mxu0 %v1862_v5  ;;  %v1947_v4 = vld [vmem:[%s2322_s13 + $0x2d0] ss:$8 sps:$4 sm:$0xff]   ;;  %v1952_v5 = vld [vmem:[%s2322_s13 + $0x2e4] ss:$8 sps:$4 sm:$0xff]  }
  0x83   : > { %1391 = vmatprep.subr.bf16.mxu1 %v1864_v6  ;;  %v1950_v6 = vld [vmem:[%s2322_s13 + $0x2e0] ss:$8 sps:$4 sm:$0xff]  }
  0x85   : > { %1351 = vmatpush1.bf16.msra.mxu0 %v1866_v7  ;;  %v1955_v7 = vld [vmem:[%s2322_s13 + $0x2f4] ss:$8 sps:$4 sm:$0xff]  }
  0x86   : > { %1392 = vmatpush1.bf16.msra.mxu1 %v1867_v8  ;;  %1352 = vmatprep.subr.bf16.mxu0 %v1868_v9  ;;  %v1953_v8 = vld [vmem:[%s2322_s13 + $0x2f0] ss:$8 sps:$4 sm:$0xff]   ;;  %v1647_v9 = vcombine.low %v2394_v41, %v2394_v41 }
  0x87   : > { %1393 = vmatprep.subr.bf16.mxu1 %v1870_v10 }
  0x89   : > { %1353 = vmatpush1.bf16.msra.mxu0 %v1872_v11 }
  0x8a   : > { %1394 = vmatpush1.bf16.msra.mxu1 %v1873_v12  ;;  %1354 = vmatprep.subr.bf16.mxu0 %v1874_v13 }
  0x8b   : > { %1395 = vmatprep.subr.bf16.mxu1 %v1876_v14 }
  0x8d   : > { %1355 = vmatpush1.bf16.msra.mxu0 %v1878_v18 }
  0x8e   : > { %1396 = vmatpush1.bf16.msra.mxu1 %v1879_v19  ;;  %1356 = vmatprep.subr.bf16.mxu0 %v1880_v21 }
  0x8f   : > { %1397 = vmatprep.subr.bf16.mxu1 %v1882_v22 }
  0x91   : > { %1357 = vmatpush1.bf16.msra.mxu0 %v1884_v23  ;;  %v731_v23 = vld [vmem:[#allocation2 + $0x8] sm:$0xff] }
  0x92   : > { %1398 = vmatpush1.bf16.msra.mxu1 %v1885_v24  ;;  %1358 = vmatprep.subr.bf16.mxu0 %v1886_v25 }
  0x93   : > { %1399 = vmatprep.subr.bf16.mxu1 %v1888_v26 }
  0x95   : > { %1359 = vmatpush1.bf16.msra.mxu0 %v1890_v27 }
  0x96   : > { %1400 = vmatpush1.bf16.msra.mxu1 %v1891_v28  ;;  %1360 = vmatprep.subr.bf16.mxu0 %v1892_v29 }
  0x97   : > { %1401 = vmatprep.subr.bf16.mxu1 %v1894_v30  ;;  %v1467_v30 = vlaneseq (!%p1745_p13) }
  0x99   : > { %1361 = vmatpush1.bf16.msra.mxu0 %v1896_v31  ;;  %v1468_v31 = vshrl.u32 (!%p1745_p13), %v1467_v30, 7 }
  0x9a   : > { %1402 = vmatpush1.bf16.msra.mxu1 %v1897_v32  ;;  %1362 = vmatprep.subr.bf16.mxu0 %v1898_v33  ;;  %v1465_v32 = vld [vmem:[%s707_s15] sm:$0x3] (!%p1745_p13) }
  0x9b   : > { %1403 = vmatprep.subr.bf16.mxu1 %v1900_v34  ;;  %v1479_v33 = vld [vmem:[%s712_s8] sm:$0x3] (!%p1745_p13)  ;;  %v1469_v34 = vsub.s32 (!%p1745_p13), 0, %v1468_v31 }
  0x9d   : > { %1363 = vmatpush1.bf16.msra.mxu0 %v1902_v35  ;;  %v1473_v35 = vsub.s32 (!%p1745_p13), 1, %v1468_v31 }
  0x9e   : > { %1404 = vmatpush1.bf16.msra.mxu1 %v1903_v36  ;;  %1414 = vmatprep.subr.bf16.mxu0 %v1910_v37 }
  0x9f   : > { %v1488_v41 = vrot.slane (!%p1745_p13), %v1479_v33, %v1473_v35 }
  0xa0   : > { %1365 = vmatmul.mubr.bf16.vlgmr.msra.gmra.mrb[0].mxu0 %v1643_v38  ;;  %v1470_v38 = vrot.slane (!%p1745_p13), %v1465_v32, %v1469_v34 }
  0xa1   : > { %1406 = vmatmul.mubr.bf16.vlgmr.msra.gmra.mrb[0].mxu1 %v1645_v39  ;;  %1415 = vmatpush1.bf16.msra.mxu0 %v1908_v40  ;;  %v1484_v39 = vrot.slane (!%p1745_p13), %v1479_v33, %v1469_v34  ;;  %v1474_v40 = vrot.slane (!%p1745_p13), %v1465_v32, %v1473_v35 }
  0xa2   : > { %1446 = vmatprep.mubr.bf16.mxu0 %v1648_v43  ;;  %1416 = vmatprep.subr.bf16.mxu0 %v1913_v42 }
  0xa5   : > { %1417 = vmatpush1.bf16.msra.mxu0 %v1911_v44 }
  0xa6   : > { %1418 = vmatprep.subr.bf16.mxu0 %v1916_v45 }
  0xa9   : > { %1419 = vmatpush1.bf16.msra.mxu0 %v1914_v46 }
  0xaa   : > { %1420 = vmatprep.subr.bf16.mxu0 %v1919_v47 }
  0xad   : > { %1421 = vmatpush1.bf16.msra.mxu0 %v1917_v48 }
  0xae   : > { %1422 = vmatprep.subr.bf16.mxu0 %v1922_v49 }
  0xb1   : > { %1423 = vmatpush1.bf16.msra.mxu0 %v1920_v50 }
  0xb2   : > { %1424 = vmatprep.subr.bf16.mxu0 %v1925_v51 }
  0xb5   : > { %1425 = vmatpush1.bf16.msra.mxu0 %v1923_v52 }
  0xb6   : > { %1426 = vmatprep.subr.bf16.mxu0 %v1928_v53 }
  0xb9   : > { %1427 = vmatpush1.bf16.msra.mxu0 %v1926_v54 }
  0xba   : > { %1428 = vmatprep.subr.bf16.mxu0 %v1931_v55 }
  0xbd   : > { %1429 = vmatpush1.bf16.msra.mxu0 %v1929_v56 }
  0xbe   : > { %1430 = vmatprep.subr.bf16.mxu0 %v1934_v57 }
  0xc1   : > { %1431 = vmatpush1.bf16.msra.mxu0 %v1932_v58 }
  0xc2   : > { %1432 = vmatprep.subr.bf16.mxu0 %v1937_v59 }
  0xc5   : > { %1433 = vmatpush1.bf16.msra.mxu0 %v1935_v60 }
  0xc6   : > { %1434 = vmatprep.subr.bf16.mxu0 %v1940_v61 }
  0xc9   : > { %1435 = vmatpush1.bf16.msra.mxu0 %v1938_v62 }
  0xca   : > { %1436 = vmatprep.subr.bf16.mxu0 %v1943_v63 }
  0xcd   : > { %1437 = vmatpush1.bf16.msra.mxu0 %v1941_v0 }
  0xce   : > { %1438 = vmatprep.subr.bf16.mxu0 %v1946_v1 }
  0xd1   : > { %1439 = vmatpush1.bf16.msra.mxu0 %v1944_v2 }
  0xd2   : > { %1440 = vmatprep.subr.bf16.mxu0 %v1949_v3 }
  0xd5   : > { %1441 = vmatpush1.bf16.msra.mxu0 %v1947_v4 }
  0xd6   : > { %1442 = vmatprep.subr.bf16.mxu0 %v1952_v5 }
  0xd9   : > { %1443 = vmatpush1.bf16.msra.mxu0 %v1950_v6 }
  0xda   : > { %1444 = vmatprep.subr.bf16.mxu0 %v1955_v7 }
  0xdd   : > { %1445 = vmatpush1.bf16.msra.mxu0 %v1953_v8 }
  0xe0   : > { %1447 = vmatmul.mubr.bf16.vlgmr.msra.gmra.mrb[4].mxu0 %v1647_v9 }
 0x173   : > { %v1366_v10 = vpop.f32.mrb[0].mxu0 }
 0x174   : > { %v1407_v11 = vpop.f32.mrb[0].mxu1  ;;  %v1368_v13 = vpop.f32.mrb[1].mxu0 }
 0x175   : > { %v1408_v12 = vadd.f32 %v1407_v11, %v1366_v10  ;;  %v1409_v14 = vpop.f32.mrb[1].mxu1  ;;  %v1370_v16 = vpop.f32.mrb[2].mxu0 }
 0x176   : > { %v1410_v15 = vadd.f32 %v1409_v14, %v1368_v13  ;;  %v1411_v17 = vpop.f32.mrb[2].mxu1  ;;  %v1371_v18 = vpop.f32.mrb[3].mxu0 }
 0x177   : > { %v1412_v19 = vpop.f32.mrb[3].mxu1 }
 0x1b3   : > { %v1448_v21 = vpop.f32.mrb[4].mxu0  ;;  %1462 = sbr.rel (%p1745_p13) target bundleno = 456 (0x1c8), region = 82 }
 0x1b4   : > { %v1449_v22 = vadd.f32 %v1448_v21, %v1408_v12  ;;  %v1450_v24 = vpop.f32.mrb[5].mxu0 }
 0x1b5   : > { %v1451_v25 = vadd.f32 %v1450_v24, %v1410_v15  ;;  %v1452_v26 = vpop.f32.mrb[6].mxu0 }
 0x1b6   : > { %v1455_v27 = vadd.f32 %v1449_v22, %v730_v20  ;;  %v1453_v28 = vpop.f32.mrb[7].mxu0 }
 0x1b7   : > { %v1456_v29 = vadd.f32 %v1451_v25, %v731_v23 }
 0x1b8   : > { %1457 = vst [vmem:[#allocation2] sm:$0xff] %v1455_v27 }
 0x1b9   : > { %1458 = vst [vmem:[#allocation2 + $0x8] sm:$0xff] %v1456_v29 }
 0x1bf   : > { %v1463_v36 = vld [vmem:[#allocation2] sm:$0xff] }
 0x1c0   : > { %v1464_v37 = vld [vmem:[#allocation2 + $0x8] sm:$0xff]  ;;  %v1477_v42 = vmul.f32 %v1470_v38, %v1463_v36 }
 0x1c1   : > { %v1478_v43 = vmul.f32 %v1474_v40, %v1464_v37 }
 0x1c2   : > { %v1491_v44 = vadd.f32 %v1484_v39, %v1477_v42 }
 0x1c3   : > { %v1492_v45 = vadd.f32 %v1488_v41, %v1478_v43 }
 0x1c4   : > { %v1493_v46 = vmax.f32 %v1491_v44, 0.0 }
 0x1c5   : > { %v1494_v47 = vmax.f32 %v1492_v45, 0.0 }
 0x1c6   : > { %1495 = vst [vmem:[%s2320_s12] sm:$0xff] %v1493_v46 }
 0x1c7   : > { %1496 = vst [vmem:[%s2320_s12 + $0x8] sm:$0xff] %v1494_v47 }
 0x1c8 PF: > { %s14_s21 = sadd.s32 1, %s2012_s21   ;;  %s2469_s15 = smov %s1992_s16 }
 0x1c9   : > { %p11_p0 = scmp.ge.s32.totalorder %s14_s21, 8   ;;  %s2470_s16 = smov %s2091_s28 }
 0x1ca   : > { %s2471_s17 = smov %s2004_s19  ;;  %s2472_s18 = smov %s2008_s20 }
 0x1cb   : > { %s2473_s19 = smov %s2476_s22  ;;  %s2474_s20 = smov %s2480_s23 }
 0x1cc   :  { %13 = sbr.rel (!%p11_p0) target bundleno = 4 (0x4), region = 126 }

// kernel: _lambda_.39
= control target key start
LH: loop header
LB: loop body
LE: loop exit
PB: predicated region body
PF: predicated region fallthrough
CT: control target
= control target key end

     0   :  { %s1094_s15 = smov 0   ;;  %s1096_s16 = smov 0   ;;  %s1276_s0 = inlined_call_operand.vmem [shape: bf16[8,256], index: 0, kind: input, shape index: {}]   ;;  %s1277_s1 = inlined_call_operand.vmem [shape: bf16[256,512], index: 1, kind: input, shape index: {}]   ;;  %s1278_s2 = inlined_call_operand.vmem [shape: f32[1,512], index: 2, kind: input, shape index: {}]   ;;  %s1279_s3 = inlined_call_operand.vmem [shape: f32[1,512], index: 3, kind: input, shape index: {}]   ;;  %s1280_s4 = inlined_call_operand.vmem [shape: f32[8,512], index: 4, kind: output, shape index: {}]  }
   0x1   :  { %s1098_s17 = smov 0   ;;  %s1100_s18 = smov 0  }
   0x2   :  { %s1102_s19 = smov 0  }
   0x3 LB: > { %s29_s20 = sadd.s32 1, %s1063_s18  ;;  %p77_p1 = scmp.ne.s32.totalorder %s1055_s16, %s1051_s15  ;;  %s1067_s19 = sphi %s1102_s19, %s14_s19   ;;  %s1063_s18 = sphi %s1100_s18, %s1284_s18   ;;  %s1059_s17 = sphi %s1098_s17, %s1283_s17   ;;  %s1055_s16 = sphi %s1096_s16, %s1282_s16   ;;  %s1051_s15 = sphi %s1094_s15, %s1281_s15  }
   0x4   : > { %p31_p0 = scmp.ge.s32.totalorder %s29_s20, 2  ;;  %p78_p2 = scmp.eq.s32.totalorder %s1067_s19, 0 }
   0x5   : > { %s70_s22 = sadd.s32 1, %s1055_s16  ;;  %p892_p5 = scmp.ge.s32.totalorder %s1067_s19, 2 }
   0x6   : > { %s1286_s20 = smov (%p31_p0, %s29_s20), 0  ;;  %p79_p3 = por %p78_p2, %p77_p1 }
   0x7   : > { %s66_s21 = ssub.s32 %s1063_s18, %s1286_s20  ;;  %196 = sbr.rel (%p892_p5) target bundleno = 34 (0x22), region = 20 }
   0x8   : > { %p68_p4 = scmp.eq.s32.totalorder %s66_s21, 0 }
   0xa   : > { %s1129_s23 = scalar_select %p68_p4, %s1055_s16, %s70_s22  }
   0xe   : > { %199 = sbr.rel (!%p79_p3) target bundleno = 34 (0x22), region = 24  ;;  %s201_s24 = sand.u32 (%p79_p3), 1, %s1055_s16  }
   0xf   : > { %s938_s25 = sshll.u32 (%p79_p3), %s1063_s18, 3  ;;  %s893_s26 = sshll.u32 (%p79_p3), %s201_s24, 8 }
  0x10   : > { %s1137_s29 = scalar_lea.vmem (%p79_p3), %s1277_s1, %s938_s25  ;;  %s1142_s30 = scalar_lea.vmem (%p79_p3), [#allocation3], %s893_s26 }
  0x11   : > { %v299_v0 = vld [vmem:[%s1137_s29] sm:$0xff] (%p79_p3)  ;;  %v301_v1 = vld [vmem:[%s1137_s29 + $0x10] sm:$0xff] (%p79_p3) }
  0x12   : > { %v303_v2 = vld [vmem:[%s1137_s29 + $0x20] sm:$0xff] (%p79_p3)  ;;  %300 = vst [vmem:[%s1142_s30] sm:$0xff] (%p79_p3), %v299_v0  ;;  %302 = vst [vmem:[%s1142_s30 + $0x8] sm:$0xff] (%p79_p3), %v301_v1  ;;  %v305_v3 = vld [vmem:[%s1137_s29 + $0x30] sm:$0xff] (%p79_p3) }
  0x13   : > { %304 = vst [vmem:[%s1142_s30 + $0x10] sm:$0xff] (%p79_p3), %v303_v2  ;;  %v307_v4 = vld [vmem:[%s1137_s29 + $0x40] sm:$0xff] (%p79_p3)  ;;  %v309_v5 = vld [vmem:[%s1137_s29 + $0x50] sm:$0xff] (%p79_p3)  ;;  %306 = vst [vmem:[%s1142_s30 + $0x18] sm:$0xff] (%p79_p3), %v305_v3 }
  0x14   : > { %308 = vst [vmem:[%s1142_s30 + $0x20] sm:$0xff] (%p79_p3), %v307_v4  ;;  %310 = vst [vmem:[%s1142_s30 + $0x28] sm:$0xff] (%p79_p3), %v309_v5  ;;  %v311_v6 = vld [vmem:[%s1137_s29 + $0x60] sm:$0xff] (%p79_p3)  ;;  %v313_v7 = vld [vmem:[%s1137_s29 + $0x70] sm:$0xff] (%p79_p3) }
  0x15   : > { %v315_v8 = vld [vmem:[%s1137_s29 + $0x80] sm:$0xff]  ;;  %312 = vst [vmem:[%s1142_s30 + $0x30] sm:$0xff] %v311_v6  ;;  %314 = vst [vmem:[%s1142_s30 + $0x38] sm:$0xff] %v313_v7  ;;  %v317_v9 = vld [vmem:[%s1137_s29 + $0x90] sm:$0xff] }
  0x16   : > { %316 = vst [vmem:[%s1142_s30 + $0x40] sm:$0xff] %v315_v8  ;;  %v319_v10 = vld [vmem:[%s1137_s29 + $0xa0] sm:$0xff]  ;;  %v321_v11 = vld [vmem:[%s1137_s29 + $0xb0] sm:$0xff]  ;;  %318 = vst [vmem:[%s1142_s30 + $0x48] sm:$0xff] %v317_v9 }
  0x17   : > { %320 = vst [vmem:[%s1142_s30 + $0x50] sm:$0xff] %v319_v10  ;;  %322 = vst [vmem:[%s1142_s30 + $0x58] sm:$0xff] %v321_v11  ;;  %v323_v12 = vld [vmem:[%s1137_s29 + $0xc0] sm:$0xff]  ;;  %v325_v13 = vld [vmem:[%s1137_s29 + $0xd0] sm:$0xff] }
  0x18   : > { %v327_v14 = vld [vmem:[%s1137_s29 + $0xe0] sm:$0xff]  ;;  %324 = vst [vmem:[%s1142_s30 + $0x60] sm:$0xff] %v323_v12  ;;  %326 = vst [vmem:[%s1142_s30 + $0x68] sm:$0xff] %v325_v13  ;;  %v329_v15 = vld [vmem:[%s1137_s29 + $0xf0] sm:$0xff] }
  0x19   : > { %328 = vst [vmem:[%s1142_s30 + $0x70] sm:$0xff] %v327_v14  ;;  %v331_v16 = vld [vmem:[%s1137_s29 + $0x100] sm:$0xff]  ;;  %v333_v17 = vld [vmem:[%s1137_s29 + $0x110] sm:$0xff]  ;;  %330 = vst [vmem:[%s1142_s30 + $0x78] sm:$0xff] %v329_v15 }
  0x1a   : > { %332 = vst [vmem:[%s1142_s30 + $0x80] sm:$0xff] %v331_v16  ;;  %334 = vst [vmem:[%s1142_s30 + $0x88] sm:$0xff] %v333_v17  ;;  %v335_v18 = vld [vmem:[%s1137_s29 + $0x120] sm:$0xff]  ;;  %v337_v19 = vld [vmem:[%s1137_s29 + $0x130] sm:$0xff] }
  0x1b   : > { %v339_v20 = vld [vmem:[%s1137_s29 + $0x140] sm:$0xff]  ;;  %336 = vst [vmem:[%s1142_s30 + $0x90] sm:$0xff] %v335_v18  ;;  %338 = vst [vmem:[%s1142_s30 + $0x98] sm:$0xff] %v337_v19  ;;  %v341_v21 = vld [vmem:[%s1137_s29 + $0x150] sm:$0xff] }
  0x1c   : > { %340 = vst [vmem:[%s1142_s30 + $0xa0] sm:$0xff] %v339_v20  ;;  %v343_v22 = vld [vmem:[%s1137_s29 + $0x160] sm:$0xff]  ;;  %v345_v23 = vld [vmem:[%s1137_s29 + $0x170] sm:$0xff]  ;;  %342 = vst [vmem:[%s1142_s30 + $0xa8] sm:$0xff] %v341_v21 }
  0x1d   : > { %344 = vst [vmem:[%s1142_s30 + $0xb0] sm:$0xff] %v343_v22  ;;  %346 = vst [vmem:[%s1142_s30 + $0xb8] sm:$0xff] %v345_v23  ;;  %v347_v24 = vld [vmem:[%s1137_s29 + $0x180] sm:$0xff]  ;;  %v349_v25 = vld [vmem:[%s1137_s29 + $0x190] sm:$0xff] }
  0x1e   : > { %v351_v26 = vld [vmem:[%s1137_s29 + $0x1a0] sm:$0xff]  ;;  %348 = vst [vmem:[%s1142_s30 + $0xc0] sm:$0xff] %v347_v24  ;;  %350 = vst [vmem:[%s1142_s30 + $0xc8] sm:$0xff] %v349_v25  ;;  %v353_v27 = vld [vmem:[%s1137_s29 + $0x1b0] sm:$0xff] }
  0x1f   : > { %352 = vst [vmem:[%s1142_s30 + $0xd0] sm:$0xff] %v351_v26  ;;  %v355_v28 = vld [vmem:[%s1137_s29 + $0x1c0] sm:$0xff]  ;;  %v357_v29 = vld [vmem:[%s1137_s29 + $0x1d0] sm:$0xff]  ;;  %354 = vst [vmem:[%s1142_s30 + $0xd8] sm:$0xff] %v353_v27 }
  0x20   : > { %356 = vst [vmem:[%s1142_s30 + $0xe0] sm:$0xff] %v355_v28  ;;  %358 = vst [vmem:[%s1142_s30 + $0xe8] sm:$0xff] %v357_v29  ;;  %v359_v30 = vld [vmem:[%s1137_s29 + $0x1e0] sm:$0xff]  ;;  %v361_v31 = vld [vmem:[%s1137_s29 + $0x1f0] sm:$0xff] }
  0x21   : > { %360 = vst [vmem:[%s1142_s30 + $0xf0] sm:$0xff] %v359_v30  ;;  %362 = vst [vmem:[%s1142_s30 + $0xf8] sm:$0xff] %v361_v31 }
  0x22 PF: > { %p896_p6 = scmp.ge.s32.totalorder %s1067_s19, 1  ;;  %p383_p7 = scmp.lt.s32.totalorder %s1067_s19, 3 }
  0x24   : > { %p384_p8 = pnand %p896_p6, %p383_p7 }
  0x25   : > { %s390_s5 = sand.u32 (!%p384_p8), 1, %s1051_s15   ;;  %v1211_v32 = vld [vmem:[%s1276_s0] sm:$0xff] (!%p384_p8)  ;;  %s898_s10 = sshll.u32 (!%p384_p8), %s1059_s17, 1  ;;  %v728_v3 = vlaneseq (!%p384_p8) }
  0x26   : > { %387 = sbr.rel (%p384_p8) target bundleno = 323 (0x143), region = 70  ;;  %s897_s8 = sshll.u32 (!%p384_p8), %s390_s5, 8  ;;  %v903_v33 = vcombine.high (!%p384_p8), %v1211_v32, %v1211_v32  ;;  %v902_v2 = vcombine.low (!%p384_p8), %v1211_v32, %v1211_v32 }
  0x27   : > { %s1215_s9 = scalar_lea.vmem (!%p384_p8), [#allocation3], %s897_s8  ;;  %p449_p9 = scmp.lt.s32.totalorder (!%p384_p8), %s898_s10, 3  ;;  %v729_v4 = vshrl.u32 (!%p384_p8), %v728_v3, 7 }
  0x28   : > { %v979_v34 = vld [vmem:[%s1215_s9 + $0x4] ss:$8 sps:$4 sm:$0xff] (!%p384_p8)   ;;  %708 = vmatprep.mubr.bf16.mxu0 (!%p384_p8), %v903_v33  ;;  %v981_v35 = vld [vmem:[%s1215_s9] ss:$8 sps:$4 sm:$0xff] (!%p384_p8)   ;;  %v982_v36 = vld [vmem:[%s1215_s9 + $0x14] ss:$8 sps:$4 sm:$0xff] (!%p384_p8)  }
  0x29   : > { %676 = vmatprep.subr.bf16.mxu0 (!%p384_p8), %v979_v34  ;;  %v984_v37 = vld [vmem:[%s1215_s9 + $0x10] ss:$8 sps:$4 sm:$0xff] (!%p384_p8)   ;;  %v985_v38 = vld [vmem:[%s1215_s9 + $0x24] ss:$8 sps:$4 sm:$0xff] (!%p384_p8)   ;;  %v987_v39 = vld [vmem:[%s1215_s9 + $0x20] ss:$8 sps:$4 sm:$0xff] (!%p384_p8)  }
  0x2a   : > { %677 = vmatpush1.bf16.msra.mxu0 (!%p384_p8), %v981_v35  ;;  %v988_v40 = vld [vmem:[%s1215_s9 + $0x34] ss:$8 sps:$4 sm:$0xff] (!%p384_p8)   ;;  %v990_v41 = vld [vmem:[%s1215_s9 + $0x30] ss:$8 sps:$4 sm:$0xff] (!%p384_p8)   ;;  %v991_v42 = vld [vmem:[%s1215_s9 + $0x44] ss:$8 sps:$4 sm:$0xff] (!%p384_p8)  }
  0x2b   : > { %678 = vmatprep.subr.bf16.mxu0 (!%p384_p8), %v982_v36  ;;  %v993_v43 = vld [vmem:[%s1215_s9 + $0x40] ss:$8 sps:$4 sm:$0xff] (!%p384_p8)   ;;  %v994_v44 = vld [vmem:[%s1215_s9 + $0x54] ss:$8 sps:$4 sm:$0xff] (!%p384_p8)   ;;  %v996_v45 = vld [vmem:[%s1215_s9 + $0x50] ss:$8 sps:$4 sm:$0xff] (!%p384_p8)  }
  0x2c   : > { %v997_v46 = vld [vmem:[%s1215_s9 + $0x64] ss:$8 sps:$4 sm:$0xff] (!%p384_p8)   ;;  %v999_v47 = vld [vmem:[%s1215_s9 + $0x60] ss:$8 sps:$4 sm:$0xff] (!%p384_p8)   ;;  %v1000_v48 = vld [vmem:[%s1215_s9 + $0x74] ss:$8 sps:$4 sm:$0xff] (!%p384_p8)  }
  0x2d   : > { %v1002_v49 = vld [vmem:[%s1215_s9 + $0x70] ss:$8 sps:$4 sm:$0xff]   ;;  %v1003_v50 = vld [vmem:[%s1215_s9 + $0x84] ss:$8 sps:$4 sm:$0xff]   ;;  %v1005_v51 = vld [vmem:[%s1215_s9 + $0x80] ss:$8 sps:$4 sm:$0xff]  }
  0x2e   : > { %679 = vmatpush1.bf16.msra.mxu0 %v984_v37  ;;  %v1006_v52 = vld [vmem:[%s1215_s9 + $0x94] ss:$8 sps:$4 sm:$0xff]   ;;  %v1008_v53 = vld [vmem:[%s1215_s9 + $0x90] ss:$8 sps:$4 sm:$0xff]   ;;  %v1009_v54 = vld [vmem:[%s1215_s9 + $0xa4] ss:$8 sps:$4 sm:$0xff]  }
  0x2f   : > { %680 = vmatprep.subr.bf16.mxu0 %v985_v38  ;;  %v1011_v55 = vld [vmem:[%s1215_s9 + $0xa0] ss:$8 sps:$4 sm:$0xff]   ;;  %v1012_v56 = vld [vmem:[%s1215_s9 + $0xb4] ss:$8 sps:$4 sm:$0xff]   ;;  %v1014_v57 = vld [vmem:[%s1215_s9 + $0xb0] ss:$8 sps:$4 sm:$0xff]  }
  0x30   : > { %v1015_v58 = vld [vmem:[%s1215_s9 + $0xc4] ss:$8 sps:$4 sm:$0xff]   ;;  %v1017_v59 = vld [vmem:[%s1215_s9 + $0xc0] ss:$8 sps:$4 sm:$0xff]   ;;  %v1018_v60 = vld [vmem:[%s1215_s9 + $0xd4] ss:$8 sps:$4 sm:$0xff]  }
  0x31   : > { %v1020_v61 = vld [vmem:[%s1215_s9 + $0xd0] ss:$8 sps:$4 sm:$0xff]   ;;  %v1021_v62 = vld [vmem:[%s1215_s9 + $0xe4] ss:$8 sps:$4 sm:$0xff]   ;;  %v1023_v63 = vld [vmem:[%s1215_s9 + $0xe0] ss:$8 sps:$4 sm:$0xff]  }
  0x32   : > { %681 = vmatpush1.bf16.msra.mxu0 %v987_v39  ;;  %v1024_v0 = vld [vmem:[%s1215_s9 + $0xf4] ss:$8 sps:$4 sm:$0xff]   ;;  %v1026_v1 = vld [vmem:[%s1215_s9 + $0xf0] ss:$8 sps:$4 sm:$0xff]   ;;  %s1288_s10 = smov (!%p449_p9, %s898_s10), 3  ;;  %v730_v5 = vsub.s32 0, %v729_v4 }
  0x33   : > { %682 = vmatprep.subr.bf16.mxu0 %v988_v40  ;;  %s451_s13 = scalar_lea.vmem %s1278_s2, %s1288_s10  ;;  %s456_s21 = scalar_lea.vmem %s1279_s3, %s1288_s10  ;;  %v734_v7 = vsub.s32 1, %v729_v4 }
  0x34   : > { %v726_v6 = vld [vmem:[%s451_s13] sm:$0x3]  ;;  %s901_s22 = sshll.u32 %s1288_s10, 3 }
  0x35   : > { %v740_v8 = vld [vmem:[%s456_s21] sm:$0x3]  ;;  %v731_v9 = vrot.slane %v726_v6, %v730_v5  ;;  %v735_v10 = vrot.slane %v726_v6, %v734_v7  ;;  %s466_s25 = scalar_lea.vmem %s1280_s4, %s901_s22 }
  0x36   : > { %683 = vmatpush1.bf16.msra.mxu0 %v990_v41  ;;  %v745_v11 = vrot.slane %v740_v8, %v730_v5  ;;  %v749_v13 = vrot.slane %v740_v8, %v734_v7 }
  0x37   : > { %684 = vmatprep.subr.bf16.mxu0 %v991_v42 }
  0x3a   : > { %685 = vmatpush1.bf16.msra.mxu0 %v993_v43 }
  0x3b   : > { %686 = vmatprep.subr.bf16.mxu0 %v994_v44 }
  0x3e   : > { %687 = vmatpush1.bf16.msra.mxu0 %v996_v45 }
  0x3f   : > { %688 = vmatprep.subr.bf16.mxu0 %v997_v46 }
  0x42   : > { %689 = vmatpush1.bf16.msra.mxu0 %v999_v47 }
  0x43   : > { %690 = vmatprep.subr.bf16.mxu0 %v1000_v48 }
  0x46   : > { %691 = vmatpush1.bf16.msra.mxu0 %v1002_v49 }
  0x47   : > { %692 = vmatprep.subr.bf16.mxu0 %v1003_v50 }
  0x4a   : > { %693 = vmatpush1.bf16.msra.mxu0 %v1005_v51 }
  0x4b   : > { %694 = vmatprep.subr.bf16.mxu0 %v1006_v52 }
  0x4e   : > { %695 = vmatpush1.bf16.msra.mxu0 %v1008_v53 }
  0x4f   : > { %696 = vmatprep.subr.bf16.mxu0 %v1009_v54 }
  0x52   : > { %697 = vmatpush1.bf16.msra.mxu0 %v1011_v55 }
  0x53   : > { %698 = vmatprep.subr.bf16.mxu0 %v1012_v56 }
  0x56   : > { %699 = vmatpush1.bf16.msra.mxu0 %v1014_v57 }
  0x57   : > { %700 = vmatprep.subr.bf16.mxu0 %v1015_v58 }
  0x5a   : > { %701 = vmatpush1.bf16.msra.mxu0 %v1017_v59 }
  0x5b   : > { %702 = vmatprep.subr.bf16.mxu0 %v1018_v60 }
  0x5e   : > { %703 = vmatpush1.bf16.msra.mxu0 %v1020_v61 }
  0x5f   : > { %704 = vmatprep.subr.bf16.mxu0 %v1021_v62 }
  0x62   : > { %705 = vmatpush1.bf16.msra.mxu0 %v1023_v63 }
  0x63   : > { %706 = vmatprep.subr.bf16.mxu0 %v1024_v0 }
  0x66   : > { %707 = vmatpush1.bf16.msra.mxu0 %v1026_v1 }
  0x69   : > { %709 = vmatmul.mubr.bf16.vlgmr.msra.gmra.mrb[0].mxu0 %v902_v2 }
 0x13c   : > { %v710_v12 = vpop.f32.mrb[0].mxu0 }
 0x13d   : > { %v738_v14 = vmul.f32 %v731_v9, %v710_v12  ;;  %v712_v15 = vpop.f32.mrb[1].mxu0 }
 0x13e   : > { %v739_v16 = vmul.f32 %v735_v10, %v712_v15  ;;  %v714_v17 = vpop.f32.mrb[2].mxu0 }
 0x13f   : > { %v752_v18 = vadd.f32 %v745_v11, %v738_v14  ;;  %v715_v19 = vpop.f32.mrb[3].mxu0 }
 0x140   : > { %v753_v20 = vadd.f32 %v749_v13, %v739_v16 }
 0x141   : > { %754 = vst [vmem:[%s466_s25] sm:$0xff] %v752_v18 }
 0x142   : > { %755 = vst [vmem:[%s466_s25 + $0x8] sm:$0xff] %v753_v20 }
 0x143 PF: > { %s14_s19 = sadd.s32 1, %s1067_s19   ;;  %s1281_s15 = smov %s1055_s16 }
 0x144   : > { %p11_p10 = scmp.ge.s32.totalorder %s14_s19, 4   ;;  %s1282_s16 = smov %s1129_s23 }
 0x145   : > { %s1283_s17 = smov %s1063_s18  ;;  %s1284_s18 = smov %s1286_s20 }
 0x146   :  { %13 = sbr.rel (!%p11_p10) target bundleno = 3 (0x3), region = 126 }

// kernel: _lambda_.41
= control target key start
LH: loop header
LB: loop body
LE: loop exit
PB: predicated region body
PF: predicated region fallthrough
CT: control target
= control target key end

     0   :  { %s2563_s0 = inlined_call_operand.vmem [shape: bf16[8,4608], index: 0, kind: input, shape index: {}]   ;;  %s2564_s1 = inlined_call_operand.vmem [shape: bf16[4608,512], index: 1, kind: input, shape index: {}]   ;;  %s2565_s2 = inlined_call_operand.vmem [shape: f32[1,512], index: 2, kind: input, shape index: {}]   ;;  %s2566_s3 = inlined_call_operand.vmem [shape: f32[1,512], index: 3, kind: input, shape index: {}]   ;;  %s2567_s4 = inlined_call_operand.vmem [shape: f32[8,512], index: 4, kind: input, shape index: {}]   ;;  %s2568_s5 = inlined_call_operand.vmem [shape: f32[8,512], index: 5, kind: output, shape index: {}]  }
   0x1   :  { %2569 = sst [smem:[#allocation4_spill]] %s2564_s1 }
   0x2   :  { %s2132_s18 = smov 0   ;;  %s2134_s19 = smov 0  }
   0x3   :  { %s2136_s20 = smov 0   ;;  %s2138_s21 = smov 0  }
   0x4   :  { %s2140_s22 = smov 0   ;;  %s2142_s23 = smov 0  }
   0x5   :  { %s2144_s24 = smov 0  }
   0x6 LB: > { %s27_s25 = sadd.s32 1, %s2091_s22  ;;  %s30_s26 = sadd.s32 1, %s2095_s23  ;;  %s2099_s24 = sphi %s2144_s24, %s15_s24   ;;  %s2095_s23 = sphi %s2142_s23, %s2576_s23   ;;  %s2091_s22 = sphi %s2140_s22, %s2575_s22   ;;  %s2087_s21 = sphi %s2138_s21, %s2574_s21   ;;  %s2083_s20 = sphi %s2136_s20, %s2573_s20   ;;  %s2079_s19 = sphi %s2134_s19, %s2572_s19   ;;  %s2075_s18 = sphi %s2132_s18, %s2571_s18  }
   0x7   : > { %p28_p0 = scmp.ge.s32.totalorder %s27_s25, 6  ;;  %p78_p1 = scmp.ne.s32.totalorder %s2079_s19, %s2075_s18 }
   0x8   : > { %p79_p2 = scmp.eq.s32.totalorder %s2099_s24, 0  ;;  %s71_s30 = sadd.s32 1, %s2079_s19 }
   0x9   : > { %s2578_s25 = smov (%p28_p0, %s27_s25), 0  ;;  %s2580_s26 = smov (!%p28_p0, %s30_s26), %s2095_s23 }
   0xa   : > { %p80_p3 = por %p79_p2, %p78_p1  ;;  %p32_p4 = scmp.ge.s32.totalorder %s2580_s26, 2 }
   0xb   : > { %s66_s27 = ssub.s32 %s2091_s22, %s2578_s25  ;;  %p1717_p6 = scmp.ge.s32.totalorder %s2099_s24, 12 }
   0xc   : > { %s2582_s26 = smov (%p32_p4, %s2580_s26), 0 }
   0xd   : > { %s67_s28 = ssub.s32 %s2095_s23, %s2582_s26  ;;  %212 = sbr.rel (%p1717_p6) target bundleno = 78 (0x4e), region = 16 }
   0xe   : > { %s68_s29 = sor.u32 %s67_s28, %s66_s27 }
   0xf   : > { %p69_p5 = scmp.eq.s32.totalorder %s68_s29, 0 }
  0x11   : > { %s2183_s6 = scalar_select %p69_p5, %s2079_s19, %s71_s30  }
  0x14   : > { %228 = sbr.rel (!%p80_p3) target bundleno = 78 (0x4e), region = 24  ;;  %s230_s7 = sand.u32 (%p80_p3), 1, %s2079_s19  }
  0x15   : > { %s1836_s8 = smul.u32 (%p80_p3), 768, %s230_s7  ;;  %s1718_s9 = sshll.u32 (%p80_p3), %s2095_s23, 1 }
  0x16   : > { %s1835_s10 = smul.u32 (%p80_p3), 384, %s2091_s22  ;;  %s2570_s1 = sld [smem:[#allocation4_spill]] (%p80_p3) }
  0x17   : > { %s2197_s16 = scalar_lea.vmem (%p80_p3), [#allocation3], %s1836_s8 }
  0x18   : > { %s236_s11 = sadd.s32 (%p80_p3), %s1835_s10, %s1718_s9 }
  0x19   : > { %s1720_s12 = sshll.u32 (%p80_p3), %s236_s11, 2 }
  0x1c   : > { %s2192_s15 = scalar_lea.vmem %s2570_s1, %s1720_s12 }
  0x1d   : > { %v456_v0 = vld [vmem:[%s2192_s15] sm:$0xff]  ;;  %v458_v1 = vld [vmem:[%s2192_s15 + $0x10] sm:$0xff] }
  0x1e   : > { %v460_v2 = vld [vmem:[%s2192_s15 + $0x20] sm:$0xff]  ;;  %457 = vst [vmem:[%s2197_s16] sm:$0xff] %v456_v0  ;;  %459 = vst [vmem:[%s2197_s16 + $0x8] sm:$0xff] %v458_v1  ;;  %v462_v3 = vld [vmem:[%s2192_s15 + $0x30] sm:$0xff] }
  0x1f   : > { %461 = vst [vmem:[%s2197_s16 + $0x10] sm:$0xff] %v460_v2  ;;  %v464_v4 = vld [vmem:[%s2192_s15 + $0x40] sm:$0xff]  ;;  %v466_v5 = vld [vmem:[%s2192_s15 + $0x50] sm:$0xff]  ;;  %463 = vst [vmem:[%s2197_s16 + $0x18] sm:$0xff] %v462_v3 }
  0x20   : > { %465 = vst [vmem:[%s2197_s16 + $0x20] sm:$0xff] %v464_v4  ;;  %467 = vst [vmem:[%s2197_s16 + $0x28] sm:$0xff] %v466_v5  ;;  %v468_v6 = vld [vmem:[%s2192_s15 + $0x60] sm:$0xff]  ;;  %v470_v7 = vld [vmem:[%s2192_s15 + $0x70] sm:$0xff] }
  0x21   : > { %v472_v8 = vld [vmem:[%s2192_s15 + $0x80] sm:$0xff]  ;;  %469 = vst [vmem:[%s2197_s16 + $0x30] sm:$0xff] %v468_v6  ;;  %471 = vst [vmem:[%s2197_s16 + $0x38] sm:$0xff] %v470_v7  ;;  %v474_v9 = vld [vmem:[%s2192_s15 + $0x90] sm:$0xff] }
  0x22   : > { %473 = vst [vmem:[%s2197_s16 + $0x40] sm:$0xff] %v472_v8  ;;  %v476_v10 = vld [vmem:[%s2192_s15 + $0xa0] sm:$0xff]  ;;  %v478_v11 = vld [vmem:[%s2192_s15 + $0xb0] sm:$0xff]  ;;  %475 = vst [vmem:[%s2197_s16 + $0x48] sm:$0xff] %v474_v9 }
  0x23   : > { %477 = vst [vmem:[%s2197_s16 + $0x50] sm:$0xff] %v476_v10  ;;  %479 = vst [vmem:[%s2197_s16 + $0x58] sm:$0xff] %v478_v11  ;;  %v480_v12 = vld [vmem:[%s2192_s15 + $0xc0] sm:$0xff]  ;;  %v482_v13 = vld [vmem:[%s2192_s15 + $0xd0] sm:$0xff] }
  0x24   : > { %v484_v14 = vld [vmem:[%s2192_s15 + $0xe0] sm:$0xff]  ;;  %481 = vst [vmem:[%s2197_s16 + $0x60] sm:$0xff] %v480_v12  ;;  %483 = vst [vmem:[%s2197_s16 + $0x68] sm:$0xff] %v482_v13  ;;  %v486_v15 = vld [vmem:[%s2192_s15 + $0xf0] sm:$0xff] }
  0x25   : > { %485 = vst [vmem:[%s2197_s16 + $0x70] sm:$0xff] %v484_v14  ;;  %v488_v16 = vld [vmem:[%s2192_s15 + $0x100] sm:$0xff]  ;;  %v490_v17 = vld [vmem:[%s2192_s15 + $0x110] sm:$0xff]  ;;  %487 = vst [vmem:[%s2197_s16 + $0x78] sm:$0xff] %v486_v15 }
  0x26   : > { %489 = vst [vmem:[%s2197_s16 + $0x80] sm:$0xff] %v488_v16  ;;  %491 = vst [vmem:[%s2197_s16 + $0x88] sm:$0xff] %v490_v17  ;;  %v492_v18 = vld [vmem:[%s2192_s15 + $0x120] sm:$0xff]  ;;  %v494_v19 = vld [vmem:[%s2192_s15 + $0x130] sm:$0xff] }
  0x27   : > { %v496_v20 = vld [vmem:[%s2192_s15 + $0x140] sm:$0xff]  ;;  %493 = vst [vmem:[%s2197_s16 + $0x90] sm:$0xff] %v492_v18  ;;  %495 = vst [vmem:[%s2197_s16 + $0x98] sm:$0xff] %v494_v19  ;;  %v498_v21 = vld [vmem:[%s2192_s15 + $0x150] sm:$0xff] }
  0x28   : > { %497 = vst [vmem:[%s2197_s16 + $0xa0] sm:$0xff] %v496_v20  ;;  %v500_v22 = vld [vmem:[%s2192_s15 + $0x160] sm:$0xff]  ;;  %v502_v23 = vld [vmem:[%s2192_s15 + $0x170] sm:$0xff]  ;;  %499 = vst [vmem:[%s2197_s16 + $0xa8] sm:$0xff] %v498_v21 }
  0x29   : > { %501 = vst [vmem:[%s2197_s16 + $0xb0] sm:$0xff] %v500_v22  ;;  %503 = vst [vmem:[%s2197_s16 + $0xb8] sm:$0xff] %v502_v23  ;;  %v504_v24 = vld [vmem:[%s2192_s15 + $0x180] sm:$0xff]  ;;  %v506_v25 = vld [vmem:[%s2192_s15 + $0x190] sm:$0xff] }
  0x2a   : > { %v508_v26 = vld [vmem:[%s2192_s15 + $0x1a0] sm:$0xff]  ;;  %505 = vst [vmem:[%s2197_s16 + $0xc0] sm:$0xff] %v504_v24  ;;  %507 = vst [vmem:[%s2197_s16 + $0xc8] sm:$0xff] %v506_v25  ;;  %v510_v27 = vld [vmem:[%s2192_s15 + $0x1b0] sm:$0xff] }
  0x2b   : > { %509 = vst [vmem:[%s2197_s16 + $0xd0] sm:$0xff] %v508_v26  ;;  %v512_v28 = vld [vmem:[%s2192_s15 + $0x1c0] sm:$0xff]  ;;  %v514_v29 = vld [vmem:[%s2192_s15 + $0x1d0] sm:$0xff]  ;;  %511 = vst [vmem:[%s2197_s16 + $0xd8] sm:$0xff] %v510_v27 }
  0x2c   : > { %513 = vst [vmem:[%s2197_s16 + $0xe0] sm:$0xff] %v512_v28  ;;  %515 = vst [vmem:[%s2197_s16 + $0xe8] sm:$0xff] %v514_v29  ;;  %v516_v30 = vld [vmem:[%s2192_s15 + $0x1e0] sm:$0xff]  ;;  %v518_v31 = vld [vmem:[%s2192_s15 + $0x1f0] sm:$0xff] }
  0x2d   : > { %v520_v32 = vld [vmem:[%s2192_s15 + $0x200] sm:$0xff]  ;;  %517 = vst [vmem:[%s2197_s16 + $0xf0] sm:$0xff] %v516_v30  ;;  %519 = vst [vmem:[%s2197_s16 + $0xf8] sm:$0xff] %v518_v31  ;;  %v522_v33 = vld [vmem:[%s2192_s15 + $0x210] sm:$0xff] }
  0x2e   : > { %521 = vst [vmem:[%s2197_s16 + $0x100] sm:$0xff] %v520_v32  ;;  %v524_v34 = vld [vmem:[%s2192_s15 + $0x220] sm:$0xff]  ;;  %v526_v35 = vld [vmem:[%s2192_s15 + $0x230] sm:$0xff]  ;;  %523 = vst [vmem:[%s2197_s16 + $0x108] sm:$0xff] %v522_v33 }
  0x2f   : > { %525 = vst [vmem:[%s2197_s16 + $0x110] sm:$0xff] %v524_v34  ;;  %527 = vst [vmem:[%s2197_s16 + $0x118] sm:$0xff] %v526_v35  ;;  %v528_v36 = vld [vmem:[%s2192_s15 + $0x240] sm:$0xff]  ;;  %v530_v37 = vld [vmem:[%s2192_s15 + $0x250] sm:$0xff] }
  0x30   : > { %v532_v38 = vld [vmem:[%s2192_s15 + $0x260] sm:$0xff]  ;;  %529 = vst [vmem:[%s2197_s16 + $0x120] sm:$0xff] %v528_v36  ;;  %531 = vst [vmem:[%s2197_s16 + $0x128] sm:$0xff] %v530_v37  ;;  %v534_v39 = vld [vmem:[%s2192_s15 + $0x270] sm:$0xff] }
  0x31   : > { %533 = vst [vmem:[%s2197_s16 + $0x130] sm:$0xff] %v532_v38  ;;  %v536_v40 = vld [vmem:[%s2192_s15 + $0x280] sm:$0xff]  ;;  %v538_v41 = vld [vmem:[%s2192_s15 + $0x290] sm:$0xff]  ;;  %535 = vst [vmem:[%s2197_s16 + $0x138] sm:$0xff] %v534_v39 }
  0x32   : > { %537 = vst [vmem:[%s2197_s16 + $0x140] sm:$0xff] %v536_v40  ;;  %539 = vst [vmem:[%s2197_s16 + $0x148] sm:$0xff] %v538_v41  ;;  %v540_v42 = vld [vmem:[%s2192_s15 + $0x2a0] sm:$0xff]  ;;  %v542_v43 = vld [vmem:[%s2192_s15 + $0x2b0] sm:$0xff] }
  0x33   : > { %v544_v44 = vld [vmem:[%s2192_s15 + $0x2c0] sm:$0xff]  ;;  %541 = vst [vmem:[%s2197_s16 + $0x150] sm:$0xff] %v540_v42  ;;  %543 = vst [vmem:[%s2197_s16 + $0x158] sm:$0xff] %v542_v43  ;;  %v546_v45 = vld [vmem:[%s2192_s15 + $0x2d0] sm:$0xff] }
  0x34   : > { %545 = vst [vmem:[%s2197_s16 + $0x160] sm:$0xff] %v544_v44  ;;  %v548_v46 = vld [vmem:[%s2192_s15 + $0x2e0] sm:$0xff]  ;;  %v550_v47 = vld [vmem:[%s2192_s15 + $0x2f0] sm:$0xff]  ;;  %547 = vst [vmem:[%s2197_s16 + $0x168] sm:$0xff] %v546_v45 }
  0x35   : > { %549 = vst [vmem:[%s2197_s16 + $0x170] sm:$0xff] %v548_v46  ;;  %551 = vst [vmem:[%s2197_s16 + $0x178] sm:$0xff] %v550_v47  ;;  %v552_v48 = vld [vmem:[%s2192_s15 + $0x300] sm:$0xff]  ;;  %v554_v49 = vld [vmem:[%s2192_s15 + $0x310] sm:$0xff] }
  0x36   : > { %v556_v50 = vld [vmem:[%s2192_s15 + $0x320] sm:$0xff]  ;;  %553 = vst [vmem:[%s2197_s16 + $0x180] sm:$0xff] %v552_v48  ;;  %555 = vst [vmem:[%s2197_s16 + $0x188] sm:$0xff] %v554_v49  ;;  %v558_v51 = vld [vmem:[%s2192_s15 + $0x330] sm:$0xff] }
  0x37   : > { %557 = vst [vmem:[%s2197_s16 + $0x190] sm:$0xff] %v556_v50  ;;  %v560_v52 = vld [vmem:[%s2192_s15 + $0x340] sm:$0xff]  ;;  %v562_v53 = vld [vmem:[%s2192_s15 + $0x350] sm:$0xff]  ;;  %559 = vst [vmem:[%s2197_s16 + $0x198] sm:$0xff] %v558_v51 }
  0x38   : > { %561 = vst [vmem:[%s2197_s16 + $0x1a0] sm:$0xff] %v560_v52  ;;  %563 = vst [vmem:[%s2197_s16 + $0x1a8] sm:$0xff] %v562_v53  ;;  %v564_v54 = vld [vmem:[%s2192_s15 + $0x360] sm:$0xff]  ;;  %v566_v55 = vld [vmem:[%s2192_s15 + $0x370] sm:$0xff] }
  0x39   : > { %v568_v56 = vld [vmem:[%s2192_s15 + $0x380] sm:$0xff]  ;;  %565 = vst [vmem:[%s2197_s16 + $0x1b0] sm:$0xff] %v564_v54  ;;  %567 = vst [vmem:[%s2197_s16 + $0x1b8] sm:$0xff] %v566_v55  ;;  %v570_v57 = vld [vmem:[%s2192_s15 + $0x390] sm:$0xff] }
  0x3a   : > { %569 = vst [vmem:[%s2197_s16 + $0x1c0] sm:$0xff] %v568_v56  ;;  %v572_v58 = vld [vmem:[%s2192_s15 + $0x3a0] sm:$0xff]  ;;  %v574_v59 = vld [vmem:[%s2192_s15 + $0x3b0] sm:$0xff]  ;;  %571 = vst [vmem:[%s2197_s16 + $0x1c8] sm:$0xff] %v570_v57 }
  0x3b   : > { %573 = vst [vmem:[%s2197_s16 + $0x1d0] sm:$0xff] %v572_v58  ;;  %575 = vst [vmem:[%s2197_s16 + $0x1d8] sm:$0xff] %v574_v59  ;;  %v576_v60 = vld [vmem:[%s2192_s15 + $0x3c0] sm:$0xff]  ;;  %v578_v61 = vld [vmem:[%s2192_s15 + $0x3d0] sm:$0xff] }
  0x3c   : > { %v580_v62 = vld [vmem:[%s2192_s15 + $0x3e0] sm:$0xff]  ;;  %577 = vst [vmem:[%s2197_s16 + $0x1e0] sm:$0xff] %v576_v60  ;;  %579 = vst [vmem:[%s2197_s16 + $0x1e8] sm:$0xff] %v578_v61  ;;  %v582_v63 = vld [vmem:[%s2192_s15 + $0x3f0] sm:$0xff] }
  0x3d   : > { %581 = vst [vmem:[%s2197_s16 + $0x1f0] sm:$0xff] %v580_v62  ;;  %v584_v0 = vld [vmem:[%s2192_s15 + $0x400] sm:$0xff]  ;;  %v586_v1 = vld [vmem:[%s2192_s15 + $0x410] sm:$0xff]  ;;  %583 = vst [vmem:[%s2197_s16 + $0x1f8] sm:$0xff] %v582_v63 }
  0x3e   : > { %585 = vst [vmem:[%s2197_s16 + $0x200] sm:$0xff] %v584_v0  ;;  %587 = vst [vmem:[%s2197_s16 + $0x208] sm:$0xff] %v586_v1  ;;  %v588_v2 = vld [vmem:[%s2192_s15 + $0x420] sm:$0xff]  ;;  %v590_v3 = vld [vmem:[%s2192_s15 + $0x430] sm:$0xff] }
  0x3f   : > { %v592_v4 = vld [vmem:[%s2192_s15 + $0x440] sm:$0xff]  ;;  %589 = vst [vmem:[%s2197_s16 + $0x210] sm:$0xff] %v588_v2  ;;  %591 = vst [vmem:[%s2197_s16 + $0x218] sm:$0xff] %v590_v3  ;;  %v594_v5 = vld [vmem:[%s2192_s15 + $0x450] sm:$0xff] }
  0x40   : > { %593 = vst [vmem:[%s2197_s16 + $0x220] sm:$0xff] %v592_v4  ;;  %v596_v6 = vld [vmem:[%s2192_s15 + $0x460] sm:$0xff]  ;;  %v598_v7 = vld [vmem:[%s2192_s15 + $0x470] sm:$0xff]  ;;  %595 = vst [vmem:[%s2197_s16 + $0x228] sm:$0xff] %v594_v5 }
  0x41   : > { %597 = vst [vmem:[%s2197_s16 + $0x230] sm:$0xff] %v596_v6  ;;  %599 = vst [vmem:[%s2197_s16 + $0x238] sm:$0xff] %v598_v7  ;;  %v600_v8 = vld [vmem:[%s2192_s15 + $0x480] sm:$0xff]  ;;  %v602_v9 = vld [vmem:[%s2192_s15 + $0x490] sm:$0xff] }
  0x42   : > { %v604_v10 = vld [vmem:[%s2192_s15 + $0x4a0] sm:$0xff]  ;;  %601 = vst [vmem:[%s2197_s16 + $0x240] sm:$0xff] %v600_v8  ;;  %603 = vst [vmem:[%s2197_s16 + $0x248] sm:$0xff] %v602_v9  ;;  %v606_v11 = vld [vmem:[%s2192_s15 + $0x4b0] sm:$0xff] }
  0x43   : > { %605 = vst [vmem:[%s2197_s16 + $0x250] sm:$0xff] %v604_v10  ;;  %v608_v12 = vld [vmem:[%s2192_s15 + $0x4c0] sm:$0xff]  ;;  %v610_v13 = vld [vmem:[%s2192_s15 + $0x4d0] sm:$0xff]  ;;  %607 = vst [vmem:[%s2197_s16 + $0x258] sm:$0xff] %v606_v11 }
  0x44   : > { %609 = vst [vmem:[%s2197_s16 + $0x260] sm:$0xff] %v608_v12  ;;  %611 = vst [vmem:[%s2197_s16 + $0x268] sm:$0xff] %v610_v13  ;;  %v612_v14 = vld [vmem:[%s2192_s15 + $0x4e0] sm:$0xff]  ;;  %v614_v15 = vld [vmem:[%s2192_s15 + $0x4f0] sm:$0xff] }
  0x45   : > { %v616_v16 = vld [vmem:[%s2192_s15 + $0x500] sm:$0xff]  ;;  %613 = vst [vmem:[%s2197_s16 + $0x270] sm:$0xff] %v612_v14  ;;  %615 = vst [vmem:[%s2197_s16 + $0x278] sm:$0xff] %v614_v15  ;;  %v618_v17 = vld [vmem:[%s2192_s15 + $0x510] sm:$0xff] }
  0x46   : > { %617 = vst [vmem:[%s2197_s16 + $0x280] sm:$0xff] %v616_v16  ;;  %v620_v18 = vld [vmem:[%s2192_s15 + $0x520] sm:$0xff]  ;;  %v622_v19 = vld [vmem:[%s2192_s15 + $0x530] sm:$0xff]  ;;  %619 = vst [vmem:[%s2197_s16 + $0x288] sm:$0xff] %v618_v17 }
  0x47   : > { %621 = vst [vmem:[%s2197_s16 + $0x290] sm:$0xff] %v620_v18  ;;  %623 = vst [vmem:[%s2197_s16 + $0x298] sm:$0xff] %v622_v19  ;;  %v624_v20 = vld [vmem:[%s2192_s15 + $0x540] sm:$0xff]  ;;  %v626_v21 = vld [vmem:[%s2192_s15 + $0x550] sm:$0xff] }
  0x48   : > { %v628_v22 = vld [vmem:[%s2192_s15 + $0x560] sm:$0xff]  ;;  %625 = vst [vmem:[%s2197_s16 + $0x2a0] sm:$0xff] %v624_v20  ;;  %627 = vst [vmem:[%s2197_s16 + $0x2a8] sm:$0xff] %v626_v21  ;;  %v630_v23 = vld [vmem:[%s2192_s15 + $0x570] sm:$0xff] }
  0x49   : > { %629 = vst [vmem:[%s2197_s16 + $0x2b0] sm:$0xff] %v628_v22  ;;  %v632_v24 = vld [vmem:[%s2192_s15 + $0x580] sm:$0xff]  ;;  %v634_v25 = vld [vmem:[%s2192_s15 + $0x590] sm:$0xff]  ;;  %631 = vst [vmem:[%s2197_s16 + $0x2b8] sm:$0xff] %v630_v23 }
  0x4a   : > { %633 = vst [vmem:[%s2197_s16 + $0x2c0] sm:$0xff] %v632_v24  ;;  %635 = vst [vmem:[%s2197_s16 + $0x2c8] sm:$0xff] %v634_v25  ;;  %v636_v26 = vld [vmem:[%s2192_s15 + $0x5a0] sm:$0xff]  ;;  %v638_v27 = vld [vmem:[%s2192_s15 + $0x5b0] sm:$0xff] }
  0x4b   : > { %v640_v28 = vld [vmem:[%s2192_s15 + $0x5c0] sm:$0xff]  ;;  %637 = vst [vmem:[%s2197_s16 + $0x2d0] sm:$0xff] %v636_v26  ;;  %639 = vst [vmem:[%s2197_s16 + $0x2d8] sm:$0xff] %v638_v27  ;;  %v642_v29 = vld [vmem:[%s2192_s15 + $0x5d0] sm:$0xff] }
  0x4c   : > { %641 = vst [vmem:[%s2197_s16 + $0x2e0] sm:$0xff] %v640_v28  ;;  %v644_v30 = vld [vmem:[%s2192_s15 + $0x5e0] sm:$0xff]  ;;  %v646_v31 = vld [vmem:[%s2192_s15 + $0x5f0] sm:$0xff]  ;;  %643 = vst [vmem:[%s2197_s16 + $0x2e8] sm:$0xff] %v642_v29 }
  0x4d   : > { %645 = vst [vmem:[%s2197_s16 + $0x2f0] sm:$0xff] %v644_v30  ;;  %647 = vst [vmem:[%s2197_s16 + $0x2f8] sm:$0xff] %v646_v31 }
  0x4e PF: > { %p1721_p7 = scmp.ge.s32.totalorder %s2099_s24, 1  ;;  %p681_p8 = scmp.lt.s32.totalorder %s2099_s24, 13 }
  0x50   : > { %p682_p9 = pnand %p1721_p7, %p681_p8 }
  0x51   : > { %s688_s17 = sand.u32 (!%p682_p9), 1, %s2075_s18   ;;  %s745_s27 = smul.u32 (!%p682_p9), 6, %s2083_s20 }
  0x52   : > { %685 = sbr.rel (%p682_p9) target bundleno = 464 (0x1d0), region = 74  ;;  %s1723_s29 = sshll.u32 (!%p682_p9), %s2087_s21, 1 }
  0x53   : > { %s1837_s28 = smul.u32 (!%p682_p9), 768, %s688_s17  ;;  %p748_p10 = scmp.lt.s32.totalorder (!%p682_p9), %s745_s27, 35 }
  0x54   : > { %p758_p11 = scmp.lt.s32.totalorder (!%p682_p9), %s1723_s29, 3  ;;  %p1729_p12 = scmp.ne.s32.totalorder (!%p682_p9), %s2083_s20, 0 }
  0x59   : > { %s2584_s27 = smov (!%p748_p10, %s745_s27), 35  ;;  %s2586_s29 = smov (!%p758_p11, %s1723_s29), 3 }
  0x5a   : > { %s1722_s30 = sshll.u32 %s2584_s27, 2  ;;  %s760_s18 = scalar_lea.vmem %s2565_s2, %s2586_s29  ;;  %v2101_v32 = vmov (!%p1729_p12), 0.0  }
  0x5b   : > { %s2398_s9 = scalar_lea.vmem %s2563_s0, %s1722_s30  ;;  %s765_s13 = scalar_lea.vmem %s2566_s3, %s2586_s29  ;;  %791 = vst [vmem:[#allocation2] sm:$0xff] (!%p1729_p12), %v2101_v32  ;;  %792 = vst [vmem:[#allocation2 + $0x8] sm:$0xff] (!%p1729_p12), %v2101_v32 }
  0x5c   : > { %s1726_s14 = sshll.u32 %s2586_s29, 3  ;;  %s2419_s30 = scalar_lea.vmem [#allocation3], %s1837_s28 }
  0x5d   : > { %s2412_s17 = scalar_lea.vmem %s2567_s4, %s1726_s14  ;;  %s2417_s7 = scalar_lea.vmem %s2568_s5, %s1726_s14 }
  0x5e   : > { %790 = sbr.rel (%p1729_p12) target bundleno = 101 (0x65), region = 82 }
  0x65 PF: > { %v1895_v33 = vld [vmem:[%s2419_s30 + $0x4] ss:$8 sps:$4 sm:$0xff]   ;;  %v1899_v35 = vld [vmem:[%s2419_s30] ss:$8 sps:$4 sm:$0xff]   ;;  %v1901_v37 = vld [vmem:[%s2419_s30 + $0x14] ss:$8 sps:$4 sm:$0xff]  }
  0x66   : > { %v1897_v34 = vld [vmem:[%s2419_s30 + $0x104] ss:$8 sps:$4 sm:$0xff]   ;;  %1395 = vmatprep.subr.bf16.mxu0 %v1895_v33  ;;  %v1900_v36 = vld [vmem:[%s2419_s30 + $0x100] ss:$8 sps:$4 sm:$0xff]   ;;  %v1903_v38 = vld [vmem:[%s2419_s30 + $0x114] ss:$8 sps:$4 sm:$0xff]  }
  0x67   : > { %1436 = vmatprep.subr.bf16.mxu1 %v1897_v34  ;;  %1396 = vmatpush1.bf16.msra.mxu0 %v1899_v35  ;;  %v1905_v39 = vld [vmem:[%s2419_s30 + $0x10] ss:$8 sps:$4 sm:$0xff]   ;;  %v1907_v41 = vld [vmem:[%s2419_s30 + $0x24] ss:$8 sps:$4 sm:$0xff]   ;;  %v1911_v43 = vld [vmem:[%s2419_s30 + $0x20] ss:$8 sps:$4 sm:$0xff]  }
  0x68   : > { %1437 = vmatpush1.bf16.msra.mxu1 %v1900_v36  ;;  %1397 = vmatprep.subr.bf16.mxu0 %v1901_v37  ;;  %v1906_v40 = vld [vmem:[%s2419_s30 + $0x110] ss:$8 sps:$4 sm:$0xff]   ;;  %v1909_v42 = vld [vmem:[%s2419_s30 + $0x124] ss:$8 sps:$4 sm:$0xff]   ;;  %v1912_v44 = vld [vmem:[%s2419_s30 + $0x120] ss:$8 sps:$4 sm:$0xff]  }
  0x69   : > { %1438 = vmatprep.subr.bf16.mxu1 %v1903_v38  ;;  %v1913_v45 = vld [vmem:[%s2419_s30 + $0x34] ss:$8 sps:$4 sm:$0xff]   ;;  %v1917_v47 = vld [vmem:[%s2419_s30 + $0x30] ss:$8 sps:$4 sm:$0xff]   ;;  %v1919_v49 = vld [vmem:[%s2419_s30 + $0x44] ss:$8 sps:$4 sm:$0xff]  }
  0x6a   : > { %v1915_v46 = vld [vmem:[%s2419_s30 + $0x134] ss:$8 sps:$4 sm:$0xff]   ;;  %v1918_v48 = vld [vmem:[%s2419_s30 + $0x130] ss:$8 sps:$4 sm:$0xff]   ;;  %v1921_v50 = vld [vmem:[%s2419_s30 + $0x144] ss:$8 sps:$4 sm:$0xff]  }
  0x6b   : > { %1398 = vmatpush1.bf16.msra.mxu0 %v1905_v39  ;;  %v1923_v51 = vld [vmem:[%s2419_s30 + $0x40] ss:$8 sps:$4 sm:$0xff]   ;;  %v1925_v53 = vld [vmem:[%s2419_s30 + $0x54] ss:$8 sps:$4 sm:$0xff]   ;;  %v1929_v55 = vld [vmem:[%s2419_s30 + $0x50] ss:$8 sps:$4 sm:$0xff]  }
  0x6c   : > { %1439 = vmatpush1.bf16.msra.mxu1 %v1906_v40  ;;  %1399 = vmatprep.subr.bf16.mxu0 %v1907_v41  ;;  %v1924_v52 = vld [vmem:[%s2419_s30 + $0x140] ss:$8 sps:$4 sm:$0xff]   ;;  %v1927_v54 = vld [vmem:[%s2419_s30 + $0x154] ss:$8 sps:$4 sm:$0xff]   ;;  %v1930_v56 = vld [vmem:[%s2419_s30 + $0x150] ss:$8 sps:$4 sm:$0xff]  }
  0x6d   : > { %1440 = vmatprep.subr.bf16.mxu1 %v1909_v42  ;;  %v1931_v57 = vld [vmem:[%s2419_s30 + $0x64] ss:$8 sps:$4 sm:$0xff]   ;;  %v1935_v59 = vld [vmem:[%s2419_s30 + $0x60] ss:$8 sps:$4 sm:$0xff]   ;;  %v1937_v61 = vld [vmem:[%s2419_s30 + $0x74] ss:$8 sps:$4 sm:$0xff]  }
  0x6e   : > { %v1933_v58 = vld [vmem:[%s2419_s30 + $0x164] ss:$8 sps:$4 sm:$0xff]   ;;  %v1936_v60 = vld [vmem:[%s2419_s30 + $0x160] ss:$8 sps:$4 sm:$0xff]   ;;  %v1939_v62 = vld [vmem:[%s2419_s30 + $0x174] ss:$8 sps:$4 sm:$0xff]  }
  0x6f   : > { %1400 = vmatpush1.bf16.msra.mxu0 %v1911_v43  ;;  %v1941_v63 = vld [vmem:[%s2419_s30 + $0x70] ss:$8 sps:$4 sm:$0xff]   ;;  %v1943_v1 = vld [vmem:[%s2419_s30 + $0x84] ss:$8 sps:$4 sm:$0xff]   ;;  %v1947_v3 = vld [vmem:[%s2419_s30 + $0x80] ss:$8 sps:$4 sm:$0xff]  }
  0x70   : > { %1441 = vmatpush1.bf16.msra.mxu1 %v1912_v44  ;;  %1401 = vmatprep.subr.bf16.mxu0 %v1913_v45  ;;  %v1942_v0 = vld [vmem:[%s2419_s30 + $0x170] ss:$8 sps:$4 sm:$0xff]   ;;  %v1945_v2 = vld [vmem:[%s2419_s30 + $0x184] ss:$8 sps:$4 sm:$0xff]   ;;  %v1948_v4 = vld [vmem:[%s2419_s30 + $0x180] ss:$8 sps:$4 sm:$0xff]  }
  0x71   : > { %1442 = vmatprep.subr.bf16.mxu1 %v1915_v46  ;;  %v1949_v5 = vld [vmem:[%s2419_s30 + $0x94] ss:$8 sps:$4 sm:$0xff]   ;;  %v1953_v7 = vld [vmem:[%s2419_s30 + $0x90] ss:$8 sps:$4 sm:$0xff]   ;;  %v1955_v9 = vld [vmem:[%s2419_s30 + $0xa4] ss:$8 sps:$4 sm:$0xff]  }
  0x72   : > { %v1951_v6 = vld [vmem:[%s2419_s30 + $0x194] ss:$8 sps:$4 sm:$0xff]   ;;  %v1954_v8 = vld [vmem:[%s2419_s30 + $0x190] ss:$8 sps:$4 sm:$0xff]   ;;  %v1957_v10 = vld [vmem:[%s2419_s30 + $0x1a4] ss:$8 sps:$4 sm:$0xff]  }
  0x73   : > { %1402 = vmatpush1.bf16.msra.mxu0 %v1917_v47  ;;  %v1959_v11 = vld [vmem:[%s2419_s30 + $0xa0] ss:$8 sps:$4 sm:$0xff]   ;;  %v1961_v13 = vld [vmem:[%s2419_s30 + $0xb4] ss:$8 sps:$4 sm:$0xff]   ;;  %v1965_v18 = vld [vmem:[%s2419_s30 + $0xb0] ss:$8 sps:$4 sm:$0xff]  }
  0x74   : > { %1443 = vmatpush1.bf16.msra.mxu1 %v1918_v48  ;;  %1403 = vmatprep.subr.bf16.mxu0 %v1919_v49  ;;  %v1960_v12 = vld [vmem:[%s2419_s30 + $0x1a0] ss:$8 sps:$4 sm:$0xff]   ;;  %v1963_v14 = vld [vmem:[%s2419_s30 + $0x1b4] ss:$8 sps:$4 sm:$0xff]   ;;  %v1966_v19 = vld [vmem:[%s2419_s30 + $0x1b0] ss:$8 sps:$4 sm:$0xff]  }
  0x75   : > { %1444 = vmatprep.subr.bf16.mxu1 %v1921_v50  ;;  %v795_v15 = vld [vmem:[%s2398_s9] sm:$0xff]  ;;  %v796_v17 = vld [vmem:[%s2398_s9 + $0x8] sm:$0xff]  ;;  %v1967_v21 = vld [vmem:[%s2419_s30 + $0xc4] ss:$8 sps:$4 sm:$0xff]   ;;  %p1832_p13 = scmp.ne.s32.totalorder %s2083_s20, 5 }
  0x76   : > { %v1731_v16 = vcombine.high %v795_v15, %v795_v15  ;;  %v1733_v20 = vcombine.high %v796_v17, %v796_v17  ;;  %v1969_v22 = vld [vmem:[%s2419_s30 + $0x1c4] ss:$8 sps:$4 sm:$0xff]   ;;  %v1971_v23 = vld [vmem:[%s2419_s30 + $0xc0] ss:$8 sps:$4 sm:$0xff]   ;;  %v1973_v25 = vld [vmem:[%s2419_s30 + $0xd4] ss:$8 sps:$4 sm:$0xff]   ;;  %v1730_v38 = vcombine.low %v795_v15, %v795_v15  ;;  %v1732_v39 = vcombine.low %v796_v17, %v796_v17 }
  0x77   : > { %1404 = vmatpush1.bf16.msra.mxu0 %v1923_v51  ;;  %v1972_v24 = vld [vmem:[%s2419_s30 + $0x1c0] ss:$8 sps:$4 sm:$0xff]   ;;  %v1975_v26 = vld [vmem:[%s2419_s30 + $0x1d4] ss:$8 sps:$4 sm:$0xff]   ;;  %v1977_v27 = vld [vmem:[%s2419_s30 + $0xd0] ss:$8 sps:$4 sm:$0xff]  }
  0x78   : > { %1445 = vmatpush1.bf16.msra.mxu1 %v1924_v52  ;;  %1405 = vmatprep.subr.bf16.mxu0 %v1925_v53  ;;  %v1978_v28 = vld [vmem:[%s2419_s30 + $0x1d0] ss:$8 sps:$4 sm:$0xff]   ;;  %v1979_v29 = vld [vmem:[%s2419_s30 + $0xe4] ss:$8 sps:$4 sm:$0xff]   ;;  %v1983_v31 = vld [vmem:[%s2419_s30 + $0xe0] ss:$8 sps:$4 sm:$0xff]  }
  0x79   : > { %1446 = vmatprep.subr.bf16.mxu1 %v1927_v54  ;;  %1427 = vmatprep.mubr.bf16.mxu0 %v1731_v16  ;;  %v1981_v30 = vld [vmem:[%s2419_s30 + $0x1e4] ss:$8 sps:$4 sm:$0xff]   ;;  %v1984_v32 = vld [vmem:[%s2419_s30 + $0x1e0] ss:$8 sps:$4 sm:$0xff]   ;;  %v1985_v33 = vld [vmem:[%s2419_s30 + $0xf4] ss:$8 sps:$4 sm:$0xff]  }
  0x7a   : > { %1468 = vmatprep.mubr.bf16.mxu1 %v1733_v20  ;;  %v1987_v34 = vld [vmem:[%s2419_s30 + $0x1f4] ss:$8 sps:$4 sm:$0xff]   ;;  %v1989_v35 = vld [vmem:[%s2419_s30 + $0xf0] ss:$8 sps:$4 sm:$0xff]   ;;  %v1997_v37 = vld [vmem:[%s2419_s30 + $0x204] ss:$8 sps:$4 sm:$0xff]  }
  0x7b   : > { %1406 = vmatpush1.bf16.msra.mxu0 %v1929_v55  ;;  %v1990_v36 = vld [vmem:[%s2419_s30 + $0x1f0] ss:$8 sps:$4 sm:$0xff]   ;;  %v1995_v40 = vld [vmem:[%s2419_s30 + $0x200] ss:$8 sps:$4 sm:$0xff]   ;;  %v2000_v42 = vld [vmem:[%s2419_s30 + $0x214] ss:$8 sps:$4 sm:$0xff]  }
  0x7c   : > { %1447 = vmatpush1.bf16.msra.mxu1 %v1930_v56  ;;  %1407 = vmatprep.subr.bf16.mxu0 %v1931_v57  ;;  %v2491_v41 = vld [vmem:[%s2398_s9 + $0x10] sm:$0xff]  ;;  %v1998_v44 = vld [vmem:[%s2419_s30 + $0x210] ss:$8 sps:$4 sm:$0xff]   ;;  %v2006_v47 = vld [vmem:[%s2419_s30 + $0x234] ss:$8 sps:$4 sm:$0xff]  }
  0x7d   : > { %1448 = vmatprep.subr.bf16.mxu1 %v1933_v58  ;;  %v1735_v43 = vcombine.high %v2491_v41, %v2491_v41  ;;  %v2003_v45 = vld [vmem:[%s2419_s30 + $0x224] ss:$8 sps:$4 sm:$0xff]   ;;  %v2001_v46 = vld [vmem:[%s2419_s30 + $0x220] ss:$8 sps:$4 sm:$0xff]   ;;  %v2004_v48 = vld [vmem:[%s2419_s30 + $0x230] ss:$8 sps:$4 sm:$0xff]  }
  0x7e   : > { %v2009_v49 = vld [vmem:[%s2419_s30 + $0x244] ss:$8 sps:$4 sm:$0xff]   ;;  %v2007_v50 = vld [vmem:[%s2419_s30 + $0x240] ss:$8 sps:$4 sm:$0xff]   ;;  %v2012_v51 = vld [vmem:[%s2419_s30 + $0x254] ss:$8 sps:$4 sm:$0xff]  }
  0x7f   : > { %1408 = vmatpush1.bf16.msra.mxu0 %v1935_v59  ;;  %v2010_v52 = vld [vmem:[%s2419_s30 + $0x250] ss:$8 sps:$4 sm:$0xff]   ;;  %v2015_v53 = vld [vmem:[%s2419_s30 + $0x264] ss:$8 sps:$4 sm:$0xff]   ;;  %v2013_v54 = vld [vmem:[%s2419_s30 + $0x260] ss:$8 sps:$4 sm:$0xff]  }
  0x80   : > { %1449 = vmatpush1.bf16.msra.mxu1 %v1936_v60  ;;  %1409 = vmatprep.subr.bf16.mxu0 %v1937_v61  ;;  %v2018_v55 = vld [vmem:[%s2419_s30 + $0x274] ss:$8 sps:$4 sm:$0xff]   ;;  %v2016_v56 = vld [vmem:[%s2419_s30 + $0x270] ss:$8 sps:$4 sm:$0xff]   ;;  %v2021_v57 = vld [vmem:[%s2419_s30 + $0x284] ss:$8 sps:$4 sm:$0xff]  }
  0x81   : > { %1450 = vmatprep.subr.bf16.mxu1 %v1939_v62  ;;  %v2019_v58 = vld [vmem:[%s2419_s30 + $0x280] ss:$8 sps:$4 sm:$0xff]   ;;  %v2024_v59 = vld [vmem:[%s2419_s30 + $0x294] ss:$8 sps:$4 sm:$0xff]   ;;  %v2022_v60 = vld [vmem:[%s2419_s30 + $0x290] ss:$8 sps:$4 sm:$0xff]  }
  0x82   : > { %v2027_v61 = vld [vmem:[%s2419_s30 + $0x2a4] ss:$8 sps:$4 sm:$0xff]   ;;  %v2025_v62 = vld [vmem:[%s2419_s30 + $0x2a0] ss:$8 sps:$4 sm:$0xff]   ;;  %v793_v20 = vld [vmem:[#allocation2] sm:$0xff] }
  0x83   : > { %1410 = vmatpush1.bf16.msra.mxu0 %v1941_v63  ;;  %v2030_v63 = vld [vmem:[%s2419_s30 + $0x2b4] ss:$8 sps:$4 sm:$0xff]  }
  0x84   : > { %1451 = vmatpush1.bf16.msra.mxu1 %v1942_v0  ;;  %1411 = vmatprep.subr.bf16.mxu0 %v1943_v1  ;;  %v2028_v0 = vld [vmem:[%s2419_s30 + $0x2b0] ss:$8 sps:$4 sm:$0xff]   ;;  %v2033_v1 = vld [vmem:[%s2419_s30 + $0x2c4] ss:$8 sps:$4 sm:$0xff]  }
  0x85   : > { %1452 = vmatprep.subr.bf16.mxu1 %v1945_v2  ;;  %v2031_v2 = vld [vmem:[%s2419_s30 + $0x2c0] ss:$8 sps:$4 sm:$0xff]  }
  0x87   : > { %1412 = vmatpush1.bf16.msra.mxu0 %v1947_v3  ;;  %v2036_v3 = vld [vmem:[%s2419_s30 + $0x2d4] ss:$8 sps:$4 sm:$0xff]  }
  0x88   : > { %1453 = vmatpush1.bf16.msra.mxu1 %v1948_v4  ;;  %1413 = vmatprep.subr.bf16.mxu0 %v1949_v5  ;;  %v2034_v4 = vld [vmem:[%s2419_s30 + $0x2d0] ss:$8 sps:$4 sm:$0xff]   ;;  %v2039_v5 = vld [vmem:[%s2419_s30 + $0x2e4] ss:$8 sps:$4 sm:$0xff]  }
  0x89   : > { %1454 = vmatprep.subr.bf16.mxu1 %v1951_v6  ;;  %v2037_v6 = vld [vmem:[%s2419_s30 + $0x2e0] ss:$8 sps:$4 sm:$0xff]  }
  0x8b   : > { %1414 = vmatpush1.bf16.msra.mxu0 %v1953_v7  ;;  %v2042_v7 = vld [vmem:[%s2419_s30 + $0x2f4] ss:$8 sps:$4 sm:$0xff]  }
  0x8c   : > { %1455 = vmatpush1.bf16.msra.mxu1 %v1954_v8  ;;  %1415 = vmatprep.subr.bf16.mxu0 %v1955_v9  ;;  %v2040_v8 = vld [vmem:[%s2419_s30 + $0x2f0] ss:$8 sps:$4 sm:$0xff]   ;;  %v1734_v9 = vcombine.low %v2491_v41, %v2491_v41 }
  0x8d   : > { %1456 = vmatprep.subr.bf16.mxu1 %v1957_v10 }
  0x8f   : > { %1416 = vmatpush1.bf16.msra.mxu0 %v1959_v11 }
  0x90   : > { %1457 = vmatpush1.bf16.msra.mxu1 %v1960_v12  ;;  %1417 = vmatprep.subr.bf16.mxu0 %v1961_v13 }
  0x91   : > { %1458 = vmatprep.subr.bf16.mxu1 %v1963_v14 }
  0x93   : > { %1418 = vmatpush1.bf16.msra.mxu0 %v1965_v18 }
  0x94   : > { %1459 = vmatpush1.bf16.msra.mxu1 %v1966_v19  ;;  %1419 = vmatprep.subr.bf16.mxu0 %v1967_v21 }
  0x95   : > { %1460 = vmatprep.subr.bf16.mxu1 %v1969_v22 }
  0x97   : > { %1420 = vmatpush1.bf16.msra.mxu0 %v1971_v23  ;;  %v794_v23 = vld [vmem:[#allocation2 + $0x8] sm:$0xff] }
  0x98   : > { %1461 = vmatpush1.bf16.msra.mxu1 %v1972_v24  ;;  %1421 = vmatprep.subr.bf16.mxu0 %v1973_v25 }
  0x99   : > { %1462 = vmatprep.subr.bf16.mxu1 %v1975_v26 }
  0x9b   : > { %1422 = vmatpush1.bf16.msra.mxu0 %v1977_v27 }
  0x9c   : > { %1463 = vmatpush1.bf16.msra.mxu1 %v1978_v28  ;;  %1423 = vmatprep.subr.bf16.mxu0 %v1979_v29 }
  0x9d   : > { %1464 = vmatprep.subr.bf16.mxu1 %v1981_v30  ;;  %v1530_v30 = vlaneseq (!%p1832_p13) }
  0x9f   : > { %1424 = vmatpush1.bf16.msra.mxu0 %v1983_v31  ;;  %v1531_v31 = vshrl.u32 (!%p1832_p13), %v1530_v30, 7 }
  0xa0   : > { %1465 = vmatpush1.bf16.msra.mxu1 %v1984_v32  ;;  %1425 = vmatprep.subr.bf16.mxu0 %v1985_v33  ;;  %v1528_v32 = vld [vmem:[%s760_s18] sm:$0x3] (!%p1832_p13) }
  0xa1   : > { %1466 = vmatprep.subr.bf16.mxu1 %v1987_v34  ;;  %v1542_v33 = vld [vmem:[%s765_s13] sm:$0x3] (!%p1832_p13)  ;;  %v1532_v34 = vsub.s32 (!%p1832_p13), 0, %v1531_v31 }
  0xa3   : > { %1426 = vmatpush1.bf16.msra.mxu0 %v1989_v35  ;;  %v1536_v35 = vsub.s32 (!%p1832_p13), 1, %v1531_v31 }
  0xa4   : > { %1467 = vmatpush1.bf16.msra.mxu1 %v1990_v36  ;;  %1477 = vmatprep.subr.bf16.mxu0 %v1997_v37 }
  0xa5   : > { %v1551_v41 = vrot.slane (!%p1832_p13), %v1542_v33, %v1536_v35 }
  0xa6   : > { %1428 = vmatmul.mubr.bf16.vlgmr.msra.gmra.mrb[0].mxu0 %v1730_v38  ;;  %v1533_v38 = vrot.slane (!%p1832_p13), %v1528_v32, %v1532_v34 }
  0xa7   : > { %1469 = vmatmul.mubr.bf16.vlgmr.msra.gmra.mrb[0].mxu1 %v1732_v39  ;;  %1478 = vmatpush1.bf16.msra.mxu0 %v1995_v40  ;;  %v1547_v39 = vrot.slane (!%p1832_p13), %v1542_v33, %v1532_v34  ;;  %v1537_v40 = vrot.slane (!%p1832_p13), %v1528_v32, %v1536_v35 }
  0xa8   : > { %1509 = vmatprep.mubr.bf16.mxu0 %v1735_v43  ;;  %1479 = vmatprep.subr.bf16.mxu0 %v2000_v42 }
  0xab   : > { %1480 = vmatpush1.bf16.msra.mxu0 %v1998_v44  ;;  %v1556_v44 = vld [vmem:[%s2412_s17] sm:$0xff] (!%p1832_p13) }
  0xac   : > { %1481 = vmatprep.subr.bf16.mxu0 %v2003_v45  ;;  %v1557_v45 = vld [vmem:[%s2412_s17 + $0x8] sm:$0xff] (!%p1832_p13) }
  0xaf   : > { %1482 = vmatpush1.bf16.msra.mxu0 %v2001_v46 }
  0xb0   : > { %1483 = vmatprep.subr.bf16.mxu0 %v2006_v47 }
  0xb3   : > { %1484 = vmatpush1.bf16.msra.mxu0 %v2004_v48 }
  0xb4   : > { %1485 = vmatprep.subr.bf16.mxu0 %v2009_v49 }
  0xb7   : > { %1486 = vmatpush1.bf16.msra.mxu0 %v2007_v50 }
  0xb8   : > { %1487 = vmatprep.subr.bf16.mxu0 %v2012_v51 }
  0xbb   : > { %1488 = vmatpush1.bf16.msra.mxu0 %v2010_v52 }
  0xbc   : > { %1489 = vmatprep.subr.bf16.mxu0 %v2015_v53 }
  0xbf   : > { %1490 = vmatpush1.bf16.msra.mxu0 %v2013_v54 }
  0xc0   : > { %1491 = vmatprep.subr.bf16.mxu0 %v2018_v55 }
  0xc3   : > { %1492 = vmatpush1.bf16.msra.mxu0 %v2016_v56 }
  0xc4   : > { %1493 = vmatprep.subr.bf16.mxu0 %v2021_v57 }
  0xc7   : > { %1494 = vmatpush1.bf16.msra.mxu0 %v2019_v58 }
  0xc8   : > { %1495 = vmatprep.subr.bf16.mxu0 %v2024_v59 }
  0xcb   : > { %1496 = vmatpush1.bf16.msra.mxu0 %v2022_v60 }
  0xcc   : > { %1497 = vmatprep.subr.bf16.mxu0 %v2027_v61 }
  0xcf   : > { %1498 = vmatpush1.bf16.msra.mxu0 %v2025_v62 }
  0xd0   : > { %1499 = vmatprep.subr.bf16.mxu0 %v2030_v63 }
  0xd3   : > { %1500 = vmatpush1.bf16.msra.mxu0 %v2028_v0 }
  0xd4   : > { %1501 = vmatprep.subr.bf16.mxu0 %v2033_v1 }
  0xd7   : > { %1502 = vmatpush1.bf16.msra.mxu0 %v2031_v2 }
  0xd8   : > { %1503 = vmatprep.subr.bf16.mxu0 %v2036_v3 }
  0xdb   : > { %1504 = vmatpush1.bf16.msra.mxu0 %v2034_v4 }
  0xdc   : > { %1505 = vmatprep.subr.bf16.mxu0 %v2039_v5 }
  0xdf   : > { %1506 = vmatpush1.bf16.msra.mxu0 %v2037_v6 }
  0xe0   : > { %1507 = vmatprep.subr.bf16.mxu0 %v2042_v7 }
  0xe3   : > { %1508 = vmatpush1.bf16.msra.mxu0 %v2040_v8 }
  0xe6   : > { %1510 = vmatmul.mubr.bf16.vlgmr.msra.gmra.mrb[4].mxu0 %v1734_v9 }
 0x179   : > { %v1429_v10 = vpop.f32.mrb[0].mxu0 }
 0x17a   : > { %v1470_v11 = vpop.f32.mrb[0].mxu1  ;;  %v1431_v13 = vpop.f32.mrb[1].mxu0 }
 0x17b   : > { %v1471_v12 = vadd.f32 %v1470_v11, %v1429_v10  ;;  %v1472_v14 = vpop.f32.mrb[1].mxu1  ;;  %v1433_v16 = vpop.f32.mrb[2].mxu0 }
 0x17c   : > { %v1473_v15 = vadd.f32 %v1472_v14, %v1431_v13  ;;  %v1474_v17 = vpop.f32.mrb[2].mxu1  ;;  %v1434_v18 = vpop.f32.mrb[3].mxu0 }
 0x17d   : > { %v1475_v19 = vpop.f32.mrb[3].mxu1 }
 0x1b9   : > { %v1511_v21 = vpop.f32.mrb[4].mxu0  ;;  %1525 = sbr.rel (%p1832_p13) target bundleno = 464 (0x1d0), region = 86 }
 0x1ba   : > { %v1512_v22 = vadd.f32 %v1511_v21, %v1471_v12  ;;  %v1513_v24 = vpop.f32.mrb[5].mxu0 }
 0x1bb   : > { %v1514_v25 = vadd.f32 %v1513_v24, %v1473_v15  ;;  %v1515_v26 = vpop.f32.mrb[6].mxu0 }
 0x1bc   : > { %v1518_v27 = vadd.f32 %v1512_v22, %v793_v20  ;;  %v1516_v28 = vpop.f32.mrb[7].mxu0 }
 0x1bd   : > { %v1519_v29 = vadd.f32 %v1514_v25, %v794_v23 }
 0x1be   : > { %1520 = vst [vmem:[#allocation2] sm:$0xff] %v1518_v27 }
 0x1bf   : > { %1521 = vst [vmem:[#allocation2 + $0x8] sm:$0xff] %v1519_v29 }
 0x1c5   : > { %v1526_v36 = vld [vmem:[#allocation2] sm:$0xff] }
 0x1c6   : > { %v1527_v37 = vld [vmem:[#allocation2 + $0x8] sm:$0xff]  ;;  %v1540_v42 = vmul.f32 %v1533_v38, %v1526_v36 }
 0x1c7   : > { %v1541_v43 = vmul.f32 %v1537_v40, %v1527_v37 }
 0x1c8   : > { %v1554_v46 = vadd.f32 %v1547_v39, %v1540_v42 }
 0x1c9   : > { %v1555_v47 = vadd.f32 %v1551_v41, %v1541_v43 }
 0x1ca   : > { %v1558_v48 = vadd.f32 %v1556_v44, %v1554_v46 }
 0x1cb   : > { %v1559_v49 = vadd.f32 %v1557_v45, %v1555_v47 }
 0x1cc   : > { %v1560_v50 = vmax.f32 %v1558_v48, 0.0 }
 0x1cd   : > { %v1561_v51 = vmax.f32 %v1559_v49, 0.0 }
 0x1ce   : > { %1562 = vst [vmem:[%s2417_s7] sm:$0xff] %v1560_v50 }
 0x1cf   : > { %1563 = vst [vmem:[%s2417_s7 + $0x8] sm:$0xff] %v1561_v51 }
 0x1d0 PF: > { %s15_s24 = sadd.s32 1, %s2099_s24   ;;  %s2571_s18 = smov %s2079_s19 }
 0x1d1   : > { %p12_p0 = scmp.ge.s32.totalorder %s15_s24, 14   ;;  %s2572_s19 = smov %s2183_s6 }
 0x1d2   : > { %s2573_s20 = smov %s2091_s22  ;;  %s2574_s21 = smov %s2095_s23 }
 0x1d3   : > { %s2575_s22 = smov %s2578_s25  ;;  %s2576_s23 = smov %s2582_s26 }
 0x1d4   :  { %14 = sbr.rel (!%p12_p0) target bundleno = 6 (0x6), region = 133 }

// kernel: _lambda_.42
= control target key start
LH: loop header
LB: loop body
LE: loop exit
PB: predicated region body
PF: predicated region fallthrough
CT: control target
= control target key end

     0   :  { %s2040_s15 = smov 0   ;;  %s2042_s16 = smov 0   ;;  %s2464_s0 = inlined_call_operand.vmem [shape: bf16[8,4608], index: 0, kind: input, shape index: {}]   ;;  %s2465_s1 = inlined_call_operand.vmem [shape: bf16[4608,512], index: 1, kind: input, shape index: {}]   ;;  %s2466_s2 = inlined_call_operand.vmem [shape: f32[1,512], index: 2, kind: input, shape index: {}]   ;;  %s2467_s3 = inlined_call_operand.vmem [shape: f32[1,512], index: 3, kind: input, shape index: {}]   ;;  %s2468_s4 = inlined_call_operand.vmem [shape: f32[8,512], index: 4, kind: output, shape index: {}]  }
   0x1   :  { %s2044_s17 = smov 0   ;;  %s2046_s18 = smov 0  }
   0x2   :  { %s2048_s19 = smov 0   ;;  %s2050_s20 = smov 0  }
   0x3   :  { %s2052_s21 = smov 0  }
   0x4 LB: > { %s26_s22 = sadd.s32 1, %s2004_s19  ;;  %s29_s23 = sadd.s32 1, %s2008_s20  ;;  %s2012_s21 = sphi %s2052_s21, %s14_s21   ;;  %s2008_s20 = sphi %s2050_s20, %s2474_s20   ;;  %s2004_s19 = sphi %s2048_s19, %s2473_s19   ;;  %s2000_s18 = sphi %s2046_s18, %s2472_s18   ;;  %s1996_s17 = sphi %s2044_s17, %s2471_s17   ;;  %s1992_s16 = sphi %s2042_s16, %s2470_s16   ;;  %s1988_s15 = sphi %s2040_s15, %s2469_s15  }
   0x5   : > { %p27_p0 = scmp.ge.s32.totalorder %s26_s22, 6  ;;  %p77_p1 = scmp.ne.s32.totalorder %s1992_s16, %s1988_s15 }
   0x6   : > { %p78_p2 = scmp.eq.s32.totalorder %s2012_s21, 0  ;;  %s70_s27 = sadd.s32 1, %s1992_s16 }
   0x7   : > { %s2476_s22 = smov (%p27_p0, %s26_s22), 0  ;;  %s2478_s23 = smov (!%p27_p0, %s29_s23), %s2008_s20 }
   0x8   : > { %p79_p3 = por %p78_p2, %p77_p1  ;;  %p31_p4 = scmp.ge.s32.totalorder %s2478_s23, 2 }
   0x9   : > { %s65_s24 = ssub.s32 %s2004_s19, %s2476_s22  ;;  %p1632_p6 = scmp.ge.s32.totalorder %s2012_s21, 12 }
   0xa   : > { %s2480_s23 = smov (%p31_p4, %s2478_s23), 0 }
   0xb   : > { %s66_s25 = ssub.s32 %s2008_s20, %s2480_s23  ;;  %183 = sbr.rel (%p1632_p6) target bundleno = 74 (0x4a), region = 16 }
   0xc   : > { %s67_s26 = sor.u32 %s66_s25, %s65_s24 }
   0xd   : > { %p68_p5 = scmp.eq.s32.totalorder %s67_s26, 0 }
   0xf   : > { %s2091_s28 = scalar_select %p68_p5, %s1992_s16, %s70_s27  }
  0x12   : > { %199 = sbr.rel (!%p79_p3) target bundleno = 74 (0x4a), region = 24  ;;  %s201_s29 = sand.u32 (%p79_p3), 1, %s1992_s16  }
  0x13   : > { %s1749_s30 = smul.u32 (%p79_p3), 768, %s201_s29  ;;  %s1633_s5 = sshll.u32 (%p79_p3), %s2008_s20, 1 }
  0x14   : > { %s1748_s6 = smul.u32 (%p79_p3), 384, %s2004_s19 }
  0x15   : > { %s2105_s12 = scalar_lea.vmem (%p79_p3), [#allocation3], %s1749_s30 }
  0x16   : > { %s207_s7 = sadd.s32 (%p79_p3), %s1748_s6, %s1633_s5 }
  0x17   : > { %s1635_s8 = sshll.u32 (%p79_p3), %s207_s7, 2 }
  0x18   : > { %s2100_s11 = scalar_lea.vmem (%p79_p3), %s2465_s1, %s1635_s8 }
  0x19   : > { %v427_v0 = vld [vmem:[%s2100_s11] sm:$0xff]  ;;  %v429_v1 = vld [vmem:[%s2100_s11 + $0x10] sm:$0xff] }
  0x1a   : > { %v431_v2 = vld [vmem:[%s2100_s11 + $0x20] sm:$0xff]  ;;  %428 = vst [vmem:[%s2105_s12] sm:$0xff] %v427_v0  ;;  %430 = vst [vmem:[%s2105_s12 + $0x8] sm:$0xff] %v429_v1  ;;  %v433_v3 = vld [vmem:[%s2100_s11 + $0x30] sm:$0xff] }
  0x1b   : > { %432 = vst [vmem:[%s2105_s12 + $0x10] sm:$0xff] %v431_v2  ;;  %v435_v4 = vld [vmem:[%s2100_s11 + $0x40] sm:$0xff]  ;;  %v437_v5 = vld [vmem:[%s2100_s11 + $0x50] sm:$0xff]  ;;  %434 = vst [vmem:[%s2105_s12 + $0x18] sm:$0xff] %v433_v3 }
  0x1c   : > { %436 = vst [vmem:[%s2105_s12 + $0x20] sm:$0xff] %v435_v4  ;;  %438 = vst [vmem:[%s2105_s12 + $0x28] sm:$0xff] %v437_v5  ;;  %v439_v6 = vld [vmem:[%s2100_s11 + $0x60] sm:$0xff]  ;;  %v441_v7 = vld [vmem:[%s2100_s11 + $0x70] sm:$0xff] }
  0x1d   : > { %v443_v8 = vld [vmem:[%s2100_s11 + $0x80] sm:$0xff]  ;;  %440 = vst [vmem:[%s2105_s12 + $0x30] sm:$0xff] %v439_v6  ;;  %442 = vst [vmem:[%s2105_s12 + $0x38] sm:$0xff] %v441_v7  ;;  %v445_v9 = vld [vmem:[%s2100_s11 + $0x90] sm:$0xff] }
  0x1e   : > { %444 = vst [vmem:[%s2105_s12 + $0x40] sm:$0xff] %v443_v8  ;;  %v447_v10 = vld [vmem:[%s2100_s11 + $0xa0] sm:$0xff]  ;;  %v449_v11 = vld [vmem:[%s2100_s11 + $0xb0] sm:$0xff]  ;;  %446 = vst [vmem:[%s2105_s12 + $0x48] sm:$0xff] %v445_v9 }
  0x1f   : > { %448 = vst [vmem:[%s2105_s12 + $0x50] sm:$0xff] %v447_v10  ;;  %450 = vst [vmem:[%s2105_s12 + $0x58] sm:$0xff] %v449_v11  ;;  %v451_v12 = vld [vmem:[%s2100_s11 + $0xc0] sm:$0xff]  ;;  %v453_v13 = vld [vmem:[%s2100_s11 + $0xd0] sm:$0xff] }
  0x20   : > { %v455_v14 = vld [vmem:[%s2100_s11 + $0xe0] sm:$0xff]  ;;  %452 = vst [vmem:[%s2105_s12 + $0x60] sm:$0xff] %v451_v12  ;;  %454 = vst [vmem:[%s2105_s12 + $0x68] sm:$0xff] %v453_v13  ;;  %v457_v15 = vld [vmem:[%s2100_s11 + $0xf0] sm:$0xff] }
  0x21   : > { %456 = vst [vmem:[%s2105_s12 + $0x70] sm:$0xff] %v455_v14  ;;  %v459_v16 = vld [vmem:[%s2100_s11 + $0x100] sm:$0xff]  ;;  %v461_v17 = vld [vmem:[%s2100_s11 + $0x110] sm:$0xff]  ;;  %458 = vst [vmem:[%s2105_s12 + $0x78] sm:$0xff] %v457_v15 }
  0x22   : > { %460 = vst [vmem:[%s2105_s12 + $0x80] sm:$0xff] %v459_v16  ;;  %462 = vst [vmem:[%s2105_s12 + $0x88] sm:$0xff] %v461_v17  ;;  %v463_v18 = vld [vmem:[%s2100_s11 + $0x120] sm:$0xff]  ;;  %v465_v19 = vld [vmem:[%s2100_s11 + $0x130] sm:$0xff] }
  0x23   : > { %v467_v20 = vld [vmem:[%s2100_s11 + $0x140] sm:$0xff]  ;;  %464 = vst [vmem:[%s2105_s12 + $0x90] sm:$0xff] %v463_v18  ;;  %466 = vst [vmem:[%s2105_s12 + $0x98] sm:$0xff] %v465_v19  ;;  %v469_v21 = vld [vmem:[%s2100_s11 + $0x150] sm:$0xff] }
  0x24   : > { %468 = vst [vmem:[%s2105_s12 + $0xa0] sm:$0xff] %v467_v20  ;;  %v471_v22 = vld [vmem:[%s2100_s11 + $0x160] sm:$0xff]  ;;  %v473_v23 = vld [vmem:[%s2100_s11 + $0x170] sm:$0xff]  ;;  %470 = vst [vmem:[%s2105_s12 + $0xa8] sm:$0xff] %v469_v21 }
  0x25   : > { %472 = vst [vmem:[%s2105_s12 + $0xb0] sm:$0xff] %v471_v22  ;;  %474 = vst [vmem:[%s2105_s12 + $0xb8] sm:$0xff] %v473_v23  ;;  %v475_v24 = vld [vmem:[%s2100_s11 + $0x180] sm:$0xff]  ;;  %v477_v25 = vld [vmem:[%s2100_s11 + $0x190] sm:$0xff] }
  0x26   : > { %v479_v26 = vld [vmem:[%s2100_s11 + $0x1a0] sm:$0xff]  ;;  %476 = vst [vmem:[%s2105_s12 + $0xc0] sm:$0xff] %v475_v24  ;;  %478 = vst [vmem:[%s2105_s12 + $0xc8] sm:$0xff] %v477_v25  ;;  %v481_v27 = vld [vmem:[%s2100_s11 + $0x1b0] sm:$0xff] }
  0x27   : > { %480 = vst [vmem:[%s2105_s12 + $0xd0] sm:$0xff] %v479_v26  ;;  %v483_v28 = vld [vmem:[%s2100_s11 + $0x1c0] sm:$0xff]  ;;  %v485_v29 = vld [vmem:[%s2100_s11 + $0x1d0] sm:$0xff]  ;;  %482 = vst [vmem:[%s2105_s12 + $0xd8] sm:$0xff] %v481_v27 }
  0x28   : > { %484 = vst [vmem:[%s2105_s12 + $0xe0] sm:$0xff] %v483_v28  ;;  %486 = vst [vmem:[%s2105_s12 + $0xe8] sm:$0xff] %v485_v29  ;;  %v487_v30 = vld [vmem:[%s2100_s11 + $0x1e0] sm:$0xff]  ;;  %v489_v31 = vld [vmem:[%s2100_s11 + $0x1f0] sm:$0xff] }
  0x29   : > { %v491_v32 = vld [vmem:[%s2100_s11 + $0x200] sm:$0xff]  ;;  %488 = vst [vmem:[%s2105_s12 + $0xf0] sm:$0xff] %v487_v30  ;;  %490 = vst [vmem:[%s2105_s12 + $0xf8] sm:$0xff] %v489_v31  ;;  %v493_v33 = vld [vmem:[%s2100_s11 + $0x210] sm:$0xff] }
  0x2a   : > { %492 = vst [vmem:[%s2105_s12 + $0x100] sm:$0xff] %v491_v32  ;;  %v495_v34 = vld [vmem:[%s2100_s11 + $0x220] sm:$0xff]  ;;  %v497_v35 = vld [vmem:[%s2100_s11 + $0x230] sm:$0xff]  ;;  %494 = vst [vmem:[%s2105_s12 + $0x108] sm:$0xff] %v493_v33 }
  0x2b   : > { %496 = vst [vmem:[%s2105_s12 + $0x110] sm:$0xff] %v495_v34  ;;  %498 = vst [vmem:[%s2105_s12 + $0x118] sm:$0xff] %v497_v35  ;;  %v499_v36 = vld [vmem:[%s2100_s11 + $0x240] sm:$0xff]  ;;  %v501_v37 = vld [vmem:[%s2100_s11 + $0x250] sm:$0xff] }
  0x2c   : > { %v503_v38 = vld [vmem:[%s2100_s11 + $0x260] sm:$0xff]  ;;  %500 = vst [vmem:[%s2105_s12 + $0x120] sm:$0xff] %v499_v36  ;;  %502 = vst [vmem:[%s2105_s12 + $0x128] sm:$0xff] %v501_v37  ;;  %v505_v39 = vld [vmem:[%s2100_s11 + $0x270] sm:$0xff] }
  0x2d   : > { %504 = vst [vmem:[%s2105_s12 + $0x130] sm:$0xff] %v503_v38  ;;  %v507_v40 = vld [vmem:[%s2100_s11 + $0x280] sm:$0xff]  ;;  %v509_v41 = vld [vmem:[%s2100_s11 + $0x290] sm:$0xff]  ;;  %506 = vst [vmem:[%s2105_s12 + $0x138] sm:$0xff] %v505_v39 }
  0x2e   : > { %508 = vst [vmem:[%s2105_s12 + $0x140] sm:$0xff] %v507_v40  ;;  %510 = vst [vmem:[%s2105_s12 + $0x148] sm:$0xff] %v509_v41  ;;  %v511_v42 = vld [vmem:[%s2100_s11 + $0x2a0] sm:$0xff]  ;;  %v513_v43 = vld [vmem:[%s2100_s11 + $0x2b0] sm:$0xff] }
  0x2f   : > { %v515_v44 = vld [vmem:[%s2100_s11 + $0x2c0] sm:$0xff]  ;;  %512 = vst [vmem:[%s2105_s12 + $0x150] sm:$0xff] %v511_v42  ;;  %514 = vst [vmem:[%s2105_s12 + $0x158] sm:$0xff] %v513_v43  ;;  %v517_v45 = vld [vmem:[%s2100_s11 + $0x2d0] sm:$0xff] }
  0x30   : > { %516 = vst [vmem:[%s2105_s12 + $0x160] sm:$0xff] %v515_v44  ;;  %v519_v46 = vld [vmem:[%s2100_s11 + $0x2e0] sm:$0xff]  ;;  %v521_v47 = vld [vmem:[%s2100_s11 + $0x2f0] sm:$0xff]  ;;  %518 = vst [vmem:[%s2105_s12 + $0x168] sm:$0xff] %v517_v45 }
  0x31   : > { %520 = vst [vmem:[%s2105_s12 + $0x170] sm:$0xff] %v519_v46  ;;  %522 = vst [vmem:[%s2105_s12 + $0x178] sm:$0xff] %v521_v47  ;;  %v523_v48 = vld [vmem:[%s2100_s11 + $0x300] sm:$0xff]  ;;  %v525_v49 = vld [vmem:[%s2100_s11 + $0x310] sm:$0xff] }
  0x32   : > { %v527_v50 = vld [vmem:[%s2100_s11 + $0x320] sm:$0xff]  ;;  %524 = vst [vmem:[%s2105_s12 + $0x180] sm:$0xff] %v523_v48  ;;  %526 = vst [vmem:[%s2105_s12 + $0x188] sm:$0xff] %v525_v49  ;;  %v529_v51 = vld [vmem:[%s2100_s11 + $0x330] sm:$0xff] }
  0x33   : > { %528 = vst [vmem:[%s2105_s12 + $0x190] sm:$0xff] %v527_v50  ;;  %v531_v52 = vld [vmem:[%s2100_s11 + $0x340] sm:$0xff]  ;;  %v533_v53 = vld [vmem:[%s2100_s11 + $0x350] sm:$0xff]  ;;  %530 = vst [vmem:[%s2105_s12 + $0x198] sm:$0xff] %v529_v51 }
  0x34   : > { %532 = vst [vmem:[%s2105_s12 + $0x1a0] sm:$0xff] %v531_v52  ;;  %534 = vst [vmem:[%s2105_s12 + $0x1a8] sm:$0xff] %v533_v53  ;;  %v535_v54 = vld [vmem:[%s2100_s11 + $0x360] sm:$0xff]  ;;  %v537_v55 = vld [vmem:[%s2100_s11 + $0x370] sm:$0xff] }
  0x35   : > { %v539_v56 = vld [vmem:[%s2100_s11 + $0x380] sm:$0xff]  ;;  %536 = vst [vmem:[%s2105_s12 + $0x1b0] sm:$0xff] %v535_v54  ;;  %538 = vst [vmem:[%s2105_s12 + $0x1b8] sm:$0xff] %v537_v55  ;;  %v541_v57 = vld [vmem:[%s2100_s11 + $0x390] sm:$0xff] }
  0x36   : > { %540 = vst [vmem:[%s2105_s12 + $0x1c0] sm:$0xff] %v539_v56  ;;  %v543_v58 = vld [vmem:[%s2100_s11 + $0x3a0] sm:$0xff]  ;;  %v545_v59 = vld [vmem:[%s2100_s11 + $0x3b0] sm:$0xff]  ;;  %542 = vst [vmem:[%s2105_s12 + $0x1c8] sm:$0xff] %v541_v57 }
  0x37   : > { %544 = vst [vmem:[%s2105_s12 + $0x1d0] sm:$0xff] %v543_v58  ;;  %546 = vst [vmem:[%s2105_s12 + $0x1d8] sm:$0xff] %v545_v59  ;;  %v547_v60 = vld [vmem:[%s2100_s11 + $0x3c0] sm:$0xff]  ;;  %v549_v61 = vld [vmem:[%s2100_s11 + $0x3d0] sm:$0xff] }
  0x38   : > { %v551_v62 = vld [vmem:[%s2100_s11 + $0x3e0] sm:$0xff]  ;;  %548 = vst [vmem:[%s2105_s12 + $0x1e0] sm:$0xff] %v547_v60  ;;  %550 = vst [vmem:[%s2105_s12 + $0x1e8] sm:$0xff] %v549_v61  ;;  %v553_v63 = vld [vmem:[%s2100_s11 + $0x3f0] sm:$0xff] }
  0x39   : > { %552 = vst [vmem:[%s2105_s12 + $0x1f0] sm:$0xff] %v551_v62  ;;  %v555_v0 = vld [vmem:[%s2100_s11 + $0x400] sm:$0xff]  ;;  %v557_v1 = vld [vmem:[%s2100_s11 + $0x410] sm:$0xff]  ;;  %554 = vst [vmem:[%s2105_s12 + $0x1f8] sm:$0xff] %v553_v63 }
  0x3a   : > { %556 = vst [vmem:[%s2105_s12 + $0x200] sm:$0xff] %v555_v0  ;;  %558 = vst [vmem:[%s2105_s12 + $0x208] sm:$0xff] %v557_v1  ;;  %v559_v2 = vld [vmem:[%s2100_s11 + $0x420] sm:$0xff]  ;;  %v561_v3 = vld [vmem:[%s2100_s11 + $0x430] sm:$0xff] }
  0x3b   : > { %v563_v4 = vld [vmem:[%s2100_s11 + $0x440] sm:$0xff]  ;;  %560 = vst [vmem:[%s2105_s12 + $0x210] sm:$0xff] %v559_v2  ;;  %562 = vst [vmem:[%s2105_s12 + $0x218] sm:$0xff] %v561_v3  ;;  %v565_v5 = vld [vmem:[%s2100_s11 + $0x450] sm:$0xff] }
  0x3c   : > { %564 = vst [vmem:[%s2105_s12 + $0x220] sm:$0xff] %v563_v4  ;;  %v567_v6 = vld [vmem:[%s2100_s11 + $0x460] sm:$0xff]  ;;  %v569_v7 = vld [vmem:[%s2100_s11 + $0x470] sm:$0xff]  ;;  %566 = vst [vmem:[%s2105_s12 + $0x228] sm:$0xff] %v565_v5 }
  0x3d   : > { %568 = vst [vmem:[%s2105_s12 + $0x230] sm:$0xff] %v567_v6  ;;  %570 = vst [vmem:[%s2105_s12 + $0x238] sm:$0xff] %v569_v7  ;;  %v571_v8 = vld [vmem:[%s2100_s11 + $0x480] sm:$0xff]  ;;  %v573_v9 = vld [vmem:[%s2100_s11 + $0x490] sm:$0xff] }
  0x3e   : > { %v575_v10 = vld [vmem:[%s2100_s11 + $0x4a0] sm:$0xff]  ;;  %572 = vst [vmem:[%s2105_s12 + $0x240] sm:$0xff] %v571_v8  ;;  %574 = vst [vmem:[%s2105_s12 + $0x248] sm:$0xff] %v573_v9  ;;  %v577_v11 = vld [vmem:[%s2100_s11 + $0x4b0] sm:$0xff] }
  0x3f   : > { %576 = vst [vmem:[%s2105_s12 + $0x250] sm:$0xff] %v575_v10  ;;  %v579_v12 = vld [vmem:[%s2100_s11 + $0x4c0] sm:$0xff]  ;;  %v581_v13 = vld [vmem:[%s2100_s11 + $0x4d0] sm:$0xff]  ;;  %578 = vst [vmem:[%s2105_s12 + $0x258] sm:$0xff] %v577_v11 }
  0x40   : > { %580 = vst [vmem:[%s2105_s12 + $0x260] sm:$0xff] %v579_v12  ;;  %582 = vst [vmem:[%s2105_s12 + $0x268] sm:$0xff] %v581_v13  ;;  %v583_v14 = vld [vmem:[%s2100_s11 + $0x4e0] sm:$0xff]  ;;  %v585_v15 = vld [vmem:[%s2100_s11 + $0x4f0] sm:$0xff] }
  0x41   : > { %v587_v16 = vld [vmem:[%s2100_s11 + $0x500] sm:$0xff]  ;;  %584 = vst [vmem:[%s2105_s12 + $0x270] sm:$0xff] %v583_v14  ;;  %586 = vst [vmem:[%s2105_s12 + $0x278] sm:$0xff] %v585_v15  ;;  %v589_v17 = vld [vmem:[%s2100_s11 + $0x510] sm:$0xff] }
  0x42   : > { %588 = vst [vmem:[%s2105_s12 + $0x280] sm:$0xff] %v587_v16  ;;  %v591_v18 = vld [vmem:[%s2100_s11 + $0x520] sm:$0xff]  ;;  %v593_v19 = vld [vmem:[%s2100_s11 + $0x530] sm:$0xff]  ;;  %590 = vst [vmem:[%s2105_s12 + $0x288] sm:$0xff] %v589_v17 }
  0x43   : > { %592 = vst [vmem:[%s2105_s12 + $0x290] sm:$0xff] %v591_v18  ;;  %594 = vst [vmem:[%s2105_s12 + $0x298] sm:$0xff] %v593_v19  ;;  %v595_v20 = vld [vmem:[%s2100_s11 + $0x540] sm:$0xff]  ;;  %v597_v21 = vld [vmem:[%s2100_s11 + $0x550] sm:$0xff] }
  0x44   : > { %v599_v22 = vld [vmem:[%s2100_s11 + $0x560] sm:$0xff]  ;;  %596 = vst [vmem:[%s2105_s12 + $0x2a0] sm:$0xff] %v595_v20  ;;  %598 = vst [vmem:[%s2105_s12 + $0x2a8] sm:$0xff] %v597_v21  ;;  %v601_v23 = vld [vmem:[%s2100_s11 + $0x570] sm:$0xff] }
  0x45   : > { %600 = vst [vmem:[%s2105_s12 + $0x2b0] sm:$0xff] %v599_v22  ;;  %v603_v24 = vld [vmem:[%s2100_s11 + $0x580] sm:$0xff]  ;;  %v605_v25 = vld [vmem:[%s2100_s11 + $0x590] sm:$0xff]  ;;  %602 = vst [vmem:[%s2105_s12 + $0x2b8] sm:$0xff] %v601_v23 }
  0x46   : > { %604 = vst [vmem:[%s2105_s12 + $0x2c0] sm:$0xff] %v603_v24  ;;  %606 = vst [vmem:[%s2105_s12 + $0x2c8] sm:$0xff] %v605_v25  ;;  %v607_v26 = vld [vmem:[%s2100_s11 + $0x5a0] sm:$0xff]  ;;  %v609_v27 = vld [vmem:[%s2100_s11 + $0x5b0] sm:$0xff] }
  0x47   : > { %v611_v28 = vld [vmem:[%s2100_s11 + $0x5c0] sm:$0xff]  ;;  %608 = vst [vmem:[%s2105_s12 + $0x2d0] sm:$0xff] %v607_v26  ;;  %610 = vst [vmem:[%s2105_s12 + $0x2d8] sm:$0xff] %v609_v27  ;;  %v613_v29 = vld [vmem:[%s2100_s11 + $0x5d0] sm:$0xff] }
  0x48   : > { %612 = vst [vmem:[%s2105_s12 + $0x2e0] sm:$0xff] %v611_v28  ;;  %v615_v30 = vld [vmem:[%s2100_s11 + $0x5e0] sm:$0xff]  ;;  %v617_v31 = vld [vmem:[%s2100_s11 + $0x5f0] sm:$0xff]  ;;  %614 = vst [vmem:[%s2105_s12 + $0x2e8] sm:$0xff] %v613_v29 }
  0x49   : > { %616 = vst [vmem:[%s2105_s12 + $0x2f0] sm:$0xff] %v615_v30  ;;  %618 = vst [vmem:[%s2105_s12 + $0x2f8] sm:$0xff] %v617_v31 }
  0x4a PF: > { %p1636_p7 = scmp.ge.s32.totalorder %s2012_s21, 1  ;;  %p639_p8 = scmp.lt.s32.totalorder %s2012_s21, 13 }
  0x4c   : > { %p640_p9 = pnand %p1636_p7, %p639_p8 }
  0x4d   : > { %s646_s13 = sand.u32 (!%p640_p9), 1, %s1988_s15   ;;  %s692_s14 = smul.u32 (!%p640_p9), 6, %s1996_s17 }
  0x4e   : > { %643 = sbr.rel (%p640_p9) target bundleno = 456 (0x1c8), region = 70  ;;  %s1638_s25 = sshll.u32 (!%p640_p9), %s2000_s18, 1 }
  0x4f   : > { %s1750_s24 = smul.u32 (!%p640_p9), 768, %s646_s13  ;;  %p695_p10 = scmp.lt.s32.totalorder (!%p640_p9), %s692_s14, 35 }
  0x50   : > { %p705_p11 = scmp.lt.s32.totalorder (!%p640_p9), %s1638_s25, 3  ;;  %p1642_p12 = scmp.ne.s32.totalorder (!%p640_p9), %s1996_s17, 0 }
  0x51   : > { %s2322_s13 = scalar_lea.vmem (!%p640_p9), [#allocation3], %s1750_s24 }
  0x55   : > { %s2482_s14 = smov (!%p695_p10, %s692_s14), 35  ;;  %s2484_s25 = smov (!%p705_p11, %s1638_s25), 3 }
  0x56   : > { %s1637_s26 = sshll.u32 %s2482_s14, 2  ;;  %s707_s15 = scalar_lea.vmem %s2466_s2, %s2484_s25  ;;  %v2014_v32 = vmov (!%p1642_p12), 0.0  }
  0x57   : > { %s2306_s30 = scalar_lea.vmem %s2464_s0, %s1637_s26  ;;  %s712_s8 = scalar_lea.vmem %s2467_s3, %s2484_s25  ;;  %728 = vst [vmem:[#allocation2] sm:$0xff] (!%p1642_p12), %v2014_v32  ;;  %729 = vst [vmem:[#allocation2 + $0x8] sm:$0xff] (!%p1642_p12), %v2014_v32 }
  0x58   : > { %s1641_s9 = sshll.u32 %s2484_s25, 3  ;;  %727 = sbr.rel (%p1642_p12) target bundleno = 95 (0x5f), region = 78 }
  0x59   : > { %s2320_s12 = scalar_lea.vmem %s2468_s4, %s1641_s9 }
  0x5f PF: > { %v1808_v33 = vld [vmem:[%s2322_s13 + $0x4] ss:$8 sps:$4 sm:$0xff]   ;;  %v1812_v35 = vld [vmem:[%s2322_s13] ss:$8 sps:$4 sm:$0xff]   ;;  %v1814_v37 = vld [vmem:[%s2322_s13 + $0x14] ss:$8 sps:$4 sm:$0xff]  }
  0x60   : > { %v1810_v34 = vld [vmem:[%s2322_s13 + $0x104] ss:$8 sps:$4 sm:$0xff]   ;;  %1332 = vmatprep.subr.bf16.mxu0 %v1808_v33  ;;  %v1813_v36 = vld [vmem:[%s2322_s13 + $0x100] ss:$8 sps:$4 sm:$0xff]   ;;  %v1816_v38 = vld [vmem:[%s2322_s13 + $0x114] ss:$8 sps:$4 sm:$0xff]  }
  0x61   : > { %1373 = vmatprep.subr.bf16.mxu1 %v1810_v34  ;;  %1333 = vmatpush1.bf16.msra.mxu0 %v1812_v35  ;;  %v1818_v39 = vld [vmem:[%s2322_s13 + $0x10] ss:$8 sps:$4 sm:$0xff]   ;;  %v1820_v41 = vld [vmem:[%s2322_s13 + $0x24] ss:$8 sps:$4 sm:$0xff]   ;;  %v1824_v43 = vld [vmem:[%s2322_s13 + $0x20] ss:$8 sps:$4 sm:$0xff]  }
  0x62   : > { %1374 = vmatpush1.bf16.msra.mxu1 %v1813_v36  ;;  %1334 = vmatprep.subr.bf16.mxu0 %v1814_v37  ;;  %v1819_v40 = vld [vmem:[%s2322_s13 + $0x110] ss:$8 sps:$4 sm:$0xff]   ;;  %v1822_v42 = vld [vmem:[%s2322_s13 + $0x124] ss:$8 sps:$4 sm:$0xff]   ;;  %v1825_v44 = vld [vmem:[%s2322_s13 + $0x120] ss:$8 sps:$4 sm:$0xff]  }
  0x63   : > { %1375 = vmatprep.subr.bf16.mxu1 %v1816_v38  ;;  %v1826_v45 = vld [vmem:[%s2322_s13 + $0x34] ss:$8 sps:$4 sm:$0xff]   ;;  %v1830_v47 = vld [vmem:[%s2322_s13 + $0x30] ss:$8 sps:$4 sm:$0xff]   ;;  %v1832_v49 = vld [vmem:[%s2322_s13 + $0x44] ss:$8 sps:$4 sm:$0xff]  }
  0x64   : > { %v1828_v46 = vld [vmem:[%s2322_s13 + $0x134] ss:$8 sps:$4 sm:$0xff]   ;;  %v1831_v48 = vld [vmem:[%s2322_s13 + $0x130] ss:$8 sps:$4 sm:$0xff]   ;;  %v1834_v50 = vld [vmem:[%s2322_s13 + $0x144] ss:$8 sps:$4 sm:$0xff]  }
  0x65   : > { %1335 = vmatpush1.bf16.msra.mxu0 %v1818_v39  ;;  %v1836_v51 = vld [vmem:[%s2322_s13 + $0x40] ss:$8 sps:$4 sm:$0xff]   ;;  %v1838_v53 = vld [vmem:[%s2322_s13 + $0x54] ss:$8 sps:$4 sm:$0xff]   ;;  %v1842_v55 = vld [vmem:[%s2322_s13 + $0x50] ss:$8 sps:$4 sm:$0xff]  }
  0x66   : > { %1376 = vmatpush1.bf16.msra.mxu1 %v1819_v40  ;;  %1336 = vmatprep.subr.bf16.mxu0 %v1820_v41  ;;  %v1837_v52 = vld [vmem:[%s2322_s13 + $0x140] ss:$8 sps:$4 sm:$0xff]   ;;  %v1840_v54 = vld [vmem:[%s2322_s13 + $0x154] ss:$8 sps:$4 sm:$0xff]   ;;  %v1843_v56 = vld [vmem:[%s2322_s13 + $0x150] ss:$8 sps:$4 sm:$0xff]  }
  0x67   : > { %1377 = vmatprep.subr.bf16.mxu1 %v1822_v42  ;;  %v1844_v57 = vld [vmem:[%s2322_s13 + $0x64] ss:$8 sps:$4 sm:$0xff]   ;;  %v1848_v59 = vld [vmem:[%s2322_s13 + $0x60] ss:$8 sps:$4 sm:$0xff]   ;;  %v1850_v61 = vld [vmem:[%s2322_s13 + $0x74] ss:$8 sps:$4 sm:$0xff]  }
  0x68   : > { %v1846_v58 = vld [vmem:[%s2322_s13 + $0x164] ss:$8 sps:$4 sm:$0xff]   ;;  %v1849_v60 = vld [vmem:[%s2322_s13 + $0x160] ss:$8 sps:$4 sm:$0xff]   ;;  %v1852_v62 = vld [vmem:[%s2322_s13 + $0x174] ss:$8 sps:$4 sm:$0xff]  }
  0x69   : > { %1337 = vmatpush1.bf16.msra.mxu0 %v1824_v43  ;;  %v1854_v63 = vld [vmem:[%s2322_s13 + $0x70] ss:$8 sps:$4 sm:$0xff]   ;;  %v1856_v1 = vld [vmem:[%s2322_s13 + $0x84] ss:$8 sps:$4 sm:$0xff]   ;;  %v1860_v3 = vld [vmem:[%s2322_s13 + $0x80] ss:$8 sps:$4 sm:$0xff]  }
  0x6a   : > { %1378 = vmatpush1.bf16.msra.mxu1 %v1825_v44  ;;  %1338 = vmatprep.subr.bf16.mxu0 %v1826_v45  ;;  %v1855_v0 = vld [vmem:[%s2322_s13 + $0x170] ss:$8 sps:$4 sm:$0xff]   ;;  %v1858_v2 = vld [vmem:[%s2322_s13 + $0x184] ss:$8 sps:$4 sm:$0xff]   ;;  %v1861_v4 = vld [vmem:[%s2322_s13 + $0x180] ss:$8 sps:$4 sm:$0xff]  }
  0x6b   : > { %1379 = vmatprep.subr.bf16.mxu1 %v1828_v46  ;;  %v1862_v5 = vld [vmem:[%s2322_s13 + $0x94] ss:$8 sps:$4 sm:$0xff]   ;;  %v1866_v7 = vld [vmem:[%s2322_s13 + $0x90] ss:$8 sps:$4 sm:$0xff]   ;;  %v1868_v9 = vld [vmem:[%s2322_s13 + $0xa4] ss:$8 sps:$4 sm:$0xff]  }
  0x6c   : > { %v1864_v6 = vld [vmem:[%s2322_s13 + $0x194] ss:$8 sps:$4 sm:$0xff]   ;;  %v1867_v8 = vld [vmem:[%s2322_s13 + $0x190] ss:$8 sps:$4 sm:$0xff]   ;;  %v1870_v10 = vld [vmem:[%s2322_s13 + $0x1a4] ss:$8 sps:$4 sm:$0xff]  }
  0x6d   : > { %1339 = vmatpush1.bf16.msra.mxu0 %v1830_v47  ;;  %v1872_v11 = vld [vmem:[%s2322_s13 + $0xa0] ss:$8 sps:$4 sm:$0xff]   ;;  %v1874_v13 = vld [vmem:[%s2322_s13 + $0xb4] ss:$8 sps:$4 sm:$0xff]   ;;  %v1878_v18 = vld [vmem:[%s2322_s13 + $0xb0] ss:$8 sps:$4 sm:$0xff]  }
  0x6e   : > { %1380 = vmatpush1.bf16.msra.mxu1 %v1831_v48  ;;  %1340 = vmatprep.subr.bf16.mxu0 %v1832_v49  ;;  %v1873_v12 = vld [vmem:[%s2322_s13 + $0x1a0] ss:$8 sps:$4 sm:$0xff]   ;;  %v1876_v14 = vld [vmem:[%s2322_s13 + $0x1b4] ss:$8 sps:$4 sm:$0xff]   ;;  %v1879_v19 = vld [vmem:[%s2322_s13 + $0x1b0] ss:$8 sps:$4 sm:$0xff]  }
  0x6f   : > { %1381 = vmatprep.subr.bf16.mxu1 %v1834_v50  ;;  %v732_v15 = vld [vmem:[%s2306_s30] sm:$0xff]  ;;  %v733_v17 = vld [vmem:[%s2306_s30 + $0x8] sm:$0xff]  ;;  %v1880_v21 = vld [vmem:[%s2322_s13 + $0xc4] ss:$8 sps:$4 sm:$0xff]   ;;  %p1745_p13 = scmp.ne.s32.totalorder %s1996_s17, 5 }
  0x70   : > { %v1644_v16 = vcombine.high %v732_v15, %v732_v15  ;;  %v1646_v20 = vcombine.high %v733_v17, %v733_v17  ;;  %v1882_v22 = vld [vmem:[%s2322_s13 + $0x1c4] ss:$8 sps:$4 sm:$0xff]   ;;  %v1884_v23 = vld [vmem:[%s2322_s13 + $0xc0] ss:$8 sps:$4 sm:$0xff]   ;;  %v1886_v25 = vld [vmem:[%s2322_s13 + $0xd4] ss:$8 sps:$4 sm:$0xff]   ;;  %v1643_v38 = vcombine.low %v732_v15, %v732_v15  ;;  %v1645_v39 = vcombine.low %v733_v17, %v733_v17 }
  0x71   : > { %1341 = vmatpush1.bf16.msra.mxu0 %v1836_v51  ;;  %v1885_v24 = vld [vmem:[%s2322_s13 + $0x1c0] ss:$8 sps:$4 sm:$0xff]   ;;  %v1888_v26 = vld [vmem:[%s2322_s13 + $0x1d4] ss:$8 sps:$4 sm:$0xff]   ;;  %v1890_v27 = vld [vmem:[%s2322_s13 + $0xd0] ss:$8 sps:$4 sm:$0xff]  }
  0x72   : > { %1382 = vmatpush1.bf16.msra.mxu1 %v1837_v52  ;;  %1342 = vmatprep.subr.bf16.mxu0 %v1838_v53  ;;  %v1891_v28 = vld [vmem:[%s2322_s13 + $0x1d0] ss:$8 sps:$4 sm:$0xff]   ;;  %v1892_v29 = vld [vmem:[%s2322_s13 + $0xe4] ss:$8 sps:$4 sm:$0xff]   ;;  %v1896_v31 = vld [vmem:[%s2322_s13 + $0xe0] ss:$8 sps:$4 sm:$0xff]  }
  0x73   : > { %1383 = vmatprep.subr.bf16.mxu1 %v1840_v54  ;;  %1364 = vmatprep.mubr.bf16.mxu0 %v1644_v16  ;;  %v1894_v30 = vld [vmem:[%s2322_s13 + $0x1e4] ss:$8 sps:$4 sm:$0xff]   ;;  %v1897_v32 = vld [vmem:[%s2322_s13 + $0x1e0] ss:$8 sps:$4 sm:$0xff]   ;;  %v1898_v33 = vld [vmem:[%s2322_s13 + $0xf4] ss:$8 sps:$4 sm:$0xff]  }
  0x74   : > { %1405 = vmatprep.mubr.bf16.mxu1 %v1646_v20  ;;  %v1900_v34 = vld [vmem:[%s2322_s13 + $0x1f4] ss:$8 sps:$4 sm:$0xff]   ;;  %v1902_v35 = vld [vmem:[%s2322_s13 + $0xf0] ss:$8 sps:$4 sm:$0xff]   ;;  %v1910_v37 = vld [vmem:[%s2322_s13 + $0x204] ss:$8 sps:$4 sm:$0xff]  }
  0x75   : > { %1343 = vmatpush1.bf16.msra.mxu0 %v1842_v55  ;;  %v1903_v36 = vld [vmem:[%s2322_s13 + $0x1f0] ss:$8 sps:$4 sm:$0xff]   ;;  %v1908_v40 = vld [vmem:[%s2322_s13 + $0x200] ss:$8 sps:$4 sm:$0xff]   ;;  %v1913_v42 = vld [vmem:[%s2322_s13 + $0x214] ss:$8 sps:$4 sm:$0xff]  }
  0x76   : > { %1384 = vmatpush1.bf16.msra.mxu1 %v1843_v56  ;;  %1344 = vmatprep.subr.bf16.mxu0 %v1844_v57  ;;  %v2394_v41 = vld [vmem:[%s2306_s30 + $0x10] sm:$0xff]  ;;  %v1911_v44 = vld [vmem:[%s2322_s13 + $0x210] ss:$8 sps:$4 sm:$0xff]   ;;  %v1919_v47 = vld [vmem:[%s2322_s13 + $0x234] ss:$8 sps:$4 sm:$0xff]  }
  0x77   : > { %1385 = vmatprep.subr.bf16.mxu1 %v1846_v58  ;;  %v1648_v43 = vcombine.high %v2394_v41, %v2394_v41  ;;  %v1916_v45 = vld [vmem:[%s2322_s13 + $0x224] ss:$8 sps:$4 sm:$0xff]   ;;  %v1914_v46 = vld [vmem:[%s2322_s13 + $0x220] ss:$8 sps:$4 sm:$0xff]   ;;  %v1917_v48 = vld [vmem:[%s2322_s13 + $0x230] ss:$8 sps:$4 sm:$0xff]  }
  0x78   : > { %v1922_v49 = vld [vmem:[%s2322_s13 + $0x244] ss:$8 sps:$4 sm:$0xff]   ;;  %v1920_v50 = vld [vmem:[%s2322_s13 + $0x240] ss:$8 sps:$4 sm:$0xff]   ;;  %v1925_v51 = vld [vmem:[%s2322_s13 + $0x254] ss:$8 sps:$4 sm:$0xff]  }
  0x79   : > { %1345 = vmatpush1.bf16.msra.mxu0 %v1848_v59  ;;  %v1923_v52 = vld [vmem:[%s2322_s13 + $0x250] ss:$8 sps:$4 sm:$0xff]   ;;  %v1928_v53 = vld [vmem:[%s2322_s13 + $0x264] ss:$8 sps:$4 sm:$0xff]   ;;  %v1926_v54 = vld [vmem:[%s2322_s13 + $0x260] ss:$8 sps:$4 sm:$0xff]  }
  0x7a   : > { %1386 = vmatpush1.bf16.msra.mxu1 %v1849_v60  ;;  %1346 = vmatprep.subr.bf16.mxu0 %v1850_v61  ;;  %v1931_v55 = vld [vmem:[%s2322_s13 + $0x274] ss:$8 sps:$4 sm:$0xff]   ;;  %v1929_v56 = vld [vmem:[%s2322_s13 + $0x270] ss:$8 sps:$4 sm:$0xff]   ;;  %v1934_v57 = vld [vmem:[%s2322_s13 + $0x284] ss:$8 sps:$4 sm:$0xff]  }
  0x7b   : > { %1387 = vmatprep.subr.bf16.mxu1 %v1852_v62  ;;  %v1932_v58 = vld [vmem:[%s2322_s13 + $0x280] ss:$8 sps:$4 sm:$0xff]   ;;  %v1937_v59 = vld [vmem:[%s2322_s13 + $0x294] ss:$8 sps:$4 sm:$0xff]   ;;  %v1935_v60 = vld [vmem:[%s2322_s13 + $0x290] ss:$8 sps:$4 sm:$0xff]  }
  0x7c   : > { %v1940_v61 = vld [vmem:[%s2322_s13 + $0x2a4] ss:$8 sps:$4 sm:$0xff]   ;;  %v1938_v62 = vld [vmem:[%s2322_s13 + $0x2a0] ss:$8 sps:$4 sm:$0xff]   ;;  %v730_v20 = vld [vmem:[#allocation2] sm:$0xff] }
  0x7d   : > { %1347 = vmatpush1.bf16.msra.mxu0 %v1854_v63  ;;  %v1943_v63 = vld [vmem:[%s2322_s13 + $0x2b4] ss:$8 sps:$4 sm:$0xff]  }
  0x7e   : > { %1388 = vmatpush1.bf16.msra.mxu1 %v1855_v0  ;;  %1348 = vmatprep.subr.bf16.mxu0 %v1856_v1  ;;  %v1941_v0 = vld [vmem:[%s2322_s13 + $0x2b0] ss:$8 sps:$4 sm:$0xff]   ;;  %v1946_v1 = vld [vmem:[%s2322_s13 + $0x2c4] ss:$8 sps:$4 sm:$0xff]  }
  0x7f   : > { %1389 = vmatprep.subr.bf16.mxu1 %v1858_v2  ;;  %v1944_v2 = vld [vmem:[%s2322_s13 + $0x2c0] ss:$8 sps:$4 sm:$0xff]  }
  0x81   : > { %1349 = vmatpush1.bf16.msra.mxu0 %v1860_v3  ;;  %v1949_v3 = vld [vmem:[%s2322_s13 + $0x2d4] ss:$8 sps:$4 sm:$0xff]  }
  0x82   : > { %1390 = vmatpush1.bf16.msra.mxu1 %v1861_v4  ;;  %1350 = vmatprep.subr.bf16.mxu0 %v1862_v5  ;;  %v1947_v4 = vld [vmem:[%s2322_s13 + $0x2d0] ss:$8 sps:$4 sm:$0xff]   ;;  %v1952_v5 = vld [vmem:[%s2322_s13 + $0x2e4] ss:$8 sps:$4 sm:$0xff]  }
  0x83   : > { %1391 = vmatprep.subr.bf16.mxu1 %v1864_v6  ;;  %v1950_v6 = vld [vmem:[%s2322_s13 + $0x2e0] ss:$8 sps:$4 sm:$0xff]  }
  0x85   : > { %1351 = vmatpush1.bf16.msra.mxu0 %v1866_v7  ;;  %v1955_v7 = vld [vmem:[%s2322_s13 + $0x2f4] ss:$8 sps:$4 sm:$0xff]  }
  0x86   : > { %1392 = vmatpush1.bf16.msra.mxu1 %v1867_v8  ;;  %1352 = vmatprep.subr.bf16.mxu0 %v1868_v9  ;;  %v1953_v8 = vld [vmem:[%s2322_s13 + $0x2f0] ss:$8 sps:$4 sm:$0xff]   ;;  %v1647_v9 = vcombine.low %v2394_v41, %v2394_v41 }
  0x87   : > { %1393 = vmatprep.subr.bf16.mxu1 %v1870_v10 }
  0x89   : > { %1353 = vmatpush1.bf16.msra.mxu0 %v1872_v11 }
  0x8a   : > { %1394 = vmatpush1.bf16.msra.mxu1 %v1873_v12  ;;  %1354 = vmatprep.subr.bf16.mxu0 %v1874_v13 }
  0x8b   : > { %1395 = vmatprep.subr.bf16.mxu1 %v1876_v14 }
  0x8d   : > { %1355 = vmatpush1.bf16.msra.mxu0 %v1878_v18 }
  0x8e   : > { %1396 = vmatpush1.bf16.msra.mxu1 %v1879_v19  ;;  %1356 = vmatprep.subr.bf16.mxu0 %v1880_v21 }
  0x8f   : > { %1397 = vmatprep.subr.bf16.mxu1 %v1882_v22 }
  0x91   : > { %1357 = vmatpush1.bf16.msra.mxu0 %v1884_v23  ;;  %v731_v23 = vld [vmem:[#allocation2 + $0x8] sm:$0xff] }
  0x92   : > { %1398 = vmatpush1.bf16.msra.mxu1 %v1885_v24  ;;  %1358 = vmatprep.subr.bf16.mxu0 %v1886_v25 }
  0x93   : > { %1399 = vmatprep.subr.bf16.mxu1 %v1888_v26 }
  0x95   : > { %1359 = vmatpush1.bf16.msra.mxu0 %v1890_v27 }
  0x96   : > { %1400 = vmatpush1.bf16.msra.mxu1 %v1891_v28  ;;  %1360 = vmatprep.subr.bf16.mxu0 %v1892_v29 }
  0x97   : > { %1401 = vmatprep.subr.bf16.mxu1 %v1894_v30  ;;  %v1467_v30 = vlaneseq (!%p1745_p13) }
  0x99   : > { %1361 = vmatpush1.bf16.msra.mxu0 %v1896_v31  ;;  %v1468_v31 = vshrl.u32 (!%p1745_p13), %v1467_v30, 7 }
  0x9a   : > { %1402 = vmatpush1.bf16.msra.mxu1 %v1897_v32  ;;  %1362 = vmatprep.subr.bf16.mxu0 %v1898_v33  ;;  %v1465_v32 = vld [vmem:[%s707_s15] sm:$0x3] (!%p1745_p13) }
  0x9b   : > { %1403 = vmatprep.subr.bf16.mxu1 %v1900_v34  ;;  %v1479_v33 = vld [vmem:[%s712_s8] sm:$0x3] (!%p1745_p13)  ;;  %v1469_v34 = vsub.s32 (!%p1745_p13), 0, %v1468_v31 }
  0x9d   : > { %1363 = vmatpush1.bf16.msra.mxu0 %v1902_v35  ;;  %v1473_v35 = vsub.s32 (!%p1745_p13), 1, %v1468_v31 }
  0x9e   : > { %1404 = vmatpush1.bf16.msra.mxu1 %v1903_v36  ;;  %1414 = vmatprep.subr.bf16.mxu0 %v1910_v37 }
  0x9f   : > { %v1488_v41 = vrot.slane (!%p1745_p13), %v1479_v33, %v1473_v35 }
  0xa0   : > { %1365 = vmatmul.mubr.bf16.vlgmr.msra.gmra.mrb[0].mxu0 %v1643_v38  ;;  %v1470_v38 = vrot.slane (!%p1745_p13), %v1465_v32, %v1469_v34 }
  0xa1   : > { %1406 = vmatmul.mubr.bf16.vlgmr.msra.gmra.mrb[0].mxu1 %v1645_v39  ;;  %1415 = vmatpush1.bf16.msra.mxu0 %v1908_v40  ;;  %v1484_v39 = vrot.slane (!%p1745_p13), %v1479_v33, %v1469_v34  ;;  %v1474_v40 = vrot.slane (!%p1745_p13), %v1465_v32, %v1473_v35 }
  0xa2   : > { %1446 = vmatprep.mubr.bf16.mxu0 %v1648_v43  ;;  %1416 = vmatprep.subr.bf16.mxu0 %v1913_v42 }
  0xa5   : > { %1417 = vmatpush1.bf16.msra.mxu0 %v1911_v44 }
  0xa6   : > { %1418 = vmatprep.subr.bf16.mxu0 %v1916_v45 }
  0xa9   : > { %1419 = vmatpush1.bf16.msra.mxu0 %v1914_v46 }
  0xaa   : > { %1420 = vmatprep.subr.bf16.mxu0 %v1919_v47 }
  0xad   : > { %1421 = vmatpush1.bf16.msra.mxu0 %v1917_v48 }
  0xae   : > { %1422 = vmatprep.subr.bf16.mxu0 %v1922_v49 }
  0xb1   : > { %1423 = vmatpush1.bf16.msra.mxu0 %v1920_v50 }
  0xb2   : > { %1424 = vmatprep.subr.bf16.mxu0 %v1925_v51 }
  0xb5   : > { %1425 = vmatpush1.bf16.msra.mxu0 %v1923_v52 }
  0xb6   : > { %1426 = vmatprep.subr.bf16.mxu0 %v1928_v53 }
  0xb9   : > { %1427 = vmatpush1.bf16.msra.mxu0 %v1926_v54 }
  0xba   : > { %1428 = vmatprep.subr.bf16.mxu0 %v1931_v55 }
  0xbd   : > { %1429 = vmatpush1.bf16.msra.mxu0 %v1929_v56 }
  0xbe   : > { %1430 = vmatprep.subr.bf16.mxu0 %v1934_v57 }
  0xc1   : > { %1431 = vmatpush1.bf16.msra.mxu0 %v1932_v58 }
  0xc2   : > { %1432 = vmatprep.subr.bf16.mxu0 %v1937_v59 }
  0xc5   : > { %1433 = vmatpush1.bf16.msra.mxu0 %v1935_v60 }
  0xc6   : > { %1434 = vmatprep.subr.bf16.mxu0 %v1940_v61 }
  0xc9   : > { %1435 = vmatpush1.bf16.msra.mxu0 %v1938_v62 }
  0xca   : > { %1436 = vmatprep.subr.bf16.mxu0 %v1943_v63 }
  0xcd   : > { %1437 = vmatpush1.bf16.msra.mxu0 %v1941_v0 }
  0xce   : > { %1438 = vmatprep.subr.bf16.mxu0 %v1946_v1 }
  0xd1   : > { %1439 = vmatpush1.bf16.msra.mxu0 %v1944_v2 }
  0xd2   : > { %1440 = vmatprep.subr.bf16.mxu0 %v1949_v3 }
  0xd5   : > { %1441 = vmatpush1.bf16.msra.mxu0 %v1947_v4 }
  0xd6   : > { %1442 = vmatprep.subr.bf16.mxu0 %v1952_v5 }
  0xd9   : > { %1443 = vmatpush1.bf16.msra.mxu0 %v1950_v6 }
  0xda   : > { %1444 = vmatprep.subr.bf16.mxu0 %v1955_v7 }
  0xdd   : > { %1445 = vmatpush1.bf16.msra.mxu0 %v1953_v8 }
  0xe0   : > { %1447 = vmatmul.mubr.bf16.vlgmr.msra.gmra.mrb[4].mxu0 %v1647_v9 }
 0x173   : > { %v1366_v10 = vpop.f32.mrb[0].mxu0 }
 0x174   : > { %v1407_v11 = vpop.f32.mrb[0].mxu1  ;;  %v1368_v13 = vpop.f32.mrb[1].mxu0 }
 0x175   : > { %v1408_v12 = vadd.f32 %v1407_v11, %v1366_v10  ;;  %v1409_v14 = vpop.f32.mrb[1].mxu1  ;;  %v1370_v16 = vpop.f32.mrb[2].mxu0 }
 0x176   : > { %v1410_v15 = vadd.f32 %v1409_v14, %v1368_v13  ;;  %v1411_v17 = vpop.f32.mrb[2].mxu1  ;;  %v1371_v18 = vpop.f32.mrb[3].mxu0 }
 0x177   : > { %v1412_v19 = vpop.f32.mrb[3].mxu1 }
 0x1b3   : > { %v1448_v21 = vpop.f32.mrb[4].mxu0  ;;  %1462 = sbr.rel (%p1745_p13) target bundleno = 456 (0x1c8), region = 82 }
 0x1b4   : > { %v1449_v22 = vadd.f32 %v1448_v21, %v1408_v12  ;;  %v1450_v24 = vpop.f32.mrb[5].mxu0 }
 0x1b5   : > { %v1451_v25 = vadd.f32 %v1450_v24, %v1410_v15  ;;  %v1452_v26 = vpop.f32.mrb[6].mxu0 }
 0x1b6   : > { %v1455_v27 = vadd.f32 %v1449_v22, %v730_v20  ;;  %v1453_v28 = vpop.f32.mrb[7].mxu0 }
 0x1b7   : > { %v1456_v29 = vadd.f32 %v1451_v25, %v731_v23 }
 0x1b8   : > { %1457 = vst [vmem:[#allocation2] sm:$0xff] %v1455_v27 }
 0x1b9   : > { %1458 = vst [vmem:[#allocation2 + $0x8] sm:$0xff] %v1456_v29 }
 0x1bf   : > { %v1463_v36 = vld [vmem:[#allocation2] sm:$0xff] }
 0x1c0   : > { %v1464_v37 = vld [vmem:[#allocation2 + $0x8] sm:$0xff]  ;;  %v1477_v42 = vmul.f32 %v1470_v38, %v1463_v36 }
 0x1c1   : > { %v1478_v43 = vmul.f32 %v1474_v40, %v1464_v37 }
 0x1c2   : > { %v1491_v44 = vadd.f32 %v1484_v39, %v1477_v42 }
 0x1c3   : > { %v1492_v45 = vadd.f32 %v1488_v41, %v1478_v43 }
 0x1c4   : > { %v1493_v46 = vmax.f32 %v1491_v44, 0.0 }
 0x1c5   : > { %v1494_v47 = vmax.f32 %v1492_v45, 0.0 }
 0x1c6   : > { %1495 = vst [vmem:[%s2320_s12] sm:$0xff] %v1493_v46 }
 0x1c7   : > { %1496 = vst [vmem:[%s2320_s12 + $0x8] sm:$0xff] %v1494_v47 }
 0x1c8 PF: > { %s14_s21 = sadd.s32 1, %s2012_s21   ;;  %s2469_s15 = smov %s1992_s16 }
 0x1c9   : > { %p11_p0 = scmp.ge.s32.totalorder %s14_s21, 14   ;;  %s2470_s16 = smov %s2091_s28 }
 0x1ca   : > { %s2471_s17 = smov %s2004_s19  ;;  %s2472_s18 = smov %s2008_s20 }
 0x1cb   : > { %s2473_s19 = smov %s2476_s22  ;;  %s2474_s20 = smov %s2480_s23 }
 0x1cc   :  { %13 = sbr.rel (!%p11_p0) target bundleno = 4 (0x4), region = 126 }

// kernel: _lambda_.44
= control target key start
LH: loop header
LB: loop body
LE: loop exit
PB: predicated region body
PF: predicated region fallthrough
CT: control target
= control target key end

     0   :  { %s46_s0 = inlined_call_operand.vmem [shape: f32[2,1,512], index: 0, kind: input, shape index: {}]   ;;  %s47_s1 = inlined_call_operand.vmem [shape: f32[2,512], index: 1, kind: output, shape index: {}]  }
   0x1   :  { %v29_v0 = vld [vmem:[%s46_s0] sm:$0xff]  }
   0x2   :  { %28 = vst.sshfl [vmem:[%s47_s1] sm:$0xff pattern:$0x75316420] %v29_v0 }

// kernel: _lambda_.45
= control target key start
LH: loop header
LB: loop body
LE: loop exit
PB: predicated region body
PF: predicated region fallthrough
CT: control target
= control target key end

     0   :  { %s657_s1 = inlined_call_operand.vmem [shape: bf16[512,128], index: 1, kind: input, shape index: {}]   ;;  %s658_s0 = inlined_call_operand.vmem [shape: bf16[8,512], index: 0, kind: input, shape index: {}]   ;;  %s659_s2 = inlined_call_operand.vmem [shape: f32[1,128], index: 2, kind: input, shape index: {}]   ;;  %s660_s3 = inlined_call_operand.vmem [shape: f32[1,128], index: 3, kind: input, shape index: {}]   ;;  %s661_s4 = inlined_call_operand.vmem [shape: f32[8,128], index: 4, kind: output, shape index: {}]  }
   0x1   :  { %v485_v0 = vld [vmem:[%s657_s1 + $0x40] sm:$0xff]   ;;  %v489_v4 = vld [vmem:[%s657_s1 + $0x48] sm:$0xff]   ;;  %v493_v8 = vld [vmem:[%s657_s1 + $0x50] sm:$0xff]  }
   0x2   :  { %v486_v1 = vld [vmem:[%s657_s1 + $0xc0] sm:$0xff]   ;;  %441 = vmatprep.subr.bf16.mxu0 %v485_v0  ;;  %v490_v5 = vld [vmem:[%s657_s1 + $0xc8] sm:$0xff]   ;;  %v494_v9 = vld [vmem:[%s657_s1 + $0xd0] sm:$0xff]  }
   0x3   :  { %v487_v2 = vld [vmem:[%s657_s1] sm:$0xff]   ;;  %463 = vmatprep.subr.bf16.mxu1 %v486_v1  ;;  %v491_v6 = vld [vmem:[%s657_s1 + $0x8] sm:$0xff]   ;;  %v495_v10 = vld [vmem:[%s657_s1 + $0x10] sm:$0xff]  }
   0x4   :  { %v488_v3 = vld [vmem:[%s657_s1 + $0x80] sm:$0xff]   ;;  %442 = vmatpush3.bf16.msra.mxu0 %v487_v2  ;;  %v492_v7 = vld [vmem:[%s657_s1 + $0x88] sm:$0xff]   ;;  %v496_v11 = vld [vmem:[%s657_s1 + $0x90] sm:$0xff]  }
   0x5   :  { %464 = vmatpush3.bf16.msra.mxu1 %v488_v3  ;;  %443 = vmatprep.subr.bf16.mxu0 %v489_v4  ;;  %v497_v12 = vld [vmem:[%s657_s1 + $0x58] sm:$0xff]   ;;  %v501_v16 = vld [vmem:[%s657_s1 + $0x60] sm:$0xff]   ;;  %v505_v20 = vld [vmem:[%s657_s1 + $0x68] sm:$0xff]  }
   0x6   :  { %465 = vmatprep.subr.bf16.mxu1 %v490_v5  ;;  %v498_v13 = vld [vmem:[%s657_s1 + $0xd8] sm:$0xff]   ;;  %v502_v17 = vld [vmem:[%s657_s1 + $0xe0] sm:$0xff]   ;;  %v506_v21 = vld [vmem:[%s657_s1 + $0xe8] sm:$0xff]  }
   0x7   :  { %v499_v14 = vld [vmem:[%s657_s1 + $0x18] sm:$0xff]   ;;  %v503_v18 = vld [vmem:[%s657_s1 + $0x20] sm:$0xff]   ;;  %v507_v22 = vld [vmem:[%s657_s1 + $0x28] sm:$0xff]  }
   0x8   :  { %444 = vmatpush3.bf16.msra.mxu0 %v491_v6  ;;  %v500_v15 = vld [vmem:[%s657_s1 + $0x98] sm:$0xff]   ;;  %v504_v19 = vld [vmem:[%s657_s1 + $0xa0] sm:$0xff]   ;;  %v508_v23 = vld [vmem:[%s657_s1 + $0xa8] sm:$0xff]  }
   0x9   :  { %466 = vmatpush3.bf16.msra.mxu1 %v492_v7  ;;  %445 = vmatprep.subr.bf16.mxu0 %v493_v8  ;;  %v509_v24 = vld [vmem:[%s657_s1 + $0x70] sm:$0xff]   ;;  %v513_v28 = vld [vmem:[%s657_s1 + $0x78] sm:$0xff]   ;;  %v24_v32 = vld [vmem:[%s658_s0] sm:$0xff] }
   0xa   :  { %467 = vmatprep.subr.bf16.mxu1 %v494_v9  ;;  %v510_v25 = vld [vmem:[%s657_s1 + $0xf0] sm:$0xff]   ;;  %v514_v29 = vld [vmem:[%s657_s1 + $0xf8] sm:$0xff]   ;;  %v25_v33 = vld [vmem:[%s658_s0 + $0x8] sm:$0xff]  ;;  %v403_v34 = vcombine.low %v24_v32, %v24_v32  ;;  %v404_v35 = vcombine.high %v24_v32, %v24_v32 }
   0xb   :  { %v511_v26 = vld [vmem:[%s657_s1 + $0x30] sm:$0xff]   ;;  %v515_v30 = vld [vmem:[%s657_s1 + $0x38] sm:$0xff]   ;;  %v405_v36 = vcombine.low %v25_v33, %v25_v33  ;;  %v406_v37 = vcombine.high %v25_v33, %v25_v33  ;;  %v439_v46 = vld [vmem:[%s659_s2] ss:$0 sm:$0xff] }
   0xc   :  { %446 = vmatpush3.bf16.msra.mxu0 %v495_v10  ;;  %v512_v27 = vld [vmem:[%s657_s1 + $0xb0] sm:$0xff]   ;;  %v516_v31 = vld [vmem:[%s657_s1 + $0xb8] sm:$0xff]   ;;  %328 = vmatprep.mubr.bf16.mxu0 %v404_v35  ;;  %v440_v50 = vld [vmem:[%s660_s3] ss:$0 sm:$0xff] }
   0xd   :  { %468 = vmatpush3.bf16.msra.mxu1 %v496_v11  ;;  %447 = vmatprep.subr.bf16.mxu0 %v497_v12 }
   0xe   :  { %469 = vmatprep.subr.bf16.mxu1 %v498_v13  ;;  %368 = vmatprep.mubr.bf16.mxu1 %v406_v37 }
  0x10   :  { %448 = vmatpush3.bf16.msra.mxu0 %v499_v14 }
  0x11   :  { %470 = vmatpush3.bf16.msra.mxu1 %v500_v15  ;;  %449 = vmatprep.subr.bf16.mxu0 %v501_v16 }
  0x12   :  { %471 = vmatprep.subr.bf16.mxu1 %v502_v17 }
  0x14   :  { %450 = vmatpush3.bf16.msra.mxu0 %v503_v18 }
  0x15   :  { %472 = vmatpush3.bf16.msra.mxu1 %v504_v19  ;;  %451 = vmatprep.subr.bf16.mxu0 %v505_v20 }
  0x16   :  { %473 = vmatprep.subr.bf16.mxu1 %v506_v21 }
  0x18   :  { %452 = vmatpush3.bf16.msra.mxu0 %v507_v22 }
  0x19   :  { %474 = vmatpush3.bf16.msra.mxu1 %v508_v23  ;;  %453 = vmatprep.subr.bf16.mxu0 %v509_v24 }
  0x1a   :  { %475 = vmatprep.subr.bf16.mxu1 %v510_v25 }
  0x1c   :  { %454 = vmatpush3.bf16.msra.mxu0 %v511_v26 }
  0x1d   :  { %476 = vmatpush3.bf16.msra.mxu1 %v512_v27  ;;  %455 = vmatprep.subr.bf16.mxu0 %v513_v28 }
  0x1e   :  { %477 = vmatprep.subr.bf16.mxu1 %v514_v29 }
  0x20   :  { %456 = vmatpush3.bf16.msra.mxu0 %v515_v30 }
  0x21   :  { %478 = vmatpush3.bf16.msra.mxu1 %v516_v31 }
  0x23   :  { %329 = vmatmul.mubr.bf16.vlgmr.msra.gmra.mrb[0].mxu0 %v403_v34 }
  0x24   :  { %369 = vmatmul.mubr.bf16.vlgmr.msra.gmra.mrb[0].mxu1 %v405_v36 }
  0xf6   :  { %v457_v38 = vpop.f32.mrb[0].mxu0 }
  0xf7   :  { %v479_v39 = vpop.f32.mrb[0].mxu1  ;;  %v458_v40 = vpop.f32.mrb[1].mxu0 }
  0xf8   :  { %v480_v41 = vpop.f32.mrb[1].mxu1  ;;  %v459_v42 = vadd.f32 %v458_v40, %v457_v38  ;;  %v460_v44 = vpop.f32.mrb[2].mxu0 }
  0xf9   :  { %v481_v43 = vadd.f32 %v480_v41, %v479_v39  ;;  %v482_v45 = vpop.f32.mrb[2].mxu1  ;;  %v461_v47 = vpop.f32.mrb[3].mxu0 }
  0xfa   :  { %v483_v48 = vpop.f32.mrb[3].mxu1 }
  0xfb   :  { %v371_v49 = vadd.f32 %v481_v43, %v459_v42 }
  0xfd   :  { %v389_v51 = vmul.f32 %v439_v46, %v371_v49 }
  0xff   :  { %v397_v52 = vadd.f32 %v440_v50, %v389_v51 }
 0x101   :  { %398 = vst [vmem:[%s661_s4] sm:$0xff] %v397_v52 }

</bundles_post_ra>
